<compile_context>
chip_gen: v7x
topology: tpu7x:2x2x1
jax: 0.10.0
libtpu: 0.0.40
codegen_flags: <defaults>
</compile_context>

<pallas_src>
import math

import jax
import jax.numpy as jnp
from jax import lax
from jax.experimental import pallas as pl
from jax.experimental.pallas import tpu as pltpu

EPS = 1e-8
LANE = 128

# Small demo configuration consistent with the module.
DIM = 16              # N = B = H (channels)
DIM_OUT = 16          # mask_conv output channels
LENGTH = 64           # input sequence length K
BATCH = 2
STRIDES = (2, 2)      # strides_list -> R = 2 repeats
P = 7                 # TCN kernel size
DILATIONS = (1, 3, 9)  # 3 ** x for x in range(X = 3)


def _round_up(n, m=LANE):
    return ((n + m - 1) // m) * m


def _downsample_geometry(l_in, stride):
    ksize = 2 * stride
    pad = math.ceil(stride / 2)
    l_out = (l_in + 2 * pad - ksize) // stride + 1
    return ksize, pad, l_out


def _sequence_lengths(length, strides):
    lens = [length]
    for s in strides:
        lens.append(_downsample_geometry(lens[-1], s)[2])
    return lens


# ---------------------------------------------------------------------------
# Pallas kernel
# ---------------------------------------------------------------------------
def _build_kernel(batch, dim, length, strides, dilations):
    n_rep = len(strides)
    n_blk = len(dilations)
    seq_lens = _sequence_lengths(length, strides)
    bl = [batch * s for s in seq_lens]                 # true folded widths
    blp = [_round_up(bl[r]) for r in range(n_rep)]     # lane-padded widths per repeat

    def kernel(x_ref, w_bn_ref, b_bn_ref, w_in_ref, w_dw_ref, w_pw_ref,
               gln_g_ref, gln_b_ref, *rest):
        rep_refs = [rest[6 * r:6 * r + 6] for r in range(n_rep)]
        prelu_ref = rest[6 * n_rep]        # SMEM scalar table
        o_ref = rest[6 * n_rep + 1]        # output

        def prelu(v, a):
            return jnp.where(v >= 0.0, v, a * v)

        x = x_ref[...]                                        # (C, BLp0), f32

        # --- cLN: channel mean/var per position via MXU; affine folded into w_bn ---
        ones_c = jnp.full((1, dim), 1.0 / dim, dtype=jnp.float32)
        mean = jnp.dot(ones_c, x, preferred_element_type=jnp.float32)      # (1, BLp)
        dev = x - mean
        var = jnp.dot(ones_c, dev * dev, preferred_element_type=jnp.float32)
        xn = dev * lax.rsqrt(var + EPS)
        # bottleneck 1x1 (cLN gamma folded into columns, beta folded into bias)
        x = jnp.dot(w_bn_ref[...], xn, preferred_element_type=jnp.float32) + b_bn_ref[...]

        for r in range(n_rep):
            dw_mask_ref, oh_ref, oht_ref, w_ds_ref, b_ds_ref, sel_ref = rep_refs[r]
            seq = seq_lens[r]
            width = blp[r]
            inv_cnt = 1.0 / float(dim * seq)
            onehot = oh_ref[...]       # (width, 8)  0/1 segment membership (padded cols 0)
            onehot_t = oht_ref[...]    # (8, width)

            def gln(v, gamma, beta):
                # Global LayerNorm per batch segment, statistics on the MXU (two-pass).
                seg_sum = jnp.dot(v, onehot, preferred_element_type=jnp.float32)    # (C, 8)
                mu_b = jnp.sum(seg_sum, axis=0, keepdims=True) * inv_cnt            # (1, 8)
                mu = jnp.dot(mu_b, onehot_t, preferred_element_type=jnp.float32)    # (1, width)
                dv = v - mu
                seg_sq = jnp.dot(dv * dv, onehot, preferred_element_type=jnp.float32)
                var_b = jnp.sum(seg_sq, axis=0, keepdims=True) * inv_cnt
                vr = jnp.dot(var_b, onehot_t, preferred_element_type=jnp.float32)
                return gamma * dv * lax.rsqrt(vr + EPS) + beta

            # ---- X TemporalBlocks (dilations 1, 3, 9) ---------------------------
            z = x
            for bi in range(n_blk):
                t = r * n_blk + bi
                d = dilations[bi]
                pad = (P - 1) * d // 2
                h = jnp.dot(w_in_ref[t], z, preferred_element_type=jnp.float32)
                h = prelu(h, prelu_ref[2 * t])
                h = gln(h, gln_g_ref[2 * t], gln_b_ref[2 * t])
                # Depthwise dilated conv (groups == channels): P shifted FMAs with
                # host-precomputed 0/1 tap masks (handles conv padding + lane padding).
                acc = None
                for k in range(P):
                    off = k * d - pad
                    m = dw_mask_ref[bi, k]                        # (1, width)
                    src = h if off == 0 else pltpu.roll(h, (-off) % width, axis=1)
                    term = w_dw_ref[t, k] * (src * m)
                    acc = term if acc is None else acc + term
                h = prelu(acc, prelu_ref[2 * t + 1])
                h = gln(h, gln_g_ref[2 * t + 1], gln_b_ref[2 * t + 1])
                h = jnp.dot(w_pw_ref[t], h, preferred_element_type=jnp.float32)
                z = z + h                       # TemporalBlock residual
            x = x + z                           # outer residual around the stack

            # ---- weight-norm strided downsample conv: im2col + one stacked matmul --
            ksize = 2 * strides[r]
            gath = jnp.concatenate(
                [jnp.dot(x, sel_ref[k], preferred_element_type=jnp.float32)
                 for k in range(ksize)], axis=0)                  # (ksize*C, BL_out)
            y = jnp.dot(w_ds_ref[...], gath,
                        preferred_element_type=jnp.float32) + b_ds_ref[...]
            if r + 1 < n_rep:
                padw = blp[r + 1] - bl[r + 1]
                if padw > 0:
                    # zero-pad lanes back to 128 so the next repeat stays lane-dense
                    y = jnp.concatenate(
                        [y, jnp.zeros((dim, padw), jnp.float32)], axis=1)
                x = y
            else:
                # mask conv is folded into the last downsample weights (host-side)
                o_ref[...] = y.astype(o_ref.dtype)

    return kernel, seq_lens, bl, blp


# ---------------------------------------------------------------------------
# Wrapper
# ---------------------------------------------------------------------------
def denoising_block_tcn(x, kernel_args, *, dim_out=DIM_OUT,
                        strides=STRIDES, dilations=DILATIONS):
    bsz, chan, length = x.shape
    kernel, seq_lens, bl, blp = _build_kernel(bsz, chan, length, strides, dilations)
    l_final = seq_lens[-1]

    # Fold batch into lanes: (B, C, L) -> (C, B*L); zero-pad lanes to a multiple of 128.
    x2d = jnp.transpose(x, (1, 0, 2)).reshape(chan, bsz * length)
    if blp[0] > bl[0]:
        x2d = jnp.pad(x2d, ((0, 0), (0, blp[0] - bl[0])))

    num_inputs = 1 + len(kernel_args)
    in_specs = ([pl.BlockSpec(memory_space=pltpu.MemorySpace.VMEM)]
                * (num_inputs - 1)
                + [pl.BlockSpec(memory_space=pltpu.MemorySpace.SMEM)])

    # Rough cost hint so XLA can schedule around this tiny custom call.
    flops = 2 * chan * chan * blp[0]
    for r in range(len(strides)):
        w_in = blp[r]
        w_out = bsz * seq_lens[r + 1]
        flops += len(dilations) * (4 * chan * chan * w_in
                                   + 2 * P * chan * w_in + 8 * chan * w_in)
        flops += 2 * strides[r] * (2 * chan * w_in * w_out) \
            + 2 * chan * (2 * strides[r] * chan) * w_out
    bytes_accessed = sum(int(a.size) * 4 for a in (x2d, *kernel_args))
    bytes_accessed += dim_out * bsz * l_final * 4

    out2d = pl.pallas_call(
        kernel,
        out_shape=jax.ShapeDtypeStruct((dim_out, bsz * l_final), jnp.float32),
        in_specs=in_specs,
        out_specs=pl.BlockSpec(memory_space=pltpu.MemorySpace.VMEM),
        cost_estimate=pl.CostEstimate(flops=int(flops), transcendentals=128,
                                      bytes_accessed=int(bytes_accessed)),
    )(x2d, *kernel_args)

    # Unfold lanes back to (B, C_out, L_final).
    return jnp.transpose(out2d.reshape(dim_out, bsz, l_final), (1, 0, 2))


# ---------------------------------------------------------------------------
# Host-side lookup tables (segment one-hots, depthwise masks, gather matrices)
# ---------------------------------------------------------------------------
def _make_onehot(seq, batch, blp):
    lane = jnp.arange(blp)
    bpad = max(8, batch)           # pad batch axis to a sublane tile (zero columns)
    cols = []
    for b in range(bpad):
        if b < batch:
            cols.append(((lane >= b * seq) & (lane < (b + 1) * seq)).astype(jnp.float32))
        else:
            cols.append(jnp.zeros((blp,), jnp.float32))
    onehot = jnp.stack(cols, axis=1)                 # (blp, 8)
    return onehot, jnp.transpose(onehot)             # and (8, blp)


def _make_dw_masks(seq, batch, blp, dilations, ksize):
    lane = jnp.arange(blp)
    valid_lane = lane < batch * seq
    l_loc = lane % seq
    blocks = []
    for d in dilations:
        pad = (ksize - 1) * d // 2
        taps = []
        for k in range(ksize):
            off = k * d - pad
            src = l_loc + off
            m = valid_lane & (src >= 0) & (src < seq)
            taps.append(m.astype(jnp.float32)[None, :])   # (1, blp)
        blocks.append(jnp.stack(taps))                    # (P, 1, blp)
    return jnp.stack(blocks)                              # (n_blk, P, 1, blp)


def _make_selection(l_in, l_out, stride, ksize, pad, batch, rows_padded):
    """sel[k]: (rows_padded, B*l_out) 0/1 gather matrix so that (x @ sel[k])[:, b*l_out+j]
    equals x[:, b*l_in + (j*stride - pad + k)] (zero when padding / padded lane)."""
    j = jnp.arange(l_out)
    i = jnp.arange(l_in)
    eye_b = jnp.eye(batch, dtype=jnp.float32)
    sels = []
    for k in range(ksize):
        src = j * stride - pad + k
        valid = (src >= 0) & (src < l_in)
        one_hot = ((i[:, None] == src[None, :]) & valid[None, :]).astype(jnp.float32)
        sel = jnp.kron(eye_b, one_hot)                    # block-diagonal over batch
        extra = rows_padded - batch * l_in
        if extra > 0:
            sel = jnp.concatenate(
                [sel, jnp.zeros((extra, sel.shape[1]), jnp.float32)], axis=0)
        sels.append(sel)
    return jnp.stack(sels)


# ---------------------------------------------------------------------------
# Parameter construction (deterministic, plain JAX) + host-side folds
# ---------------------------------------------------------------------------
def init_params(key, *, dim=DIM, dim_out=DIM_OUT, length=LENGTH, batch=BATCH,
                strides=STRIDES, dilations=DILATIONS):
    n_rep = len(strides)
    n_blk = len(dilations)
    nb = n_rep * n_blk
    keys = iter(jax.random.split(key, 64 + 16 * nb + 8 * n_rep))

    def uni(shape, bound):
        return jax.random.uniform(next(keys), shape, jnp.float32, -bound, bound)

    def pert(shape, base):
        return base + 0.1 * jax.random.normal(next(keys), shape, jnp.float32)

    # cLN (PyTorch inits gamma=1, beta=0; perturbed so the math is exercised).
    cln_g, cln_b = pert((dim, 1), 1.0), pert((dim, 1), 0.0)

    # Bottleneck 1x1, bias=False.
    w_bn = uni((dim, dim), 1.0 / math.sqrt(dim))

    w_in, w_dw, w_pw, gln_g, gln_b, prelu = [], [], [], [], [], []
    for _ in range(nb):
        w_in.append(uni((dim, dim), 1.0 / math.sqrt(dim)))
        prelu.append(jax.random.uniform(next(keys), (), jnp.float32, 0.05, 0.45))
        gln_g.append(pert((dim, 1), 1.0))
        gln_b.append(pert((dim, 1), 0.0))
        w_dw.append(uni((dim, P), 1.0 / math.sqrt(P)))      # depthwise: fan_in = P
        prelu.append(jax.random.uniform(next(keys), (), jnp.float32, 0.05, 0.45))
        gln_g.append(pert((dim, 1), 1.0))
        gln_b.append(pert((dim, 1), 0.0))
        w_pw.append(uni((dim, dim), 1.0 / math.sqrt(dim)))

    # Weight-norm strided downsample convs (w = g * v / ||v||).
    seq_lens = _sequence_lengths(length, strides)
    ds_raw = []
    for r, s in enumerate(strides):
        ksize, pad, l_out = _downsample_geometry(seq_lens[r], s)
        bound = 1.0 / math.sqrt(dim * ksize)
        v = uni((dim, dim, ksize), bound)
        g = jax.random.uniform(next(keys), (dim, 1, 1), jnp.float32, 0.5, 1.5)
        w = g * v / jnp.sqrt(jnp.sum(v * v, axis=(1, 2), keepdims=True))
        b = uni((dim,), bound)
        ds_raw.append(dict(w=w, b=b, stride=s, pad=pad, ksize=ksize,
                           l_in=seq_lens[r], l_out=l_out))

    # Weight-norm 1x1 mask conv, bias=False.
    bound = 1.0 / math.sqrt(dim)
    vm = uni((dim_out, dim, 1), bound)
    gm = jax.random.uniform(next(keys), (dim_out, 1, 1), jnp.float32, 0.5, 1.5)
    wm = gm * vm / jnp.sqrt(jnp.sum(vm * vm, axis=(1, 2), keepdims=True))
    wm2d = wm[:, :, 0]

    # ----- host-side folds + lookup tables for the kernel -----
    w_bn_f = w_bn * cln_g[:, 0][None, :]     # fold cLN gamma into bottleneck columns
    b_bn = w_bn @ cln_b                      # fold cLN beta into a bias (C, 1)

    rep_args = []
    for r, ds in enumerate(ds_raw):
        seq = ds['l_in']
        bl_in = batch * seq
        blp_in = _round_up(bl_in)
        ksize = ds['ksize']
        dw_mask = _make_dw_masks(seq, batch, blp_in, dilations, P)
        onehot, onehot_t = _make_onehot(seq, batch, blp_in)
        w_stack = jnp.concatenate([ds['w'][:, :, k] for k in range(ksize)], axis=1)
        b_col = ds['b'][:, None]
        if r == n_rep - 1:                   # fold mask conv into last downsample
            w_stack = wm2d @ w_stack
            b_col = wm2d @ b_col
        sel = _make_selection(seq, ds['l_out'], ds['stride'], ksize, ds['pad'],
                              batch, blp_in)
        rep_args += [dw_mask, onehot, onehot_t, w_stack, b_col, sel]

    kernel_args = (
        w_bn_f, b_bn,
        jnp.stack(w_in),                                          # (nb, C, C)
        jnp.stack([jnp.transpose(w)[:, :, None] for w in w_dw]),  # (nb, P, C, 1)
        jnp.stack(w_pw),                                          # (nb, C, C)
        jnp.stack(gln_g), jnp.stack(gln_b),                       # (2*nb, C, 1)
    ) + tuple(rep_args) + (jnp.stack(prelu),)                     # PReLU last (SMEM)

    ref_params = dict(
        cln_g=cln_g[:, 0], cln_b=cln_b[:, 0], w_bn=w_bn[:, :, None],
        w_in=w_in, w_dw=w_dw, w_pw=w_pw,
        gln_g=[g_[:, 0] for g_ in gln_g], gln_b=[b_[:, 0] for b_ in gln_b],
        prelu=prelu, downsample=ds_raw, wm=wm)
    return kernel_args, ref_params


# ---------------------------------------------------------------------------
# Pure-JAX reference (PyTorch semantics) for verification
# ---------------------------------------------------------------------------
def reference_forward(x, rp, *, strides=STRIDES, dilations=DILATIONS):
    high = lax.Precision.HIGHEST

    def conv(v, w, b=None, stride=1, dilation=1, pad=0, groups=1):
        y = lax.conv_general_dilated(
            v, w, window_strides=(stride,), padding=[(pad, pad)],
            rhs_dilation=(dilation,), feature_group_count=groups,
            dimension_numbers=('NCH', 'OIH', 'NCH'), precision=high)
        if b is not None:
            y = y + b.reshape(1, -1, 1)
        return y

    def cln(y, g, b):
        mean = jnp.mean(y, axis=1, keepdims=True)
        var = jnp.mean((y - mean) ** 2, axis=1, keepdims=True)
        return g.reshape(1, -1, 1) * (y - mean) / jnp.sqrt(var + EPS) + b.reshape(1, -1, 1)

    def gln(y, g, b):
        mean = jnp.mean(y, axis=(1, 2), keepdims=True)
        var = jnp.mean((y - mean) ** 2, axis=(1, 2), keepdims=True)
        return g.reshape(1, -1, 1) * (y - mean) / jnp.sqrt(var + EPS) + b.reshape(1, -1, 1)

    def prelu(y, a):
        return jnp.where(y >= 0, y, a * y)

    n_blk = len(dilations)
    h = cln(x, rp['cln_g'], rp['cln_b'])
    h = conv(h, rp['w_bn'])
    for r in range(len(strides)):
        z = h
        for bi in range(n_blk):
            t = r * n_blk + bi
            d = dilations[bi]
            u = conv(z, rp['w_in'][t][:, :, None])
            u = prelu(u, rp['prelu'][2 * t])
            u = gln(u, rp['gln_g'][2 * t], rp['gln_b'][2 * t])
            u = conv(u, rp['w_dw'][t][:, None, :], dilation=d,
                     pad=(P - 1) * d // 2, groups=u.shape[1])
            u = prelu(u, rp['prelu'][2 * t + 1])
            u = gln(u, rp['gln_g'][2 * t + 1], rp['gln_b'][2 * t + 1])
            u = conv(u, rp['w_pw'][t][:, :, None])
            z = z + u
        h = h + z
        dsp = rp['downsample'][r]
        h = conv(h, dsp['w'], dsp['b'], stride=dsp['stride'], pad=dsp['pad'])
    return conv(h, rp['wm'])


if __name__ == "__main__":
    root = jax.random.PRNGKey(0)
    kx, kp = jax.random.split(root)
    x = jax.random.normal(kx, (BATCH, DIM, LENGTH), jnp.float32)

    kernel_args, ref_params = init_params(kp)

    out = denoising_block_tcn(x, kernel_args)
    out = jax.block_until_ready(out)

    l_final = _sequence_lengths(LENGTH, STRIDES)[-1]
    assert out.shape == (BATCH, DIM_OUT, l_final), out.shape

    ref = reference_forward(x, ref_params)
    max_err = float(jnp.max(jnp.abs(out - ref)))
    if not bool(jnp.allclose(out, ref, atol=2e-3, rtol=2e-3)):
        raise AssertionError(
            f"Pallas output mismatch vs reference, max abs err={max_err}")
    print("KERNEL_OK")
</pallas_src>

<mosaic_0001>
module attributes {stable_mosaic.version = 11 : i64} {
  func.func @kernel(%arg0: memref<16x128xf32, #tpu.memory_space<vmem>>, %arg1: memref<16x16xf32, #tpu.memory_space<vmem>>, %arg2: memref<16x1xf32, #tpu.memory_space<vmem>>, %arg3: memref<6x16x16xf32, #tpu.memory_space<vmem>>, %arg4: memref<6x7x16x1xf32, #tpu.memory_space<vmem>>, %arg5: memref<6x16x16xf32, #tpu.memory_space<vmem>>, %arg6: memref<12x16x1xf32, #tpu.memory_space<vmem>>, %arg7: memref<12x16x1xf32, #tpu.memory_space<vmem>>, %arg8: memref<3x7x1x128xf32, #tpu.memory_space<vmem>>, %arg9: memref<128x8xf32, #tpu.memory_space<vmem>>, %arg10: memref<8x128xf32, #tpu.memory_space<vmem>>, %arg11: memref<16x64xf32, #tpu.memory_space<vmem>>, %arg12: memref<16x1xf32, #tpu.memory_space<vmem>>, %arg13: memref<4x128x64xf32, #tpu.memory_space<vmem>>, %arg14: memref<3x7x1x128xf32, #tpu.memory_space<vmem>>, %arg15: memref<128x8xf32, #tpu.memory_space<vmem>>, %arg16: memref<8x128xf32, #tpu.memory_space<vmem>>, %arg17: memref<16x64xf32, #tpu.memory_space<vmem>>, %arg18: memref<16x1xf32, #tpu.memory_space<vmem>>, %arg19: memref<4x128x32xf32, #tpu.memory_space<vmem>>, %arg20: memref<12xf32, #tpu.memory_space<smem>>, %arg21: memref<16x32xf32, #tpu.memory_space<vmem>>) attributes {dimension_semantics = [], scalar_prefetch = 0 : i64, scratch_operands = 0 : i64, tpu.core_type = #tpu.core_type<tc>} {
    %c0 = arith.constant 0 : index
    %c0_0 = arith.constant 0 : index
    %0 = vector.load %arg0[%c0, %c0_0] : memref<16x128xf32, #tpu.memory_space<vmem>>, vector<16x128xf32>
    %cst = arith.constant 6.250000e-02 : f32
    %1 = vector.broadcast %cst : f32 to vector<1x16xf32>
    %cst_1 = arith.constant dense<0.000000e+00> : vector<1x128xf32>
    %2 = tpu.matmul %1, %0, %cst_1 {dimension_numbers = #tpu.dot_dimension_numbers<[1], [0], [0], [1], [0, 0, 1, 1], [], []>} : vector<1x16xf32>, vector<16x128xf32>, vector<1x128xf32> -> vector<1x128xf32>
    %3 = vector.broadcast %2 : vector<1x128xf32> to vector<16x128xf32>
    %4 = arith.subf %0, %3 : vector<16x128xf32>
    %5 = arith.mulf %4, %4 : vector<16x128xf32>
    %cst_2 = arith.constant dense<0.000000e+00> : vector<1x128xf32>
    %6 = tpu.matmul %1, %5, %cst_2 {dimension_numbers = #tpu.dot_dimension_numbers<[1], [0], [0], [1], [0, 0, 1, 1], [], []>} : vector<1x16xf32>, vector<16x128xf32>, vector<1x128xf32> -> vector<1x128xf32>
    %cst_3 = arith.constant 9.99999993E-9 : f32
    %7 = vector.broadcast %cst_3 : f32 to vector<1x128xf32>
    %8 = arith.addf %6, %7 : vector<1x128xf32>
    %9 = math.rsqrt %8 : vector<1x128xf32>
    %10 = vector.broadcast %9 : vector<1x128xf32> to vector<16x128xf32>
    %11 = arith.mulf %4, %10 : vector<16x128xf32>
    %c0_4 = arith.constant 0 : index
    %c0_5 = arith.constant 0 : index
    %12 = vector.load %arg1[%c0_4, %c0_5] : memref<16x16xf32, #tpu.memory_space<vmem>>, vector<16x16xf32>
    %cst_6 = arith.constant dense<0.000000e+00> : vector<16x128xf32>
    %13 = tpu.matmul %12, %11, %cst_6 {dimension_numbers = #tpu.dot_dimension_numbers<[1], [0], [0], [1], [0, 0, 1, 1], [], []>} : vector<16x16xf32>, vector<16x128xf32>, vector<16x128xf32> -> vector<16x128xf32>
    %c0_7 = arith.constant 0 : index
    %c0_8 = arith.constant 0 : index
    %14 = vector.load %arg2[%c0_7, %c0_8] : memref<16x1xf32, #tpu.memory_space<vmem>>, vector<16x1xf32>
    %15 = vector.broadcast %14 : vector<16x1xf32> to vector<16x128xf32>
    %16 = arith.addf %13, %15 : vector<16x128xf32>
    %c0_9 = arith.constant 0 : index
    %c0_10 = arith.constant 0 : index
    %17 = vector.load %arg9[%c0_9, %c0_10] : memref<128x8xf32, #tpu.memory_space<vmem>>, vector<128x8xf32>
    %c0_11 = arith.constant 0 : index
    %c0_12 = arith.constant 0 : index
    %18 = vector.load %arg10[%c0_11, %c0_12] : memref<8x128xf32, #tpu.memory_space<vmem>>, vector<8x128xf32>
    %c0_13 = arith.constant 0 : index
    %c0_14 = arith.constant 0 : index
    %c0_15 = arith.constant 0 : index
    %19 = vector.load %arg3[%c0_13, %c0_14, %c0_15] : memref<6x16x16xf32, #tpu.memory_space<vmem>>, vector<1x16x16xf32>
    %20 = vector.shape_cast %19 : vector<1x16x16xf32> to vector<16x16xf32>
    %cst_16 = arith.constant dense<0.000000e+00> : vector<16x128xf32>
    %21 = tpu.matmul %20, %16, %cst_16 {dimension_numbers = #tpu.dot_dimension_numbers<[1], [0], [0], [1], [0, 0, 1, 1], [], []>} : vector<16x16xf32>, vector<16x128xf32>, vector<16x128xf32> -> vector<16x128xf32>
    %c0_17 = arith.constant 0 : index
    %22 = memref.load %arg20[%c0_17] : memref<12xf32, #tpu.memory_space<smem>>
    %cst_18 = arith.constant 0.000000e+00 : f32
    %23 = vector.broadcast %cst_18 : f32 to vector<16x128xf32>
    %24 = arith.cmpf oge, %21, %23 : vector<16x128xf32>
    %25 = vector.broadcast %22 : f32 to vector<16x128xf32>
    %26 = arith.mulf %25, %21 : vector<16x128xf32>
    %27 = arith.select %24, %21, %26 : vector<16x128xi1>, vector<16x128xf32>
    %c0_19 = arith.constant 0 : index
    %c0_20 = arith.constant 0 : index
    %c0_21 = arith.constant 0 : index
    %28 = vector.load %arg6[%c0_19, %c0_20, %c0_21] : memref<12x16x1xf32, #tpu.memory_space<vmem>>, vector<1x16x1xf32>
    %29 = vector.shape_cast %28 : vector<1x16x1xf32> to vector<16x1xf32>
    %c0_22 = arith.constant 0 : index
    %c0_23 = arith.constant 0 : index
    %c0_24 = arith.constant 0 : index
    %30 = vector.load %arg7[%c0_22, %c0_23, %c0_24] : memref<12x16x1xf32, #tpu.memory_space<vmem>>, vector<1x16x1xf32>
    %31 = vector.shape_cast %30 : vector<1x16x1xf32> to vector<16x1xf32>
    %cst_25 = arith.constant dense<0.000000e+00> : vector<16x8xf32>
    %32 = tpu.matmul %27, %17, %cst_25 {dimension_numbers = #tpu.dot_dimension_numbers<[1], [0], [0], [1], [0, 0, 1, 1], [], []>} : vector<16x128xf32>, vector<128x8xf32>, vector<16x8xf32> -> vector<16x8xf32>
    %cst_26 = arith.constant dense<0.000000e+00> : vector<8xf32>
    %33 = vector.multi_reduction <add>, %32, %cst_26 [0] : vector<16x8xf32> to vector<8xf32>
    %34 = vector.shape_cast %33 : vector<8xf32> to vector<1x8xf32>
    %cst_27 = arith.constant 9.765625E-4 : f32
    %35 = vector.broadcast %cst_27 : f32 to vector<1x8xf32>
    %36 = arith.mulf %34, %35 : vector<1x8xf32>
    %cst_28 = arith.constant dense<0.000000e+00> : vector<1x128xf32>
    %37 = tpu.matmul %36, %18, %cst_28 {dimension_numbers = #tpu.dot_dimension_numbers<[1], [0], [0], [1], [0, 0, 1, 1], [], []>} : vector<1x8xf32>, vector<8x128xf32>, vector<1x128xf32> -> vector<1x128xf32>
    %38 = vector.broadcast %37 : vector<1x128xf32> to vector<16x128xf32>
    %39 = arith.subf %27, %38 : vector<16x128xf32>
    %40 = arith.mulf %39, %39 : vector<16x128xf32>
    %cst_29 = arith.constant dense<0.000000e+00> : vector<16x8xf32>
    %41 = tpu.matmul %40, %17, %cst_29 {dimension_numbers = #tpu.dot_dimension_numbers<[1], [0], [0], [1], [0, 0, 1, 1], [], []>} : vector<16x128xf32>, vector<128x8xf32>, vector<16x8xf32> -> vector<16x8xf32>
    %cst_30 = arith.constant dense<0.000000e+00> : vector<8xf32>
    %42 = vector.multi_reduction <add>, %41, %cst_30 [0] : vector<16x8xf32> to vector<8xf32>
    %43 = vector.shape_cast %42 : vector<8xf32> to vector<1x8xf32>
    %cst_31 = arith.constant 9.765625E-4 : f32
    %44 = vector.broadcast %cst_31 : f32 to vector<1x8xf32>
    %45 = arith.mulf %43, %44 : vector<1x8xf32>
    %cst_32 = arith.constant dense<0.000000e+00> : vector<1x128xf32>
    %46 = tpu.matmul %45, %18, %cst_32 {dimension_numbers = #tpu.dot_dimension_numbers<[1], [0], [0], [1], [0, 0, 1, 1], [], []>} : vector<1x8xf32>, vector<8x128xf32>, vector<1x128xf32> -> vector<1x128xf32>
    %47 = vector.broadcast %29 : vector<16x1xf32> to vector<16x128xf32>
    %48 = arith.mulf %47, %39 : vector<16x128xf32>
    %cst_33 = arith.constant 9.99999993E-9 : f32
    %49 = vector.broadcast %cst_33 : f32 to vector<1x128xf32>
    %50 = arith.addf %46, %49 : vector<1x128xf32>
    %51 = math.rsqrt %50 : vector<1x128xf32>
    %52 = vector.broadcast %51 : vector<1x128xf32> to vector<16x128xf32>
    %53 = arith.mulf %48, %52 : vector<16x128xf32>
    %54 = vector.broadcast %31 : vector<16x1xf32> to vector<16x128xf32>
    %55 = arith.addf %53, %54 : vector<16x128xf32>
    %c0_34 = arith.constant 0 : index
    %c0_35 = arith.constant 0 : index
    %c0_36 = arith.constant 0 : index
    %c0_37 = arith.constant 0 : index
    %56 = vector.load %arg8[%c0_34, %c0_35, %c0_36, %c0_37] : memref<3x7x1x128xf32, #tpu.memory_space<vmem>>, vector<1x1x1x128xf32>
    %57 = vector.shape_cast %56 : vector<1x1x1x128xf32> to vector<1x128xf32>
    %c3_i32 = arith.constant 3 : i32
    %58 = tpu.dynamic_rotate %55 by %c3_i32 dim 1 : vector<16x128xf32>, i32 -> vector<16x128xf32>
    %c0_38 = arith.constant 0 : index
    %c0_39 = arith.constant 0 : index
    %c0_40 = arith.constant 0 : index
    %c0_41 = arith.constant 0 : index
    %59 = vector.load %arg4[%c0_38, %c0_39, %c0_40, %c0_41] : memref<6x7x16x1xf32, #tpu.memory_space<vmem>>, vector<1x1x16x1xf32>
    %60 = vector.shape_cast %59 : vector<1x1x16x1xf32> to vector<16x1xf32>
    %61 = vector.broadcast %57 : vector<1x128xf32> to vector<16x128xf32>
    %62 = arith.mulf %58, %61 : vector<16x128xf32>
    %63 = vector.broadcast %60 : vector<16x1xf32> to vector<16x128xf32>
    %64 = arith.mulf %63, %62 : vector<16x128xf32>
    %c0_42 = arith.constant 0 : index
    %c1 = arith.constant 1 : index
    %c0_43 = arith.constant 0 : index
    %c0_44 = arith.constant 0 : index
    %65 = vector.load %arg8[%c0_42, %c1, %c0_43, %c0_44] : memref<3x7x1x128xf32, #tpu.memory_space<vmem>>, vector<1x1x1x128xf32>
    %66 = vector.shape_cast %65 : vector<1x1x1x128xf32> to vector<1x128xf32>
    %c2_i32 = arith.constant 2 : i32
    %67 = tpu.dynamic_rotate %55 by %c2_i32 dim 1 : vector<16x128xf32>, i32 -> vector<16x128xf32>
    %c0_45 = arith.constant 0 : index
    %c1_46 = arith.constant 1 : index
    %c0_47 = arith.constant 0 : index
    %c0_48 = arith.constant 0 : index
    %68 = vector.load %arg4[%c0_45, %c1_46, %c0_47, %c0_48] : memref<6x7x16x1xf32, #tpu.memory_space<vmem>>, vector<1x1x16x1xf32>
    %69 = vector.shape_cast %68 : vector<1x1x16x1xf32> to vector<16x1xf32>
    %70 = vector.broadcast %66 : vector<1x128xf32> to vector<16x128xf32>
    %71 = arith.mulf %67, %70 : vector<16x128xf32>
    %72 = vector.broadcast %69 : vector<16x1xf32> to vector<16x128xf32>
    %73 = arith.mulf %72, %71 : vector<16x128xf32>
    %74 = arith.addf %64, %73 : vector<16x128xf32>
    %c0_49 = arith.constant 0 : index
    %c2 = arith.constant 2 : index
    %c0_50 = arith.constant 0 : index
    %c0_51 = arith.constant 0 : index
    %75 = vector.load %arg8[%c0_49, %c2, %c0_50, %c0_51] : memref<3x7x1x128xf32, #tpu.memory_space<vmem>>, vector<1x1x1x128xf32>
    %76 = vector.shape_cast %75 : vector<1x1x1x128xf32> to vector<1x128xf32>
    %c1_i32 = arith.constant 1 : i32
    %77 = tpu.dynamic_rotate %55 by %c1_i32 dim 1 : vector<16x128xf32>, i32 -> vector<16x128xf32>
    %c0_52 = arith.constant 0 : index
    %c2_53 = arith.constant 2 : index
    %c0_54 = arith.constant 0 : index
    %c0_55 = arith.constant 0 : index
    %78 = vector.load %arg4[%c0_52, %c2_53, %c0_54, %c0_55] : memref<6x7x16x1xf32, #tpu.memory_space<vmem>>, vector<1x1x16x1xf32>
    %79 = vector.shape_cast %78 : vector<1x1x16x1xf32> to vector<16x1xf32>
    %80 = vector.broadcast %76 : vector<1x128xf32> to vector<16x128xf32>
    %81 = arith.mulf %77, %80 : vector<16x128xf32>
    %82 = vector.broadcast %79 : vector<16x1xf32> to vector<16x128xf32>
    %83 = arith.mulf %82, %81 : vector<16x128xf32>
    %84 = arith.addf %74, %83 : vector<16x128xf32>
    %c0_56 = arith.constant 0 : index
    %c3 = arith.constant 3 : index
    %c0_57 = arith.constant 0 : index
    %c0_58 = arith.constant 0 : index
    %85 = vector.load %arg8[%c0_56, %c3, %c0_57, %c0_58] : memref<3x7x1x128xf32, #tpu.memory_space<vmem>>, vector<1x1x1x128xf32>
    %86 = vector.shape_cast %85 : vector<1x1x1x128xf32> to vector<1x128xf32>
    %c0_59 = arith.constant 0 : index
    %c3_60 = arith.constant 3 : index
    %c0_61 = arith.constant 0 : index
    %c0_62 = arith.constant 0 : index
    %87 = vector.load %arg4[%c0_59, %c3_60, %c0_61, %c0_62] : memref<6x7x16x1xf32, #tpu.memory_space<vmem>>, vector<1x1x16x1xf32>
    %88 = vector.shape_cast %87 : vector<1x1x16x1xf32> to vector<16x1xf32>
    %89 = vector.broadcast %86 : vector<1x128xf32> to vector<16x128xf32>
    %90 = arith.mulf %55, %89 : vector<16x128xf32>
    %91 = vector.broadcast %88 : vector<16x1xf32> to vector<16x128xf32>
    %92 = arith.mulf %91, %90 : vector<16x128xf32>
    %93 = arith.addf %84, %92 : vector<16x128xf32>
    %c0_63 = arith.constant 0 : index
    %c4 = arith.constant 4 : index
    %c0_64 = arith.constant 0 : index
    %c0_65 = arith.constant 0 : index
    %94 = vector.load %arg8[%c0_63, %c4, %c0_64, %c0_65] : memref<3x7x1x128xf32, #tpu.memory_space<vmem>>, vector<1x1x1x128xf32>
    %95 = vector.shape_cast %94 : vector<1x1x1x128xf32> to vector<1x128xf32>
    %c127_i32 = arith.constant 127 : i32
    %96 = tpu.dynamic_rotate %55 by %c127_i32 dim 1 : vector<16x128xf32>, i32 -> vector<16x128xf32>
    %c0_66 = arith.constant 0 : index
    %c4_67 = arith.constant 4 : index
    %c0_68 = arith.constant 0 : index
    %c0_69 = arith.constant 0 : index
    %97 = vector.load %arg4[%c0_66, %c4_67, %c0_68, %c0_69] : memref<6x7x16x1xf32, #tpu.memory_space<vmem>>, vector<1x1x16x1xf32>
    %98 = vector.shape_cast %97 : vector<1x1x16x1xf32> to vector<16x1xf32>
    %99 = vector.broadcast %95 : vector<1x128xf32> to vector<16x128xf32>
    %100 = arith.mulf %96, %99 : vector<16x128xf32>
    %101 = vector.broadcast %98 : vector<16x1xf32> to vector<16x128xf32>
    %102 = arith.mulf %101, %100 : vector<16x128xf32>
    %103 = arith.addf %93, %102 : vector<16x128xf32>
    %c0_70 = arith.constant 0 : index
    %c5 = arith.constant 5 : index
    %c0_71 = arith.constant 0 : index
    %c0_72 = arith.constant 0 : index
    %104 = vector.load %arg8[%c0_70, %c5, %c0_71, %c0_72] : memref<3x7x1x128xf32, #tpu.memory_space<vmem>>, vector<1x1x1x128xf32>
    %105 = vector.shape_cast %104 : vector<1x1x1x128xf32> to vector<1x128xf32>
    %c126_i32 = arith.constant 126 : i32
    %106 = tpu.dynamic_rotate %55 by %c126_i32 dim 1 : vector<16x128xf32>, i32 -> vector<16x128xf32>
    %c0_73 = arith.constant 0 : index
    %c5_74 = arith.constant 5 : index
    %c0_75 = arith.constant 0 : index
    %c0_76 = arith.constant 0 : index
    %107 = vector.load %arg4[%c0_73, %c5_74, %c0_75, %c0_76] : memref<6x7x16x1xf32, #tpu.memory_space<vmem>>, vector<1x1x16x1xf32>
    %108 = vector.shape_cast %107 : vector<1x1x16x1xf32> to vector<16x1xf32>
    %109 = vector.broadcast %105 : vector<1x128xf32> to vector<16x128xf32>
    %110 = arith.mulf %106, %109 : vector<16x128xf32>
    %111 = vector.broadcast %108 : vector<16x1xf32> to vector<16x128xf32>
    %112 = arith.mulf %111, %110 : vector<16x128xf32>
    %113 = arith.addf %103, %112 : vector<16x128xf32>
    %c0_77 = arith.constant 0 : index
    %c6 = arith.constant 6 : index
    %c0_78 = arith.constant 0 : index
    %c0_79 = arith.constant 0 : index
    %114 = vector.load %arg8[%c0_77, %c6, %c0_78, %c0_79] : memref<3x7x1x128xf32, #tpu.memory_space<vmem>>, vector<1x1x1x128xf32>
    %115 = vector.shape_cast %114 : vector<1x1x1x128xf32> to vector<1x128xf32>
    %c125_i32 = arith.constant 125 : i32
    %116 = tpu.dynamic_rotate %55 by %c125_i32 dim 1 : vector<16x128xf32>, i32 -> vector<16x128xf32>
    %c0_80 = arith.constant 0 : index
    %c6_81 = arith.constant 6 : index
    %c0_82 = arith.constant 0 : index
    %c0_83 = arith.constant 0 : index
    %117 = vector.load %arg4[%c0_80, %c6_81, %c0_82, %c0_83] : memref<6x7x16x1xf32, #tpu.memory_space<vmem>>, vector<1x1x16x1xf32>
    %118 = vector.shape_cast %117 : vector<1x1x16x1xf32> to vector<16x1xf32>
    %119 = vector.broadcast %115 : vector<1x128xf32> to vector<16x128xf32>
    %120 = arith.mulf %116, %119 : vector<16x128xf32>
    %121 = vector.broadcast %118 : vector<16x1xf32> to vector<16x128xf32>
    %122 = arith.mulf %121, %120 : vector<16x128xf32>
    %123 = arith.addf %113, %122 : vector<16x128xf32>
    %c1_84 = arith.constant 1 : index
    %124 = memref.load %arg20[%c1_84] : memref<12xf32, #tpu.memory_space<smem>>
    %cst_85 = arith.constant 0.000000e+00 : f32
    %125 = vector.broadcast %cst_85 : f32 to vector<16x128xf32>
    %126 = arith.cmpf oge, %123, %125 : vector<16x128xf32>
    %127 = vector.broadcast %124 : f32 to vector<16x128xf32>
    %128 = arith.mulf %127, %123 : vector<16x128xf32>
    %129 = arith.select %126, %123, %128 : vector<16x128xi1>, vector<16x128xf32>
    %c1_86 = arith.constant 1 : index
    %c0_87 = arith.constant 0 : index
    %c0_88 = arith.constant 0 : index
    %130 = vector.load %arg6[%c1_86, %c0_87, %c0_88] : memref<12x16x1xf32, #tpu.memory_space<vmem>>, vector<1x16x1xf32>
    %131 = vector.shape_cast %130 : vector<1x16x1xf32> to vector<16x1xf32>
    %c1_89 = arith.constant 1 : index
    %c0_90 = arith.constant 0 : index
    %c0_91 = arith.constant 0 : index
    %132 = vector.load %arg7[%c1_89, %c0_90, %c0_91] : memref<12x16x1xf32, #tpu.memory_space<vmem>>, vector<1x16x1xf32>
    %133 = vector.shape_cast %132 : vector<1x16x1xf32> to vector<16x1xf32>
    %cst_92 = arith.constant dense<0.000000e+00> : vector<16x8xf32>
    %134 = tpu.matmul %129, %17, %cst_92 {dimension_numbers = #tpu.dot_dimension_numbers<[1], [0], [0], [1], [0, 0, 1, 1], [], []>} : vector<16x128xf32>, vector<128x8xf32>, vector<16x8xf32> -> vector<16x8xf32>
    %cst_93 = arith.constant dense<0.000000e+00> : vector<8xf32>
    %135 = vector.multi_reduction <add>, %134, %cst_93 [0] : vector<16x8xf32> to vector<8xf32>
    %136 = vector.shape_cast %135 : vector<8xf32> to vector<1x8xf32>
    %cst_94 = arith.constant 9.765625E-4 : f32
    %137 = vector.broadcast %cst_94 : f32 to vector<1x8xf32>
    %138 = arith.mulf %136, %137 : vector<1x8xf32>
    %cst_95 = arith.constant dense<0.000000e+00> : vector<1x128xf32>
    %139 = tpu.matmul %138, %18, %cst_95 {dimension_numbers = #tpu.dot_dimension_numbers<[1], [0], [0], [1], [0, 0, 1, 1], [], []>} : vector<1x8xf32>, vector<8x128xf32>, vector<1x128xf32> -> vector<1x128xf32>
    %140 = vector.broadcast %139 : vector<1x128xf32> to vector<16x128xf32>
    %141 = arith.subf %129, %140 : vector<16x128xf32>
    %142 = arith.mulf %141, %141 : vector<16x128xf32>
    %cst_96 = arith.constant dense<0.000000e+00> : vector<16x8xf32>
    %143 = tpu.matmul %142, %17, %cst_96 {dimension_numbers = #tpu.dot_dimension_numbers<[1], [0], [0], [1], [0, 0, 1, 1], [], []>} : vector<16x128xf32>, vector<128x8xf32>, vector<16x8xf32> -> vector<16x8xf32>
    %cst_97 = arith.constant dense<0.000000e+00> : vector<8xf32>
    %144 = vector.multi_reduction <add>, %143, %cst_97 [0] : vector<16x8xf32> to vector<8xf32>
    %145 = vector.shape_cast %144 : vector<8xf32> to vector<1x8xf32>
    %cst_98 = arith.constant 9.765625E-4 : f32
    %146 = vector.broadcast %cst_98 : f32 to vector<1x8xf32>
    %147 = arith.mulf %145, %146 : vector<1x8xf32>
    %cst_99 = arith.constant dense<0.000000e+00> : vector<1x128xf32>
    %148 = tpu.matmul %147, %18, %cst_99 {dimension_numbers = #tpu.dot_dimension_numbers<[1], [0], [0], [1], [0, 0, 1, 1], [], []>} : vector<1x8xf32>, vector<8x128xf32>, vector<1x128xf32> -> vector<1x128xf32>
    %149 = vector.broadcast %131 : vector<16x1xf32> to vector<16x128xf32>
    %150 = arith.mulf %149, %141 : vector<16x128xf32>
    %cst_100 = arith.constant 9.99999993E-9 : f32
    %151 = vector.broadcast %cst_100 : f32 to vector<1x128xf32>
    %152 = arith.addf %148, %151 : vector<1x128xf32>
    %153 = math.rsqrt %152 : vector<1x128xf32>
    %154 = vector.broadcast %153 : vector<1x128xf32> to vector<16x128xf32>
    %155 = arith.mulf %150, %154 : vector<16x128xf32>
    %156 = vector.broadcast %133 : vector<16x1xf32> to vector<16x128xf32>
    %157 = arith.addf %155, %156 : vector<16x128xf32>
    %c0_101 = arith.constant 0 : index
    %c0_102 = arith.constant 0 : index
    %c0_103 = arith.constant 0 : index
    %158 = vector.load %arg5[%c0_101, %c0_102, %c0_103] : memref<6x16x16xf32, #tpu.memory_space<vmem>>, vector<1x16x16xf32>
    %159 = vector.shape_cast %158 : vector<1x16x16xf32> to vector<16x16xf32>
    %cst_104 = arith.constant dense<0.000000e+00> : vector<16x128xf32>
    %160 = tpu.matmul %159, %157, %cst_104 {dimension_numbers = #tpu.dot_dimension_numbers<[1], [0], [0], [1], [0, 0, 1, 1], [], []>} : vector<16x16xf32>, vector<16x128xf32>, vector<16x128xf32> -> vector<16x128xf32>
    %161 = arith.addf %16, %160 : vector<16x128xf32>
    %c1_105 = arith.constant 1 : index
    %c0_106 = arith.constant 0 : index
    %c0_107 = arith.constant 0 : index
    %162 = vector.load %arg3[%c1_105, %c0_106, %c0_107] : memref<6x16x16xf32, #tpu.memory_space<vmem>>, vector<1x16x16xf32>
    %163 = vector.shape_cast %162 : vector<1x16x16xf32> to vector<16x16xf32>
    %cst_108 = arith.constant dense<0.000000e+00> : vector<16x128xf32>
    %164 = tpu.matmul %163, %161, %cst_108 {dimension_numbers = #tpu.dot_dimension_numbers<[1], [0], [0], [1], [0, 0, 1, 1], [], []>} : vector<16x16xf32>, vector<16x128xf32>, vector<16x128xf32> -> vector<16x128xf32>
    %c2_109 = arith.constant 2 : index
    %165 = memref.load %arg20[%c2_109] : memref<12xf32, #tpu.memory_space<smem>>
    %cst_110 = arith.constant 0.000000e+00 : f32
    %166 = vector.broadcast %cst_110 : f32 to vector<16x128xf32>
    %167 = arith.cmpf oge, %164, %166 : vector<16x128xf32>
    %168 = vector.broadcast %165 : f32 to vector<16x128xf32>
    %169 = arith.mulf %168, %164 : vector<16x128xf32>
    %170 = arith.select %167, %164, %169 : vector<16x128xi1>, vector<16x128xf32>
    %c2_111 = arith.constant 2 : index
    %c0_112 = arith.constant 0 : index
    %c0_113 = arith.constant 0 : index
    %171 = vector.load %arg6[%c2_111, %c0_112, %c0_113] : memref<12x16x1xf32, #tpu.memory_space<vmem>>, vector<1x16x1xf32>
    %172 = vector.shape_cast %171 : vector<1x16x1xf32> to vector<16x1xf32>
    %c2_114 = arith.constant 2 : index
    %c0_115 = arith.constant 0 : index
    %c0_116 = arith.constant 0 : index
    %173 = vector.load %arg7[%c2_114, %c0_115, %c0_116] : memref<12x16x1xf32, #tpu.memory_space<vmem>>, vector<1x16x1xf32>
    %174 = vector.shape_cast %173 : vector<1x16x1xf32> to vector<16x1xf32>
    %cst_117 = arith.constant dense<0.000000e+00> : vector<16x8xf32>
    %175 = tpu.matmul %170, %17, %cst_117 {dimension_numbers = #tpu.dot_dimension_numbers<[1], [0], [0], [1], [0, 0, 1, 1], [], []>} : vector<16x128xf32>, vector<128x8xf32>, vector<16x8xf32> -> vector<16x8xf32>
    %cst_118 = arith.constant dense<0.000000e+00> : vector<8xf32>
    %176 = vector.multi_reduction <add>, %175, %cst_118 [0] : vector<16x8xf32> to vector<8xf32>
    %177 = vector.shape_cast %176 : vector<8xf32> to vector<1x8xf32>
    %cst_119 = arith.constant 9.765625E-4 : f32
    %178 = vector.broadcast %cst_119 : f32 to vector<1x8xf32>
    %179 = arith.mulf %177, %178 : vector<1x8xf32>
    %cst_120 = arith.constant dense<0.000000e+00> : vector<1x128xf32>
    %180 = tpu.matmul %179, %18, %cst_120 {dimension_numbers = #tpu.dot_dimension_numbers<[1], [0], [0], [1], [0, 0, 1, 1], [], []>} : vector<1x8xf32>, vector<8x128xf32>, vector<1x128xf32> -> vector<1x128xf32>
    %181 = vector.broadcast %180 : vector<1x128xf32> to vector<16x128xf32>
    %182 = arith.subf %170, %181 : vector<16x128xf32>
    %183 = arith.mulf %182, %182 : vector<16x128xf32>
    %cst_121 = arith.constant dense<0.000000e+00> : vector<16x8xf32>
    %184 = tpu.matmul %183, %17, %cst_121 {dimension_numbers = #tpu.dot_dimension_numbers<[1], [0], [0], [1], [0, 0, 1, 1], [], []>} : vector<16x128xf32>, vector<128x8xf32>, vector<16x8xf32> -> vector<16x8xf32>
    %cst_122 = arith.constant dense<0.000000e+00> : vector<8xf32>
    %185 = vector.multi_reduction <add>, %184, %cst_122 [0] : vector<16x8xf32> to vector<8xf32>
    %186 = vector.shape_cast %185 : vector<8xf32> to vector<1x8xf32>
    %cst_123 = arith.constant 9.765625E-4 : f32
    %187 = vector.broadcast %cst_123 : f32 to vector<1x8xf32>
    %188 = arith.mulf %186, %187 : vector<1x8xf32>
    %cst_124 = arith.constant dense<0.000000e+00> : vector<1x128xf32>
    %189 = tpu.matmul %188, %18, %cst_124 {dimension_numbers = #tpu.dot_dimension_numbers<[1], [0], [0], [1], [0, 0, 1, 1], [], []>} : vector<1x8xf32>, vector<8x128xf32>, vector<1x128xf32> -> vector<1x128xf32>
    %190 = vector.broadcast %172 : vector<16x1xf32> to vector<16x128xf32>
    %191 = arith.mulf %190, %182 : vector<16x128xf32>
    %cst_125 = arith.constant 9.99999993E-9 : f32
    %192 = vector.broadcast %cst_125 : f32 to vector<1x128xf32>
    %193 = arith.addf %189, %192 : vector<1x128xf32>
    %194 = math.rsqrt %193 : vector<1x128xf32>
    %195 = vector.broadcast %194 : vector<1x128xf32> to vector<16x128xf32>
    %196 = arith.mulf %191, %195 : vector<16x128xf32>
    %197 = vector.broadcast %174 : vector<16x1xf32> to vector<16x128xf32>
    %198 = arith.addf %196, %197 : vector<16x128xf32>
    %c1_126 = arith.constant 1 : index
    %c0_127 = arith.constant 0 : index
    %c0_128 = arith.constant 0 : index
    %c0_129 = arith.constant 0 : index
    %199 = vector.load %arg8[%c1_126, %c0_127, %c0_128, %c0_129] : memref<3x7x1x128xf32, #tpu.memory_space<vmem>>, vector<1x1x1x128xf32>
    %200 = vector.shape_cast %199 : vector<1x1x1x128xf32> to vector<1x128xf32>
    %c9_i32 = arith.constant 9 : i32
    %201 = tpu.dynamic_rotate %198 by %c9_i32 dim 1 : vector<16x128xf32>, i32 -> vector<16x128xf32>
    %c1_130 = arith.constant 1 : index
    %c0_131 = arith.constant 0 : index
    %c0_132 = arith.constant 0 : index
    %c0_133 = arith.constant 0 : index
    %202 = vector.load %arg4[%c1_130, %c0_131, %c0_132, %c0_133] : memref<6x7x16x1xf32, #tpu.memory_space<vmem>>, vector<1x1x16x1xf32>
    %203 = vector.shape_cast %202 : vector<1x1x16x1xf32> to vector<16x1xf32>
    %204 = vector.broadcast %200 : vector<1x128xf32> to vector<16x128xf32>
    %205 = arith.mulf %201, %204 : vector<16x128xf32>
    %206 = vector.broadcast %203 : vector<16x1xf32> to vector<16x128xf32>
    %207 = arith.mulf %206, %205 : vector<16x128xf32>
    %c1_134 = arith.constant 1 : index
    %c1_135 = arith.constant 1 : index
    %c0_136 = arith.constant 0 : index
    %c0_137 = arith.constant 0 : index
    %208 = vector.load %arg8[%c1_134, %c1_135, %c0_136, %c0_137] : memref<3x7x1x128xf32, #tpu.memory_space<vmem>>, vector<1x1x1x128xf32>
    %209 = vector.shape_cast %208 : vector<1x1x1x128xf32> to vector<1x128xf32>
    %c6_i32 = arith.constant 6 : i32
    %210 = tpu.dynamic_rotate %198 by %c6_i32 dim 1 : vector<16x128xf32>, i32 -> vector<16x128xf32>
    %c1_138 = arith.constant 1 : index
    %c1_139 = arith.constant 1 : index
    %c0_140 = arith.constant 0 : index
    %c0_141 = arith.constant 0 : index
    %211 = vector.load %arg4[%c1_138, %c1_139, %c0_140, %c0_141] : memref<6x7x16x1xf32, #tpu.memory_space<vmem>>, vector<1x1x16x1xf32>
    %212 = vector.shape_cast %211 : vector<1x1x16x1xf32> to vector<16x1xf32>
    %213 = vector.broadcast %209 : vector<1x128xf32> to vector<16x128xf32>
    %214 = arith.mulf %210, %213 : vector<16x128xf32>
    %215 = vector.broadcast %212 : vector<16x1xf32> to vector<16x128xf32>
    %216 = arith.mulf %215, %214 : vector<16x128xf32>
    %217 = arith.addf %207, %216 : vector<16x128xf32>
    %c1_142 = arith.constant 1 : index
    %c2_143 = arith.constant 2 : index
    %c0_144 = arith.constant 0 : index
    %c0_145 = arith.constant 0 : index
    %218 = vector.load %arg8[%c1_142, %c2_143, %c0_144, %c0_145] : memref<3x7x1x128xf32, #tpu.memory_space<vmem>>, vector<1x1x1x128xf32>
    %219 = vector.shape_cast %218 : vector<1x1x1x128xf32> to vector<1x128xf32>
    %c3_i32_146 = arith.constant 3 : i32
    %220 = tpu.dynamic_rotate %198 by %c3_i32_146 dim 1 : vector<16x128xf32>, i32 -> vector<16x128xf32>
    %c1_147 = arith.constant 1 : index
    %c2_148 = arith.constant 2 : index
    %c0_149 = arith.constant 0 : index
    %c0_150 = arith.constant 0 : index
    %221 = vector.load %arg4[%c1_147, %c2_148, %c0_149, %c0_150] : memref<6x7x16x1xf32, #tpu.memory_space<vmem>>, vector<1x1x16x1xf32>
    %222 = vector.shape_cast %221 : vector<1x1x16x1xf32> to vector<16x1xf32>
    %223 = vector.broadcast %219 : vector<1x128xf32> to vector<16x128xf32>
    %224 = arith.mulf %220, %223 : vector<16x128xf32>
    %225 = vector.broadcast %222 : vector<16x1xf32> to vector<16x128xf32>
    %226 = arith.mulf %225, %224 : vector<16x128xf32>
    %227 = arith.addf %217, %226 : vector<16x128xf32>
    %c1_151 = arith.constant 1 : index
    %c3_152 = arith.constant 3 : index
    %c0_153 = arith.constant 0 : index
    %c0_154 = arith.constant 0 : index
    %228 = vector.load %arg8[%c1_151, %c3_152, %c0_153, %c0_154] : memref<3x7x1x128xf32, #tpu.memory_space<vmem>>, vector<1x1x1x128xf32>
    %229 = vector.shape_cast %228 : vector<1x1x1x128xf32> to vector<1x128xf32>
    %c1_155 = arith.constant 1 : index
    %c3_156 = arith.constant 3 : index
    %c0_157 = arith.constant 0 : index
    %c0_158 = arith.constant 0 : index
    %230 = vector.load %arg4[%c1_155, %c3_156, %c0_157, %c0_158] : memref<6x7x16x1xf32, #tpu.memory_space<vmem>>, vector<1x1x16x1xf32>
    %231 = vector.shape_cast %230 : vector<1x1x16x1xf32> to vector<16x1xf32>
    %232 = vector.broadcast %229 : vector<1x128xf32> to vector<16x128xf32>
    %233 = arith.mulf %198, %232 : vector<16x128xf32>
    %234 = vector.broadcast %231 : vector<16x1xf32> to vector<16x128xf32>
    %235 = arith.mulf %234, %233 : vector<16x128xf32>
    %236 = arith.addf %227, %235 : vector<16x128xf32>
    %c1_159 = arith.constant 1 : index
    %c4_160 = arith.constant 4 : index
    %c0_161 = arith.constant 0 : index
    %c0_162 = arith.constant 0 : index
    %237 = vector.load %arg8[%c1_159, %c4_160, %c0_161, %c0_162] : memref<3x7x1x128xf32, #tpu.memory_space<vmem>>, vector<1x1x1x128xf32>
    %238 = vector.shape_cast %237 : vector<1x1x1x128xf32> to vector<1x128xf32>
    %c125_i32_163 = arith.constant 125 : i32
    %239 = tpu.dynamic_rotate %198 by %c125_i32_163 dim 1 : vector<16x128xf32>, i32 -> vector<16x128xf32>
    %c1_164 = arith.constant 1 : index
    %c4_165 = arith.constant 4 : index
    %c0_166 = arith.constant 0 : index
    %c0_167 = arith.constant 0 : index
    %240 = vector.load %arg4[%c1_164, %c4_165, %c0_166, %c0_167] : memref<6x7x16x1xf32, #tpu.memory_space<vmem>>, vector<1x1x16x1xf32>
    %241 = vector.shape_cast %240 : vector<1x1x16x1xf32> to vector<16x1xf32>
    %242 = vector.broadcast %238 : vector<1x128xf32> to vector<16x128xf32>
    %243 = arith.mulf %239, %242 : vector<16x128xf32>
    %244 = vector.broadcast %241 : vector<16x1xf32> to vector<16x128xf32>
    %245 = arith.mulf %244, %243 : vector<16x128xf32>
    %246 = arith.addf %236, %245 : vector<16x128xf32>
    %c1_168 = arith.constant 1 : index
    %c5_169 = arith.constant 5 : index
    %c0_170 = arith.constant 0 : index
    %c0_171 = arith.constant 0 : index
    %247 = vector.load %arg8[%c1_168, %c5_169, %c0_170, %c0_171] : memref<3x7x1x128xf32, #tpu.memory_space<vmem>>, vector<1x1x1x128xf32>
    %248 = vector.shape_cast %247 : vector<1x1x1x128xf32> to vector<1x128xf32>
    %c122_i32 = arith.constant 122 : i32
    %249 = tpu.dynamic_rotate %198 by %c122_i32 dim 1 : vector<16x128xf32>, i32 -> vector<16x128xf32>
    %c1_172 = arith.constant 1 : index
    %c5_173 = arith.constant 5 : index
    %c0_174 = arith.constant 0 : index
    %c0_175 = arith.constant 0 : index
    %250 = vector.load %arg4[%c1_172, %c5_173, %c0_174, %c0_175] : memref<6x7x16x1xf32, #tpu.memory_space<vmem>>, vector<1x1x16x1xf32>
    %251 = vector.shape_cast %250 : vector<1x1x16x1xf32> to vector<16x1xf32>
    %252 = vector.broadcast %248 : vector<1x128xf32> to vector<16x128xf32>
    %253 = arith.mulf %249, %252 : vector<16x128xf32>
    %254 = vector.broadcast %251 : vector<16x1xf32> to vector<16x128xf32>
    %255 = arith.mulf %254, %253 : vector<16x128xf32>
    %256 = arith.addf %246, %255 : vector<16x128xf32>
    %c1_176 = arith.constant 1 : index
    %c6_177 = arith.constant 6 : index
    %c0_178 = arith.constant 0 : index
    %c0_179 = arith.constant 0 : index
    %257 = vector.load %arg8[%c1_176, %c6_177, %c0_178, %c0_179] : memref<3x7x1x128xf32, #tpu.memory_space<vmem>>, vector<1x1x1x128xf32>
    %258 = vector.shape_cast %257 : vector<1x1x1x128xf32> to vector<1x128xf32>
    %c119_i32 = arith.constant 119 : i32
    %259 = tpu.dynamic_rotate %198 by %c119_i32 dim 1 : vector<16x128xf32>, i32 -> vector<16x128xf32>
    %c1_180 = arith.constant 1 : index
    %c6_181 = arith.constant 6 : index
    %c0_182 = arith.constant 0 : index
    %c0_183 = arith.constant 0 : index
    %260 = vector.load %arg4[%c1_180, %c6_181, %c0_182, %c0_183] : memref<6x7x16x1xf32, #tpu.memory_space<vmem>>, vector<1x1x16x1xf32>
    %261 = vector.shape_cast %260 : vector<1x1x16x1xf32> to vector<16x1xf32>
    %262 = vector.broadcast %258 : vector<1x128xf32> to vector<16x128xf32>
    %263 = arith.mulf %259, %262 : vector<16x128xf32>
    %264 = vector.broadcast %261 : vector<16x1xf32> to vector<16x128xf32>
    %265 = arith.mulf %264, %263 : vector<16x128xf32>
    %266 = arith.addf %256, %265 : vector<16x128xf32>
    %c3_184 = arith.constant 3 : index
    %267 = memref.load %arg20[%c3_184] : memref<12xf32, #tpu.memory_space<smem>>
    %cst_185 = arith.constant 0.000000e+00 : f32
    %268 = vector.broadcast %cst_185 : f32 to vector<16x128xf32>
    %269 = arith.cmpf oge, %266, %268 : vector<16x128xf32>
    %270 = vector.broadcast %267 : f32 to vector<16x128xf32>
    %271 = arith.mulf %270, %266 : vector<16x128xf32>
    %272 = arith.select %269, %266, %271 : vector<16x128xi1>, vector<16x128xf32>
    %c3_186 = arith.constant 3 : index
    %c0_187 = arith.constant 0 : index
    %c0_188 = arith.constant 0 : index
    %273 = vector.load %arg6[%c3_186, %c0_187, %c0_188] : memref<12x16x1xf32, #tpu.memory_space<vmem>>, vector<1x16x1xf32>
    %274 = vector.shape_cast %273 : vector<1x16x1xf32> to vector<16x1xf32>
    %c3_189 = arith.constant 3 : index
    %c0_190 = arith.constant 0 : index
    %c0_191 = arith.constant 0 : index
    %275 = vector.load %arg7[%c3_189, %c0_190, %c0_191] : memref<12x16x1xf32, #tpu.memory_space<vmem>>, vector<1x16x1xf32>
    %276 = vector.shape_cast %275 : vector<1x16x1xf32> to vector<16x1xf32>
    %cst_192 = arith.constant dense<0.000000e+00> : vector<16x8xf32>
    %277 = tpu.matmul %272, %17, %cst_192 {dimension_numbers = #tpu.dot_dimension_numbers<[1], [0], [0], [1], [0, 0, 1, 1], [], []>} : vector<16x128xf32>, vector<128x8xf32>, vector<16x8xf32> -> vector<16x8xf32>
    %cst_193 = arith.constant dense<0.000000e+00> : vector<8xf32>
    %278 = vector.multi_reduction <add>, %277, %cst_193 [0] : vector<16x8xf32> to vector<8xf32>
    %279 = vector.shape_cast %278 : vector<8xf32> to vector<1x8xf32>
    %cst_194 = arith.constant 9.765625E-4 : f32
    %280 = vector.broadcast %cst_194 : f32 to vector<1x8xf32>
    %281 = arith.mulf %279, %280 : vector<1x8xf32>
    %cst_195 = arith.constant dense<0.000000e+00> : vector<1x128xf32>
    %282 = tpu.matmul %281, %18, %cst_195 {dimension_numbers = #tpu.dot_dimension_numbers<[1], [0], [0], [1], [0, 0, 1, 1], [], []>} : vector<1x8xf32>, vector<8x128xf32>, vector<1x128xf32> -> vector<1x128xf32>
    %283 = vector.broadcast %282 : vector<1x128xf32> to vector<16x128xf32>
    %284 = arith.subf %272, %283 : vector<16x128xf32>
    %285 = arith.mulf %284, %284 : vector<16x128xf32>
    %cst_196 = arith.constant dense<0.000000e+00> : vector<16x8xf32>
    %286 = tpu.matmul %285, %17, %cst_196 {dimension_numbers = #tpu.dot_dimension_numbers<[1], [0], [0], [1], [0, 0, 1, 1], [], []>} : vector<16x128xf32>, vector<128x8xf32>, vector<16x8xf32> -> vector<16x8xf32>
    %cst_197 = arith.constant dense<0.000000e+00> : vector<8xf32>
    %287 = vector.multi_reduction <add>, %286, %cst_197 [0] : vector<16x8xf32> to vector<8xf32>
    %288 = vector.shape_cast %287 : vector<8xf32> to vector<1x8xf32>
    %cst_198 = arith.constant 9.765625E-4 : f32
    %289 = vector.broadcast %cst_198 : f32 to vector<1x8xf32>
    %290 = arith.mulf %288, %289 : vector<1x8xf32>
    %cst_199 = arith.constant dense<0.000000e+00> : vector<1x128xf32>
    %291 = tpu.matmul %290, %18, %cst_199 {dimension_numbers = #tpu.dot_dimension_numbers<[1], [0], [0], [1], [0, 0, 1, 1], [], []>} : vector<1x8xf32>, vector<8x128xf32>, vector<1x128xf32> -> vector<1x128xf32>
    %292 = vector.broadcast %274 : vector<16x1xf32> to vector<16x128xf32>
    %293 = arith.mulf %292, %284 : vector<16x128xf32>
    %cst_200 = arith.constant 9.99999993E-9 : f32
    %294 = vector.broadcast %cst_200 : f32 to vector<1x128xf32>
    %295 = arith.addf %291, %294 : vector<1x128xf32>
    %296 = math.rsqrt %295 : vector<1x128xf32>
    %297 = vector.broadcast %296 : vector<1x128xf32> to vector<16x128xf32>
    %298 = arith.mulf %293, %297 : vector<16x128xf32>
    %299 = vector.broadcast %276 : vector<16x1xf32> to vector<16x128xf32>
    %300 = arith.addf %298, %299 : vector<16x128xf32>
    %c1_201 = arith.constant 1 : index
    %c0_202 = arith.constant 0 : index
    %c0_203 = arith.constant 0 : index
    %301 = vector.load %arg5[%c1_201, %c0_202, %c0_203] : memref<6x16x16xf32, #tpu.memory_space<vmem>>, vector<1x16x16xf32>
    %302 = vector.shape_cast %301 : vector<1x16x16xf32> to vector<16x16xf32>
    %cst_204 = arith.constant dense<0.000000e+00> : vector<16x128xf32>
    %303 = tpu.matmul %302, %300, %cst_204 {dimension_numbers = #tpu.dot_dimension_numbers<[1], [0], [0], [1], [0, 0, 1, 1], [], []>} : vector<16x16xf32>, vector<16x128xf32>, vector<16x128xf32> -> vector<16x128xf32>
    %304 = arith.addf %161, %303 : vector<16x128xf32>
    %c2_205 = arith.constant 2 : index
    %c0_206 = arith.constant 0 : index
    %c0_207 = arith.constant 0 : index
    %305 = vector.load %arg3[%c2_205, %c0_206, %c0_207] : memref<6x16x16xf32, #tpu.memory_space<vmem>>, vector<1x16x16xf32>
    %306 = vector.shape_cast %305 : vector<1x16x16xf32> to vector<16x16xf32>
    %cst_208 = arith.constant dense<0.000000e+00> : vector<16x128xf32>
    %307 = tpu.matmul %306, %304, %cst_208 {dimension_numbers = #tpu.dot_dimension_numbers<[1], [0], [0], [1], [0, 0, 1, 1], [], []>} : vector<16x16xf32>, vector<16x128xf32>, vector<16x128xf32> -> vector<16x128xf32>
    %c4_209 = arith.constant 4 : index
    %308 = memref.load %arg20[%c4_209] : memref<12xf32, #tpu.memory_space<smem>>
    %cst_210 = arith.constant 0.000000e+00 : f32
    %309 = vector.broadcast %cst_210 : f32 to vector<16x128xf32>
    %310 = arith.cmpf oge, %307, %309 : vector<16x128xf32>
    %311 = vector.broadcast %308 : f32 to vector<16x128xf32>
    %312 = arith.mulf %311, %307 : vector<16x128xf32>
    %313 = arith.select %310, %307, %312 : vector<16x128xi1>, vector<16x128xf32>
    %c4_211 = arith.constant 4 : index
    %c0_212 = arith.constant 0 : index
    %c0_213 = arith.constant 0 : index
    %314 = vector.load %arg6[%c4_211, %c0_212, %c0_213] : memref<12x16x1xf32, #tpu.memory_space<vmem>>, vector<1x16x1xf32>
    %315 = vector.shape_cast %314 : vector<1x16x1xf32> to vector<16x1xf32>
    %c4_214 = arith.constant 4 : index
    %c0_215 = arith.constant 0 : index
    %c0_216 = arith.constant 0 : index
    %316 = vector.load %arg7[%c4_214, %c0_215, %c0_216] : memref<12x16x1xf32, #tpu.memory_space<vmem>>, vector<1x16x1xf32>
    %317 = vector.shape_cast %316 : vector<1x16x1xf32> to vector<16x1xf32>
    %cst_217 = arith.constant dense<0.000000e+00> : vector<16x8xf32>
    %318 = tpu.matmul %313, %17, %cst_217 {dimension_numbers = #tpu.dot_dimension_numbers<[1], [0], [0], [1], [0, 0, 1, 1], [], []>} : vector<16x128xf32>, vector<128x8xf32>, vector<16x8xf32> -> vector<16x8xf32>
    %cst_218 = arith.constant dense<0.000000e+00> : vector<8xf32>
    %319 = vector.multi_reduction <add>, %318, %cst_218 [0] : vector<16x8xf32> to vector<8xf32>
    %320 = vector.shape_cast %319 : vector<8xf32> to vector<1x8xf32>
    %cst_219 = arith.constant 9.765625E-4 : f32
    %321 = vector.broadcast %cst_219 : f32 to vector<1x8xf32>
    %322 = arith.mulf %320, %321 : vector<1x8xf32>
    %cst_220 = arith.constant dense<0.000000e+00> : vector<1x128xf32>
    %323 = tpu.matmul %322, %18, %cst_220 {dimension_numbers = #tpu.dot_dimension_numbers<[1], [0], [0], [1], [0, 0, 1, 1], [], []>} : vector<1x8xf32>, vector<8x128xf32>, vector<1x128xf32> -> vector<1x128xf32>
    %324 = vector.broadcast %323 : vector<1x128xf32> to vector<16x128xf32>
    %325 = arith.subf %313, %324 : vector<16x128xf32>
    %326 = arith.mulf %325, %325 : vector<16x128xf32>
    %cst_221 = arith.constant dense<0.000000e+00> : vector<16x8xf32>
    %327 = tpu.matmul %326, %17, %cst_221 {dimension_numbers = #tpu.dot_dimension_numbers<[1], [0], [0], [1], [0, 0, 1, 1], [], []>} : vector<16x128xf32>, vector<128x8xf32>, vector<16x8xf32> -> vector<16x8xf32>
    %cst_222 = arith.constant dense<0.000000e+00> : vector<8xf32>
    %328 = vector.multi_reduction <add>, %327, %cst_222 [0] : vector<16x8xf32> to vector<8xf32>
    %329 = vector.shape_cast %328 : vector<8xf32> to vector<1x8xf32>
    %cst_223 = arith.constant 9.765625E-4 : f32
    %330 = vector.broadcast %cst_223 : f32 to vector<1x8xf32>
    %331 = arith.mulf %329, %330 : vector<1x8xf32>
    %cst_224 = arith.constant dense<0.000000e+00> : vector<1x128xf32>
    %332 = tpu.matmul %331, %18, %cst_224 {dimension_numbers = #tpu.dot_dimension_numbers<[1], [0], [0], [1], [0, 0, 1, 1], [], []>} : vector<1x8xf32>, vector<8x128xf32>, vector<1x128xf32> -> vector<1x128xf32>
    %333 = vector.broadcast %315 : vector<16x1xf32> to vector<16x128xf32>
    %334 = arith.mulf %333, %325 : vector<16x128xf32>
    %cst_225 = arith.constant 9.99999993E-9 : f32
    %335 = vector.broadcast %cst_225 : f32 to vector<1x128xf32>
    %336 = arith.addf %332, %335 : vector<1x128xf32>
    %337 = math.rsqrt %336 : vector<1x128xf32>
    %338 = vector.broadcast %337 : vector<1x128xf32> to vector<16x128xf32>
    %339 = arith.mulf %334, %338 : vector<16x128xf32>
    %340 = vector.broadcast %317 : vector<16x1xf32> to vector<16x128xf32>
    %341 = arith.addf %339, %340 : vector<16x128xf32>
    %c2_226 = arith.constant 2 : index
    %c0_227 = arith.constant 0 : index
    %c0_228 = arith.constant 0 : index
    %c0_229 = arith.constant 0 : index
    %342 = vector.load %arg8[%c2_226, %c0_227, %c0_228, %c0_229] : memref<3x7x1x128xf32, #tpu.memory_space<vmem>>, vector<1x1x1x128xf32>
    %343 = vector.shape_cast %342 : vector<1x1x1x128xf32> to vector<1x128xf32>
    %c27_i32 = arith.constant 27 : i32
    %344 = tpu.dynamic_rotate %341 by %c27_i32 dim 1 : vector<16x128xf32>, i32 -> vector<16x128xf32>
    %c2_230 = arith.constant 2 : index
    %c0_231 = arith.constant 0 : index
    %c0_232 = arith.constant 0 : index
    %c0_233 = arith.constant 0 : index
    %345 = vector.load %arg4[%c2_230, %c0_231, %c0_232, %c0_233] : memref<6x7x16x1xf32, #tpu.memory_space<vmem>>, vector<1x1x16x1xf32>
    %346 = vector.shape_cast %345 : vector<1x1x16x1xf32> to vector<16x1xf32>
    %347 = vector.broadcast %343 : vector<1x128xf32> to vector<16x128xf32>
    %348 = arith.mulf %344, %347 : vector<16x128xf32>
    %349 = vector.broadcast %346 : vector<16x1xf32> to vector<16x128xf32>
    %350 = arith.mulf %349, %348 : vector<16x128xf32>
    %c2_234 = arith.constant 2 : index
    %c1_235 = arith.constant 1 : index
    %c0_236 = arith.constant 0 : index
    %c0_237 = arith.constant 0 : index
    %351 = vector.load %arg8[%c2_234, %c1_235, %c0_236, %c0_237] : memref<3x7x1x128xf32, #tpu.memory_space<vmem>>, vector<1x1x1x128xf32>
    %352 = vector.shape_cast %351 : vector<1x1x1x128xf32> to vector<1x128xf32>
    %c18_i32 = arith.constant 18 : i32
    %353 = tpu.dynamic_rotate %341 by %c18_i32 dim 1 : vector<16x128xf32>, i32 -> vector<16x128xf32>
    %c2_238 = arith.constant 2 : index
    %c1_239 = arith.constant 1 : index
    %c0_240 = arith.constant 0 : index
    %c0_241 = arith.constant 0 : index
    %354 = vector.load %arg4[%c2_238, %c1_239, %c0_240, %c0_241] : memref<6x7x16x1xf32, #tpu.memory_space<vmem>>, vector<1x1x16x1xf32>
    %355 = vector.shape_cast %354 : vector<1x1x16x1xf32> to vector<16x1xf32>
    %356 = vector.broadcast %352 : vector<1x128xf32> to vector<16x128xf32>
    %357 = arith.mulf %353, %356 : vector<16x128xf32>
    %358 = vector.broadcast %355 : vector<16x1xf32> to vector<16x128xf32>
    %359 = arith.mulf %358, %357 : vector<16x128xf32>
    %360 = arith.addf %350, %359 : vector<16x128xf32>
    %c2_242 = arith.constant 2 : index
    %c2_243 = arith.constant 2 : index
    %c0_244 = arith.constant 0 : index
    %c0_245 = arith.constant 0 : index
    %361 = vector.load %arg8[%c2_242, %c2_243, %c0_244, %c0_245] : memref<3x7x1x128xf32, #tpu.memory_space<vmem>>, vector<1x1x1x128xf32>
    %362 = vector.shape_cast %361 : vector<1x1x1x128xf32> to vector<1x128xf32>
    %c9_i32_246 = arith.constant 9 : i32
    %363 = tpu.dynamic_rotate %341 by %c9_i32_246 dim 1 : vector<16x128xf32>, i32 -> vector<16x128xf32>
    %c2_247 = arith.constant 2 : index
    %c2_248 = arith.constant 2 : index
    %c0_249 = arith.constant 0 : index
    %c0_250 = arith.constant 0 : index
    %364 = vector.load %arg4[%c2_247, %c2_248, %c0_249, %c0_250] : memref<6x7x16x1xf32, #tpu.memory_space<vmem>>, vector<1x1x16x1xf32>
    %365 = vector.shape_cast %364 : vector<1x1x16x1xf32> to vector<16x1xf32>
    %366 = vector.broadcast %362 : vector<1x128xf32> to vector<16x128xf32>
    %367 = arith.mulf %363, %366 : vector<16x128xf32>
    %368 = vector.broadcast %365 : vector<16x1xf32> to vector<16x128xf32>
    %369 = arith.mulf %368, %367 : vector<16x128xf32>
    %370 = arith.addf %360, %369 : vector<16x128xf32>
    %c2_251 = arith.constant 2 : index
    %c3_252 = arith.constant 3 : index
    %c0_253 = arith.constant 0 : index
    %c0_254 = arith.constant 0 : index
    %371 = vector.load %arg8[%c2_251, %c3_252, %c0_253, %c0_254] : memref<3x7x1x128xf32, #tpu.memory_space<vmem>>, vector<1x1x1x128xf32>
    %372 = vector.shape_cast %371 : vector<1x1x1x128xf32> to vector<1x128xf32>
    %c2_255 = arith.constant 2 : index
    %c3_256 = arith.constant 3 : index
    %c0_257 = arith.constant 0 : index
    %c0_258 = arith.constant 0 : index
    %373 = vector.load %arg4[%c2_255, %c3_256, %c0_257, %c0_258] : memref<6x7x16x1xf32, #tpu.memory_space<vmem>>, vector<1x1x16x1xf32>
    %374 = vector.shape_cast %373 : vector<1x1x16x1xf32> to vector<16x1xf32>
    %375 = vector.broadcast %372 : vector<1x128xf32> to vector<16x128xf32>
    %376 = arith.mulf %341, %375 : vector<16x128xf32>
    %377 = vector.broadcast %374 : vector<16x1xf32> to vector<16x128xf32>
    %378 = arith.mulf %377, %376 : vector<16x128xf32>
    %379 = arith.addf %370, %378 : vector<16x128xf32>
    %c2_259 = arith.constant 2 : index
    %c4_260 = arith.constant 4 : index
    %c0_261 = arith.constant 0 : index
    %c0_262 = arith.constant 0 : index
    %380 = vector.load %arg8[%c2_259, %c4_260, %c0_261, %c0_262] : memref<3x7x1x128xf32, #tpu.memory_space<vmem>>, vector<1x1x1x128xf32>
    %381 = vector.shape_cast %380 : vector<1x1x1x128xf32> to vector<1x128xf32>
    %c119_i32_263 = arith.constant 119 : i32
    %382 = tpu.dynamic_rotate %341 by %c119_i32_263 dim 1 : vector<16x128xf32>, i32 -> vector<16x128xf32>
    %c2_264 = arith.constant 2 : index
    %c4_265 = arith.constant 4 : index
    %c0_266 = arith.constant 0 : index
    %c0_267 = arith.constant 0 : index
    %383 = vector.load %arg4[%c2_264, %c4_265, %c0_266, %c0_267] : memref<6x7x16x1xf32, #tpu.memory_space<vmem>>, vector<1x1x16x1xf32>
    %384 = vector.shape_cast %383 : vector<1x1x16x1xf32> to vector<16x1xf32>
    %385 = vector.broadcast %381 : vector<1x128xf32> to vector<16x128xf32>
    %386 = arith.mulf %382, %385 : vector<16x128xf32>
    %387 = vector.broadcast %384 : vector<16x1xf32> to vector<16x128xf32>
    %388 = arith.mulf %387, %386 : vector<16x128xf32>
    %389 = arith.addf %379, %388 : vector<16x128xf32>
    %c2_268 = arith.constant 2 : index
    %c5_269 = arith.constant 5 : index
    %c0_270 = arith.constant 0 : index
    %c0_271 = arith.constant 0 : index
    %390 = vector.load %arg8[%c2_268, %c5_269, %c0_270, %c0_271] : memref<3x7x1x128xf32, #tpu.memory_space<vmem>>, vector<1x1x1x128xf32>
    %391 = vector.shape_cast %390 : vector<1x1x1x128xf32> to vector<1x128xf32>
    %c110_i32 = arith.constant 110 : i32
    %392 = tpu.dynamic_rotate %341 by %c110_i32 dim 1 : vector<16x128xf32>, i32 -> vector<16x128xf32>
    %c2_272 = arith.constant 2 : index
    %c5_273 = arith.constant 5 : index
    %c0_274 = arith.constant 0 : index
    %c0_275 = arith.constant 0 : index
    %393 = vector.load %arg4[%c2_272, %c5_273, %c0_274, %c0_275] : memref<6x7x16x1xf32, #tpu.memory_space<vmem>>, vector<1x1x16x1xf32>
    %394 = vector.shape_cast %393 : vector<1x1x16x1xf32> to vector<16x1xf32>
    %395 = vector.broadcast %391 : vector<1x128xf32> to vector<16x128xf32>
    %396 = arith.mulf %392, %395 : vector<16x128xf32>
    %397 = vector.broadcast %394 : vector<16x1xf32> to vector<16x128xf32>
    %398 = arith.mulf %397, %396 : vector<16x128xf32>
    %399 = arith.addf %389, %398 : vector<16x128xf32>
    %c2_276 = arith.constant 2 : index
    %c6_277 = arith.constant 6 : index
    %c0_278 = arith.constant 0 : index
    %c0_279 = arith.constant 0 : index
    %400 = vector.load %arg8[%c2_276, %c6_277, %c0_278, %c0_279] : memref<3x7x1x128xf32, #tpu.memory_space<vmem>>, vector<1x1x1x128xf32>
    %401 = vector.shape_cast %400 : vector<1x1x1x128xf32> to vector<1x128xf32>
    %c101_i32 = arith.constant 101 : i32
    %402 = tpu.dynamic_rotate %341 by %c101_i32 dim 1 : vector<16x128xf32>, i32 -> vector<16x128xf32>
    %c2_280 = arith.constant 2 : index
    %c6_281 = arith.constant 6 : index
    %c0_282 = arith.constant 0 : index
    %c0_283 = arith.constant 0 : index
    %403 = vector.load %arg4[%c2_280, %c6_281, %c0_282, %c0_283] : memref<6x7x16x1xf32, #tpu.memory_space<vmem>>, vector<1x1x16x1xf32>
    %404 = vector.shape_cast %403 : vector<1x1x16x1xf32> to vector<16x1xf32>
    %405 = vector.broadcast %401 : vector<1x128xf32> to vector<16x128xf32>
    %406 = arith.mulf %402, %405 : vector<16x128xf32>
    %407 = vector.broadcast %404 : vector<16x1xf32> to vector<16x128xf32>
    %408 = arith.mulf %407, %406 : vector<16x128xf32>
    %409 = arith.addf %399, %408 : vector<16x128xf32>
    %c5_284 = arith.constant 5 : index
    %410 = memref.load %arg20[%c5_284] : memref<12xf32, #tpu.memory_space<smem>>
    %cst_285 = arith.constant 0.000000e+00 : f32
    %411 = vector.broadcast %cst_285 : f32 to vector<16x128xf32>
    %412 = arith.cmpf oge, %409, %411 : vector<16x128xf32>
    %413 = vector.broadcast %410 : f32 to vector<16x128xf32>
    %414 = arith.mulf %413, %409 : vector<16x128xf32>
    %415 = arith.select %412, %409, %414 : vector<16x128xi1>, vector<16x128xf32>
    %c5_286 = arith.constant 5 : index
    %c0_287 = arith.constant 0 : index
    %c0_288 = arith.constant 0 : index
    %416 = vector.load %arg6[%c5_286, %c0_287, %c0_288] : memref<12x16x1xf32, #tpu.memory_space<vmem>>, vector<1x16x1xf32>
    %417 = vector.shape_cast %416 : vector<1x16x1xf32> to vector<16x1xf32>
    %c5_289 = arith.constant 5 : index
    %c0_290 = arith.constant 0 : index
    %c0_291 = arith.constant 0 : index
    %418 = vector.load %arg7[%c5_289, %c0_290, %c0_291] : memref<12x16x1xf32, #tpu.memory_space<vmem>>, vector<1x16x1xf32>
    %419 = vector.shape_cast %418 : vector<1x16x1xf32> to vector<16x1xf32>
    %cst_292 = arith.constant dense<0.000000e+00> : vector<16x8xf32>
    %420 = tpu.matmul %415, %17, %cst_292 {dimension_numbers = #tpu.dot_dimension_numbers<[1], [0], [0], [1], [0, 0, 1, 1], [], []>} : vector<16x128xf32>, vector<128x8xf32>, vector<16x8xf32> -> vector<16x8xf32>
    %cst_293 = arith.constant dense<0.000000e+00> : vector<8xf32>
    %421 = vector.multi_reduction <add>, %420, %cst_293 [0] : vector<16x8xf32> to vector<8xf32>
    %422 = vector.shape_cast %421 : vector<8xf32> to vector<1x8xf32>
    %cst_294 = arith.constant 9.765625E-4 : f32
    %423 = vector.broadcast %cst_294 : f32 to vector<1x8xf32>
    %424 = arith.mulf %422, %423 : vector<1x8xf32>
    %cst_295 = arith.constant dense<0.000000e+00> : vector<1x128xf32>
    %425 = tpu.matmul %424, %18, %cst_295 {dimension_numbers = #tpu.dot_dimension_numbers<[1], [0], [0], [1], [0, 0, 1, 1], [], []>} : vector<1x8xf32>, vector<8x128xf32>, vector<1x128xf32> -> vector<1x128xf32>
    %426 = vector.broadcast %425 : vector<1x128xf32> to vector<16x128xf32>
    %427 = arith.subf %415, %426 : vector<16x128xf32>
    %428 = arith.mulf %427, %427 : vector<16x128xf32>
    %cst_296 = arith.constant dense<0.000000e+00> : vector<16x8xf32>
    %429 = tpu.matmul %428, %17, %cst_296 {dimension_numbers = #tpu.dot_dimension_numbers<[1], [0], [0], [1], [0, 0, 1, 1], [], []>} : vector<16x128xf32>, vector<128x8xf32>, vector<16x8xf32> -> vector<16x8xf32>
    %cst_297 = arith.constant dense<0.000000e+00> : vector<8xf32>
    %430 = vector.multi_reduction <add>, %429, %cst_297 [0] : vector<16x8xf32> to vector<8xf32>
    %431 = vector.shape_cast %430 : vector<8xf32> to vector<1x8xf32>
    %cst_298 = arith.constant 9.765625E-4 : f32
    %432 = vector.broadcast %cst_298 : f32 to vector<1x8xf32>
    %433 = arith.mulf %431, %432 : vector<1x8xf32>
    %cst_299 = arith.constant dense<0.000000e+00> : vector<1x128xf32>
    %434 = tpu.matmul %433, %18, %cst_299 {dimension_numbers = #tpu.dot_dimension_numbers<[1], [0], [0], [1], [0, 0, 1, 1], [], []>} : vector<1x8xf32>, vector<8x128xf32>, vector<1x128xf32> -> vector<1x128xf32>
    %435 = vector.broadcast %417 : vector<16x1xf32> to vector<16x128xf32>
    %436 = arith.mulf %435, %427 : vector<16x128xf32>
    %cst_300 = arith.constant 9.99999993E-9 : f32
    %437 = vector.broadcast %cst_300 : f32 to vector<1x128xf32>
    %438 = arith.addf %434, %437 : vector<1x128xf32>
    %439 = math.rsqrt %438 : vector<1x128xf32>
    %440 = vector.broadcast %439 : vector<1x128xf32> to vector<16x128xf32>
    %441 = arith.mulf %436, %440 : vector<16x128xf32>
    %442 = vector.broadcast %419 : vector<16x1xf32> to vector<16x128xf32>
    %443 = arith.addf %441, %442 : vector<16x128xf32>
    %c2_301 = arith.constant 2 : index
    %c0_302 = arith.constant 0 : index
    %c0_303 = arith.constant 0 : index
    %444 = vector.load %arg5[%c2_301, %c0_302, %c0_303] : memref<6x16x16xf32, #tpu.memory_space<vmem>>, vector<1x16x16xf32>
    %445 = vector.shape_cast %444 : vector<1x16x16xf32> to vector<16x16xf32>
    %cst_304 = arith.constant dense<0.000000e+00> : vector<16x128xf32>
    %446 = tpu.matmul %445, %443, %cst_304 {dimension_numbers = #tpu.dot_dimension_numbers<[1], [0], [0], [1], [0, 0, 1, 1], [], []>} : vector<16x16xf32>, vector<16x128xf32>, vector<16x128xf32> -> vector<16x128xf32>
    %447 = arith.addf %304, %446 : vector<16x128xf32>
    %448 = arith.addf %16, %447 : vector<16x128xf32>
    %c0_305 = arith.constant 0 : index
    %c0_306 = arith.constant 0 : index
    %c0_307 = arith.constant 0 : index
    %449 = vector.load %arg13[%c0_305, %c0_306, %c0_307] : memref<4x128x64xf32, #tpu.memory_space<vmem>>, vector<1x128x64xf32>
    %450 = vector.shape_cast %449 : vector<1x128x64xf32> to vector<128x64xf32>
    %cst_308 = arith.constant dense<0.000000e+00> : vector<16x64xf32>
    %451 = tpu.matmul %448, %450, %cst_308 {dimension_numbers = #tpu.dot_dimension_numbers<[1], [0], [0], [1], [0, 0, 1, 1], [], []>} : vector<16x128xf32>, vector<128x64xf32>, vector<16x64xf32> -> vector<16x64xf32>
    %c1_309 = arith.constant 1 : index
    %c0_310 = arith.constant 0 : index
    %c0_311 = arith.constant 0 : index
    %452 = vector.load %arg13[%c1_309, %c0_310, %c0_311] : memref<4x128x64xf32, #tpu.memory_space<vmem>>, vector<1x128x64xf32>
    %453 = vector.shape_cast %452 : vector<1x128x64xf32> to vector<128x64xf32>
    %cst_312 = arith.constant dense<0.000000e+00> : vector<16x64xf32>
    %454 = tpu.matmul %448, %453, %cst_312 {dimension_numbers = #tpu.dot_dimension_numbers<[1], [0], [0], [1], [0, 0, 1, 1], [], []>} : vector<16x128xf32>, vector<128x64xf32>, vector<16x64xf32> -> vector<16x64xf32>
    %c2_313 = arith.constant 2 : index
    %c0_314 = arith.constant 0 : index
    %c0_315 = arith.constant 0 : index
    %455 = vector.load %arg13[%c2_313, %c0_314, %c0_315] : memref<4x128x64xf32, #tpu.memory_space<vmem>>, vector<1x128x64xf32>
    %456 = vector.shape_cast %455 : vector<1x128x64xf32> to vector<128x64xf32>
    %cst_316 = arith.constant dense<0.000000e+00> : vector<16x64xf32>
    %457 = tpu.matmul %448, %456, %cst_316 {dimension_numbers = #tpu.dot_dimension_numbers<[1], [0], [0], [1], [0, 0, 1, 1], [], []>} : vector<16x128xf32>, vector<128x64xf32>, vector<16x64xf32> -> vector<16x64xf32>
    %c3_317 = arith.constant 3 : index
    %c0_318 = arith.constant 0 : index
    %c0_319 = arith.constant 0 : index
    %458 = vector.load %arg13[%c3_317, %c0_318, %c0_319] : memref<4x128x64xf32, #tpu.memory_space<vmem>>, vector<1x128x64xf32>
    %459 = vector.shape_cast %458 : vector<1x128x64xf32> to vector<128x64xf32>
    %cst_320 = arith.constant dense<0.000000e+00> : vector<16x64xf32>
    %460 = tpu.matmul %448, %459, %cst_320 {dimension_numbers = #tpu.dot_dimension_numbers<[1], [0], [0], [1], [0, 0, 1, 1], [], []>} : vector<16x128xf32>, vector<128x64xf32>, vector<16x64xf32> -> vector<16x64xf32>
    %461 = tpu.concatenate %451, %454, %457, %460 in 0 : vector<16x64xf32>, vector<16x64xf32>, vector<16x64xf32>, vector<16x64xf32> -> vector<64x64xf32>
    %c0_321 = arith.constant 0 : index
    %c0_322 = arith.constant 0 : index
    %462 = vector.load %arg11[%c0_321, %c0_322] : memref<16x64xf32, #tpu.memory_space<vmem>>, vector<16x64xf32>
    %cst_323 = arith.constant dense<0.000000e+00> : vector<16x64xf32>
    %463 = tpu.matmul %462, %461, %cst_323 {dimension_numbers = #tpu.dot_dimension_numbers<[1], [0], [0], [1], [0, 0, 1, 1], [], []>} : vector<16x64xf32>, vector<64x64xf32>, vector<16x64xf32> -> vector<16x64xf32>
    %c0_324 = arith.constant 0 : index
    %c0_325 = arith.constant 0 : index
    %464 = vector.load %arg12[%c0_324, %c0_325] : memref<16x1xf32, #tpu.memory_space<vmem>>, vector<16x1xf32>
    %465 = vector.broadcast %464 : vector<16x1xf32> to vector<16x64xf32>
    %466 = arith.addf %463, %465 : vector<16x64xf32>
    %cst_326 = arith.constant 0.000000e+00 : f32
    %467 = vector.broadcast %cst_326 : f32 to vector<16x64xf32>
    %468 = tpu.concatenate %466, %467 in 1 : vector<16x64xf32>, vector<16x64xf32> -> vector<16x128xf32>
    %c0_327 = arith.constant 0 : index
    %c0_328 = arith.constant 0 : index
    %469 = vector.load %arg15[%c0_327, %c0_328] : memref<128x8xf32, #tpu.memory_space<vmem>>, vector<128x8xf32>
    %c0_329 = arith.constant 0 : index
    %c0_330 = arith.constant 0 : index
    %470 = vector.load %arg16[%c0_329, %c0_330] : memref<8x128xf32, #tpu.memory_space<vmem>>, vector<8x128xf32>
    %c3_331 = arith.constant 3 : index
    %c0_332 = arith.constant 0 : index
    %c0_333 = arith.constant 0 : index
    %471 = vector.load %arg3[%c3_331, %c0_332, %c0_333] : memref<6x16x16xf32, #tpu.memory_space<vmem>>, vector<1x16x16xf32>
    %472 = vector.shape_cast %471 : vector<1x16x16xf32> to vector<16x16xf32>
    %cst_334 = arith.constant dense<0.000000e+00> : vector<16x128xf32>
    %473 = tpu.matmul %472, %468, %cst_334 {dimension_numbers = #tpu.dot_dimension_numbers<[1], [0], [0], [1], [0, 0, 1, 1], [], []>} : vector<16x16xf32>, vector<16x128xf32>, vector<16x128xf32> -> vector<16x128xf32>
    %c6_335 = arith.constant 6 : index
    %474 = memref.load %arg20[%c6_335] : memref<12xf32, #tpu.memory_space<smem>>
    %cst_336 = arith.constant 0.000000e+00 : f32
    %475 = vector.broadcast %cst_336 : f32 to vector<16x128xf32>
    %476 = arith.cmpf oge, %473, %475 : vector<16x128xf32>
    %477 = vector.broadcast %474 : f32 to vector<16x128xf32>
    %478 = arith.mulf %477, %473 : vector<16x128xf32>
    %479 = arith.select %476, %473, %478 : vector<16x128xi1>, vector<16x128xf32>
    %c6_337 = arith.constant 6 : index
    %c0_338 = arith.constant 0 : index
    %c0_339 = arith.constant 0 : index
    %480 = vector.load %arg6[%c6_337, %c0_338, %c0_339] : memref<12x16x1xf32, #tpu.memory_space<vmem>>, vector<1x16x1xf32>
    %481 = vector.shape_cast %480 : vector<1x16x1xf32> to vector<16x1xf32>
    %c6_340 = arith.constant 6 : index
    %c0_341 = arith.constant 0 : index
    %c0_342 = arith.constant 0 : index
    %482 = vector.load %arg7[%c6_340, %c0_341, %c0_342] : memref<12x16x1xf32, #tpu.memory_space<vmem>>, vector<1x16x1xf32>
    %483 = vector.shape_cast %482 : vector<1x16x1xf32> to vector<16x1xf32>
    %cst_343 = arith.constant dense<0.000000e+00> : vector<16x8xf32>
    %484 = tpu.matmul %479, %469, %cst_343 {dimension_numbers = #tpu.dot_dimension_numbers<[1], [0], [0], [1], [0, 0, 1, 1], [], []>} : vector<16x128xf32>, vector<128x8xf32>, vector<16x8xf32> -> vector<16x8xf32>
    %cst_344 = arith.constant dense<0.000000e+00> : vector<8xf32>
    %485 = vector.multi_reduction <add>, %484, %cst_344 [0] : vector<16x8xf32> to vector<8xf32>
    %486 = vector.shape_cast %485 : vector<8xf32> to vector<1x8xf32>
    %cst_345 = arith.constant 0.001953125 : f32
    %487 = vector.broadcast %cst_345 : f32 to vector<1x8xf32>
    %488 = arith.mulf %486, %487 : vector<1x8xf32>
    %cst_346 = arith.constant dense<0.000000e+00> : vector<1x128xf32>
    %489 = tpu.matmul %488, %470, %cst_346 {dimension_numbers = #tpu.dot_dimension_numbers<[1], [0], [0], [1], [0, 0, 1, 1], [], []>} : vector<1x8xf32>, vector<8x128xf32>, vector<1x128xf32> -> vector<1x128xf32>
    %490 = vector.broadcast %489 : vector<1x128xf32> to vector<16x128xf32>
    %491 = arith.subf %479, %490 : vector<16x128xf32>
    %492 = arith.mulf %491, %491 : vector<16x128xf32>
    %cst_347 = arith.constant dense<0.000000e+00> : vector<16x8xf32>
    %493 = tpu.matmul %492, %469, %cst_347 {dimension_numbers = #tpu.dot_dimension_numbers<[1], [0], [0], [1], [0, 0, 1, 1], [], []>} : vector<16x128xf32>, vector<128x8xf32>, vector<16x8xf32> -> vector<16x8xf32>
    %cst_348 = arith.constant dense<0.000000e+00> : vector<8xf32>
    %494 = vector.multi_reduction <add>, %493, %cst_348 [0] : vector<16x8xf32> to vector<8xf32>
    %495 = vector.shape_cast %494 : vector<8xf32> to vector<1x8xf32>
    %cst_349 = arith.constant 0.001953125 : f32
    %496 = vector.broadcast %cst_349 : f32 to vector<1x8xf32>
    %497 = arith.mulf %495, %496 : vector<1x8xf32>
    %cst_350 = arith.constant dense<0.000000e+00> : vector<1x128xf32>
    %498 = tpu.matmul %497, %470, %cst_350 {dimension_numbers = #tpu.dot_dimension_numbers<[1], [0], [0], [1], [0, 0, 1, 1], [], []>} : vector<1x8xf32>, vector<8x128xf32>, vector<1x128xf32> -> vector<1x128xf32>
    %499 = vector.broadcast %481 : vector<16x1xf32> to vector<16x128xf32>
    %500 = arith.mulf %499, %491 : vector<16x128xf32>
    %cst_351 = arith.constant 9.99999993E-9 : f32
    %501 = vector.broadcast %cst_351 : f32 to vector<1x128xf32>
    %502 = arith.addf %498, %501 : vector<1x128xf32>
    %503 = math.rsqrt %502 : vector<1x128xf32>
    %504 = vector.broadcast %503 : vector<1x128xf32> to vector<16x128xf32>
    %505 = arith.mulf %500, %504 : vector<16x128xf32>
    %506 = vector.broadcast %483 : vector<16x1xf32> to vector<16x128xf32>
    %507 = arith.addf %505, %506 : vector<16x128xf32>
    %c0_352 = arith.constant 0 : index
    %c0_353 = arith.constant 0 : index
    %c0_354 = arith.constant 0 : index
    %c0_355 = arith.constant 0 : index
    %508 = vector.load %arg14[%c0_352, %c0_353, %c0_354, %c0_355] : memref<3x7x1x128xf32, #tpu.memory_space<vmem>>, vector<1x1x1x128xf32>
    %509 = vector.shape_cast %508 : vector<1x1x1x128xf32> to vector<1x128xf32>
    %c3_i32_356 = arith.constant 3 : i32
    %510 = tpu.dynamic_rotate %507 by %c3_i32_356 dim 1 : vector<16x128xf32>, i32 -> vector<16x128xf32>
    %c3_357 = arith.constant 3 : index
    %c0_358 = arith.constant 0 : index
    %c0_359 = arith.constant 0 : index
    %c0_360 = arith.constant 0 : index
    %511 = vector.load %arg4[%c3_357, %c0_358, %c0_359, %c0_360] : memref<6x7x16x1xf32, #tpu.memory_space<vmem>>, vector<1x1x16x1xf32>
    %512 = vector.shape_cast %511 : vector<1x1x16x1xf32> to vector<16x1xf32>
    %513 = vector.broadcast %509 : vector<1x128xf32> to vector<16x128xf32>
    %514 = arith.mulf %510, %513 : vector<16x128xf32>
    %515 = vector.broadcast %512 : vector<16x1xf32> to vector<16x128xf32>
    %516 = arith.mulf %515, %514 : vector<16x128xf32>
    %c0_361 = arith.constant 0 : index
    %c1_362 = arith.constant 1 : index
    %c0_363 = arith.constant 0 : index
    %c0_364 = arith.constant 0 : index
    %517 = vector.load %arg14[%c0_361, %c1_362, %c0_363, %c0_364] : memref<3x7x1x128xf32, #tpu.memory_space<vmem>>, vector<1x1x1x128xf32>
    %518 = vector.shape_cast %517 : vector<1x1x1x128xf32> to vector<1x128xf32>
    %c2_i32_365 = arith.constant 2 : i32
    %519 = tpu.dynamic_rotate %507 by %c2_i32_365 dim 1 : vector<16x128xf32>, i32 -> vector<16x128xf32>
    %c3_366 = arith.constant 3 : index
    %c1_367 = arith.constant 1 : index
    %c0_368 = arith.constant 0 : index
    %c0_369 = arith.constant 0 : index
    %520 = vector.load %arg4[%c3_366, %c1_367, %c0_368, %c0_369] : memref<6x7x16x1xf32, #tpu.memory_space<vmem>>, vector<1x1x16x1xf32>
    %521 = vector.shape_cast %520 : vector<1x1x16x1xf32> to vector<16x1xf32>
    %522 = vector.broadcast %518 : vector<1x128xf32> to vector<16x128xf32>
    %523 = arith.mulf %519, %522 : vector<16x128xf32>
    %524 = vector.broadcast %521 : vector<16x1xf32> to vector<16x128xf32>
    %525 = arith.mulf %524, %523 : vector<16x128xf32>
    %526 = arith.addf %516, %525 : vector<16x128xf32>
    %c0_370 = arith.constant 0 : index
    %c2_371 = arith.constant 2 : index
    %c0_372 = arith.constant 0 : index
    %c0_373 = arith.constant 0 : index
    %527 = vector.load %arg14[%c0_370, %c2_371, %c0_372, %c0_373] : memref<3x7x1x128xf32, #tpu.memory_space<vmem>>, vector<1x1x1x128xf32>
    %528 = vector.shape_cast %527 : vector<1x1x1x128xf32> to vector<1x128xf32>
    %c1_i32_374 = arith.constant 1 : i32
    %529 = tpu.dynamic_rotate %507 by %c1_i32_374 dim 1 : vector<16x128xf32>, i32 -> vector<16x128xf32>
    %c3_375 = arith.constant 3 : index
    %c2_376 = arith.constant 2 : index
    %c0_377 = arith.constant 0 : index
    %c0_378 = arith.constant 0 : index
    %530 = vector.load %arg4[%c3_375, %c2_376, %c0_377, %c0_378] : memref<6x7x16x1xf32, #tpu.memory_space<vmem>>, vector<1x1x16x1xf32>
    %531 = vector.shape_cast %530 : vector<1x1x16x1xf32> to vector<16x1xf32>
    %532 = vector.broadcast %528 : vector<1x128xf32> to vector<16x128xf32>
    %533 = arith.mulf %529, %532 : vector<16x128xf32>
    %534 = vector.broadcast %531 : vector<16x1xf32> to vector<16x128xf32>
    %535 = arith.mulf %534, %533 : vector<16x128xf32>
    %536 = arith.addf %526, %535 : vector<16x128xf32>
    %c0_379 = arith.constant 0 : index
    %c3_380 = arith.constant 3 : index
    %c0_381 = arith.constant 0 : index
    %c0_382 = arith.constant 0 : index
    %537 = vector.load %arg14[%c0_379, %c3_380, %c0_381, %c0_382] : memref<3x7x1x128xf32, #tpu.memory_space<vmem>>, vector<1x1x1x128xf32>
    %538 = vector.shape_cast %537 : vector<1x1x1x128xf32> to vector<1x128xf32>
    %c3_383 = arith.constant 3 : index
    %c3_384 = arith.constant 3 : index
    %c0_385 = arith.constant 0 : index
    %c0_386 = arith.constant 0 : index
    %539 = vector.load %arg4[%c3_383, %c3_384, %c0_385, %c0_386] : memref<6x7x16x1xf32, #tpu.memory_space<vmem>>, vector<1x1x16x1xf32>
    %540 = vector.shape_cast %539 : vector<1x1x16x1xf32> to vector<16x1xf32>
    %541 = vector.broadcast %538 : vector<1x128xf32> to vector<16x128xf32>
    %542 = arith.mulf %507, %541 : vector<16x128xf32>
    %543 = vector.broadcast %540 : vector<16x1xf32> to vector<16x128xf32>
    %544 = arith.mulf %543, %542 : vector<16x128xf32>
    %545 = arith.addf %536, %544 : vector<16x128xf32>
    %c0_387 = arith.constant 0 : index
    %c4_388 = arith.constant 4 : index
    %c0_389 = arith.constant 0 : index
    %c0_390 = arith.constant 0 : index
    %546 = vector.load %arg14[%c0_387, %c4_388, %c0_389, %c0_390] : memref<3x7x1x128xf32, #tpu.memory_space<vmem>>, vector<1x1x1x128xf32>
    %547 = vector.shape_cast %546 : vector<1x1x1x128xf32> to vector<1x128xf32>
    %c127_i32_391 = arith.constant 127 : i32
    %548 = tpu.dynamic_rotate %507 by %c127_i32_391 dim 1 : vector<16x128xf32>, i32 -> vector<16x128xf32>
    %c3_392 = arith.constant 3 : index
    %c4_393 = arith.constant 4 : index
    %c0_394 = arith.constant 0 : index
    %c0_395 = arith.constant 0 : index
    %549 = vector.load %arg4[%c3_392, %c4_393, %c0_394, %c0_395] : memref<6x7x16x1xf32, #tpu.memory_space<vmem>>, vector<1x1x16x1xf32>
    %550 = vector.shape_cast %549 : vector<1x1x16x1xf32> to vector<16x1xf32>
    %551 = vector.broadcast %547 : vector<1x128xf32> to vector<16x128xf32>
    %552 = arith.mulf %548, %551 : vector<16x128xf32>
    %553 = vector.broadcast %550 : vector<16x1xf32> to vector<16x128xf32>
    %554 = arith.mulf %553, %552 : vector<16x128xf32>
    %555 = arith.addf %545, %554 : vector<16x128xf32>
    %c0_396 = arith.constant 0 : index
    %c5_397 = arith.constant 5 : index
    %c0_398 = arith.constant 0 : index
    %c0_399 = arith.constant 0 : index
    %556 = vector.load %arg14[%c0_396, %c5_397, %c0_398, %c0_399] : memref<3x7x1x128xf32, #tpu.memory_space<vmem>>, vector<1x1x1x128xf32>
    %557 = vector.shape_cast %556 : vector<1x1x1x128xf32> to vector<1x128xf32>
    %c126_i32_400 = arith.constant 126 : i32
    %558 = tpu.dynamic_rotate %507 by %c126_i32_400 dim 1 : vector<16x128xf32>, i32 -> vector<16x128xf32>
    %c3_401 = arith.constant 3 : index
    %c5_402 = arith.constant 5 : index
    %c0_403 = arith.constant 0 : index
    %c0_404 = arith.constant 0 : index
    %559 = vector.load %arg4[%c3_401, %c5_402, %c0_403, %c0_404] : memref<6x7x16x1xf32, #tpu.memory_space<vmem>>, vector<1x1x16x1xf32>
    %560 = vector.shape_cast %559 : vector<1x1x16x1xf32> to vector<16x1xf32>
    %561 = vector.broadcast %557 : vector<1x128xf32> to vector<16x128xf32>
    %562 = arith.mulf %558, %561 : vector<16x128xf32>
    %563 = vector.broadcast %560 : vector<16x1xf32> to vector<16x128xf32>
    %564 = arith.mulf %563, %562 : vector<16x128xf32>
    %565 = arith.addf %555, %564 : vector<16x128xf32>
    %c0_405 = arith.constant 0 : index
    %c6_406 = arith.constant 6 : index
    %c0_407 = arith.constant 0 : index
    %c0_408 = arith.constant 0 : index
    %566 = vector.load %arg14[%c0_405, %c6_406, %c0_407, %c0_408] : memref<3x7x1x128xf32, #tpu.memory_space<vmem>>, vector<1x1x1x128xf32>
    %567 = vector.shape_cast %566 : vector<1x1x1x128xf32> to vector<1x128xf32>
    %c125_i32_409 = arith.constant 125 : i32
    %568 = tpu.dynamic_rotate %507 by %c125_i32_409 dim 1 : vector<16x128xf32>, i32 -> vector<16x128xf32>
    %c3_410 = arith.constant 3 : index
    %c6_411 = arith.constant 6 : index
    %c0_412 = arith.constant 0 : index
    %c0_413 = arith.constant 0 : index
    %569 = vector.load %arg4[%c3_410, %c6_411, %c0_412, %c0_413] : memref<6x7x16x1xf32, #tpu.memory_space<vmem>>, vector<1x1x16x1xf32>
    %570 = vector.shape_cast %569 : vector<1x1x16x1xf32> to vector<16x1xf32>
    %571 = vector.broadcast %567 : vector<1x128xf32> to vector<16x128xf32>
    %572 = arith.mulf %568, %571 : vector<16x128xf32>
    %573 = vector.broadcast %570 : vector<16x1xf32> to vector<16x128xf32>
    %574 = arith.mulf %573, %572 : vector<16x128xf32>
    %575 = arith.addf %565, %574 : vector<16x128xf32>
    %c7 = arith.constant 7 : index
    %576 = memref.load %arg20[%c7] : memref<12xf32, #tpu.memory_space<smem>>
    %cst_414 = arith.constant 0.000000e+00 : f32
    %577 = vector.broadcast %cst_414 : f32 to vector<16x128xf32>
    %578 = arith.cmpf oge, %575, %577 : vector<16x128xf32>
    %579 = vector.broadcast %576 : f32 to vector<16x128xf32>
    %580 = arith.mulf %579, %575 : vector<16x128xf32>
    %581 = arith.select %578, %575, %580 : vector<16x128xi1>, vector<16x128xf32>
    %c7_415 = arith.constant 7 : index
    %c0_416 = arith.constant 0 : index
    %c0_417 = arith.constant 0 : index
    %582 = vector.load %arg6[%c7_415, %c0_416, %c0_417] : memref<12x16x1xf32, #tpu.memory_space<vmem>>, vector<1x16x1xf32>
    %583 = vector.shape_cast %582 : vector<1x16x1xf32> to vector<16x1xf32>
    %c7_418 = arith.constant 7 : index
    %c0_419 = arith.constant 0 : index
    %c0_420 = arith.constant 0 : index
    %584 = vector.load %arg7[%c7_418, %c0_419, %c0_420] : memref<12x16x1xf32, #tpu.memory_space<vmem>>, vector<1x16x1xf32>
    %585 = vector.shape_cast %584 : vector<1x16x1xf32> to vector<16x1xf32>
    %cst_421 = arith.constant dense<0.000000e+00> : vector<16x8xf32>
    %586 = tpu.matmul %581, %469, %cst_421 {dimension_numbers = #tpu.dot_dimension_numbers<[1], [0], [0], [1], [0, 0, 1, 1], [], []>} : vector<16x128xf32>, vector<128x8xf32>, vector<16x8xf32> -> vector<16x8xf32>
    %cst_422 = arith.constant dense<0.000000e+00> : vector<8xf32>
    %587 = vector.multi_reduction <add>, %586, %cst_422 [0] : vector<16x8xf32> to vector<8xf32>
    %588 = vector.shape_cast %587 : vector<8xf32> to vector<1x8xf32>
    %cst_423 = arith.constant 0.001953125 : f32
    %589 = vector.broadcast %cst_423 : f32 to vector<1x8xf32>
    %590 = arith.mulf %588, %589 : vector<1x8xf32>
    %cst_424 = arith.constant dense<0.000000e+00> : vector<1x128xf32>
    %591 = tpu.matmul %590, %470, %cst_424 {dimension_numbers = #tpu.dot_dimension_numbers<[1], [0], [0], [1], [0, 0, 1, 1], [], []>} : vector<1x8xf32>, vector<8x128xf32>, vector<1x128xf32> -> vector<1x128xf32>
    %592 = vector.broadcast %591 : vector<1x128xf32> to vector<16x128xf32>
    %593 = arith.subf %581, %592 : vector<16x128xf32>
    %594 = arith.mulf %593, %593 : vector<16x128xf32>
    %cst_425 = arith.constant dense<0.000000e+00> : vector<16x8xf32>
    %595 = tpu.matmul %594, %469, %cst_425 {dimension_numbers = #tpu.dot_dimension_numbers<[1], [0], [0], [1], [0, 0, 1, 1], [], []>} : vector<16x128xf32>, vector<128x8xf32>, vector<16x8xf32> -> vector<16x8xf32>
    %cst_426 = arith.constant dense<0.000000e+00> : vector<8xf32>
    %596 = vector.multi_reduction <add>, %595, %cst_426 [0] : vector<16x8xf32> to vector<8xf32>
    %597 = vector.shape_cast %596 : vector<8xf32> to vector<1x8xf32>
    %cst_427 = arith.constant 0.001953125 : f32
    %598 = vector.broadcast %cst_427 : f32 to vector<1x8xf32>
    %599 = arith.mulf %597, %598 : vector<1x8xf32>
    %cst_428 = arith.constant dense<0.000000e+00> : vector<1x128xf32>
    %600 = tpu.matmul %599, %470, %cst_428 {dimension_numbers = #tpu.dot_dimension_numbers<[1], [0], [0], [1], [0, 0, 1, 1], [], []>} : vector<1x8xf32>, vector<8x128xf32>, vector<1x128xf32> -> vector<1x128xf32>
    %601 = vector.broadcast %583 : vector<16x1xf32> to vector<16x128xf32>
    %602 = arith.mulf %601, %593 : vector<16x128xf32>
    %cst_429 = arith.constant 9.99999993E-9 : f32
    %603 = vector.broadcast %cst_429 : f32 to vector<1x128xf32>
    %604 = arith.addf %600, %603 : vector<1x128xf32>
    %605 = math.rsqrt %604 : vector<1x128xf32>
    %606 = vector.broadcast %605 : vector<1x128xf32> to vector<16x128xf32>
    %607 = arith.mulf %602, %606 : vector<16x128xf32>
    %608 = vector.broadcast %585 : vector<16x1xf32> to vector<16x128xf32>
    %609 = arith.addf %607, %608 : vector<16x128xf32>
    %c3_430 = arith.constant 3 : index
    %c0_431 = arith.constant 0 : index
    %c0_432 = arith.constant 0 : index
    %610 = vector.load %arg5[%c3_430, %c0_431, %c0_432] : memref<6x16x16xf32, #tpu.memory_space<vmem>>, vector<1x16x16xf32>
    %611 = vector.shape_cast %610 : vector<1x16x16xf32> to vector<16x16xf32>
    %cst_433 = arith.constant dense<0.000000e+00> : vector<16x128xf32>
    %612 = tpu.matmul %611, %609, %cst_433 {dimension_numbers = #tpu.dot_dimension_numbers<[1], [0], [0], [1], [0, 0, 1, 1], [], []>} : vector<16x16xf32>, vector<16x128xf32>, vector<16x128xf32> -> vector<16x128xf32>
    %613 = arith.addf %468, %612 : vector<16x128xf32>
    %c4_434 = arith.constant 4 : index
    %c0_435 = arith.constant 0 : index
    %c0_436 = arith.constant 0 : index
    %614 = vector.load %arg3[%c4_434, %c0_435, %c0_436] : memref<6x16x16xf32, #tpu.memory_space<vmem>>, vector<1x16x16xf32>
    %615 = vector.shape_cast %614 : vector<1x16x16xf32> to vector<16x16xf32>
    %cst_437 = arith.constant dense<0.000000e+00> : vector<16x128xf32>
    %616 = tpu.matmul %615, %613, %cst_437 {dimension_numbers = #tpu.dot_dimension_numbers<[1], [0], [0], [1], [0, 0, 1, 1], [], []>} : vector<16x16xf32>, vector<16x128xf32>, vector<16x128xf32> -> vector<16x128xf32>
    %c8 = arith.constant 8 : index
    %617 = memref.load %arg20[%c8] : memref<12xf32, #tpu.memory_space<smem>>
    %cst_438 = arith.constant 0.000000e+00 : f32
    %618 = vector.broadcast %cst_438 : f32 to vector<16x128xf32>
    %619 = arith.cmpf oge, %616, %618 : vector<16x128xf32>
    %620 = vector.broadcast %617 : f32 to vector<16x128xf32>
    %621 = arith.mulf %620, %616 : vector<16x128xf32>
    %622 = arith.select %619, %616, %621 : vector<16x128xi1>, vector<16x128xf32>
    %c8_439 = arith.constant 8 : index
    %c0_440 = arith.constant 0 : index
    %c0_441 = arith.constant 0 : index
    %623 = vector.load %arg6[%c8_439, %c0_440, %c0_441] : memref<12x16x1xf32, #tpu.memory_space<vmem>>, vector<1x16x1xf32>
    %624 = vector.shape_cast %623 : vector<1x16x1xf32> to vector<16x1xf32>
    %c8_442 = arith.constant 8 : index
    %c0_443 = arith.constant 0 : index
    %c0_444 = arith.constant 0 : index
    %625 = vector.load %arg7[%c8_442, %c0_443, %c0_444] : memref<12x16x1xf32, #tpu.memory_space<vmem>>, vector<1x16x1xf32>
    %626 = vector.shape_cast %625 : vector<1x16x1xf32> to vector<16x1xf32>
    %cst_445 = arith.constant dense<0.000000e+00> : vector<16x8xf32>
    %627 = tpu.matmul %622, %469, %cst_445 {dimension_numbers = #tpu.dot_dimension_numbers<[1], [0], [0], [1], [0, 0, 1, 1], [], []>} : vector<16x128xf32>, vector<128x8xf32>, vector<16x8xf32> -> vector<16x8xf32>
    %cst_446 = arith.constant dense<0.000000e+00> : vector<8xf32>
    %628 = vector.multi_reduction <add>, %627, %cst_446 [0] : vector<16x8xf32> to vector<8xf32>
    %629 = vector.shape_cast %628 : vector<8xf32> to vector<1x8xf32>
    %cst_447 = arith.constant 0.001953125 : f32
    %630 = vector.broadcast %cst_447 : f32 to vector<1x8xf32>
    %631 = arith.mulf %629, %630 : vector<1x8xf32>
    %cst_448 = arith.constant dense<0.000000e+00> : vector<1x128xf32>
    %632 = tpu.matmul %631, %470, %cst_448 {dimension_numbers = #tpu.dot_dimension_numbers<[1], [0], [0], [1], [0, 0, 1, 1], [], []>} : vector<1x8xf32>, vector<8x128xf32>, vector<1x128xf32> -> vector<1x128xf32>
    %633 = vector.broadcast %632 : vector<1x128xf32> to vector<16x128xf32>
    %634 = arith.subf %622, %633 : vector<16x128xf32>
    %635 = arith.mulf %634, %634 : vector<16x128xf32>
    %cst_449 = arith.constant dense<0.000000e+00> : vector<16x8xf32>
    %636 = tpu.matmul %635, %469, %cst_449 {dimension_numbers = #tpu.dot_dimension_numbers<[1], [0], [0], [1], [0, 0, 1, 1], [], []>} : vector<16x128xf32>, vector<128x8xf32>, vector<16x8xf32> -> vector<16x8xf32>
    %cst_450 = arith.constant dense<0.000000e+00> : vector<8xf32>
    %637 = vector.multi_reduction <add>, %636, %cst_450 [0] : vector<16x8xf32> to vector<8xf32>
    %638 = vector.shape_cast %637 : vector<8xf32> to vector<1x8xf32>
    %cst_451 = arith.constant 0.001953125 : f32
    %639 = vector.broadcast %cst_451 : f32 to vector<1x8xf32>
    %640 = arith.mulf %638, %639 : vector<1x8xf32>
    %cst_452 = arith.constant dense<0.000000e+00> : vector<1x128xf32>
    %641 = tpu.matmul %640, %470, %cst_452 {dimension_numbers = #tpu.dot_dimension_numbers<[1], [0], [0], [1], [0, 0, 1, 1], [], []>} : vector<1x8xf32>, vector<8x128xf32>, vector<1x128xf32> -> vector<1x128xf32>
    %642 = vector.broadcast %624 : vector<16x1xf32> to vector<16x128xf32>
    %643 = arith.mulf %642, %634 : vector<16x128xf32>
    %cst_453 = arith.constant 9.99999993E-9 : f32
    %644 = vector.broadcast %cst_453 : f32 to vector<1x128xf32>
    %645 = arith.addf %641, %644 : vector<1x128xf32>
    %646 = math.rsqrt %645 : vector<1x128xf32>
    %647 = vector.broadcast %646 : vector<1x128xf32> to vector<16x128xf32>
    %648 = arith.mulf %643, %647 : vector<16x128xf32>
    %649 = vector.broadcast %626 : vector<16x1xf32> to vector<16x128xf32>
    %650 = arith.addf %648, %649 : vector<16x128xf32>
    %c1_454 = arith.constant 1 : index
    %c0_455 = arith.constant 0 : index
    %c0_456 = arith.constant 0 : index
    %c0_457 = arith.constant 0 : index
    %651 = vector.load %arg14[%c1_454, %c0_455, %c0_456, %c0_457] : memref<3x7x1x128xf32, #tpu.memory_space<vmem>>, vector<1x1x1x128xf32>
    %652 = vector.shape_cast %651 : vector<1x1x1x128xf32> to vector<1x128xf32>
    %c9_i32_458 = arith.constant 9 : i32
    %653 = tpu.dynamic_rotate %650 by %c9_i32_458 dim 1 : vector<16x128xf32>, i32 -> vector<16x128xf32>
    %c4_459 = arith.constant 4 : index
    %c0_460 = arith.constant 0 : index
    %c0_461 = arith.constant 0 : index
    %c0_462 = arith.constant 0 : index
    %654 = vector.load %arg4[%c4_459, %c0_460, %c0_461, %c0_462] : memref<6x7x16x1xf32, #tpu.memory_space<vmem>>, vector<1x1x16x1xf32>
    %655 = vector.shape_cast %654 : vector<1x1x16x1xf32> to vector<16x1xf32>
    %656 = vector.broadcast %652 : vector<1x128xf32> to vector<16x128xf32>
    %657 = arith.mulf %653, %656 : vector<16x128xf32>
    %658 = vector.broadcast %655 : vector<16x1xf32> to vector<16x128xf32>
    %659 = arith.mulf %658, %657 : vector<16x128xf32>
    %c1_463 = arith.constant 1 : index
    %c1_464 = arith.constant 1 : index
    %c0_465 = arith.constant 0 : index
    %c0_466 = arith.constant 0 : index
    %660 = vector.load %arg14[%c1_463, %c1_464, %c0_465, %c0_466] : memref<3x7x1x128xf32, #tpu.memory_space<vmem>>, vector<1x1x1x128xf32>
    %661 = vector.shape_cast %660 : vector<1x1x1x128xf32> to vector<1x128xf32>
    %c6_i32_467 = arith.constant 6 : i32
    %662 = tpu.dynamic_rotate %650 by %c6_i32_467 dim 1 : vector<16x128xf32>, i32 -> vector<16x128xf32>
    %c4_468 = arith.constant 4 : index
    %c1_469 = arith.constant 1 : index
    %c0_470 = arith.constant 0 : index
    %c0_471 = arith.constant 0 : index
    %663 = vector.load %arg4[%c4_468, %c1_469, %c0_470, %c0_471] : memref<6x7x16x1xf32, #tpu.memory_space<vmem>>, vector<1x1x16x1xf32>
    %664 = vector.shape_cast %663 : vector<1x1x16x1xf32> to vector<16x1xf32>
    %665 = vector.broadcast %661 : vector<1x128xf32> to vector<16x128xf32>
    %666 = arith.mulf %662, %665 : vector<16x128xf32>
    %667 = vector.broadcast %664 : vector<16x1xf32> to vector<16x128xf32>
    %668 = arith.mulf %667, %666 : vector<16x128xf32>
    %669 = arith.addf %659, %668 : vector<16x128xf32>
    %c1_472 = arith.constant 1 : index
    %c2_473 = arith.constant 2 : index
    %c0_474 = arith.constant 0 : index
    %c0_475 = arith.constant 0 : index
    %670 = vector.load %arg14[%c1_472, %c2_473, %c0_474, %c0_475] : memref<3x7x1x128xf32, #tpu.memory_space<vmem>>, vector<1x1x1x128xf32>
    %671 = vector.shape_cast %670 : vector<1x1x1x128xf32> to vector<1x128xf32>
    %c3_i32_476 = arith.constant 3 : i32
    %672 = tpu.dynamic_rotate %650 by %c3_i32_476 dim 1 : vector<16x128xf32>, i32 -> vector<16x128xf32>
    %c4_477 = arith.constant 4 : index
    %c2_478 = arith.constant 2 : index
    %c0_479 = arith.constant 0 : index
    %c0_480 = arith.constant 0 : index
    %673 = vector.load %arg4[%c4_477, %c2_478, %c0_479, %c0_480] : memref<6x7x16x1xf32, #tpu.memory_space<vmem>>, vector<1x1x16x1xf32>
    %674 = vector.shape_cast %673 : vector<1x1x16x1xf32> to vector<16x1xf32>
    %675 = vector.broadcast %671 : vector<1x128xf32> to vector<16x128xf32>
    %676 = arith.mulf %672, %675 : vector<16x128xf32>
    %677 = vector.broadcast %674 : vector<16x1xf32> to vector<16x128xf32>
    %678 = arith.mulf %677, %676 : vector<16x128xf32>
    %679 = arith.addf %669, %678 : vector<16x128xf32>
    %c1_481 = arith.constant 1 : index
    %c3_482 = arith.constant 3 : index
    %c0_483 = arith.constant 0 : index
    %c0_484 = arith.constant 0 : index
    %680 = vector.load %arg14[%c1_481, %c3_482, %c0_483, %c0_484] : memref<3x7x1x128xf32, #tpu.memory_space<vmem>>, vector<1x1x1x128xf32>
    %681 = vector.shape_cast %680 : vector<1x1x1x128xf32> to vector<1x128xf32>
    %c4_485 = arith.constant 4 : index
    %c3_486 = arith.constant 3 : index
    %c0_487 = arith.constant 0 : index
    %c0_488 = arith.constant 0 : index
    %682 = vector.load %arg4[%c4_485, %c3_486, %c0_487, %c0_488] : memref<6x7x16x1xf32, #tpu.memory_space<vmem>>, vector<1x1x16x1xf32>
    %683 = vector.shape_cast %682 : vector<1x1x16x1xf32> to vector<16x1xf32>
    %684 = vector.broadcast %681 : vector<1x128xf32> to vector<16x128xf32>
    %685 = arith.mulf %650, %684 : vector<16x128xf32>
    %686 = vector.broadcast %683 : vector<16x1xf32> to vector<16x128xf32>
    %687 = arith.mulf %686, %685 : vector<16x128xf32>
    %688 = arith.addf %679, %687 : vector<16x128xf32>
    %c1_489 = arith.constant 1 : index
    %c4_490 = arith.constant 4 : index
    %c0_491 = arith.constant 0 : index
    %c0_492 = arith.constant 0 : index
    %689 = vector.load %arg14[%c1_489, %c4_490, %c0_491, %c0_492] : memref<3x7x1x128xf32, #tpu.memory_space<vmem>>, vector<1x1x1x128xf32>
    %690 = vector.shape_cast %689 : vector<1x1x1x128xf32> to vector<1x128xf32>
    %c125_i32_493 = arith.constant 125 : i32
    %691 = tpu.dynamic_rotate %650 by %c125_i32_493 dim 1 : vector<16x128xf32>, i32 -> vector<16x128xf32>
    %c4_494 = arith.constant 4 : index
    %c4_495 = arith.constant 4 : index
    %c0_496 = arith.constant 0 : index
    %c0_497 = arith.constant 0 : index
    %692 = vector.load %arg4[%c4_494, %c4_495, %c0_496, %c0_497] : memref<6x7x16x1xf32, #tpu.memory_space<vmem>>, vector<1x1x16x1xf32>
    %693 = vector.shape_cast %692 : vector<1x1x16x1xf32> to vector<16x1xf32>
    %694 = vector.broadcast %690 : vector<1x128xf32> to vector<16x128xf32>
    %695 = arith.mulf %691, %694 : vector<16x128xf32>
    %696 = vector.broadcast %693 : vector<16x1xf32> to vector<16x128xf32>
    %697 = arith.mulf %696, %695 : vector<16x128xf32>
    %698 = arith.addf %688, %697 : vector<16x128xf32>
    %c1_498 = arith.constant 1 : index
    %c5_499 = arith.constant 5 : index
    %c0_500 = arith.constant 0 : index
    %c0_501 = arith.constant 0 : index
    %699 = vector.load %arg14[%c1_498, %c5_499, %c0_500, %c0_501] : memref<3x7x1x128xf32, #tpu.memory_space<vmem>>, vector<1x1x1x128xf32>
    %700 = vector.shape_cast %699 : vector<1x1x1x128xf32> to vector<1x128xf32>
    %c122_i32_502 = arith.constant 122 : i32
    %701 = tpu.dynamic_rotate %650 by %c122_i32_502 dim 1 : vector<16x128xf32>, i32 -> vector<16x128xf32>
    %c4_503 = arith.constant 4 : index
    %c5_504 = arith.constant 5 : index
    %c0_505 = arith.constant 0 : index
    %c0_506 = arith.constant 0 : index
    %702 = vector.load %arg4[%c4_503, %c5_504, %c0_505, %c0_506] : memref<6x7x16x1xf32, #tpu.memory_space<vmem>>, vector<1x1x16x1xf32>
    %703 = vector.shape_cast %702 : vector<1x1x16x1xf32> to vector<16x1xf32>
    %704 = vector.broadcast %700 : vector<1x128xf32> to vector<16x128xf32>
    %705 = arith.mulf %701, %704 : vector<16x128xf32>
    %706 = vector.broadcast %703 : vector<16x1xf32> to vector<16x128xf32>
    %707 = arith.mulf %706, %705 : vector<16x128xf32>
    %708 = arith.addf %698, %707 : vector<16x128xf32>
    %c1_507 = arith.constant 1 : index
    %c6_508 = arith.constant 6 : index
    %c0_509 = arith.constant 0 : index
    %c0_510 = arith.constant 0 : index
    %709 = vector.load %arg14[%c1_507, %c6_508, %c0_509, %c0_510] : memref<3x7x1x128xf32, #tpu.memory_space<vmem>>, vector<1x1x1x128xf32>
    %710 = vector.shape_cast %709 : vector<1x1x1x128xf32> to vector<1x128xf32>
    %c119_i32_511 = arith.constant 119 : i32
    %711 = tpu.dynamic_rotate %650 by %c119_i32_511 dim 1 : vector<16x128xf32>, i32 -> vector<16x128xf32>
    %c4_512 = arith.constant 4 : index
    %c6_513 = arith.constant 6 : index
    %c0_514 = arith.constant 0 : index
    %c0_515 = arith.constant 0 : index
    %712 = vector.load %arg4[%c4_512, %c6_513, %c0_514, %c0_515] : memref<6x7x16x1xf32, #tpu.memory_space<vmem>>, vector<1x1x16x1xf32>
    %713 = vector.shape_cast %712 : vector<1x1x16x1xf32> to vector<16x1xf32>
    %714 = vector.broadcast %710 : vector<1x128xf32> to vector<16x128xf32>
    %715 = arith.mulf %711, %714 : vector<16x128xf32>
    %716 = vector.broadcast %713 : vector<16x1xf32> to vector<16x128xf32>
    %717 = arith.mulf %716, %715 : vector<16x128xf32>
    %718 = arith.addf %708, %717 : vector<16x128xf32>
    %c9 = arith.constant 9 : index
    %719 = memref.load %arg20[%c9] : memref<12xf32, #tpu.memory_space<smem>>
    %cst_516 = arith.constant 0.000000e+00 : f32
    %720 = vector.broadcast %cst_516 : f32 to vector<16x128xf32>
    %721 = arith.cmpf oge, %718, %720 : vector<16x128xf32>
    %722 = vector.broadcast %719 : f32 to vector<16x128xf32>
    %723 = arith.mulf %722, %718 : vector<16x128xf32>
    %724 = arith.select %721, %718, %723 : vector<16x128xi1>, vector<16x128xf32>
    %c9_517 = arith.constant 9 : index
    %c0_518 = arith.constant 0 : index
    %c0_519 = arith.constant 0 : index
    %725 = vector.load %arg6[%c9_517, %c0_518, %c0_519] : memref<12x16x1xf32, #tpu.memory_space<vmem>>, vector<1x16x1xf32>
    %726 = vector.shape_cast %725 : vector<1x16x1xf32> to vector<16x1xf32>
    %c9_520 = arith.constant 9 : index
    %c0_521 = arith.constant 0 : index
    %c0_522 = arith.constant 0 : index
    %727 = vector.load %arg7[%c9_520, %c0_521, %c0_522] : memref<12x16x1xf32, #tpu.memory_space<vmem>>, vector<1x16x1xf32>
    %728 = vector.shape_cast %727 : vector<1x16x1xf32> to vector<16x1xf32>
    %cst_523 = arith.constant dense<0.000000e+00> : vector<16x8xf32>
    %729 = tpu.matmul %724, %469, %cst_523 {dimension_numbers = #tpu.dot_dimension_numbers<[1], [0], [0], [1], [0, 0, 1, 1], [], []>} : vector<16x128xf32>, vector<128x8xf32>, vector<16x8xf32> -> vector<16x8xf32>
    %cst_524 = arith.constant dense<0.000000e+00> : vector<8xf32>
    %730 = vector.multi_reduction <add>, %729, %cst_524 [0] : vector<16x8xf32> to vector<8xf32>
    %731 = vector.shape_cast %730 : vector<8xf32> to vector<1x8xf32>
    %cst_525 = arith.constant 0.001953125 : f32
    %732 = vector.broadcast %cst_525 : f32 to vector<1x8xf32>
    %733 = arith.mulf %731, %732 : vector<1x8xf32>
    %cst_526 = arith.constant dense<0.000000e+00> : vector<1x128xf32>
    %734 = tpu.matmul %733, %470, %cst_526 {dimension_numbers = #tpu.dot_dimension_numbers<[1], [0], [0], [1], [0, 0, 1, 1], [], []>} : vector<1x8xf32>, vector<8x128xf32>, vector<1x128xf32> -> vector<1x128xf32>
    %735 = vector.broadcast %734 : vector<1x128xf32> to vector<16x128xf32>
    %736 = arith.subf %724, %735 : vector<16x128xf32>
    %737 = arith.mulf %736, %736 : vector<16x128xf32>
    %cst_527 = arith.constant dense<0.000000e+00> : vector<16x8xf32>
    %738 = tpu.matmul %737, %469, %cst_527 {dimension_numbers = #tpu.dot_dimension_numbers<[1], [0], [0], [1], [0, 0, 1, 1], [], []>} : vector<16x128xf32>, vector<128x8xf32>, vector<16x8xf32> -> vector<16x8xf32>
    %cst_528 = arith.constant dense<0.000000e+00> : vector<8xf32>
    %739 = vector.multi_reduction <add>, %738, %cst_528 [0] : vector<16x8xf32> to vector<8xf32>
    %740 = vector.shape_cast %739 : vector<8xf32> to vector<1x8xf32>
    %cst_529 = arith.constant 0.001953125 : f32
    %741 = vector.broadcast %cst_529 : f32 to vector<1x8xf32>
    %742 = arith.mulf %740, %741 : vector<1x8xf32>
    %cst_530 = arith.constant dense<0.000000e+00> : vector<1x128xf32>
    %743 = tpu.matmul %742, %470, %cst_530 {dimension_numbers = #tpu.dot_dimension_numbers<[1], [0], [0], [1], [0, 0, 1, 1], [], []>} : vector<1x8xf32>, vector<8x128xf32>, vector<1x128xf32> -> vector<1x128xf32>
    %744 = vector.broadcast %726 : vector<16x1xf32> to vector<16x128xf32>
    %745 = arith.mulf %744, %736 : vector<16x128xf32>
    %cst_531 = arith.constant 9.99999993E-9 : f32
    %746 = vector.broadcast %cst_531 : f32 to vector<1x128xf32>
    %747 = arith.addf %743, %746 : vector<1x128xf32>
    %748 = math.rsqrt %747 : vector<1x128xf32>
    %749 = vector.broadcast %748 : vector<1x128xf32> to vector<16x128xf32>
    %750 = arith.mulf %745, %749 : vector<16x128xf32>
    %751 = vector.broadcast %728 : vector<16x1xf32> to vector<16x128xf32>
    %752 = arith.addf %750, %751 : vector<16x128xf32>
    %c4_532 = arith.constant 4 : index
    %c0_533 = arith.constant 0 : index
    %c0_534 = arith.constant 0 : index
    %753 = vector.load %arg5[%c4_532, %c0_533, %c0_534] : memref<6x16x16xf32, #tpu.memory_space<vmem>>, vector<1x16x16xf32>
    %754 = vector.shape_cast %753 : vector<1x16x16xf32> to vector<16x16xf32>
    %cst_535 = arith.constant dense<0.000000e+00> : vector<16x128xf32>
    %755 = tpu.matmul %754, %752, %cst_535 {dimension_numbers = #tpu.dot_dimension_numbers<[1], [0], [0], [1], [0, 0, 1, 1], [], []>} : vector<16x16xf32>, vector<16x128xf32>, vector<16x128xf32> -> vector<16x128xf32>
    %756 = arith.addf %613, %755 : vector<16x128xf32>
    %c5_536 = arith.constant 5 : index
    %c0_537 = arith.constant 0 : index
    %c0_538 = arith.constant 0 : index
    %757 = vector.load %arg3[%c5_536, %c0_537, %c0_538] : memref<6x16x16xf32, #tpu.memory_space<vmem>>, vector<1x16x16xf32>
    %758 = vector.shape_cast %757 : vector<1x16x16xf32> to vector<16x16xf32>
    %cst_539 = arith.constant dense<0.000000e+00> : vector<16x128xf32>
    %759 = tpu.matmul %758, %756, %cst_539 {dimension_numbers = #tpu.dot_dimension_numbers<[1], [0], [0], [1], [0, 0, 1, 1], [], []>} : vector<16x16xf32>, vector<16x128xf32>, vector<16x128xf32> -> vector<16x128xf32>
    %c10 = arith.constant 10 : index
    %760 = memref.load %arg20[%c10] : memref<12xf32, #tpu.memory_space<smem>>
    %cst_540 = arith.constant 0.000000e+00 : f32
    %761 = vector.broadcast %cst_540 : f32 to vector<16x128xf32>
    %762 = arith.cmpf oge, %759, %761 : vector<16x128xf32>
    %763 = vector.broadcast %760 : f32 to vector<16x128xf32>
    %764 = arith.mulf %763, %759 : vector<16x128xf32>
    %765 = arith.select %762, %759, %764 : vector<16x128xi1>, vector<16x128xf32>
    %c10_541 = arith.constant 10 : index
    %c0_542 = arith.constant 0 : index
    %c0_543 = arith.constant 0 : index
    %766 = vector.load %arg6[%c10_541, %c0_542, %c0_543] : memref<12x16x1xf32, #tpu.memory_space<vmem>>, vector<1x16x1xf32>
    %767 = vector.shape_cast %766 : vector<1x16x1xf32> to vector<16x1xf32>
    %c10_544 = arith.constant 10 : index
    %c0_545 = arith.constant 0 : index
    %c0_546 = arith.constant 0 : index
    %768 = vector.load %arg7[%c10_544, %c0_545, %c0_546] : memref<12x16x1xf32, #tpu.memory_space<vmem>>, vector<1x16x1xf32>
    %769 = vector.shape_cast %768 : vector<1x16x1xf32> to vector<16x1xf32>
    %cst_547 = arith.constant dense<0.000000e+00> : vector<16x8xf32>
    %770 = tpu.matmul %765, %469, %cst_547 {dimension_numbers = #tpu.dot_dimension_numbers<[1], [0], [0], [1], [0, 0, 1, 1], [], []>} : vector<16x128xf32>, vector<128x8xf32>, vector<16x8xf32> -> vector<16x8xf32>
    %cst_548 = arith.constant dense<0.000000e+00> : vector<8xf32>
    %771 = vector.multi_reduction <add>, %770, %cst_548 [0] : vector<16x8xf32> to vector<8xf32>
    %772 = vector.shape_cast %771 : vector<8xf32> to vector<1x8xf32>
    %cst_549 = arith.constant 0.001953125 : f32
    %773 = vector.broadcast %cst_549 : f32 to vector<1x8xf32>
    %774 = arith.mulf %772, %773 : vector<1x8xf32>
    %cst_550 = arith.constant dense<0.000000e+00> : vector<1x128xf32>
    %775 = tpu.matmul %774, %470, %cst_550 {dimension_numbers = #tpu.dot_dimension_numbers<[1], [0], [0], [1], [0, 0, 1, 1], [], []>} : vector<1x8xf32>, vector<8x128xf32>, vector<1x128xf32> -> vector<1x128xf32>
    %776 = vector.broadcast %775 : vector<1x128xf32> to vector<16x128xf32>
    %777 = arith.subf %765, %776 : vector<16x128xf32>
    %778 = arith.mulf %777, %777 : vector<16x128xf32>
    %cst_551 = arith.constant dense<0.000000e+00> : vector<16x8xf32>
    %779 = tpu.matmul %778, %469, %cst_551 {dimension_numbers = #tpu.dot_dimension_numbers<[1], [0], [0], [1], [0, 0, 1, 1], [], []>} : vector<16x128xf32>, vector<128x8xf32>, vector<16x8xf32> -> vector<16x8xf32>
    %cst_552 = arith.constant dense<0.000000e+00> : vector<8xf32>
    %780 = vector.multi_reduction <add>, %779, %cst_552 [0] : vector<16x8xf32> to vector<8xf32>
    %781 = vector.shape_cast %780 : vector<8xf32> to vector<1x8xf32>
    %cst_553 = arith.constant 0.001953125 : f32
    %782 = vector.broadcast %cst_553 : f32 to vector<1x8xf32>
    %783 = arith.mulf %781, %782 : vector<1x8xf32>
    %cst_554 = arith.constant dense<0.000000e+00> : vector<1x128xf32>
    %784 = tpu.matmul %783, %470, %cst_554 {dimension_numbers = #tpu.dot_dimension_numbers<[1], [0], [0], [1], [0, 0, 1, 1], [], []>} : vector<1x8xf32>, vector<8x128xf32>, vector<1x128xf32> -> vector<1x128xf32>
    %785 = vector.broadcast %767 : vector<16x1xf32> to vector<16x128xf32>
    %786 = arith.mulf %785, %777 : vector<16x128xf32>
    %cst_555 = arith.constant 9.99999993E-9 : f32
    %787 = vector.broadcast %cst_555 : f32 to vector<1x128xf32>
    %788 = arith.addf %784, %787 : vector<1x128xf32>
    %789 = math.rsqrt %788 : vector<1x128xf32>
    %790 = vector.broadcast %789 : vector<1x128xf32> to vector<16x128xf32>
    %791 = arith.mulf %786, %790 : vector<16x128xf32>
    %792 = vector.broadcast %769 : vector<16x1xf32> to vector<16x128xf32>
    %793 = arith.addf %791, %792 : vector<16x128xf32>
    %c2_556 = arith.constant 2 : index
    %c0_557 = arith.constant 0 : index
    %c0_558 = arith.constant 0 : index
    %c0_559 = arith.constant 0 : index
    %794 = vector.load %arg14[%c2_556, %c0_557, %c0_558, %c0_559] : memref<3x7x1x128xf32, #tpu.memory_space<vmem>>, vector<1x1x1x128xf32>
    %795 = vector.shape_cast %794 : vector<1x1x1x128xf32> to vector<1x128xf32>
    %c27_i32_560 = arith.constant 27 : i32
    %796 = tpu.dynamic_rotate %793 by %c27_i32_560 dim 1 : vector<16x128xf32>, i32 -> vector<16x128xf32>
    %c5_561 = arith.constant 5 : index
    %c0_562 = arith.constant 0 : index
    %c0_563 = arith.constant 0 : index
    %c0_564 = arith.constant 0 : index
    %797 = vector.load %arg4[%c5_561, %c0_562, %c0_563, %c0_564] : memref<6x7x16x1xf32, #tpu.memory_space<vmem>>, vector<1x1x16x1xf32>
    %798 = vector.shape_cast %797 : vector<1x1x16x1xf32> to vector<16x1xf32>
    %799 = vector.broadcast %795 : vector<1x128xf32> to vector<16x128xf32>
    %800 = arith.mulf %796, %799 : vector<16x128xf32>
    %801 = vector.broadcast %798 : vector<16x1xf32> to vector<16x128xf32>
    %802 = arith.mulf %801, %800 : vector<16x128xf32>
    %c2_565 = arith.constant 2 : index
    %c1_566 = arith.constant 1 : index
    %c0_567 = arith.constant 0 : index
    %c0_568 = arith.constant 0 : index
    %803 = vector.load %arg14[%c2_565, %c1_566, %c0_567, %c0_568] : memref<3x7x1x128xf32, #tpu.memory_space<vmem>>, vector<1x1x1x128xf32>
    %804 = vector.shape_cast %803 : vector<1x1x1x128xf32> to vector<1x128xf32>
    %c18_i32_569 = arith.constant 18 : i32
    %805 = tpu.dynamic_rotate %793 by %c18_i32_569 dim 1 : vector<16x128xf32>, i32 -> vector<16x128xf32>
    %c5_570 = arith.constant 5 : index
    %c1_571 = arith.constant 1 : index
    %c0_572 = arith.constant 0 : index
    %c0_573 = arith.constant 0 : index
    %806 = vector.load %arg4[%c5_570, %c1_571, %c0_572, %c0_573] : memref<6x7x16x1xf32, #tpu.memory_space<vmem>>, vector<1x1x16x1xf32>
    %807 = vector.shape_cast %806 : vector<1x1x16x1xf32> to vector<16x1xf32>
    %808 = vector.broadcast %804 : vector<1x128xf32> to vector<16x128xf32>
    %809 = arith.mulf %805, %808 : vector<16x128xf32>
    %810 = vector.broadcast %807 : vector<16x1xf32> to vector<16x128xf32>
    %811 = arith.mulf %810, %809 : vector<16x128xf32>
    %812 = arith.addf %802, %811 : vector<16x128xf32>
    %c2_574 = arith.constant 2 : index
    %c2_575 = arith.constant 2 : index
    %c0_576 = arith.constant 0 : index
    %c0_577 = arith.constant 0 : index
    %813 = vector.load %arg14[%c2_574, %c2_575, %c0_576, %c0_577] : memref<3x7x1x128xf32, #tpu.memory_space<vmem>>, vector<1x1x1x128xf32>
    %814 = vector.shape_cast %813 : vector<1x1x1x128xf32> to vector<1x128xf32>
    %c9_i32_578 = arith.constant 9 : i32
    %815 = tpu.dynamic_rotate %793 by %c9_i32_578 dim 1 : vector<16x128xf32>, i32 -> vector<16x128xf32>
    %c5_579 = arith.constant 5 : index
    %c2_580 = arith.constant 2 : index
    %c0_581 = arith.constant 0 : index
    %c0_582 = arith.constant 0 : index
    %816 = vector.load %arg4[%c5_579, %c2_580, %c0_581, %c0_582] : memref<6x7x16x1xf32, #tpu.memory_space<vmem>>, vector<1x1x16x1xf32>
    %817 = vector.shape_cast %816 : vector<1x1x16x1xf32> to vector<16x1xf32>
    %818 = vector.broadcast %814 : vector<1x128xf32> to vector<16x128xf32>
    %819 = arith.mulf %815, %818 : vector<16x128xf32>
    %820 = vector.broadcast %817 : vector<16x1xf32> to vector<16x128xf32>
    %821 = arith.mulf %820, %819 : vector<16x128xf32>
    %822 = arith.addf %812, %821 : vector<16x128xf32>
    %c2_583 = arith.constant 2 : index
    %c3_584 = arith.constant 3 : index
    %c0_585 = arith.constant 0 : index
    %c0_586 = arith.constant 0 : index
    %823 = vector.load %arg14[%c2_583, %c3_584, %c0_585, %c0_586] : memref<3x7x1x128xf32, #tpu.memory_space<vmem>>, vector<1x1x1x128xf32>
    %824 = vector.shape_cast %823 : vector<1x1x1x128xf32> to vector<1x128xf32>
    %c5_587 = arith.constant 5 : index
    %c3_588 = arith.constant 3 : index
    %c0_589 = arith.constant 0 : index
    %c0_590 = arith.constant 0 : index
    %825 = vector.load %arg4[%c5_587, %c3_588, %c0_589, %c0_590] : memref<6x7x16x1xf32, #tpu.memory_space<vmem>>, vector<1x1x16x1xf32>
    %826 = vector.shape_cast %825 : vector<1x1x16x1xf32> to vector<16x1xf32>
    %827 = vector.broadcast %824 : vector<1x128xf32> to vector<16x128xf32>
    %828 = arith.mulf %793, %827 : vector<16x128xf32>
    %829 = vector.broadcast %826 : vector<16x1xf32> to vector<16x128xf32>
    %830 = arith.mulf %829, %828 : vector<16x128xf32>
    %831 = arith.addf %822, %830 : vector<16x128xf32>
    %c2_591 = arith.constant 2 : index
    %c4_592 = arith.constant 4 : index
    %c0_593 = arith.constant 0 : index
    %c0_594 = arith.constant 0 : index
    %832 = vector.load %arg14[%c2_591, %c4_592, %c0_593, %c0_594] : memref<3x7x1x128xf32, #tpu.memory_space<vmem>>, vector<1x1x1x128xf32>
    %833 = vector.shape_cast %832 : vector<1x1x1x128xf32> to vector<1x128xf32>
    %c119_i32_595 = arith.constant 119 : i32
    %834 = tpu.dynamic_rotate %793 by %c119_i32_595 dim 1 : vector<16x128xf32>, i32 -> vector<16x128xf32>
    %c5_596 = arith.constant 5 : index
    %c4_597 = arith.constant 4 : index
    %c0_598 = arith.constant 0 : index
    %c0_599 = arith.constant 0 : index
    %835 = vector.load %arg4[%c5_596, %c4_597, %c0_598, %c0_599] : memref<6x7x16x1xf32, #tpu.memory_space<vmem>>, vector<1x1x16x1xf32>
    %836 = vector.shape_cast %835 : vector<1x1x16x1xf32> to vector<16x1xf32>
    %837 = vector.broadcast %833 : vector<1x128xf32> to vector<16x128xf32>
    %838 = arith.mulf %834, %837 : vector<16x128xf32>
    %839 = vector.broadcast %836 : vector<16x1xf32> to vector<16x128xf32>
    %840 = arith.mulf %839, %838 : vector<16x128xf32>
    %841 = arith.addf %831, %840 : vector<16x128xf32>
    %c2_600 = arith.constant 2 : index
    %c5_601 = arith.constant 5 : index
    %c0_602 = arith.constant 0 : index
    %c0_603 = arith.constant 0 : index
    %842 = vector.load %arg14[%c2_600, %c5_601, %c0_602, %c0_603] : memref<3x7x1x128xf32, #tpu.memory_space<vmem>>, vector<1x1x1x128xf32>
    %843 = vector.shape_cast %842 : vector<1x1x1x128xf32> to vector<1x128xf32>
    %c110_i32_604 = arith.constant 110 : i32
    %844 = tpu.dynamic_rotate %793 by %c110_i32_604 dim 1 : vector<16x128xf32>, i32 -> vector<16x128xf32>
    %c5_605 = arith.constant 5 : index
    %c5_606 = arith.constant 5 : index
    %c0_607 = arith.constant 0 : index
    %c0_608 = arith.constant 0 : index
    %845 = vector.load %arg4[%c5_605, %c5_606, %c0_607, %c0_608] : memref<6x7x16x1xf32, #tpu.memory_space<vmem>>, vector<1x1x16x1xf32>
    %846 = vector.shape_cast %845 : vector<1x1x16x1xf32> to vector<16x1xf32>
    %847 = vector.broadcast %843 : vector<1x128xf32> to vector<16x128xf32>
    %848 = arith.mulf %844, %847 : vector<16x128xf32>
    %849 = vector.broadcast %846 : vector<16x1xf32> to vector<16x128xf32>
    %850 = arith.mulf %849, %848 : vector<16x128xf32>
    %851 = arith.addf %841, %850 : vector<16x128xf32>
    %c2_609 = arith.constant 2 : index
    %c6_610 = arith.constant 6 : index
    %c0_611 = arith.constant 0 : index
    %c0_612 = arith.constant 0 : index
    %852 = vector.load %arg14[%c2_609, %c6_610, %c0_611, %c0_612] : memref<3x7x1x128xf32, #tpu.memory_space<vmem>>, vector<1x1x1x128xf32>
    %853 = vector.shape_cast %852 : vector<1x1x1x128xf32> to vector<1x128xf32>
    %c101_i32_613 = arith.constant 101 : i32
    %854 = tpu.dynamic_rotate %793 by %c101_i32_613 dim 1 : vector<16x128xf32>, i32 -> vector<16x128xf32>
    %c5_614 = arith.constant 5 : index
    %c6_615 = arith.constant 6 : index
    %c0_616 = arith.constant 0 : index
    %c0_617 = arith.constant 0 : index
    %855 = vector.load %arg4[%c5_614, %c6_615, %c0_616, %c0_617] : memref<6x7x16x1xf32, #tpu.memory_space<vmem>>, vector<1x1x16x1xf32>
    %856 = vector.shape_cast %855 : vector<1x1x16x1xf32> to vector<16x1xf32>
    %857 = vector.broadcast %853 : vector<1x128xf32> to vector<16x128xf32>
    %858 = arith.mulf %854, %857 : vector<16x128xf32>
    %859 = vector.broadcast %856 : vector<16x1xf32> to vector<16x128xf32>
    %860 = arith.mulf %859, %858 : vector<16x128xf32>
    %861 = arith.addf %851, %860 : vector<16x128xf32>
    %c11 = arith.constant 11 : index
    %862 = memref.load %arg20[%c11] : memref<12xf32, #tpu.memory_space<smem>>
    %cst_618 = arith.constant 0.000000e+00 : f32
    %863 = vector.broadcast %cst_618 : f32 to vector<16x128xf32>
    %864 = arith.cmpf oge, %861, %863 : vector<16x128xf32>
    %865 = vector.broadcast %862 : f32 to vector<16x128xf32>
    %866 = arith.mulf %865, %861 : vector<16x128xf32>
    %867 = arith.select %864, %861, %866 : vector<16x128xi1>, vector<16x128xf32>
    %c11_619 = arith.constant 11 : index
    %c0_620 = arith.constant 0 : index
    %c0_621 = arith.constant 0 : index
    %868 = vector.load %arg6[%c11_619, %c0_620, %c0_621] : memref<12x16x1xf32, #tpu.memory_space<vmem>>, vector<1x16x1xf32>
    %869 = vector.shape_cast %868 : vector<1x16x1xf32> to vector<16x1xf32>
    %c11_622 = arith.constant 11 : index
    %c0_623 = arith.constant 0 : index
    %c0_624 = arith.constant 0 : index
    %870 = vector.load %arg7[%c11_622, %c0_623, %c0_624] : memref<12x16x1xf32, #tpu.memory_space<vmem>>, vector<1x16x1xf32>
    %871 = vector.shape_cast %870 : vector<1x16x1xf32> to vector<16x1xf32>
    %cst_625 = arith.constant dense<0.000000e+00> : vector<16x8xf32>
    %872 = tpu.matmul %867, %469, %cst_625 {dimension_numbers = #tpu.dot_dimension_numbers<[1], [0], [0], [1], [0, 0, 1, 1], [], []>} : vector<16x128xf32>, vector<128x8xf32>, vector<16x8xf32> -> vector<16x8xf32>
    %cst_626 = arith.constant dense<0.000000e+00> : vector<8xf32>
    %873 = vector.multi_reduction <add>, %872, %cst_626 [0] : vector<16x8xf32> to vector<8xf32>
    %874 = vector.shape_cast %873 : vector<8xf32> to vector<1x8xf32>
    %cst_627 = arith.constant 0.001953125 : f32
    %875 = vector.broadcast %cst_627 : f32 to vector<1x8xf32>
    %876 = arith.mulf %874, %875 : vector<1x8xf32>
    %cst_628 = arith.constant dense<0.000000e+00> : vector<1x128xf32>
    %877 = tpu.matmul %876, %470, %cst_628 {dimension_numbers = #tpu.dot_dimension_numbers<[1], [0], [0], [1], [0, 0, 1, 1], [], []>} : vector<1x8xf32>, vector<8x128xf32>, vector<1x128xf32> -> vector<1x128xf32>
    %878 = vector.broadcast %877 : vector<1x128xf32> to vector<16x128xf32>
    %879 = arith.subf %867, %878 : vector<16x128xf32>
    %880 = arith.mulf %879, %879 : vector<16x128xf32>
    %cst_629 = arith.constant dense<0.000000e+00> : vector<16x8xf32>
    %881 = tpu.matmul %880, %469, %cst_629 {dimension_numbers = #tpu.dot_dimension_numbers<[1], [0], [0], [1], [0, 0, 1, 1], [], []>} : vector<16x128xf32>, vector<128x8xf32>, vector<16x8xf32> -> vector<16x8xf32>
    %cst_630 = arith.constant dense<0.000000e+00> : vector<8xf32>
    %882 = vector.multi_reduction <add>, %881, %cst_630 [0] : vector<16x8xf32> to vector<8xf32>
    %883 = vector.shape_cast %882 : vector<8xf32> to vector<1x8xf32>
    %cst_631 = arith.constant 0.001953125 : f32
    %884 = vector.broadcast %cst_631 : f32 to vector<1x8xf32>
    %885 = arith.mulf %883, %884 : vector<1x8xf32>
    %cst_632 = arith.constant dense<0.000000e+00> : vector<1x128xf32>
    %886 = tpu.matmul %885, %470, %cst_632 {dimension_numbers = #tpu.dot_dimension_numbers<[1], [0], [0], [1], [0, 0, 1, 1], [], []>} : vector<1x8xf32>, vector<8x128xf32>, vector<1x128xf32> -> vector<1x128xf32>
    %887 = vector.broadcast %869 : vector<16x1xf32> to vector<16x128xf32>
    %888 = arith.mulf %887, %879 : vector<16x128xf32>
    %cst_633 = arith.constant 9.99999993E-9 : f32
    %889 = vector.broadcast %cst_633 : f32 to vector<1x128xf32>
    %890 = arith.addf %886, %889 : vector<1x128xf32>
    %891 = math.rsqrt %890 : vector<1x128xf32>
    %892 = vector.broadcast %891 : vector<1x128xf32> to vector<16x128xf32>
    %893 = arith.mulf %888, %892 : vector<16x128xf32>
    %894 = vector.broadcast %871 : vector<16x1xf32> to vector<16x128xf32>
    %895 = arith.addf %893, %894 : vector<16x128xf32>
    %c5_634 = arith.constant 5 : index
    %c0_635 = arith.constant 0 : index
    %c0_636 = arith.constant 0 : index
    %896 = vector.load %arg5[%c5_634, %c0_635, %c0_636] : memref<6x16x16xf32, #tpu.memory_space<vmem>>, vector<1x16x16xf32>
    %897 = vector.shape_cast %896 : vector<1x16x16xf32> to vector<16x16xf32>
    %cst_637 = arith.constant dense<0.000000e+00> : vector<16x128xf32>
    %898 = tpu.matmul %897, %895, %cst_637 {dimension_numbers = #tpu.dot_dimension_numbers<[1], [0], [0], [1], [0, 0, 1, 1], [], []>} : vector<16x16xf32>, vector<16x128xf32>, vector<16x128xf32> -> vector<16x128xf32>
    %899 = arith.addf %756, %898 : vector<16x128xf32>
    %900 = arith.addf %468, %899 : vector<16x128xf32>
    %c0_638 = arith.constant 0 : index
    %c0_639 = arith.constant 0 : index
    %c0_640 = arith.constant 0 : index
    %901 = vector.load %arg19[%c0_638, %c0_639, %c0_640] : memref<4x128x32xf32, #tpu.memory_space<vmem>>, vector<1x128x32xf32>
    %902 = vector.shape_cast %901 : vector<1x128x32xf32> to vector<128x32xf32>
    %cst_641 = arith.constant dense<0.000000e+00> : vector<16x32xf32>
    %903 = tpu.matmul %900, %902, %cst_641 {dimension_numbers = #tpu.dot_dimension_numbers<[1], [0], [0], [1], [0, 0, 1, 1], [], []>} : vector<16x128xf32>, vector<128x32xf32>, vector<16x32xf32> -> vector<16x32xf32>
    %c1_642 = arith.constant 1 : index
    %c0_643 = arith.constant 0 : index
    %c0_644 = arith.constant 0 : index
    %904 = vector.load %arg19[%c1_642, %c0_643, %c0_644] : memref<4x128x32xf32, #tpu.memory_space<vmem>>, vector<1x128x32xf32>
    %905 = vector.shape_cast %904 : vector<1x128x32xf32> to vector<128x32xf32>
    %cst_645 = arith.constant dense<0.000000e+00> : vector<16x32xf32>
    %906 = tpu.matmul %900, %905, %cst_645 {dimension_numbers = #tpu.dot_dimension_numbers<[1], [0], [0], [1], [0, 0, 1, 1], [], []>} : vector<16x128xf32>, vector<128x32xf32>, vector<16x32xf32> -> vector<16x32xf32>
    %c2_646 = arith.constant 2 : index
    %c0_647 = arith.constant 0 : index
    %c0_648 = arith.constant 0 : index
    %907 = vector.load %arg19[%c2_646, %c0_647, %c0_648] : memref<4x128x32xf32, #tpu.memory_space<vmem>>, vector<1x128x32xf32>
    %908 = vector.shape_cast %907 : vector<1x128x32xf32> to vector<128x32xf32>
    %cst_649 = arith.constant dense<0.000000e+00> : vector<16x32xf32>
    %909 = tpu.matmul %900, %908, %cst_649 {dimension_numbers = #tpu.dot_dimension_numbers<[1], [0], [0], [1], [0, 0, 1, 1], [], []>} : vector<16x128xf32>, vector<128x32xf32>, vector<16x32xf32> -> vector<16x32xf32>
    %c3_650 = arith.constant 3 : index
    %c0_651 = arith.constant 0 : index
    %c0_652 = arith.constant 0 : index
    %910 = vector.load %arg19[%c3_650, %c0_651, %c0_652] : memref<4x128x32xf32, #tpu.memory_space<vmem>>, vector<1x128x32xf32>
    %911 = vector.shape_cast %910 : vector<1x128x32xf32> to vector<128x32xf32>
    %cst_653 = arith.constant dense<0.000000e+00> : vector<16x32xf32>
    %912 = tpu.matmul %900, %911, %cst_653 {dimension_numbers = #tpu.dot_dimension_numbers<[1], [0], [0], [1], [0, 0, 1, 1], [], []>} : vector<16x128xf32>, vector<128x32xf32>, vector<16x32xf32> -> vector<16x32xf32>
    %913 = tpu.concatenate %903, %906, %909, %912 in 0 : vector<16x32xf32>, vector<16x32xf32>, vector<16x32xf32>, vector<16x32xf32> -> vector<64x32xf32>
    %c0_654 = arith.constant 0 : index
    %c0_655 = arith.constant 0 : index
    %914 = vector.load %arg17[%c0_654, %c0_655] : memref<16x64xf32, #tpu.memory_space<vmem>>, vector<16x64xf32>
    %cst_656 = arith.constant dense<0.000000e+00> : vector<16x32xf32>
    %915 = tpu.matmul %914, %913, %cst_656 {dimension_numbers = #tpu.dot_dimension_numbers<[1], [0], [0], [1], [0, 0, 1, 1], [], []>} : vector<16x64xf32>, vector<64x32xf32>, vector<16x32xf32> -> vector<16x32xf32>
    %c0_657 = arith.constant 0 : index
    %c0_658 = arith.constant 0 : index
    %916 = vector.load %arg18[%c0_657, %c0_658] : memref<16x1xf32, #tpu.memory_space<vmem>>, vector<16x1xf32>
    %917 = vector.broadcast %916 : vector<16x1xf32> to vector<16x32xf32>
    %918 = arith.addf %915, %917 : vector<16x32xf32>
    %c0_659 = arith.constant 0 : index
    %c0_660 = arith.constant 0 : index
    %919 = vector.load %arg21[%c0_659, %c0_660] : memref<16x32xf32, #tpu.memory_space<vmem>>, vector<16x32xf32>
    tpu.vector_store %arg21[%c0_659, %c0_660], %918 {strides = array<i32>} : memref<16x32xf32, #tpu.memory_space<vmem>>, vector<16x32xf32>,
    return
  }
}

</mosaic_0001>

<bundles_post_ra>
// kernel: tpu_custom_call.1
= control target key start
LH: loop header
LB: loop body
LE: loop exit
PB: predicated region body
PF: predicated region fallthrough
CT: control target
= control target key end

     0   :  { %s13922_s0 = inlined_call_operand.vmem [shape: f32[16,128], index: 0, kind: input, shape index: {}]   ;;  %s13923_s1 = inlined_call_operand.vmem [shape: f32[16,16], index: 1, kind: input, shape index: {}]   ;;  %s13924_s2 = inlined_call_operand.vmem [shape: f32[16,1], index: 2, kind: input, shape index: {}]   ;;  %s13925_s3 = inlined_call_operand.vmem [shape: f32[6,16,16], index: 3, kind: input, shape index: {}]   ;;  %s13926_s4 = inlined_call_operand.vmem [shape: f32[6,7,16,1], index: 4, kind: input, shape index: {}]   ;;  %s13927_s5 = inlined_call_operand.vmem [shape: f32[6,16,16], index: 5, kind: input, shape index: {}]   ;;  %s13928_s6 = inlined_call_operand.vmem [shape: f32[12,16,1], index: 6, kind: input, shape index: {}]   ;;  %s13929_s7 = inlined_call_operand.vmem [shape: f32[12,16,1], index: 7, kind: input, shape index: {}]   ;;  %s13930_s8 = inlined_call_operand.vmem [shape: f32[3,7,1,128], index: 8, kind: input, shape index: {}]   ;;  %s13931_s9 = inlined_call_operand.vmem [shape: f32[128,8], index: 9, kind: input, shape index: {}]   ;;  %s13932_s10 = inlined_call_operand.vmem [shape: f32[8,128], index: 10, kind: input, shape index: {}]   ;;  %s13933_s11 = inlined_call_operand.vmem [shape: f32[16,64], index: 11, kind: input, shape index: {}]   ;;  %s13934_s12 = inlined_call_operand.vmem [shape: f32[16,1], index: 12, kind: input, shape index: {}]   ;;  %s13935_s13 = inlined_call_operand.vmem [shape: f32[4,128,64], index: 13, kind: input, shape index: {}]   ;;  %s13936_s14 = inlined_call_operand.vmem [shape: f32[3,7,1,128], index: 14, kind: input, shape index: {}]   ;;  %s13937_s15 = inlined_call_operand.vmem [shape: f32[128,8], index: 15, kind: input, shape index: {}]   ;;  %s13938_s16 = inlined_call_operand.vmem [shape: f32[8,128], index: 16, kind: input, shape index: {}]   ;;  %s13939_s17 = inlined_call_operand.vmem [shape: f32[16,64], index: 17, kind: input, shape index: {}]   ;;  %s13940_s18 = inlined_call_operand.vmem [shape: f32[16,1], index: 18, kind: input, shape index: {}]   ;;  %s13941_s19 = inlined_call_operand.vmem [shape: f32[4,128,32], index: 19, kind: input, shape index: {}]   ;;  %s13942_s20 = inlined_call_operand.vmem [shape: f32[12], index: 20, kind: input, shape index: {}]   ;;  %s13943_s21 = inlined_call_operand.hbm [shape: f32[16,32], index: 21, kind: output, shape index: {}]  }
   0x1   :  { %13968 = sst [smem:[#allocation8_spill]] %s13922_s0 }
   0x2   :  { %13969 = sst [smem:[#allocation9_spill]] %s13923_s1 }
   0x3   :  { %13970 = sst [smem:[#allocation10_spill]] %s13924_s2 }
   0x4   :  { %13971 = sst [smem:[#allocation11_spill]] %s13925_s3 }
   0x5   :  { %13972 = sst [smem:[#allocation12_spill]] %s13926_s4 }
   0x6   :  { %13973 = sst [smem:[#allocation13_spill]] %s13927_s5 }
   0x7   :  { %26 = vsyncpa [#allocation4], 0 }
   0x8   :  { %27 = vsyncpa [#allocation3], 0  ;;  %s74_s26 = sshll.u32 %s13942_s20, 4  ;;  %s75_s26 = int_to_ptr.vmem [resolvable:$true] %s74_s26 }
   0x9   :  { %s11678_s27 = scalar_lea.vmem %s75_s26, 16  ;;  %p11683_p1 = scmp.lt.s32.totalorder %s75_s26, %s75_s26 }
   0xa   :  { %p11679_p0 = scmp.ne.s32.totalorder %s75_s26, %s11678_s27  ;;  %p11684_p2 = scmp.lt.s32.totalorder %s11678_s27, %s11678_s27 }
   0xc   :  { %p11685_p3 = por %p11684_p2, %p11683_p1 }
   0xe   :  { %p11686_p4 = pnand %p11685_p3, %p11679_p0 }
  0x10   :  { %11689 = shalt.err (!%p11686_p4)
}
  0x11   :  { %s11716_s3 = smov [#allocation2]  }
  0x12   :  { %77 = dma.vmem_to_smem %s75_s26, 16, %s11716_s3, [#allocation4]  }
  0x13   :  { %11712 = dma.done.wait [#allocation4], 16  }
  0x14   :  { %11713 = vsyncadd [#allocation4], 4294967280 }
  0x15   :  { %81 = sfence }
  0x16   :  { %s13974_s0 = sld [smem:[#allocation8_spill]]  ;;  %v11717_v2 = vmov 0.0|0.0   ;;  %vm11718_vm0 = vmmov 0   ;;  %v11719_v4 = vmov 0.0   ;;  %vm84_vm1 = vcmask 130048   ;;  %s13975_s22 = sld [smem:[#allocation9_spill]] }
  0x17   :  { %10509 = vmatprep.subr.bf16.mxu0 %v11717_v2  ;;  %9130 = vmatprep.mubr.msk.f32.mxu0 %vm11718_vm0, %v11719_v4  ;;  %v11720_v5 = vmov 0.0625   ;;  %v158_v6 = vlaneseq  ;;  %s13976_s24 = sld [smem:[#allocation10_spill]]  ;;  %v11721_v19 = vmov 0   ;;  %v448_v21 = vld [vmem:[%s13929_s7] sm:$0xff]  ;;  %s13977_s29 = sld [smem:[#allocation12_spill]]  ;;  %v339_v41 = vld [vmem:[%s13931_s9 + $0x8] sm:$0xff] }
  0x18   :  { %11648 = vset.pattern.permute.xlu0 %v11721_v19  ;;  %11649 = vset.pattern.permute.xlu1 %v11721_v19  ;;  %s13978_s5 = sld [smem:[#allocation11_spill]]  ;;  %v338_v40 = vld [vmem:[%s13931_s9] sm:$0xff]  ;;  %v340_v42 = vld [vmem:[%s13931_s9 + $0x10] sm:$0xff]  ;;  %v341_v44 = vld [vmem:[%s13931_s9 + $0x18] sm:$0xff]  ;;  %vm525_vm4 = vcmask 64512   ;;  %s11722_s28 = smov 2  }
  0x19   :  { %v159_v7 = vshrl.u32 %v158_v6, 7  ;;  %v11922_v43 = vpack.c.bf16 %v339_v41, %v338_v40  ;;  %v11927_v45 = vpack.c.bf16 %v341_v44, %v340_v42  ;;  %v342_v46 = vld [vmem:[%s13931_s9 + $0x20] sm:$0xff]  ;;  %v343_v47 = vld [vmem:[%s13931_s9 + $0x28] sm:$0xff]  ;;  %v344_v49 = vld [vmem:[%s13931_s9 + $0x30] sm:$0xff]  ;;  %s13960_s20 = smov 1   ;;  %s13956_s23 = smov 126  }
  0x1a   :  { %v11938_v48 = vpack.c.bf16 %v343_v47, %v342_v46  ;;  %v345_v50 = vld [vmem:[%s13931_s9 + $0x38] sm:$0xff]  ;;  %v346_v52 = vld [vmem:[%s13931_s9 + $0x40] sm:$0xff]  ;;  %v347_v53 = vld [vmem:[%s13931_s9 + $0x48] sm:$0xff]  ;;  %s13954_s1 = smov 125   ;;  %s13979_s2 = sld [smem:[#allocation13_spill]]  ;;  %vm4090_vm15 = vcmask 523264  }
  0x1b   :  { %v11863_v8 = vsub.s32 0, %v159_v7  ;;  %v11948_v51 = vpack.c.bf16 %v345_v50, %v344_v49  ;;  %v11958_v54 = vpack.c.bf16 %v347_v53, %v346_v52  ;;  %v348_v55 = vld [vmem:[%s13931_s9 + $0x50] sm:$0xff]  ;;  %v349_v56 = vld [vmem:[%s13931_s9 + $0x58] sm:$0xff]  ;;  %v350_v58 = vld [vmem:[%s13931_s9 + $0x60] sm:$0xff]  ;;  %s8077_s3 = sld [smem:[#allocation2 + $0x2]]  ;;  %s13952_s4 = smov 6  }
  0x1c   :  { %v82_v0 = vld [vmem:[%s13974_s0] sm:$0xff]  ;;  %v83_v1 = vld [vmem:[%s13974_s0 + $0x8] sm:$0xff]  ;;  %v11968_v57 = vpack.c.bf16 %v349_v56, %v348_v55  ;;  %v352_v6 = vld [vmem:[%s13931_s9 + $0x70] sm:$0xff]  ;;  %s11723_s0 = smov 3   ;;  %s11729_s30 = smov 9  }
  0x1d   :  { %v10510_v3 = vpack.c.bf16 %v83_v1, %v82_v0  ;;  %v243_v17 = vld [vmem:[%s13975_s22] sm:$0xff]  ;;  %v246_v20 = vld [vmem:[%s13976_s24 + $0x8] sm:$0xff]  ;;  %v8049_v25 = vld [vmem:[%s13977_s29 + $0x30] sm:$0xff]  ;;  %s11732_s27 = smov 18   ;;  %s13964_s25 = smov 101  }
  0x1e   :  { %v245_v18 = vld [vmem:[%s13976_s24] sm:$0xff]  ;;  %v812_v23 = vld [vmem:[%s13977_s29 + $0x8] sm:$0xff]  ;;  %v8057_v28 = vld [vmem:[%s13977_s29 + $0x50] sm:$0xff]  ;;  %s13950_s24 = smov 127   ;;  %s13982_s26 = smov 125  }
  0x1f   :  { %10511 = vmatpush3.bf16.msra.mxu0 %v10510_v3  ;;  %249 = vperm.xlu0 %11648, %v245_v18   ;;  %v811_v22 = vld [vmem:[%s13977_s29] sm:$0xff]  ;;  %v8054_v27 = vld [vmem:[%s13977_s29 + $0x48] sm:$0xff]  ;;  %v353_v7 = vld [vmem:[%s13931_s9 + $0x78] sm:$0xff] }
  0x20   :  { %10512 = vmatprep.subr.bf16.mxu0 %v11717_v2  ;;  %v8045_v24 = vld [vmem:[%s13977_s29 + $0x20] sm:$0xff]  ;;  %v244_v38 = vld [vmem:[%s13975_s22 + $0x8] sm:$0xff]  ;;  %s438_s22 = sld [smem:[#allocation2]]  ;;  %v8041_v40 = vld [vmem:[%s13977_s29 + $0x10] sm:$0xff] }
  0x21   :  { %v8053_v26 = vld [vmem:[%s13977_s29 + $0x40] sm:$0xff]  ;;  %v351_v59 = vld [vmem:[%s13931_s9 + $0x68] sm:$0xff]  ;;  %v8042_v41 = vld [vmem:[%s13977_s29 + $0x18] sm:$0xff]  ;;  %s11731_s9 = smov 119  }
  0x22   :  { %9131 = vmatmul.mubr.msk.f32.vlgmr.msra.gmra.mrb[0].mxu0 %vm84_vm1, %v11720_v5  ;;  %v8061_v29 = vld [vmem:[%s13977_s29 + $0x60] sm:$0xff]  ;;  %v11978_v60 = vpack.c.bf16 %v351_v59, %v350_v58  ;;  %v447_v19 = vld [vmem:[%s13928_s6 + $0x8] sm:$0xff]  ;;  %v8050_v44 = vld [vmem:[%s13977_s29 + $0x38] sm:$0xff] }
  0x23   :  { %9137 = vmatprep.mubr.msk.f32.mxu0 %vm11718_vm0, %v11719_v4  ;;  %254 = vperm.xlu0 %11648, %v246_v20   ;;  %v355_v39 = vld [vmem:[%s13978_s5] sm:$0xff]  ;;  %v8046_v42 = vld [vmem:[%s13977_s29 + $0x28] sm:$0xff]  ;;  %v8058_v46 = vld [vmem:[%s13977_s29 + $0x58] sm:$0xff] }
  0x24   :  { %9151 = vmatprep.mubr.msk.f32.mxu1 %vm84_vm1, %v355_v39  ;;  %v446_v18 = vld [vmem:[%s13928_s6] sm:$0xff]  ;;  %v449_v39 = vld [vmem:[%s13929_s7 + $0x8] sm:$0xff] }
  0x25   :  { %704 = vperm.xlu1 %11649, %v446_v18  }
  0x27   :  { %796 = vperm.xlu0 %11648, %v448_v21  }
  0x29   :  { %709 = vperm.xlu1 %11649, %v447_v19  }
  0x2b   :  { %823 = vperm.xlu0 %11648, %v811_v22  }
  0x2d   :  { %801 = vperm.xlu1 %11649, %v449_v39   ;;  %v8105_v39 = vld [vmem:[%s13977_s29 + $0xc0] sm:$0xff] }
  0x2f   :  { %828 = vperm.xlu0 %11648, %v812_v23  }
  0x31   :  { %852 = vperm.xlu1 %11649, %v8041_v40   ;;  %v8098_v40 = vld [vmem:[%s13977_s29 + $0xa8] sm:$0xff] }
  0x33   :  { %883 = vperm.xlu0 %11648, %v8045_v24  }
  0x35   :  { %857 = vperm.xlu1 %11649, %v8042_v41   ;;  %v8109_v41 = vld [vmem:[%s13977_s29 + $0xd0] sm:$0xff] }
  0x37   :  { %910 = vperm.xlu0 %11648, %v8049_v25  }
  0x39   :  { %888 = vperm.xlu1 %11649, %v8046_v42   ;;  %v8106_v42 = vld [vmem:[%s13977_s29 + $0xc8] sm:$0xff] }
  0x3b   :  { %941 = vperm.xlu0 %11648, %v8053_v26  }
  0x3d   :  { %915 = vperm.xlu1 %11649, %v8050_v44  }
  0x3f   :  { %946 = vperm.xlu0 %11648, %v8054_v27  }
  0x41   :  { %977 = vperm.xlu1 %11649, %v8058_v46  }
  0x43   :  { %972 = vperm.xlu0 %11648, %v8057_v28  }
  0x47   :  { %1003 = vperm.xlu0 %11648, %v8061_v29  }
  0x9e   :  { %v250_v61 = vpop.permute.xlu0 %249 }
  0xa2   :  { %v255_v62 = vpop.permute.xlu0 %254 }
  0xf5   :  { %v154_v9 = vpop.f32.mrb[0].mxu0 }
  0xf6   :  { %v161_v10 = vrot.slane %v154_v9, %v11863_v8  ;;  %v9132_v11 = vpop.f32.mrb[1].mxu0  ;;  %v12002_v9 = vpack.c.bf16 %v353_v7, %v352_v6  ;;  %v705_v6 = vpop.permute.xlu1 %704 }
  0xf8   :  { %v162_v12 = vsub.f32 %v82_v0, %v161_v10  ;;  %v163_v13 = vsub.f32 %v83_v1, %v161_v10  ;;  %v441_v10 = vstv %s438_s22  ;;  %s13958_s22 = smov 122  }
  0xfa   :  { %v164_v14 = vmul.f32 %v162_v12, %v162_v12  ;;  %v165_v15 = vmul.f32 %v163_v13, %v163_v13  ;;  %v710_v7 = vpop.permute.xlu1 %709 }
  0xfc   :  { %v10513_v16 = vpack.c.bf16 %v165_v15, %v164_v14 }
  0xfe   :  { %10514 = vmatpush3.bf16.msra.mxu0 %v10513_v16  ;;  %v802_v19 = vpop.permute.xlu1 %801 }
 0x101   :  { %9138 = vmatmul.mubr.msk.f32.vlgmr.msra.gmra.mrb[2].mxu0 %vm84_vm1, %v11720_v5  ;;  %v356_v5 = vld [vmem:[%s13978_s5 + $0x8] sm:$0xff] }
 0x102   :  { %9144 = vmatprep.mubr.msk.f32.mxu0 %vm84_vm1, %v243_v17  ;;  %v12012_v17 = vld [vmem:[%s13932_s10] sm:$0xff] }
 0x1d4   :  { %v232_v30 = vpop.f32.mrb[2].mxu0 }
 0x1d5   :  { %v233_v31 = vadd.f32 1e-08, %v232_v30  ;;  %v9139_v32 = vpop.f32.mrb[3].mxu0 }
 0x1d7   :  { %11650 = vrsqrt.f32 %v233_v31 }
 0x1e1   :  { %v11651_v33 = vpop.eup %11650 }
 0x1e2   :  { %v240_v34 = vrot.slane %v11651_v33, %v11863_v8 }
 0x1e4   :  { %v241_v35 = vmul.f32 %v240_v34, %v162_v12  ;;  %v242_v36 = vmul.f32 %v240_v34, %v163_v13 }
 0x1e6   :  { %v10515_v37 = vpack.c.bf16 %v242_v36, %v241_v35 }
 0x1e8   :  { %10516 = vmatprep.subr.bf16.mxu0 %v10515_v37 }
 0x1e9   :  { %10518 = vmatpush3.bf16.msra.mxu0 %v10515_v37 }
 0x1ea   :  { %10524 = vmatprep.subr.bf16.mxu0 %v11922_v43 }
 0x1ec   :  { %9145 = vmatmul.mubr.msk.f32.vlgmr.msra.gmra.mrb[4].mxu0 %vm84_vm1, %v244_v38 }
 0x1ed   :  { %10526 = vmatpush3.bf16.msra.mxu0 %v11922_v43 }
 0x1ee   :  { %10528 = vmatprep.subr.bf16.mxu0 %v11927_v45 }
 0x1f1   :  { %10530 = vmatpush3.bf16.msra.mxu0 %v11927_v45 }
 0x1f2   :  { %10532 = vmatprep.subr.bf16.mxu0 %v11938_v48 }
 0x1f5   :  { %10534 = vmatpush3.bf16.msra.mxu0 %v11938_v48 }
 0x1f6   :  { %10536 = vmatprep.subr.bf16.mxu0 %v11948_v51 }
 0x1f9   :  { %10538 = vmatpush3.bf16.msra.mxu0 %v11948_v51 }
 0x1fa   :  { %10540 = vmatprep.subr.bf16.mxu0 %v11958_v54 }
 0x1fd   :  { %10542 = vmatpush3.bf16.msra.mxu0 %v11958_v54 }
 0x1fe   :  { %10544 = vmatprep.subr.bf16.mxu0 %v11968_v57 }
 0x201   :  { %10546 = vmatpush3.bf16.msra.mxu0 %v11968_v57 }
 0x202   :  { %10548 = vmatprep.subr.bf16.mxu0 %v11978_v60 }
 0x205   :  { %10550 = vmatpush3.bf16.msra.mxu0 %v11978_v60 }
 0x206   :  { %10552 = vmatprep.subr.bf16.mxu0 %v12002_v9 }
 0x209   :  { %10554 = vmatpush3.bf16.msra.mxu0 %v12002_v9 }
 0x20a   :  { %9229 = vmatprep.subr.mxu0 %v11719_v4 }
 0x2bf   :  { %v9146_v63 = vpop.f32.mrb[4].mxu0 }
 0x2c0   :  { %v11983_v0 = vadd.f32 %v9146_v63, %v255_v62  ;;  %v329_v1 = vpop.f32.mrb[5].mxu0 }
 0x2c1   :  { %v11985_v2 = vadd.f32 %v329_v1, %v250_v61 }
 0x2c3   :  { %v10519_v3 = vpack.c.bf16 %v11983_v0, %v11985_v2 }
 0x2c5   :  { %10520 = vmatprep.subr.bf16.mxu1 %v10519_v3 }
 0x2c6   :  { %10522 = vmatpush3.bf16.msra.mxu1 %v10519_v3 }
 0x2c7   :  { %9189 = vmatprep.subr.mxu1 %v11719_v4 }
 0x2c9   :  { %9152 = vmatmul.mubr.msk.f32.vlgmr.msra.gmra.mrb[0].mxu1 %vm84_vm1, %v356_v5 }
 0x2ca   :  { %9191 = vmatprep.mubr.msk.f32.mxu1 %vm11718_vm0, %v11719_v4  ;;  %9190 = vmatpush3.msra.mxu1 %v12012_v17 }
 0x2cb   :  { %10556 = vmatprep.subr.bf16.mxu1 %v11922_v43 }
 0x39c   :  { %v9153_v11 = vpop.f32.mrb[0].mxu1 }
 0x39d   :  { %v443_v12 = vmul.f32 %v9153_v11, %v441_v10  ;;  %v429_v13 = vpop.f32.mrb[1].mxu1  ;;  %vm440_vm2 = vcmp.ge.f32.partialorder %v9153_v11, 0.0 }
 0x39e   :  { %vm439_vm3 = vcmp.ge.f32.partialorder %v429_v13, 0.0  ;;  %v442_v14 = vmul.f32 %v441_v10, %v429_v13 }
 0x39f   :  { %v445_v16 = vsel %vm440_vm2, %v9153_v11, %v443_v12  ;;  %vm11072_vm2 = vmpackc.low %vm4090_vm15, %vm4090_vm15 }
 0x3a0   :  { %v444_v15 = vsel %vm439_vm3, %v429_v13, %v442_v14 }
 0x3a1   :  { %9186 = vmatprep.mubr.f32.mxu0 %v444_v15 }
 0x3a2   :  { %9187 = vmatmul.mubr.f32.vlgmr.msra.gmra.mrb[6].mxu0 %v445_v16 }
 0x3a3   :  { %9231 = vmatprep.mubr.msk.f32.mxu0 %vm11718_vm0, %v11719_v4  ;;  %9230 = vmatpush3.msra.mxu0 %v12012_v17 }
 0x3a4   :  { %10588 = vmatprep.subr.bf16.mxu0 %v11922_v43 }
 0x475   :  { %v9188_v20 = vpop.f32.mrb[6].mxu0 }
 0x476   :  { %v527_v21 = vsel %vm525_vm4, %v9188_v20, 0.0  ;;  %v516_v22 = vpop.f32.mrb[7].mxu0 }
 0x477   :  { %v526_v23 = vsel %vm525_vm4, %v516_v22, 0.0  ;;  %v8065_v22 = vld [vmem:[%s13928_s6 + $0x10] sm:$0xff] }
 0x478   :  { %v528_v24 = vadd.f32 %v527_v21, %v526_v23  ;;  %v8062_v21 = vld [vmem:[%s13977_s29 + $0x68] sm:$0xff]  ;;  %v8067_v23 = vld [vmem:[%s13929_s7 + $0x10] sm:$0xff] }
 0x47a   :  { %v529_v25 = vrot.slane %v528_v24, 4 }
 0x47c   :  { %v530_v26 = vadd.f32 %v529_v25, %v528_v24  ;;  %v8078_v24 = vld [vmem:[%s13928_s6 + $0x20] sm:$0xff] }
 0x47d   :  { %v8080_v25 = vld [vmem:[%s13929_s7 + $0x20] sm:$0xff] }
 0x47e   :  { %v531_v27 = vrot.slane %v530_v26, 2 }
 0x480   :  { %v532_v28 = vadd.f32 %v531_v27, %v530_v26  ;;  %v8066_v26 = vld [vmem:[%s13928_s6 + $0x18] sm:$0xff]  ;;  %v8085_v27 = vld [vmem:[%s13977_s29 + $0x70] sm:$0xff] }
 0x482   :  { %v533_v29 = vrot.slane %v532_v28, 1 }
 0x484   :  { %v534_v30 = vadd.f32 %v533_v29, %v532_v28  ;;  %v8068_v28 = vld [vmem:[%s13929_s7 + $0x18] sm:$0xff] }
 0x485   :  { %v8086_v29 = vld [vmem:[%s13977_s29 + $0x78] sm:$0xff] }
 0x486   :  { %v535_v31 = vmul.f32 0.0009765625, %v534_v30  ;;  %v8079_v30 = vld [vmem:[%s13928_s6 + $0x28] sm:$0xff] }
 0x488   :  { %9192 = vmatmul.mubr.msk.f32.vlgmr.msra.gmra.mrb[2].mxu1 %vm525_vm4, %v535_v31  ;;  %v8093_v31 = vld [vmem:[%s13977_s29 + $0x90] sm:$0xff] }
 0x489   :  { %10558 = vmatpush3.bf16.msra.mxu1 %v11922_v43 }
 0x48a   :  { %10560 = vmatprep.subr.bf16.mxu1 %v11927_v45 }
 0x48d   :  { %10562 = vmatpush3.bf16.msra.mxu1 %v11927_v45 }
 0x48e   :  { %10564 = vmatprep.subr.bf16.mxu1 %v11938_v48 }
 0x491   :  { %10566 = vmatpush3.bf16.msra.mxu1 %v11938_v48 }
 0x492   :  { %10568 = vmatprep.subr.bf16.mxu1 %v11948_v51 }
 0x495   :  { %10570 = vmatpush3.bf16.msra.mxu1 %v11948_v51 }
 0x496   :  { %10572 = vmatprep.subr.bf16.mxu1 %v11958_v54 }
 0x499   :  { %10574 = vmatpush3.bf16.msra.mxu1 %v11958_v54 }
 0x49a   :  { %10576 = vmatprep.subr.bf16.mxu1 %v11968_v57 }
 0x49d   :  { %10578 = vmatpush3.bf16.msra.mxu1 %v11968_v57 }
 0x49e   :  { %10580 = vmatprep.subr.bf16.mxu1 %v11978_v60 }
 0x4a1   :  { %10582 = vmatpush3.bf16.msra.mxu1 %v11978_v60 }
 0x4a2   :  { %10584 = vmatprep.subr.bf16.mxu1 %v12002_v9 }
 0x4a5   :  { %10586 = vmatpush3.bf16.msra.mxu1 %v12002_v9 }
 0x4a6   :  { %9269 = vmatprep.subr.mxu1 %v11719_v4 }
 0x55b   :  { %v605_v32 = vpop.f32.mrb[2].mxu1 }
 0x55c   :  { %v612_v33 = vrot.slane %v605_v32, %v11863_v8  ;;  %v9193_v34 = vpop.f32.mrb[3].mxu1  ;;  %v8081_v32 = vld [vmem:[%s13929_s7 + $0x28] sm:$0xff] }
 0x55d   :  { %v8089_v34 = vld [vmem:[%s13977_s29 + $0x80] sm:$0xff] }
 0x55e   :  { %v613_v35 = vsub.f32 %v444_v15, %v612_v33  ;;  %v614_v36 = vsub.f32 %v445_v16, %v612_v33  ;;  %v797_v16 = vpop.permute.xlu0 %796  ;;  %v8097_v33 = vld [vmem:[%s13977_s29 + $0xa0] sm:$0xff] }
 0x560   :  { %v616_v37 = vmul.f32 %v614_v36, %v614_v36  ;;  %v615_v38 = vmul.f32 %v613_v35, %v613_v35  ;;  %v712_v11 = vmul.f32 %v705_v6, %v613_v35  ;;  %v713_v12 = vmul.f32 %v710_v7, %v614_v36  ;;  %v8101_v35 = vld [vmem:[%s13977_s29 + $0xb0] sm:$0xff]  ;;  %v8090_v36 = vld [vmem:[%s13977_s29 + $0x88] sm:$0xff]  ;;  %v8043_v7 = vld [vmem:[%s13930_s8 + $0x1] ss:$0 sm:$0xff] }
 0x562   :  { %9226 = vmatprep.mubr.f32.mxu1 %v615_v38  ;;  %v8094_v38 = vld [vmem:[%s13977_s29 + $0x98] sm:$0xff]  ;;  %v824_v44 = vpop.permute.xlu0 %823 }
 0x563   :  { %9227 = vmatmul.mubr.f32.vlgmr.msra.gmra.mrb[4].mxu1 %v616_v37  ;;  %v8102_v37 = vld [vmem:[%s13977_s29 + $0xb8] sm:$0xff] }
 0x564   :  { %9270 = vmatpush3.msra.mxu1 %v12012_v17  ;;  %9271 = vmatprep.mubr.msk.f32.mxu1 %vm11718_vm0, %v11719_v4 }
 0x565   :  { %10620 = vmatprep.subr.bf16.mxu1 %v11922_v43 }
 0x566   :  { %v829_v46 = vpop.permute.xlu0 %828 }
 0x636   :  { %v9228_v47 = vpop.f32.mrb[4].mxu1 }
 0x637   :  { %v693_v49 = vsel %vm525_vm4, %v9228_v47, 0.0  ;;  %v683_v50 = vpop.f32.mrb[5].mxu1  ;;  %v884_v47 = vpop.permute.xlu0 %883 }
 0x638   :  { %v692_v52 = vsel %vm525_vm4, %v683_v50, 0.0 }
 0x639   :  { %v694_v53 = vadd.f32 %v693_v49, %v692_v52  ;;  %v853_v49 = vpop.permute.xlu1 %852 }
 0x63b   :  { %v695_v55 = vrot.slane %v694_v53, 4  ;;  %v911_v50 = vpop.permute.xlu0 %910 }
 0x63d   :  { %v696_v56 = vadd.f32 %v695_v55, %v694_v53  ;;  %v858_v52 = vpop.permute.xlu1 %857 }
 0x63f   :  { %v697_v58 = vrot.slane %v696_v56, 2  ;;  %v942_v53 = vpop.permute.xlu0 %941 }
 0x641   :  { %v698_v59 = vadd.f32 %v697_v58, %v696_v56  ;;  %v889_v55 = vpop.permute.xlu1 %888 }
 0x643   :  { %v699_v61 = vrot.slane %v698_v59, 1  ;;  %v947_v56 = vpop.permute.xlu0 %946 }
 0x645   :  { %v700_v62 = vadd.f32 %v699_v61, %v698_v59  ;;  %v916_v58 = vpop.permute.xlu1 %915 }
 0x647   :  { %v701_v63 = vmul.f32 0.0009765625, %v700_v62  ;;  %v973_v59 = vpop.permute.xlu0 %972 }
 0x649   :  { %9232 = vmatmul.mubr.msk.f32.vlgmr.msra.gmra.mrb[8].mxu0 %vm525_vm4, %v701_v63  ;;  %v978_v61 = vpop.permute.xlu1 %977 }
 0x64a   :  { %10590 = vmatpush3.bf16.msra.mxu0 %v11922_v43 }
 0x64b   :  { %10592 = vmatprep.subr.bf16.mxu0 %v11927_v45  ;;  %v1004_v62 = vpop.permute.xlu0 %1003 }
 0x64e   :  { %10594 = vmatpush3.bf16.msra.mxu0 %v11927_v45 }
 0x64f   :  { %10596 = vmatprep.subr.bf16.mxu0 %v11938_v48 }
 0x652   :  { %10598 = vmatpush3.bf16.msra.mxu0 %v11938_v48 }
 0x653   :  { %10600 = vmatprep.subr.bf16.mxu0 %v11948_v51 }
 0x656   :  { %10602 = vmatpush3.bf16.msra.mxu0 %v11948_v51 }
 0x657   :  { %10604 = vmatprep.subr.bf16.mxu0 %v11958_v54 }
 0x65a   :  { %10606 = vmatpush3.bf16.msra.mxu0 %v11958_v54 }
 0x65b   :  { %10608 = vmatprep.subr.bf16.mxu0 %v11968_v57 }
 0x65e   :  { %10610 = vmatpush3.bf16.msra.mxu0 %v11968_v57 }
 0x65f   :  { %10612 = vmatprep.subr.bf16.mxu0 %v11978_v60 }
 0x662   :  { %10614 = vmatpush3.bf16.msra.mxu0 %v11978_v60 }
 0x663   :  { %10616 = vmatprep.subr.bf16.mxu0 %v12002_v9 }
 0x666   :  { %10618 = vmatpush3.bf16.msra.mxu0 %v12002_v9 }
 0x667   :  { %9309 = vmatprep.subr.mxu0 %v11719_v4 }
 0x71c   :  { %v783_v1 = vpop.f32.mrb[8].mxu0 }
 0x71d   :  { %v784_v3 = vadd.f32 1e-08, %v783_v1  ;;  %v9233_v5 = vpop.f32.mrb[9].mxu0 }
 0x71f   :  { %11652 = vrsqrt.f32 %v784_v3 }
 0x729   :  { %v11653_v10 = vpop.eup %11652 }
 0x72a   :  { %v791_v13 = vrot.slane %v11653_v10, %v11863_v8  ;;  %v8039_v10 = vld [vmem:[%s13930_s8] ss:$0 sm:$0xff] }
 0x72c   :  { %v792_v14 = vmul.f32 %v791_v13, %v712_v11  ;;  %v793_v15 = vmul.f32 %v791_v13, %v713_v12 }
 0x72e   :  { %v12086_v18 = vadd.f32 %v797_v16, %v792_v14  ;;  %v12092_v20 = vadd.f32 %v802_v19, %v793_v15  ;;  %v8047_v14 = vld [vmem:[%s13930_s8 + $0x2] ss:$0 sm:$0xff] }
 0x730   :  { %835 = vrot.lane.b32.xlu0 %v12086_v18, %s11722_s28  ;;  %807 = vrot.lane.b32.xlu1 %v12086_v18, %s11723_s0 }
 0x734   :  { %809 = vrot.lane.b32.xlu0 %v12092_v20, %s11723_s0  ;;  %837 = vrot.lane.b32.xlu1 %v12092_v20, %s11722_s28 }
 0x738   :  { %1008 = vperm.xlu0 %11648, %v8062_v21   ;;  %866 = vrot.lane.b32.xlu1 %v12086_v18, %s13960_s20 }
 0x73c   :  { %955 = vrot.lane.b32.xlu0 %v12086_v18, %s13956_s23  ;;  %868 = vrot.lane.b32.xlu1 %v12092_v20, %s13960_s20  ;;  %s8112_s20 = sld [smem:[#allocation2 + $0x3]] }
 0x740   :  { %986 = vrot.lane.b32.xlu0 %v12086_v18, %s13954_s1  ;;  %924 = vrot.lane.b32.xlu1 %v12086_v18, %s13950_s24 }
 0x744   :  { %1282 = vperm.xlu0 %11648, %v8065_v22   ;;  %926 = vrot.lane.b32.xlu1 %v12092_v20, %s13950_s24  ;;  %s8064_s24 = sld [smem:[#allocation2 + $0x1]] }
 0x748   :  { %1374 = vperm.xlu0 %11648, %v8067_v23   ;;  %957 = vrot.lane.b32.xlu1 %v12092_v20, %s13956_s23  ;;  %s13962_s23 = smov 27  }
 0x74c   :  { %1820 = vperm.xlu0 %11648, %v8078_v24   ;;  %988 = vrot.lane.b32.xlu1 %v12092_v20, %s13954_s1 }
 0x750   :  { %1912 = vperm.xlu0 %11648, %v8080_v25   ;;  %1287 = vperm.xlu1 %11649, %v8066_v26   ;;  %v8051_v25 = vld [vmem:[%s13930_s8 + $0x3] ss:$0 sm:$0xff] }
 0x754   :  { %1941 = vperm.xlu0 %11648, %v8085_v27   ;;  %1379 = vperm.xlu1 %11649, %v8068_v28  }
 0x758   :  { %1946 = vperm.xlu0 %11648, %v8086_v29   ;;  %1825 = vperm.xlu1 %11649, %v8079_v30   ;;  %v8055_v29 = vld [vmem:[%s13930_s8 + $0x4] ss:$0 sm:$0xff] }
 0x75c   :  { %2001 = vperm.xlu0 %11648, %v8093_v31   ;;  %1917 = vperm.xlu1 %11649, %v8081_v32   ;;  %v907_v32 = vmul.f32 %v8051_v25, %v12092_v20 }
 0x760   :  { %2028 = vperm.xlu0 %11648, %v8097_v33   ;;  %1970 = vperm.xlu1 %11649, %v8089_v34  }
 0x764   :  { %2059 = vperm.xlu0 %11648, %v8101_v35   ;;  %1975 = vperm.xlu1 %11649, %v8090_v36   ;;  %v906_v36 = vmul.f32 %v8051_v25, %v12086_v18  ;;  %v8063_v18 = vld [vmem:[%s13930_s8 + $0x6] ss:$0 sm:$0xff] }
 0x766   :  { %v918_v20 = vmul.f32 %v911_v50, %v906_v36 }
 0x768   :  { %2064 = vperm.xlu0 %11648, %v8102_v37   ;;  %2006 = vperm.xlu1 %11649, %v8094_v38  }
 0x76c   :  { %2090 = vperm.xlu0 %11648, %v8105_v39   ;;  %2033 = vperm.xlu1 %11649, %v8098_v40   ;;  %v8059_v39 = vld [vmem:[%s13930_s8 + $0x5] ss:$0 sm:$0xff] }
 0x770   :  { %2121 = vperm.xlu0 %11648, %v8109_v41   ;;  %2095 = vperm.xlu1 %11649, %v8106_v42  }
 0x7a2   :  { %v808_v63 = vpop.permute.xlu1 %807  ;;  %v836_v1 = vpop.permute.xlu0 %835 }
 0x7a3   :  { %v848_v15 = vmul.f32 %v8043_v7, %v836_v1  ;;  %v819_v16 = vmul.f32 %v8039_v10, %v808_v63 }
 0x7a5   :  { %v860_v26 = vmul.f32 %v853_v49, %v848_v15  ;;  %v831_v27 = vmul.f32 %v824_v44, %v819_v16  ;;  %v919_v44 = vmul.f32 %v916_v58, %v907_v32 }
 0x7a6   :  { %v838_v3 = vpop.permute.xlu1 %837  ;;  %v810_v6 = vpop.permute.xlu0 %809 }
 0x7a7   :  { %v820_v12 = vmul.f32 %v8039_v10, %v810_v6  ;;  %v849_v13 = vmul.f32 %v8043_v7, %v838_v3  ;;  %v862_v37 = vadd.f32 %v860_v26, %v831_v27 }
 0x7a9   :  { %v832_v23 = vmul.f32 %v829_v46, %v820_v12  ;;  %v861_v24 = vmul.f32 %v858_v52, %v849_v13 }
 0x7aa   :  { %v867_v5 = vpop.permute.xlu1 %866 }
 0x7ab   :  { %v879_v21 = vmul.f32 %v8047_v14, %v867_v5  ;;  %v863_v33 = vadd.f32 %v861_v24, %v832_v23 }
 0x7ad   :  { %v891_v30 = vmul.f32 %v884_v47, %v879_v21 }
 0x7ae   :  { %v869_v11 = vpop.permute.xlu1 %868 }
 0x7af   :  { %v880_v19 = vmul.f32 %v8047_v14, %v869_v11  ;;  %v893_v41 = vadd.f32 %v891_v30, %v862_v37 }
 0x7b1   :  { %v892_v28 = vmul.f32 %v889_v55, %v880_v19  ;;  %v920_v3 = vadd.f32 %v918_v20, %v893_v41 }
 0x7b2   :  { %v925_v22 = vpop.permute.xlu1 %924 }
 0x7b3   :  { %v937_v38 = vmul.f32 %v8055_v29, %v925_v22  ;;  %v894_v40 = vadd.f32 %v892_v28, %v863_v33 }
 0x7b5   :  { %v949_v52 = vmul.f32 %v942_v53, %v937_v38  ;;  %v921_v63 = vadd.f32 %v919_v44, %v894_v40  ;;  %v1018_v53 = vstv %s8064_s24  ;;  %s8127_s24 = sld [smem:[#allocation2 + $0x4]] }
 0x7b6   :  { %v927_v31 = vpop.permute.xlu1 %926 }
 0x7b7   :  { %v938_v34 = vmul.f32 %v8055_v29, %v927_v31  ;;  %v1009_v35 = vpop.permute.xlu0 %1008  ;;  %v951_v12 = vadd.f32 %v949_v52, %v920_v3 }
 0x7b9   :  { %v950_v46 = vmul.f32 %v947_v56, %v938_v34 }
 0x7ba   :  { %v958_v42 = vpop.permute.xlu1 %957 }
 0x7bb   :  { %v969_v47 = vmul.f32 %v8059_v39, %v958_v42  ;;  %v956_v49 = vpop.permute.xlu0 %955  ;;  %v952_v7 = vadd.f32 %v950_v46, %v921_v63 }
 0x7bc   :  { %v968_v55 = vmul.f32 %v8059_v39, %v956_v49 }
 0x7bd   :  { %v981_v1 = vmul.f32 %v978_v61, %v969_v47 }
 0x7be   :  { %v980_v5 = vmul.f32 %v973_v59, %v968_v55  ;;  %v989_v6 = vpop.permute.xlu1 %988 }
 0x7bf   :  { %v1000_v10 = vmul.f32 %v8063_v18, %v989_v6  ;;  %v987_v11 = vpop.permute.xlu0 %986  ;;  %v983_v56 = vadd.f32 %v981_v1, %v952_v7  ;;  %v1384_v1 = vld [vmem:[%s13979_s2] sm:$0xff] }
 0x7c0   :  { %v999_v58 = vmul.f32 %v8063_v18, %v987_v11  ;;  %v982_v14 = vadd.f32 %v980_v5, %v951_v12 }
 0x7c1   :  { %v1012_v13 = vmul.f32 %v1009_v35, %v1000_v10 }
 0x7c2   :  { %v1011_v50 = vmul.f32 %v1004_v62, %v999_v58 }
 0x7c3   :  { %v1014_v15 = vadd.f32 %v1012_v13, %v983_v56  ;;  %v1283_v7 = vpop.permute.xlu0 %1282 }
 0x7c4   :  { %v1013_v16 = vadd.f32 %v1011_v50, %v982_v14 }
 0x7c5   :  { %v1020_v19 = vmul.f32 %v1018_v53, %v1014_v15  ;;  %vm1017_vm6 = vcmp.ge.f32.partialorder %v1014_v15, 0.0 }
 0x7c6   :  { %vm1016_vm5 = vcmp.ge.f32.partialorder %v1013_v16, 0.0  ;;  %v1019_v21 = vmul.f32 %v1018_v53, %v1013_v16 }
 0x7c7   :  { %v1022_v59 = vsel %vm1017_vm6, %v1014_v15, %v1020_v19  ;;  %v1375_v50 = vpop.permute.xlu0 %1374 }
 0x7c8   :  { %v1021_v61 = vsel %vm1016_vm5, %v1013_v16, %v1019_v21  ;;  %v1385_v21 = vld [vmem:[%s13979_s2 + $0x8] sm:$0xff] }
 0x7c9   :  { %9266 = vmatprep.mubr.f32.mxu0 %v1021_v61 }
 0x7ca   :  { %9267 = vmatmul.mubr.f32.vlgmr.msra.gmra.mrb[10].mxu0 %v1022_v59 }
 0x7cb   :  { %9310 = vmatpush3.msra.mxu0 %v12012_v17  ;;  %9311 = vmatprep.mubr.msk.f32.mxu0 %vm11718_vm0, %v11719_v4 }
 0x7cf   :  { %v1288_v10 = vpop.permute.xlu1 %1287 }
 0x7d3   :  { %v1380_v53 = vpop.permute.xlu1 %1379 }
 0x89d   :  { %v9268_v22 = vpop.f32.mrb[10].mxu0 }
 0x89e   :  { %v1105_v23 = vsel %vm525_vm4, %v9268_v22, 0.0  ;;  %v1095_v62 = vpop.f32.mrb[11].mxu0 }
 0x89f   :  { %v1104_v24 = vsel %vm525_vm4, %v1095_v62, 0.0 }
 0x8a0   :  { %v1106_v25 = vadd.f32 %v1105_v23, %v1104_v24 }
 0x8a2   :  { %v1107_v26 = vrot.slane %v1106_v25, 4 }
 0x8a4   :  { %v1108_v27 = vadd.f32 %v1107_v26, %v1106_v25  ;;  %v8074_v25 = vld [vmem:[%s13978_s5 + $0x18] sm:$0xff]  ;;  %v1556_v26 = vstv %s8077_s3  ;;  %s13966_s3 = smov 110  }
 0x8a6   :  { %v1109_v28 = vrot.slane %v1108_v27, 2 }
 0x8a8   :  { %v1110_v29 = vadd.f32 %v1109_v28, %v1108_v27 }
 0x8aa   :  { %v1111_v30 = vrot.slane %v1110_v29, 1 }
 0x8ac   :  { %v1112_v31 = vadd.f32 %v1111_v30, %v1110_v29 }
 0x8ae   :  { %v1113_v32 = vmul.f32 0.0009765625, %v1112_v31 }
 0x8b0   :  { %9272 = vmatmul.mubr.msk.f32.vlgmr.msra.gmra.mrb[6].mxu1 %vm525_vm4, %v1113_v32 }
 0x8b1   :  { %10622 = vmatpush3.bf16.msra.mxu1 %v11922_v43 }
 0x8b2   :  { %10624 = vmatprep.subr.bf16.mxu1 %v11927_v45 }
 0x8b5   :  { %10626 = vmatpush3.bf16.msra.mxu1 %v11927_v45 }
 0x8b6   :  { %10628 = vmatprep.subr.bf16.mxu1 %v11938_v48 }
 0x8b9   :  { %10630 = vmatpush3.bf16.msra.mxu1 %v11938_v48 }
 0x8ba   :  { %10632 = vmatprep.subr.bf16.mxu1 %v11948_v51 }
 0x8bd   :  { %10634 = vmatpush3.bf16.msra.mxu1 %v11948_v51 }
 0x8be   :  { %10636 = vmatprep.subr.bf16.mxu1 %v11958_v54 }
 0x8c1   :  { %10638 = vmatpush3.bf16.msra.mxu1 %v11958_v54 }
 0x8c2   :  { %10640 = vmatprep.subr.bf16.mxu1 %v11968_v57 }
 0x8c5   :  { %10642 = vmatpush3.bf16.msra.mxu1 %v11968_v57 }
 0x8c6   :  { %10644 = vmatprep.subr.bf16.mxu1 %v11978_v60 }
 0x8c9   :  { %10646 = vmatpush3.bf16.msra.mxu1 %v11978_v60 }
 0x8ca   :  { %10648 = vmatprep.subr.bf16.mxu1 %v12002_v9 }
 0x8cd   :  { %10650 = vmatpush3.bf16.msra.mxu1 %v12002_v9 }
 0x983   :  { %v1183_v33 = vpop.f32.mrb[6].mxu1 }
 0x984   :  { %v1190_v34 = vrot.slane %v1183_v33, %v11863_v8  ;;  %v9273_v35 = vpop.f32.mrb[7].mxu1 }
 0x986   :  { %v1191_v36 = vsub.f32 %v1021_v61, %v1190_v34  ;;  %v1192_v37 = vsub.f32 %v1022_v59, %v1190_v34  ;;  %v8073_v61 = vld [vmem:[%s13978_s5 + $0x10] sm:$0xff] }
 0x988   :  { %v1194_v38 = vmul.f32 %v1192_v37, %v1192_v37  ;;  %v1193_v39 = vmul.f32 %v1191_v36, %v1191_v36  ;;  %v1290_v12 = vmul.f32 %v1283_v7, %v1191_v36  ;;  %v1291_v58 = vmul.f32 %v1288_v10, %v1192_v37 }
 0x98a   :  { %9306 = vmatprep.mubr.f32.mxu1 %v1193_v39 }
 0x98b   :  { %9307 = vmatmul.mubr.f32.vlgmr.msra.gmra.mrb[8].mxu1 %v1194_v38 }
 0x98c   :  { %9325 = vmatprep.mubr.msk.f32.mxu1 %vm84_vm1, %v8073_v61 }
 0xa5e   :  { %v9308_v40 = vpop.f32.mrb[8].mxu1 }
 0xa5f   :  { %v1271_v41 = vsel %vm525_vm4, %v9308_v40, 0.0  ;;  %v1261_v42 = vpop.f32.mrb[9].mxu1 }
 0xa60   :  { %v1270_v44 = vsel %vm525_vm4, %v1261_v42, 0.0 }
 0xa61   :  { %v1272_v46 = vadd.f32 %v1271_v41, %v1270_v44 }
 0xa63   :  { %v1273_v47 = vrot.slane %v1272_v46, 4 }
 0xa65   :  { %v1274_v49 = vadd.f32 %v1273_v47, %v1272_v46 }
 0xa67   :  { %v1275_v20 = vrot.slane %v1274_v49, 2 }
 0xa69   :  { %v1276_v52 = vadd.f32 %v1275_v20, %v1274_v49 }
 0xa6b   :  { %v1277_v55 = vrot.slane %v1276_v52, 1 }
 0xa6d   :  { %v1278_v18 = vadd.f32 %v1277_v55, %v1276_v52 }
 0xa6f   :  { %v1279_v63 = vmul.f32 0.0009765625, %v1278_v18 }
 0xa71   :  { %9312 = vmatmul.mubr.msk.f32.vlgmr.msra.gmra.mrb[12].mxu0 %vm525_vm4, %v1279_v63 }
 0xa72   :  { %9318 = vmatprep.mubr.msk.f32.mxu0 %vm84_vm1, %v1384_v1 }
 0xb44   :  { %v1361_v3 = vpop.f32.mrb[12].mxu0 }
 0xb45   :  { %v1362_v5 = vadd.f32 1e-08, %v1361_v3  ;;  %v9313_v6 = vpop.f32.mrb[13].mxu0 }
 0xb47   :  { %11654 = vrsqrt.f32 %v1362_v5 }
 0xb51   :  { %v11655_v11 = vpop.eup %11654 }
 0xb52   :  { %v1369_v56 = vrot.slane %v11655_v11, %v11863_v8 }
 0xb54   :  { %v1370_v13 = vmul.f32 %v1369_v56, %v1290_v12  ;;  %v1371_v14 = vmul.f32 %v1369_v56, %v1291_v58 }
 0xb56   :  { %v1382_v15 = vadd.f32 %v1375_v50, %v1370_v13  ;;  %v1383_v16 = vadd.f32 %v1380_v53, %v1371_v14 }
 0xb58   :  { %v10651_v19 = vpack.c.bf16 %v1383_v16, %v1382_v15  ;;  %v1821_v15 = vpop.permute.xlu0 %1820 }
 0xb5a   :  { %10652 = vmatprep.subr.bf16.mxu0 %v10651_v19 }
 0xb5b   :  { %10654 = vmatpush3.bf16.msra.mxu0 %v10651_v19  ;;  %v1826_v19 = vpop.permute.xlu1 %1825 }
 0xb5c   :  { %10660 = vmatprep.subr.bf16.mxu0 %v11922_v43 }
 0xb5e   :  { %9319 = vmatmul.mubr.msk.f32.vlgmr.msra.gmra.mrb[14].mxu0 %vm84_vm1, %v1385_v21 }
 0xb5f   :  { %10662 = vmatpush3.bf16.msra.mxu0 %v11922_v43 }
 0xb60   :  { %10664 = vmatprep.subr.bf16.mxu0 %v11927_v45 }
 0xb63   :  { %10666 = vmatpush3.bf16.msra.mxu0 %v11927_v45 }
 0xb64   :  { %10668 = vmatprep.subr.bf16.mxu0 %v11938_v48 }
 0xb67   :  { %10670 = vmatpush3.bf16.msra.mxu0 %v11938_v48 }
 0xb68   :  { %10672 = vmatprep.subr.bf16.mxu0 %v11948_v51 }
 0xb6b   :  { %10674 = vmatpush3.bf16.msra.mxu0 %v11948_v51 }
 0xb6c   :  { %10676 = vmatprep.subr.bf16.mxu0 %v11958_v54 }
 0xb6f   :  { %10678 = vmatpush3.bf16.msra.mxu0 %v11958_v54 }
 0xb70   :  { %10680 = vmatprep.subr.bf16.mxu0 %v11968_v57 }
 0xb73   :  { %10682 = vmatpush3.bf16.msra.mxu0 %v11968_v57 }
 0xb74   :  { %10684 = vmatprep.subr.bf16.mxu0 %v11978_v60 }
 0xb77   :  { %10686 = vmatpush3.bf16.msra.mxu0 %v11978_v60 }
 0xb78   :  { %10688 = vmatprep.subr.bf16.mxu0 %v12002_v9 }
 0xb7b   :  { %10690 = vmatpush3.bf16.msra.mxu0 %v12002_v9 }
 0xb7c   :  { %9403 = vmatprep.subr.mxu0 %v11719_v4 }
 0xc31   :  { %v9320_v59 = vpop.f32.mrb[14].mxu0 }
 0xc32   :  { %v12259_v22 = vadd.f32 %v9320_v59, %v11983_v0  ;;  %v1458_v23 = vpop.f32.mrb[15].mxu0 }
 0xc33   :  { %v12262_v62 = vadd.f32 %v1458_v23, %v11985_v2 }
 0xc35   :  { %v10655_v24 = vpack.c.bf16 %v12259_v22, %v12262_v62 }
 0xc37   :  { %10656 = vmatprep.subr.bf16.mxu1 %v10655_v24 }
 0xc38   :  { %10658 = vmatpush3.bf16.msra.mxu1 %v10655_v24 }
 0xc39   :  { %9363 = vmatprep.subr.mxu1 %v11719_v4 }
 0xc3b   :  { %9326 = vmatmul.mubr.msk.f32.vlgmr.msra.gmra.mrb[10].mxu1 %vm84_vm1, %v8074_v25  ;;  %v1913_v25 = vpop.permute.xlu0 %1912 }
 0xc3c   :  { %9364 = vmatpush3.msra.mxu1 %v12012_v17  ;;  %9365 = vmatprep.mubr.msk.f32.mxu1 %vm11718_vm0, %v11719_v4 }
 0xc3d   :  { %10692 = vmatprep.subr.bf16.mxu1 %v11922_v43 }
 0xd0e   :  { %v9327_v27 = vpop.f32.mrb[10].mxu1 }
 0xd0f   :  { %v1558_v28 = vmul.f32 %v9327_v27, %v1556_v26  ;;  %v1544_v29 = vpop.f32.mrb[11].mxu1  ;;  %vm1555_vm7 = vcmp.ge.f32.partialorder %v9327_v27, 0.0 }
 0xd10   :  { %vm1554_vm8 = vcmp.ge.f32.partialorder %v1544_v29, 0.0  ;;  %v1557_v30 = vmul.f32 %v1556_v26, %v1544_v29 }
 0xd11   :  { %v1560_v32 = vsel %vm1555_vm7, %v9327_v27, %v1558_v28  ;;  %v1918_v27 = vpop.permute.xlu1 %1917 }
 0xd12   :  { %v1559_v31 = vsel %vm1554_vm8, %v1544_v29, %v1557_v30  ;;  %v8110_v29 = vld [vmem:[%s13977_s29 + $0xd8] sm:$0xff]  ;;  %v8113_v30 = vld [vmem:[%s13928_s6 + $0x30] sm:$0xff] }
 0xd13   :  { %9360 = vmatprep.mubr.f32.mxu0 %v1559_v31 }
 0xd14   :  { %9361 = vmatmul.mubr.f32.vlgmr.msra.gmra.mrb[16].mxu0 %v1560_v32 }
 0xd15   :  { %9404 = vmatpush3.msra.mxu0 %v12012_v17  ;;  %9405 = vmatprep.mubr.msk.f32.mxu0 %vm11718_vm0, %v11719_v4 }
 0xd16   :  { %10724 = vmatprep.subr.bf16.mxu0 %v11922_v43 }
 0xde7   :  { %v9362_v33 = vpop.f32.mrb[16].mxu0 }
 0xde8   :  { %v1643_v34 = vsel %vm525_vm4, %v9362_v33, 0.0  ;;  %v1633_v35 = vpop.f32.mrb[17].mxu0  ;;  %v8130_v33 = vld [vmem:[%s13929_s7 + $0x40] sm:$0xff] }
 0xde9   :  { %v1642_v36 = vsel %vm525_vm4, %v1633_v35, 0.0  ;;  %v8135_v35 = vld [vmem:[%s13977_s29 + $0xe0] sm:$0xff] }
 0xdea   :  { %v1644_v37 = vadd.f32 %v1643_v34, %v1642_v36  ;;  %v8114_v34 = vld [vmem:[%s13928_s6 + $0x38] sm:$0xff] }
 0xdeb   :  { %v8116_v36 = vld [vmem:[%s13929_s7 + $0x38] sm:$0xff] }
 0xdec   :  { %v1645_v38 = vrot.slane %v1644_v37, 4 }
 0xdee   :  { %v1646_v39 = vadd.f32 %v1645_v38, %v1644_v37  ;;  %v8136_v37 = vld [vmem:[%s13977_s29 + $0xe8] sm:$0xff] }
 0xdef   :  { %v8129_v38 = vld [vmem:[%s13928_s6 + $0x48] sm:$0xff] }
 0xdf0   :  { %v1647_v40 = vrot.slane %v1646_v39, 2 }
 0xdf2   :  { %v1648_v41 = vadd.f32 %v1647_v40, %v1646_v39  ;;  %v8143_v39 = vld [vmem:[%s13977_s29 + $0x100] sm:$0xff]  ;;  %v8131_v40 = vld [vmem:[%s13929_s7 + $0x48] sm:$0xff] }
 0xdf4   :  { %v1649_v42 = vrot.slane %v1648_v41, 1 }
 0xdf6   :  { %v1650_v44 = vadd.f32 %v1649_v42, %v1648_v41  ;;  %v8147_v41 = vld [vmem:[%s13977_s29 + $0x110] sm:$0xff] }
 0xdf7   :  { %v8139_v42 = vld [vmem:[%s13977_s29 + $0xf0] sm:$0xff] }
 0xdf8   :  { %v1651_v46 = vmul.f32 0.0009765625, %v1650_v44  ;;  %v8151_v44 = vld [vmem:[%s13977_s29 + $0x120] sm:$0xff] }
 0xdfa   :  { %9366 = vmatmul.mubr.msk.f32.vlgmr.msra.gmra.mrb[12].mxu1 %vm525_vm4, %v1651_v46  ;;  %v8140_v46 = vld [vmem:[%s13977_s29 + $0xf8] sm:$0xff] }
 0xdfb   :  { %10694 = vmatpush3.bf16.msra.mxu1 %v11922_v43 }
 0xdfc   :  { %10696 = vmatprep.subr.bf16.mxu1 %v11927_v45 }
 0xdff   :  { %10698 = vmatpush3.bf16.msra.mxu1 %v11927_v45 }
 0xe00   :  { %10700 = vmatprep.subr.bf16.mxu1 %v11938_v48 }
 0xe03   :  { %10702 = vmatpush3.bf16.msra.mxu1 %v11938_v48 }
 0xe04   :  { %10704 = vmatprep.subr.bf16.mxu1 %v11948_v51 }
 0xe07   :  { %10706 = vmatpush3.bf16.msra.mxu1 %v11948_v51 }
 0xe08   :  { %10708 = vmatprep.subr.bf16.mxu1 %v11958_v54 }
 0xe0b   :  { %10710 = vmatpush3.bf16.msra.mxu1 %v11958_v54 }
 0xe0c   :  { %10712 = vmatprep.subr.bf16.mxu1 %v11968_v57 }
 0xe0f   :  { %10714 = vmatpush3.bf16.msra.mxu1 %v11968_v57 }
 0xe10   :  { %10716 = vmatprep.subr.bf16.mxu1 %v11978_v60 }
 0xe13   :  { %10718 = vmatpush3.bf16.msra.mxu1 %v11978_v60 }
 0xe14   :  { %10720 = vmatprep.subr.bf16.mxu1 %v12002_v9 }
 0xe17   :  { %10722 = vmatpush3.bf16.msra.mxu1 %v12002_v9 }
 0xe18   :  { %9443 = vmatprep.subr.mxu1 %v11719_v4 }
 0xecd   :  { %v1721_v47 = vpop.f32.mrb[12].mxu1 }
 0xece   :  { %v1728_v49 = vrot.slane %v1721_v47, %v11863_v8  ;;  %v9367_v20 = vpop.f32.mrb[13].mxu1  ;;  %v8152_v47 = vld [vmem:[%s13977_s29 + $0x128] sm:$0xff] }
 0xecf   :  { %v8155_v20 = vld [vmem:[%s13977_s29 + $0x130] sm:$0xff] }
 0xed0   :  { %v1729_v52 = vsub.f32 %v1559_v31, %v1728_v49  ;;  %v1730_v55 = vsub.f32 %v1560_v32, %v1728_v49  ;;  %v8115_v31 = vld [vmem:[%s13929_s7 + $0x30] sm:$0xff]  ;;  %v8128_v32 = vld [vmem:[%s13928_s6 + $0x40] sm:$0xff]  ;;  %v8144_v49 = vld [vmem:[%s13977_s29 + $0x108] sm:$0xff] }
 0xed2   :  { %v1732_v18 = vmul.f32 %v1730_v55, %v1730_v55  ;;  %v1731_v63 = vmul.f32 %v1729_v52, %v1729_v52  ;;  %v1828_v21 = vmul.f32 %v1821_v15, %v1729_v52  ;;  %v1829_v61 = vmul.f32 %v1826_v19, %v1730_v55  ;;  %v8148_v52 = vld [vmem:[%s13977_s29 + $0x118] sm:$0xff]  ;;  %v8159_v55 = vld [vmem:[%s13977_s29 + $0x140] sm:$0xff]  ;;  %v8091_v19 = vld [vmem:[%s13930_s8 + $0x8] ss:$0 sm:$0xff] }
 0xed4   :  { %9400 = vmatprep.mubr.f32.mxu1 %v1731_v63  ;;  %v1942_v63 = vpop.permute.xlu0 %1941 }
 0xed5   :  { %9401 = vmatmul.mubr.f32.vlgmr.msra.gmra.mrb[14].mxu1 %v1732_v18  ;;  %v8156_v18 = vld [vmem:[%s13977_s29 + $0x138] sm:$0xff] }
 0xed6   :  { %9444 = vmatpush3.msra.mxu1 %v12012_v17  ;;  %9445 = vmatprep.mubr.msk.f32.mxu1 %vm11718_vm0, %v11719_v4 }
 0xed7   :  { %10756 = vmatprep.subr.bf16.mxu1 %v11922_v43 }
 0xfa8   :  { %v9402_v1 = vpop.f32.mrb[14].mxu1 }
 0xfa9   :  { %v1809_v3 = vsel %vm525_vm4, %v9402_v1, 0.0  ;;  %v1799_v5 = vpop.f32.mrb[15].mxu1  ;;  %v1947_v1 = vpop.permute.xlu0 %1946 }
 0xfaa   :  { %v1808_v6 = vsel %vm525_vm4, %v1799_v5, 0.0  ;;  %v1971_v5 = vpop.permute.xlu1 %1970 }
 0xfab   :  { %v1810_v7 = vadd.f32 %v1809_v3, %v1808_v6 }
 0xfad   :  { %v1811_v10 = vrot.slane %v1810_v7, 4  ;;  %v2002_v3 = vpop.permute.xlu0 %2001 }
 0xfaf   :  { %v1812_v11 = vadd.f32 %v1811_v10, %v1810_v7  ;;  %v1976_v7 = vpop.permute.xlu1 %1975 }
 0xfb1   :  { %v1813_v12 = vrot.slane %v1812_v11, 2  ;;  %v2029_v6 = vpop.permute.xlu0 %2028 }
 0xfb3   :  { %v1814_v58 = vadd.f32 %v1813_v12, %v1812_v11  ;;  %v2007_v11 = vpop.permute.xlu1 %2006 }
 0xfb5   :  { %v1815_v56 = vrot.slane %v1814_v58, 1  ;;  %v2060_v10 = vpop.permute.xlu0 %2059 }
 0xfb7   :  { %v1816_v13 = vadd.f32 %v1815_v56, %v1814_v58  ;;  %v2034_v58 = vpop.permute.xlu1 %2033 }
 0xfb9   :  { %v1817_v14 = vmul.f32 0.0009765625, %v1816_v13  ;;  %v2065_v12 = vpop.permute.xlu0 %2064 }
 0xfbb   :  { %9406 = vmatmul.mubr.msk.f32.vlgmr.msra.gmra.mrb[18].mxu0 %vm525_vm4, %v1817_v14  ;;  %v2096_v13 = vpop.permute.xlu1 %2095 }
 0xfbc   :  { %10726 = vmatpush3.bf16.msra.mxu0 %v11922_v43 }
 0xfbd   :  { %10728 = vmatprep.subr.bf16.mxu0 %v11927_v45  ;;  %v2091_v56 = vpop.permute.xlu0 %2090 }
 0xfc0   :  { %10730 = vmatpush3.bf16.msra.mxu0 %v11927_v45 }
 0xfc1   :  { %10732 = vmatprep.subr.bf16.mxu0 %v11938_v48  ;;  %v2122_v14 = vpop.permute.xlu0 %2121 }
 0xfc4   :  { %10734 = vmatpush3.bf16.msra.mxu0 %v11938_v48 }
 0xfc5   :  { %10736 = vmatprep.subr.bf16.mxu0 %v11948_v51 }
 0xfc8   :  { %10738 = vmatpush3.bf16.msra.mxu0 %v11948_v51 }
 0xfc9   :  { %10740 = vmatprep.subr.bf16.mxu0 %v11958_v54 }
 0xfcc   :  { %10742 = vmatpush3.bf16.msra.mxu0 %v11958_v54 }
 0xfcd   :  { %10744 = vmatprep.subr.bf16.mxu0 %v11968_v57 }
 0xfd0   :  { %10746 = vmatpush3.bf16.msra.mxu0 %v11968_v57 }
 0xfd1   :  { %10748 = vmatprep.subr.bf16.mxu0 %v11978_v60 }
 0xfd4   :  { %10750 = vmatpush3.bf16.msra.mxu0 %v11978_v60 }
 0xfd5   :  { %10752 = vmatprep.subr.bf16.mxu0 %v12002_v9 }
 0xfd8   :  { %10754 = vmatpush3.bf16.msra.mxu0 %v12002_v9 }
 0xfd9   :  { %9483 = vmatprep.subr.mxu0 %v11719_v4 }
0x108e   :  { %v1899_v17 = vpop.f32.mrb[18].mxu0 }
0x108f   :  { %v1900_v50 = vadd.f32 1e-08, %v1899_v17  ;;  %v9407_v53 = vpop.f32.mrb[19].mxu0 }
0x1091   :  { %11656 = vrsqrt.f32 %v1900_v50 }
0x109b   :  { %v11657_v16 = vpop.eup %11656 }
0x109c   :  { %v1907_v59 = vrot.slane %v11657_v16, %v11863_v8 }
0x109e   :  { %v1908_v23 = vmul.f32 %v1907_v59, %v1828_v21  ;;  %v1909_v24 = vmul.f32 %v1907_v59, %v1829_v61  ;;  %v8087_v21 = vld [vmem:[%s13930_s8 + $0x7] ss:$0 sm:$0xff] }
0x10a0   :  { %v12323_v26 = vadd.f32 %v1913_v25, %v1908_v23  ;;  %v12329_v28 = vadd.f32 %v1918_v27, %v1909_v24  ;;  %v8095_v24 = vld [vmem:[%s13930_s8 + $0x9] ss:$0 sm:$0xff] }
0x10a2   :  { %1953 = vrot.lane.b32.xlu0 %v12323_v26, %s13952_s4  ;;  %1924 = vrot.lane.b32.xlu1 %v12323_v26, %s11729_s30 }
0x10a6   :  { %1926 = vrot.lane.b32.xlu0 %v12329_v28, %s11729_s30  ;;  %1955 = vrot.lane.b32.xlu1 %v12329_v28, %s13952_s4  ;;  %s13987_s4 = smov 110  }
0x10aa   :  { %2126 = vperm.xlu0 %11648, %v8110_v29   ;;  %1984 = vrot.lane.b32.xlu1 %v12323_v26, %s11723_s0 }
0x10ae   :  { %2073 = vrot.lane.b32.xlu0 %v12323_v26, %s13958_s22  ;;  %1986 = vrot.lane.b32.xlu1 %v12329_v28, %s11723_s0 }
0x10b2   :  { %2104 = vrot.lane.b32.xlu0 %v12323_v26, %s11731_s9  ;;  %2042 = vrot.lane.b32.xlu1 %v12323_v26, %s13954_s1 }
0x10b6   :  { %2400 = vperm.xlu0 %11648, %v8113_v30   ;;  %2044 = vrot.lane.b32.xlu1 %v12329_v28, %s13954_s1  ;;  %s8263_s1 = sld [smem:[#allocation2 + $0x7]] }
0x10ba   :  { %2492 = vperm.xlu0 %11648, %v8115_v31   ;;  %2075 = vrot.lane.b32.xlu1 %v12329_v28, %s13958_s22 }
0x10be   :  { %2939 = vperm.xlu0 %11648, %v8128_v32   ;;  %2106 = vrot.lane.b32.xlu1 %v12329_v28, %s11731_s9 }
0x10c2   :  { %3031 = vperm.xlu0 %11648, %v8130_v33   ;;  %2405 = vperm.xlu1 %11649, %v8114_v34  }
0x10c6   :  { %3060 = vperm.xlu0 %11648, %v8135_v35   ;;  %2497 = vperm.xlu1 %11649, %v8116_v36   ;;  %v8099_v36 = vld [vmem:[%s13930_s8 + $0xa] ss:$0 sm:$0xff] }
0x10ca   :  { %3065 = vperm.xlu0 %11648, %v8136_v37   ;;  %2944 = vperm.xlu1 %11649, %v8129_v38   ;;  %v8103_v38 = vld [vmem:[%s13930_s8 + $0xb] ss:$0 sm:$0xff] }
0x10ce   :  { %3120 = vperm.xlu0 %11648, %v8143_v39   ;;  %3036 = vperm.xlu1 %11649, %v8131_v40  }
0x10d2   :  { %3147 = vperm.xlu0 %11648, %v8147_v41   ;;  %3089 = vperm.xlu1 %11649, %v8139_v42   ;;  %v2025_v42 = vmul.f32 %v8099_v36, %v12329_v28 }
0x10d6   :  { %3178 = vperm.xlu0 %11648, %v8151_v44   ;;  %3094 = vperm.xlu1 %11649, %v8140_v46  }
0x10da   :  { %3183 = vperm.xlu0 %11648, %v8152_v47   ;;  %3125 = vperm.xlu1 %11649, %v8144_v49   ;;  %v2024_v49 = vmul.f32 %v8099_v36, %v12323_v26  ;;  %v8111_v26 = vld [vmem:[%s13930_s8 + $0xd] ss:$0 sm:$0xff] }
0x10de   :  { %3209 = vperm.xlu0 %11648, %v8155_v20   ;;  %3152 = vperm.xlu1 %11649, %v8148_v52   ;;  %v8107_v52 = vld [vmem:[%s13930_s8 + $0xc] ss:$0 sm:$0xff] }
0x10e2   :  { %3240 = vperm.xlu0 %11648, %v8159_v55   ;;  %3214 = vperm.xlu1 %11649, %v8156_v18  }
0x1114   :  { %v1925_v17 = vpop.permute.xlu1 %1924  ;;  %v1954_v50 = vpop.permute.xlu0 %1953 }
0x1115   :  { %v1966_v25 = vmul.f32 %v8091_v19, %v1954_v50  ;;  %v1937_v27 = vmul.f32 %v8087_v21, %v1925_v17 }
0x1117   :  { %v1978_v34 = vmul.f32 %v1971_v5, %v1966_v25  ;;  %v1949_v35 = vmul.f32 %v1942_v63, %v1937_v27 }
0x1118   :  { %v1956_v53 = vpop.permute.xlu1 %1955  ;;  %v1927_v16 = vpop.permute.xlu0 %1926 }
0x1119   :  { %v1938_v59 = vmul.f32 %v8087_v21, %v1927_v16  ;;  %v1967_v23 = vmul.f32 %v8091_v19, %v1956_v53  ;;  %v1980_v47 = vadd.f32 %v1978_v34, %v1949_v35 }
0x111b   :  { %v1950_v32 = vmul.f32 %v1947_v1, %v1938_v59  ;;  %v1979_v33 = vmul.f32 %v1976_v7, %v1967_v23  ;;  %v2037_v1 = vmul.f32 %v2034_v58, %v2025_v42 }
0x111c   :  { %v1985_v15 = vpop.permute.xlu1 %1984 }
0x111d   :  { %v1997_v30 = vmul.f32 %v8095_v24, %v1985_v15  ;;  %v1981_v41 = vadd.f32 %v1979_v33, %v1950_v32  ;;  %v12443_v32 = vld [vmem:[%s13932_s10] sm:$0xff] }
0x111f   :  { %v2009_v39 = vmul.f32 %v2002_v3, %v1997_v30 }
0x1120   :  { %v1987_v61 = vpop.permute.xlu1 %1986 }
0x1121   :  { %v1998_v29 = vmul.f32 %v8095_v24, %v1987_v61  ;;  %v2011_v18 = vadd.f32 %v2009_v39, %v1980_v47 }
0x1123   :  { %v2010_v37 = vmul.f32 %v2007_v11, %v1998_v29  ;;  %v2036_v11 = vmul.f32 %v2029_v6, %v2024_v49 }
0x1124   :  { %v2043_v31 = vpop.permute.xlu1 %2042 }
0x1125   :  { %v2055_v20 = vmul.f32 %v8103_v38, %v2043_v31  ;;  %v2012_v55 = vadd.f32 %v2010_v37, %v1981_v41  ;;  %v2038_v15 = vadd.f32 %v2036_v11, %v2011_v18 }
0x1127   :  { %v2067_v28 = vmul.f32 %v2060_v10, %v2055_v20  ;;  %v2039_v50 = vadd.f32 %v2037_v1, %v2012_v55  ;;  %v2136_v10 = vstv %s8112_s20  ;;  %s13983_s20 = smov 127  }
0x1128   :  { %v2045_v40 = vpop.permute.xlu1 %2044 }
0x1129   :  { %v2056_v44 = vmul.f32 %v8103_v38, %v2045_v40  ;;  %v2127_v46 = vpop.permute.xlu0 %2126  ;;  %v2069_v23 = vadd.f32 %v2067_v28, %v2038_v15 }
0x112b   :  { %v2068_v3 = vmul.f32 %v2065_v12, %v2056_v44 }
0x112c   :  { %v2076_v63 = vpop.permute.xlu1 %2075 }
0x112d   :  { %v2087_v5 = vmul.f32 %v8107_v52, %v2076_v63  ;;  %v2074_v7 = vpop.permute.xlu0 %2073  ;;  %v2070_v21 = vadd.f32 %v2068_v3, %v2039_v50 }
0x112e   :  { %v2086_v17 = vmul.f32 %v8107_v52, %v2074_v7 }
0x112f   :  { %v2099_v53 = vmul.f32 %v2096_v13, %v2087_v5 }
0x1130   :  { %v2098_v16 = vmul.f32 %v2091_v56, %v2086_v17  ;;  %v2107_v19 = vpop.permute.xlu1 %2106 }
0x1131   :  { %v2118_v61 = vmul.f32 %v8111_v26, %v2107_v19  ;;  %v2105_v59 = vpop.permute.xlu0 %2104  ;;  %v2101_v12 = vadd.f32 %v2099_v53, %v2070_v21 }
0x1132   :  { %v2117_v58 = vmul.f32 %v8111_v26, %v2105_v59  ;;  %v2100_v25 = vadd.f32 %v2098_v16, %v2069_v23  ;;  %v8119_v16 = vld [vmem:[%s13979_s2 + $0x10] sm:$0xff] }
0x1133   :  { %v2130_v24 = vmul.f32 %v2127_v46, %v2118_v61 }
0x1134   :  { %v2129_v6 = vmul.f32 %v2122_v14, %v2117_v58 }
0x1135   :  { %v2132_v27 = vadd.f32 %v2130_v24, %v2101_v12  ;;  %v2401_v59 = vpop.permute.xlu0 %2400 }
0x1136   :  { %v2131_v29 = vadd.f32 %v2129_v6, %v2100_v25 }
0x1137   :  { %v2138_v30 = vmul.f32 %v2136_v10, %v2132_v27  ;;  %vm2135_vm10 = vcmp.ge.f32.partialorder %v2132_v27, 0.0 }
0x1138   :  { %vm2134_vm9 = vcmp.ge.f32.partialorder %v2131_v29, 0.0  ;;  %v2137_v31 = vmul.f32 %v2136_v10, %v2131_v29 }
0x1139   :  { %v2140_v56 = vsel %vm2135_vm10, %v2132_v27, %v2138_v30  ;;  %v2493_v27 = vpop.permute.xlu0 %2492 }
0x113a   :  { %v2139_v13 = vsel %vm2134_vm9, %v2131_v29, %v2137_v31 }
0x113b   :  { %9440 = vmatprep.mubr.f32.mxu0 %v2139_v13 }
0x113c   :  { %9441 = vmatmul.mubr.f32.vlgmr.msra.gmra.mrb[20].mxu0 %v2140_v56 }
0x113d   :  { %9484 = vmatpush3.msra.mxu0 %v12443_v32  ;;  %9485 = vmatprep.mubr.msk.f32.mxu0 %vm11718_vm0, %v11719_v4 }
0x1141   :  { %v2406_v23 = vpop.permute.xlu1 %2405 }
0x1145   :  { %v2498_v29 = vpop.permute.xlu1 %2497 }
0x120f   :  { %v9442_v14 = vpop.f32.mrb[20].mxu0 }
0x1210   :  { %v2223_v33 = vsel %vm525_vm4, %v9442_v14, 0.0  ;;  %v2213_v34 = vpop.f32.mrb[21].mxu0  ;;  %v8123_v14 = vld [vmem:[%s13978_s5 + $0x20] sm:$0xff] }
0x1211   :  { %v2222_v35 = vsel %vm525_vm4, %v2213_v34, 0.0 }
0x1212   :  { %v2224_v36 = vadd.f32 %v2223_v33, %v2222_v35 }
0x1214   :  { %v2225_v37 = vrot.slane %v2224_v36, 4 }
0x1216   :  { %v2226_v38 = vadd.f32 %v2225_v37, %v2224_v36 }
0x1218   :  { %v2227_v39 = vrot.slane %v2226_v38, 2 }
0x121a   :  { %v2228_v40 = vadd.f32 %v2227_v39, %v2226_v38  ;;  %v8124_v38 = vld [vmem:[%s13978_s5 + $0x28] sm:$0xff] }
0x121c   :  { %v2229_v41 = vrot.slane %v2228_v40, 1 }
0x121e   :  { %v2230_v42 = vadd.f32 %v2229_v41, %v2228_v40 }
0x1220   :  { %v2231_v44 = vmul.f32 0.0009765625, %v2230_v42 }
0x1222   :  { %9446 = vmatmul.mubr.msk.f32.vlgmr.msra.gmra.mrb[16].mxu1 %vm525_vm4, %v2231_v44 }
0x1223   :  { %10758 = vmatpush3.bf16.msra.mxu1 %v11922_v43 }
0x1224   :  { %10760 = vmatprep.subr.bf16.mxu1 %v11927_v45 }
0x1227   :  { %10762 = vmatpush3.bf16.msra.mxu1 %v11927_v45 }
0x1228   :  { %10764 = vmatprep.subr.bf16.mxu1 %v11938_v48 }
0x122b   :  { %10766 = vmatpush3.bf16.msra.mxu1 %v11938_v48 }
0x122c   :  { %10768 = vmatprep.subr.bf16.mxu1 %v11948_v51 }
0x122f   :  { %10770 = vmatpush3.bf16.msra.mxu1 %v11948_v51 }
0x1230   :  { %10772 = vmatprep.subr.bf16.mxu1 %v11958_v54 }
0x1233   :  { %10774 = vmatpush3.bf16.msra.mxu1 %v11958_v54 }
0x1234   :  { %10776 = vmatprep.subr.bf16.mxu1 %v11968_v57 }
0x1237   :  { %10778 = vmatpush3.bf16.msra.mxu1 %v11968_v57 }
0x1238   :  { %10780 = vmatprep.subr.bf16.mxu1 %v11978_v60 }
0x123b   :  { %10782 = vmatpush3.bf16.msra.mxu1 %v11978_v60 }
0x123c   :  { %10784 = vmatprep.subr.bf16.mxu1 %v12002_v9 }
0x123f   :  { %10786 = vmatpush3.bf16.msra.mxu1 %v12002_v9 }
0x12f5   :  { %v2301_v46 = vpop.f32.mrb[16].mxu1 }
0x12f6   :  { %v2308_v47 = vrot.slane %v2301_v46, %v11863_v8  ;;  %v9447_v49 = vpop.f32.mrb[17].mxu1 }
0x12f8   :  { %v2309_v20 = vsub.f32 %v2139_v13, %v2308_v47  ;;  %v2310_v52 = vsub.f32 %v2140_v56, %v2308_v47  ;;  %v8120_v56 = vld [vmem:[%s13979_s2 + $0x18] sm:$0xff] }
0x12fa   :  { %v2312_v55 = vmul.f32 %v2310_v52, %v2310_v52  ;;  %v2311_v18 = vmul.f32 %v2309_v20, %v2309_v20  ;;  %v2408_v12 = vmul.f32 %v2401_v59, %v2309_v20  ;;  %v2409_v24 = vmul.f32 %v2406_v23, %v2310_v52 }
0x12fc   :  { %9480 = vmatprep.mubr.f32.mxu1 %v2311_v18 }
0x12fd   :  { %9481 = vmatmul.mubr.f32.vlgmr.msra.gmra.mrb[18].mxu1 %v2312_v55 }
0x12fe   :  { %9499 = vmatprep.mubr.msk.f32.mxu1 %vm84_vm1, %v8123_v14 }
0x13d0   :  { %v9482_v63 = vpop.f32.mrb[18].mxu1 }
0x13d1   :  { %v2389_v1 = vsel %vm525_vm4, %v9482_v63, 0.0  ;;  %v2379_v3 = vpop.f32.mrb[19].mxu1 }
0x13d2   :  { %v2388_v5 = vsel %vm525_vm4, %v2379_v3, 0.0 }
0x13d3   :  { %v2390_v7 = vadd.f32 %v2389_v1, %v2388_v5 }
0x13d5   :  { %v2391_v11 = vrot.slane %v2390_v7, 4 }
0x13d7   :  { %v2392_v28 = vadd.f32 %v2391_v11, %v2390_v7 }
0x13d9   :  { %v2393_v17 = vrot.slane %v2392_v28, 2 }
0x13db   :  { %v2394_v26 = vadd.f32 %v2393_v17, %v2392_v28 }
0x13dd   :  { %v2395_v50 = vrot.slane %v2394_v26, 1 }
0x13df   :  { %v2396_v53 = vadd.f32 %v2395_v50, %v2394_v26 }
0x13e1   :  { %v2397_v15 = vmul.f32 0.0009765625, %v2396_v53 }
0x13e3   :  { %9486 = vmatmul.mubr.msk.f32.vlgmr.msra.gmra.mrb[22].mxu0 %vm525_vm4, %v2397_v15 }
0x13e4   :  { %9492 = vmatprep.mubr.msk.f32.mxu0 %vm84_vm1, %v8119_v16 }
0x14b6   :  { %v2479_v19 = vpop.f32.mrb[22].mxu0 }
0x14b7   :  { %v2480_v21 = vadd.f32 1e-08, %v2479_v19  ;;  %v9487_v61 = vpop.f32.mrb[23].mxu0 }
0x14b9   :  { %11658 = vrsqrt.f32 %v2480_v21 }
0x14c3   :  { %v11659_v58 = vpop.eup %11658 }
0x14c4   :  { %v2487_v25 = vrot.slane %v11659_v58, %v11863_v8 }
0x14c6   :  { %v2488_v6 = vmul.f32 %v2487_v25, %v2408_v12  ;;  %v2489_v10 = vmul.f32 %v2487_v25, %v2409_v24 }
0x14c8   :  { %v2500_v30 = vadd.f32 %v2493_v27, %v2488_v6  ;;  %v2501_v31 = vadd.f32 %v2498_v29, %v2489_v10 }
0x14ca   :  { %v10787_v13 = vpack.c.bf16 %v2501_v31, %v2500_v30  ;;  %v2940_v31 = vpop.permute.xlu0 %2939 }
0x14cc   :  { %10788 = vmatprep.subr.bf16.mxu0 %v10787_v13 }
0x14cd   :  { %10790 = vmatpush3.bf16.msra.mxu0 %v10787_v13 }
0x14ce   :  { %10796 = vmatprep.subr.bf16.mxu0 %v11922_v43 }
0x14d0   :  { %9493 = vmatmul.mubr.msk.f32.vlgmr.msra.gmra.mrb[24].mxu0 %vm84_vm1, %v8120_v56  ;;  %v2945_v56 = vpop.permute.xlu1 %2944 }
0x14d1   :  { %10798 = vmatpush3.bf16.msra.mxu0 %v11922_v43 }
0x14d2   :  { %10800 = vmatprep.subr.bf16.mxu0 %v11927_v45 }
0x14d5   :  { %10802 = vmatpush3.bf16.msra.mxu0 %v11927_v45 }
0x14d6   :  { %10804 = vmatprep.subr.bf16.mxu0 %v11938_v48 }
0x14d9   :  { %10806 = vmatpush3.bf16.msra.mxu0 %v11938_v48 }
0x14da   :  { %10808 = vmatprep.subr.bf16.mxu0 %v11948_v51 }
0x14dd   :  { %10810 = vmatpush3.bf16.msra.mxu0 %v11948_v51 }
0x14de   :  { %10812 = vmatprep.subr.bf16.mxu0 %v11958_v54 }
0x14e1   :  { %10814 = vmatpush3.bf16.msra.mxu0 %v11958_v54 }
0x14e2   :  { %10816 = vmatprep.subr.bf16.mxu0 %v11968_v57 }
0x14e5   :  { %10818 = vmatpush3.bf16.msra.mxu0 %v11968_v57 }
0x14e6   :  { %10820 = vmatprep.subr.bf16.mxu0 %v11978_v60 }
0x14e9   :  { %10822 = vmatpush3.bf16.msra.mxu0 %v11978_v60 }
0x14ea   :  { %10824 = vmatprep.subr.bf16.mxu0 %v12002_v9 }
0x14ed   :  { %10826 = vmatpush3.bf16.msra.mxu0 %v12002_v9 }
0x14ee   :  { %9577 = vmatprep.subr.mxu0 %v11719_v4 }
0x15a3   :  { %v9494_v33 = vpop.f32.mrb[24].mxu0 }
0x15a4   :  { %v12501_v34 = vadd.f32 %v9494_v33, %v12259_v22  ;;  %v2577_v35 = vpop.f32.mrb[25].mxu0  ;;  %v2675_v22 = vstv %s8127_s24 }
0x15a5   :  { %v12504_v36 = vadd.f32 %v2577_v35, %v12262_v62 }
0x15a7   :  { %v10791_v37 = vpack.c.bf16 %v12501_v34, %v12504_v36 }
0x15a9   :  { %10792 = vmatprep.subr.bf16.mxu1 %v10791_v37 }
0x15aa   :  { %10794 = vmatpush3.bf16.msra.mxu1 %v10791_v37 }
0x15ab   :  { %9537 = vmatprep.subr.mxu1 %v11719_v4 }
0x15ad   :  { %9500 = vmatmul.mubr.msk.f32.vlgmr.msra.gmra.mrb[20].mxu1 %vm84_vm1, %v8124_v38 }
0x15ae   :  { %9538 = vmatpush3.msra.mxu1 %v12443_v32  ;;  %9539 = vmatprep.mubr.msk.f32.mxu1 %vm11718_vm0, %v11719_v4 }
0x15af   :  { %10828 = vmatprep.subr.bf16.mxu1 %v11922_v43 }
0x1680   :  { %v9501_v62 = vpop.f32.mrb[20].mxu1 }
0x1681   :  { %v2677_v39 = vmul.f32 %v9501_v62, %v2675_v22  ;;  %v2663_v40 = vpop.f32.mrb[21].mxu1  ;;  %vm2674_vm11 = vcmp.ge.f32.partialorder %v9501_v62, 0.0 }
0x1682   :  { %vm2673_vm12 = vcmp.ge.f32.partialorder %v2663_v40, 0.0  ;;  %v2676_v41 = vmul.f32 %v2675_v22, %v2663_v40  ;;  %v3032_v22 = vpop.permute.xlu0 %3031 }
0x1683   :  { %v2679_v44 = vsel %vm2674_vm11, %v9501_v62, %v2677_v39  ;;  %v3037_v39 = vpop.permute.xlu1 %3036 }
0x1684   :  { %v2678_v42 = vsel %vm2673_vm12, %v2663_v40, %v2676_v41  ;;  %v8160_v41 = vld [vmem:[%s13977_s29 + $0x148] sm:$0xff] }
0x1685   :  { %9534 = vmatprep.mubr.f32.mxu0 %v2678_v42 }
0x1686   :  { %9535 = vmatmul.mubr.f32.vlgmr.msra.gmra.mrb[26].mxu0 %v2679_v44 }
0x1687   :  { %9578 = vmatpush3.msra.mxu0 %v12443_v32  ;;  %9579 = vmatprep.mubr.msk.f32.mxu0 %vm11718_vm0, %v11719_v4 }
0x1688   :  { %10860 = vmatprep.subr.bf16.mxu0 %v11922_v43 }
0x1759   :  { %v9536_v46 = vpop.f32.mrb[26].mxu0 }
0x175a   :  { %v2762_v47 = vsel %vm525_vm4, %v9536_v46, 0.0  ;;  %v2752_v49 = vpop.f32.mrb[27].mxu0  ;;  %v4078_v46 = vld [vmem:[%s13934_s12] sm:$0xff] }
0x175b   :  { %v2761_v20 = vsel %vm525_vm4, %v2752_v49, 0.0  ;;  %v8164_v49 = vld [vmem:[%s13928_s6 + $0x58] sm:$0xff] }
0x175c   :  { %v2763_v52 = vadd.f32 %v2762_v47, %v2761_v20  ;;  %v8230_v47 = vld [vmem:[%s13928_s6 + $0x60] sm:$0xff] }
0x175d   :  { %v8232_v20 = vld [vmem:[%s13929_s7 + $0x60] sm:$0xff] }
0x175e   :  { %v2764_v55 = vrot.slane %v2763_v52, 4 }
0x1760   :  { %v2765_v18 = vadd.f32 %v2764_v55, %v2763_v52  ;;  %v8166_v52 = vld [vmem:[%s13929_s7 + $0x58] sm:$0xff]  ;;  %v8236_v55 = vld [vmem:[%s13977_s29 + $0x150] sm:$0xff] }
0x1762   :  { %v2766_v63 = vrot.slane %v2765_v18, 2 }
0x1764   :  { %v2767_v1 = vadd.f32 %v2766_v63, %v2765_v18  ;;  %v4079_v18 = vld [vmem:[%s13934_s12 + $0x8] sm:$0xff]  ;;  %v8237_v63 = vld [vmem:[%s13977_s29 + $0x158] sm:$0xff]  ;;  %s8229_s12 = sld [smem:[#allocation2 + $0x6]] }
0x1766   :  { %v2768_v3 = vrot.slane %v2767_v1, 1 }
0x1768   :  { %v2769_v5 = vadd.f32 %v2768_v3, %v2767_v1  ;;  %v8231_v1 = vld [vmem:[%s13928_s6 + $0x68] sm:$0xff]  ;;  %v8244_v3 = vld [vmem:[%s13977_s29 + $0x170] sm:$0xff] }
0x176a   :  { %v2770_v7 = vmul.f32 0.0009765625, %v2769_v5  ;;  %v8233_v5 = vld [vmem:[%s13929_s7 + $0x68] sm:$0xff] }
0x176c   :  { %9540 = vmatmul.mubr.msk.f32.vlgmr.msra.gmra.mrb[22].mxu1 %vm525_vm4, %v2770_v7  ;;  %v8248_v7 = vld [vmem:[%s13977_s29 + $0x180] sm:$0xff] }
0x176d   :  { %10830 = vmatpush3.bf16.msra.mxu1 %v11922_v43 }
0x176e   :  { %10832 = vmatprep.subr.bf16.mxu1 %v11927_v45 }
0x1771   :  { %10834 = vmatpush3.bf16.msra.mxu1 %v11927_v45 }
0x1772   :  { %10836 = vmatprep.subr.bf16.mxu1 %v11938_v48 }
0x1775   :  { %10838 = vmatpush3.bf16.msra.mxu1 %v11938_v48 }
0x1776   :  { %10840 = vmatprep.subr.bf16.mxu1 %v11948_v51 }
0x1779   :  { %10842 = vmatpush3.bf16.msra.mxu1 %v11948_v51 }
0x177a   :  { %10844 = vmatprep.subr.bf16.mxu1 %v11958_v54 }
0x177d   :  { %10846 = vmatpush3.bf16.msra.mxu1 %v11958_v54 }
0x177e   :  { %10848 = vmatprep.subr.bf16.mxu1 %v11968_v57 }
0x1781   :  { %10850 = vmatpush3.bf16.msra.mxu1 %v11968_v57 }
0x1782   :  { %10852 = vmatprep.subr.bf16.mxu1 %v11978_v60 }
0x1785   :  { %10854 = vmatpush3.bf16.msra.mxu1 %v11978_v60 }
0x1786   :  { %10856 = vmatprep.subr.bf16.mxu1 %v12002_v9 }
0x1789   :  { %10858 = vmatpush3.bf16.msra.mxu1 %v12002_v9 }
0x178a   :  { %9617 = vmatprep.subr.mxu1 %v11719_v4 }
0x183f   :  { %v2840_v11 = vpop.f32.mrb[22].mxu1 }
0x1840   :  { %v2847_v28 = vrot.slane %v2840_v11, %v11863_v8  ;;  %v9541_v17 = vpop.f32.mrb[23].mxu1  ;;  %v8240_v11 = vld [vmem:[%s13977_s29 + $0x160] sm:$0xff] }
0x1841   :  { %v8241_v17 = vld [vmem:[%s13977_s29 + $0x168] sm:$0xff] }
0x1842   :  { %v2848_v26 = vsub.f32 %v2678_v42, %v2847_v28  ;;  %v2849_v50 = vsub.f32 %v2679_v44, %v2847_v28  ;;  %v8163_v42 = vld [vmem:[%s13928_s6 + $0x50] sm:$0xff] }
0x1843   :  { %v8165_v44 = vld [vmem:[%s13929_s7 + $0x50] sm:$0xff] }
0x1844   :  { %v2851_v53 = vmul.f32 %v2849_v50, %v2849_v50  ;;  %v2850_v15 = vmul.f32 %v2848_v26, %v2848_v26  ;;  %v2947_v14 = vmul.f32 %v2940_v31, %v2848_v26  ;;  %v2948_v33 = vmul.f32 %v2945_v56, %v2849_v50  ;;  %v8252_v28 = vld [vmem:[%s13977_s29 + $0x190] sm:$0xff]  ;;  %v8253_v26 = vld [vmem:[%s13977_s29 + $0x198] sm:$0xff] }
0x1845   :  { %v8245_v50 = vld [vmem:[%s13977_s29 + $0x178] sm:$0xff] }
0x1846   :  { %9574 = vmatprep.mubr.f32.mxu1 %v2850_v15  ;;  %v8249_v15 = vld [vmem:[%s13977_s29 + $0x188] sm:$0xff] }
0x1847   :  { %9575 = vmatmul.mubr.f32.vlgmr.msra.gmra.mrb[24].mxu1 %v2851_v53  ;;  %v8256_v53 = vld [vmem:[%s13977_s29 + $0x1a0] sm:$0xff] }
0x1848   :  { %9618 = vmatpush3.msra.mxu1 %v12443_v32  ;;  %9619 = vmatprep.mubr.msk.f32.mxu1 %vm11718_vm0, %v11719_v4 }
0x1849   :  { %10892 = vmatprep.subr.bf16.mxu1 %v11922_v43 }
0x191a   :  { %v9576_v16 = vpop.f32.mrb[24].mxu1 }
0x191b   :  { %v2928_v19 = vsel %vm525_vm4, %v9576_v16, 0.0  ;;  %v2918_v21 = vpop.f32.mrb[25].mxu1  ;;  %v8260_v16 = vld [vmem:[%s13977_s29 + $0x1b0] sm:$0xff] }
0x191c   :  { %v2927_v61 = vsel %vm525_vm4, %v2918_v21, 0.0  ;;  %v3061_v21 = vpop.permute.xlu0 %3060 }
0x191d   :  { %v2929_v59 = vadd.f32 %v2928_v19, %v2927_v61  ;;  %v8257_v19 = vld [vmem:[%s13977_s29 + $0x1a8] sm:$0xff] }
0x191f   :  { %v2930_v23 = vrot.slane %v2929_v59, 4 }
0x1920   :  { %v3066_v61 = vpop.permute.xlu0 %3065 }
0x1921   :  { %v2931_v58 = vadd.f32 %v2930_v23, %v2929_v59  ;;  %v3090_v23 = vpop.permute.xlu1 %3089 }
0x1923   :  { %v2932_v12 = vrot.slane %v2931_v58, 2 }
0x1924   :  { %v3121_v59 = vpop.permute.xlu0 %3120 }
0x1925   :  { %v2933_v24 = vadd.f32 %v2932_v12, %v2931_v58  ;;  %v3095_v12 = vpop.permute.xlu1 %3094 }
0x1927   :  { %v2934_v25 = vrot.slane %v2933_v24, 1 }
0x1928   :  { %v3148_v58 = vpop.permute.xlu0 %3147 }
0x1929   :  { %v2935_v6 = vadd.f32 %v2934_v25, %v2933_v24  ;;  %v3126_v25 = vpop.permute.xlu1 %3125 }
0x192b   :  { %v2936_v10 = vmul.f32 0.0009765625, %v2935_v6 }
0x192c   :  { %v3179_v24 = vpop.permute.xlu0 %3178 }
0x192d   :  { %9580 = vmatmul.mubr.msk.f32.vlgmr.msra.gmra.mrb[28].mxu0 %vm525_vm4, %v2936_v10  ;;  %v3153_v10 = vpop.permute.xlu1 %3152 }
0x192e   :  { %10862 = vmatpush3.bf16.msra.mxu0 %v11922_v43 }
0x192f   :  { %10864 = vmatprep.subr.bf16.mxu0 %v11927_v45 }
0x1930   :  { %v3184_v6 = vpop.permute.xlu0 %3183 }
0x1932   :  { %10866 = vmatpush3.bf16.msra.mxu0 %v11927_v45 }
0x1933   :  { %10868 = vmatprep.subr.bf16.mxu0 %v11938_v48 }
0x1936   :  { %10870 = vmatpush3.bf16.msra.mxu0 %v11938_v48 }
0x1937   :  { %10872 = vmatprep.subr.bf16.mxu0 %v11948_v51 }
0x193a   :  { %10874 = vmatpush3.bf16.msra.mxu0 %v11948_v51 }
0x193b   :  { %10876 = vmatprep.subr.bf16.mxu0 %v11958_v54 }
0x193e   :  { %10878 = vmatpush3.bf16.msra.mxu0 %v11958_v54 }
0x193f   :  { %10880 = vmatprep.subr.bf16.mxu0 %v11968_v57 }
0x1942   :  { %10882 = vmatpush3.bf16.msra.mxu0 %v11968_v57 }
0x1943   :  { %10884 = vmatprep.subr.bf16.mxu0 %v11978_v60 }
0x1946   :  { %10886 = vmatpush3.bf16.msra.mxu0 %v11978_v60 }
0x1947   :  { %10888 = vmatprep.subr.bf16.mxu0 %v12002_v9 }
0x194a   :  { %10890 = vmatpush3.bf16.msra.mxu0 %v12002_v9 }
0x194b   :  { %9657 = vmatprep.subr.mxu0 %v11719_v4 }
0x1a00   :  { %v3018_v27 = vpop.f32.mrb[28].mxu0 }
0x1a01   :  { %v3019_v29 = vadd.f32 1e-08, %v3018_v27  ;;  %v9581_v30 = vpop.f32.mrb[29].mxu0  ;;  %v3210_v27 = vpop.permute.xlu0 %3209 }
0x1a03   :  { %11660 = vrsqrt.f32 %v3019_v29  ;;  %v3215_v29 = vpop.permute.xlu1 %3214 }
0x1a05   :  { %v3241_v30 = vpop.permute.xlu0 %3240 }
0x1a0d   :  { %v11661_v13 = vpop.eup %11660 }
0x1a0e   :  { %v3026_v35 = vrot.slane %v11661_v13, %v11863_v8 }
0x1a10   :  { %v3027_v37 = vmul.f32 %v3026_v35, %v2947_v14  ;;  %v3028_v38 = vmul.f32 %v3026_v35, %v2948_v33  ;;  %v8141_v35 = vld [vmem:[%s13930_s8 + $0xf] ss:$0 sm:$0xff] }
0x1a12   :  { %v12565_v62 = vadd.f32 %v3032_v22, %v3027_v37  ;;  %v12571_v40 = vadd.f32 %v3037_v39, %v3028_v38  ;;  %v8137_v37 = vld [vmem:[%s13930_s8 + $0xe] ss:$0 sm:$0xff] }
0x1a14   :  { %3072 = vrot.lane.b32.xlu0 %v12565_v62, %s11732_s27  ;;  %3043 = vrot.lane.b32.xlu1 %v12565_v62, %s13962_s23 }
0x1a18   :  { %3045 = vrot.lane.b32.xlu0 %v12571_v40, %s13962_s23  ;;  %3074 = vrot.lane.b32.xlu1 %v12571_v40, %s11732_s27  ;;  %s13981_s23 = smov 126  }
0x1a1c   :  { %3245 = vperm.xlu0 %11648, %v8160_v41   ;;  %3103 = vrot.lane.b32.xlu1 %v12565_v62, %s11729_s30  ;;  %v8145_v41 = vld [vmem:[%s13930_s8 + $0x10] ss:$0 sm:$0xff] }
0x1a20   :  { %3192 = vrot.lane.b32.xlu0 %v12565_v62, %s13966_s3  ;;  %3105 = vrot.lane.b32.xlu1 %v12571_v40, %s11729_s30 }
0x1a24   :  { %3223 = vrot.lane.b32.xlu0 %v12565_v62, %s13964_s25  ;;  %3161 = vrot.lane.b32.xlu1 %v12565_v62, %s11731_s9 }
0x1a28   :  { %3519 = vperm.xlu0 %11648, %v8163_v42   ;;  %3163 = vrot.lane.b32.xlu1 %v12571_v40, %s11731_s9 }
0x1a2c   :  { %3611 = vperm.xlu0 %11648, %v8165_v44   ;;  %3194 = vrot.lane.b32.xlu1 %v12571_v40, %s13966_s3  ;;  %s8278_s3 = sld [smem:[#allocation2 + $0x8]] }
0x1a30   :  { %4082 = vperm.xlu0 %11648, %v4078_v46   ;;  %3225 = vrot.lane.b32.xlu1 %v12571_v40, %s13964_s25  ;;  %s8162_s25 = sld [smem:[#allocation2 + $0x5]] }
0x1a34   :  { %4542 = vperm.xlu0 %11648, %v8230_v47   ;;  %3524 = vperm.xlu1 %11649, %v8164_v49  }
0x1a38   :  { %4634 = vperm.xlu0 %11648, %v8232_v20   ;;  %3616 = vperm.xlu1 %11649, %v8166_v52  }
0x1a3c   :  { %4662 = vperm.xlu0 %11648, %v8236_v55   ;;  %4087 = vperm.xlu1 %11649, %v4079_v18  }
0x1a40   :  { %4667 = vperm.xlu0 %11648, %v8237_v63   ;;  %4547 = vperm.xlu1 %11649, %v8231_v1   ;;  %v8149_v63 = vld [vmem:[%s13930_s8 + $0x11] ss:$0 sm:$0xff] }
0x1a44   :  { %4722 = vperm.xlu0 %11648, %v8244_v3   ;;  %4639 = vperm.xlu1 %11649, %v8233_v5   ;;  %v8153_v3 = vld [vmem:[%s13930_s8 + $0x12] ss:$0 sm:$0xff] }
0x1a48   :  { %4749 = vperm.xlu0 %11648, %v8248_v7   ;;  %4691 = vperm.xlu1 %11649, %v8240_v11  }
0x1a4c   :  { %4780 = vperm.xlu0 %11648, %v8252_v28   ;;  %4696 = vperm.xlu1 %11649, %v8241_v17   ;;  %v3144_v28 = vmul.f32 %v8149_v63, %v12571_v40 }
0x1a50   :  { %4785 = vperm.xlu0 %11648, %v8253_v26   ;;  %4727 = vperm.xlu1 %11649, %v8245_v50  }
0x1a54   :  { %4811 = vperm.xlu0 %11648, %v8256_v53   ;;  %4754 = vperm.xlu1 %11649, %v8249_v15   ;;  %v3143_v53 = vmul.f32 %v8149_v63, %v12565_v62  ;;  %v8161_v62 = vld [vmem:[%s13930_s8 + $0x14] ss:$0 sm:$0xff] }
0x1a58   :  { %4842 = vperm.xlu0 %11648, %v8260_v16   ;;  %4816 = vperm.xlu1 %11649, %v8257_v19   ;;  %v8157_v16 = vld [vmem:[%s13930_s8 + $0x13] ss:$0 sm:$0xff]  ;;  %s11736_s8 = smov [#allocation5]  }
0x1a86   :  { %v3044_v31 = vpop.permute.xlu1 %3043  ;;  %v3073_v13 = vpop.permute.xlu0 %3072 }
0x1a87   :  { %v3085_v42 = vmul.f32 %v8141_v35, %v3073_v13  ;;  %v3056_v44 = vmul.f32 %v8137_v37, %v3044_v31  ;;  %v3155_v31 = vmul.f32 %v3148_v58, %v3143_v53 }
0x1a89   :  { %v3097_v55 = vmul.f32 %v3090_v23, %v3085_v42  ;;  %v3068_v18 = vmul.f32 %v3061_v21, %v3056_v44  ;;  %v3156_v23 = vmul.f32 %v3153_v10, %v3144_v28 }
0x1a8a   :  { %v3075_v56 = vpop.permute.xlu1 %3074  ;;  %v3046_v33 = vpop.permute.xlu0 %3045 }
0x1a8b   :  { %v3057_v22 = vmul.f32 %v8137_v37, %v3046_v33  ;;  %v3086_v39 = vmul.f32 %v8141_v35, %v3075_v56  ;;  %v3099_v50 = vadd.f32 %v3097_v55, %v3068_v18 }
0x1a8d   :  { %v3069_v20 = vmul.f32 %v3066_v61, %v3057_v22  ;;  %v3098_v52 = vmul.f32 %v3095_v12, %v3086_v39 }
0x1a8e   :  { %v3104_v14 = vpop.permute.xlu1 %3103 }
0x1a8f   :  { %v3116_v47 = vmul.f32 %v8145_v41, %v3104_v14  ;;  %v3100_v11 = vadd.f32 %v3098_v52, %v3069_v20 }
0x1a91   :  { %v3128_v5 = vmul.f32 %v3121_v59, %v3116_v47 }
0x1a92   :  { %v3106_v38 = vpop.permute.xlu1 %3105 }
0x1a93   :  { %v3117_v46 = vmul.f32 %v8145_v41, %v3106_v38  ;;  %v3130_v21 = vadd.f32 %v3128_v5, %v3099_v50 }
0x1a95   :  { %v3129_v1 = vmul.f32 %v3126_v25, %v3117_v46  ;;  %v3157_v33 = vadd.f32 %v3155_v31, %v3130_v21  ;;  %v3710_v31 = vld [vmem:[%s13935_s13 + $0x8] sm:$0xff] }
0x1a96   :  { %v3162_v49 = vpop.permute.xlu1 %3161 }
0x1a97   :  { %v3174_v15 = vmul.f32 %v8153_v3, %v3162_v49  ;;  %v3131_v19 = vadd.f32 %v3129_v1, %v3100_v11 }
0x1a99   :  { %v3186_v40 = vmul.f32 %v3179_v24, %v3174_v15  ;;  %v3158_v56 = vadd.f32 %v3156_v23, %v3131_v19  ;;  %v3255_v24 = vstv %s8162_s25  ;;  %s13984_s25 = smov 6  }
0x1a9a   :  { %v3164_v7 = vpop.permute.xlu1 %3163 }
0x1a9b   :  { %v3175_v17 = vmul.f32 %v8153_v3, %v3164_v7  ;;  %v3246_v26 = vpop.permute.xlu0 %3245  ;;  %v3188_v41 = vadd.f32 %v3186_v40, %v3157_v33  ;;  %v3714_v33 = vld [vmem:[%s13935_s13 + $0x28] sm:$0xff] }
0x1a9d   :  { %v3187_v59 = vmul.f32 %v3184_v6, %v3175_v17 }
0x1a9e   :  { %v3195_v61 = vpop.permute.xlu1 %3194 }
0x1a9f   :  { %v3206_v12 = vmul.f32 %v8157_v16, %v3195_v61  ;;  %v3193_v25 = vpop.permute.xlu0 %3192  ;;  %v3189_v38 = vadd.f32 %v3187_v59, %v3158_v56 }
0x1aa0   :  { %v3205_v13 = vmul.f32 %v8157_v16, %v3193_v25  ;;  %v3709_v25 = vld [vmem:[%s13935_s13] sm:$0xff] }
0x1aa1   :  { %v3218_v14 = vmul.f32 %v3215_v29, %v3206_v12  ;;  %v8169_v12 = vld [vmem:[%s13979_s2 + $0x20] sm:$0xff]  ;;  %v10927_v40 = vpack.c.bf16 %v3710_v31, %v3709_v25  ;;  %v3723_v31 = vld [vmem:[%s13935_s13 + $0x70] sm:$0xff] }
0x1aa2   :  { %v3217_v35 = vmul.f32 %v3210_v27, %v3205_v13  ;;  %v3226_v37 = vpop.permute.xlu1 %3225  ;;  %v3711_v13 = vld [vmem:[%s13935_s13 + $0x10] sm:$0xff] }
0x1aa3   :  { %v3237_v22 = vmul.f32 %v8161_v62, %v3226_v37  ;;  %v3224_v39 = vpop.permute.xlu0 %3223  ;;  %v3220_v6 = vadd.f32 %v3218_v14, %v3189_v38  ;;  %v3713_v14 = vld [vmem:[%s13935_s13 + $0x20] sm:$0xff]  ;;  %v3715_v37 = vld [vmem:[%s13935_s13 + $0x30] sm:$0xff]  ;;  %v3716_v38 = vld [vmem:[%s13935_s13 + $0x38] sm:$0xff] }
0x1aa4   :  { %v3236_v10 = vmul.f32 %v8161_v62, %v3224_v39  ;;  %v3219_v44 = vadd.f32 %v3217_v35, %v3188_v41  ;;  %v3712_v62 = vld [vmem:[%s13935_s13 + $0x18] sm:$0xff]  ;;  %v10935_v35 = vpack.c.bf16 %v3714_v33, %v3713_v14  ;;  %v3717_v39 = vld [vmem:[%s13935_s13 + $0x40] sm:$0xff]  ;;  %v3718_v41 = vld [vmem:[%s13935_s13 + $0x48] sm:$0xff] }
0x1aa5   :  { %v3249_v42 = vmul.f32 %v3246_v26, %v3237_v22  ;;  %v10931_v56 = vpack.c.bf16 %v3712_v62, %v3711_v13  ;;  %v10939_v22 = vpack.c.bf16 %v3716_v38, %v3715_v37  ;;  %v8187_v13 = vld [vmem:[%s13935_s13 + $0xf0] sm:$0xff]  ;;  %v8189_v33 = vld [vmem:[%s13935_s13 + $0x100] sm:$0xff] }
0x1aa6   :  { %v3248_v58 = vmul.f32 %v3241_v30, %v3236_v10  ;;  %v10943_v10 = vpack.c.bf16 %v3718_v41, %v3717_v39  ;;  %v8205_v37 = vld [vmem:[%s13935_s13 + $0x180] sm:$0xff] }
0x1aa7   :  { %v3251_v46 = vadd.f32 %v3249_v42, %v3220_v6  ;;  %v3719_v6 = vld [vmem:[%s13935_s13 + $0x50] sm:$0xff]  ;;  %v3720_v42 = vld [vmem:[%s13935_s13 + $0x58] sm:$0xff] }
0x1aa8   :  { %v3250_v47 = vadd.f32 %v3248_v58, %v3219_v44  ;;  %v10947_v44 = vpack.c.bf16 %v3720_v42, %v3719_v6  ;;  %v3721_v58 = vld [vmem:[%s13935_s13 + $0x60] sm:$0xff] }
0x1aa9   :  { %v3257_v49 = vmul.f32 %v3255_v24, %v3251_v46  ;;  %vm3254_vm14 = vcmp.ge.f32.partialorder %v3251_v46, 0.0 }
0x1aaa   :  { %vm3253_vm13 = vcmp.ge.f32.partialorder %v3250_v47, 0.0  ;;  %v3256_v20 = vmul.f32 %v3255_v24, %v3250_v47  ;;  %v3722_v24 = vld [vmem:[%s13935_s13 + $0x68] sm:$0xff] }
0x1aab   :  { %v3259_v27 = vsel %vm3254_vm14, %v3251_v46, %v3257_v49  ;;  %v10951_v46 = vpack.c.bf16 %v3722_v24, %v3721_v58  ;;  %v8192_v58 = vld [vmem:[%s13935_s13 + $0x118] sm:$0xff]  ;;  %v8207_v24 = vld [vmem:[%s13935_s13 + $0x190] sm:$0xff] }
0x1aac   :  { %v3258_v29 = vsel %vm3253_vm13, %v3250_v47, %v3256_v20 }
0x1aad   :  { %9614 = vmatprep.mubr.f32.mxu0 %v3258_v29 }
0x1aae   :  { %9615 = vmatmul.mubr.f32.vlgmr.msra.gmra.mrb[30].mxu0 %v3259_v27 }
0x1aaf   :  { %9658 = vmatpush3.msra.mxu0 %v12443_v32  ;;  %9659 = vmatprep.mubr.msk.f32.mxu0 %vm11718_vm0, %v11719_v4 }
0x1b81   :  { %v9616_v52 = vpop.f32.mrb[30].mxu0 }
0x1b82   :  { %v3342_v55 = vsel %vm525_vm4, %v9616_v52, 0.0  ;;  %v3332_v30 = vpop.f32.mrb[31].mxu0 }
0x1b83   :  { %v3341_v18 = vsel %vm525_vm4, %v3332_v30, 0.0 }
0x1b84   :  { %v3343_v63 = vadd.f32 %v3342_v55, %v3341_v18 }
0x1b86   :  { %v3344_v1 = vrot.slane %v3343_v63, 4 }
0x1b88   :  { %v3345_v3 = vadd.f32 %v3344_v1, %v3343_v63 }
0x1b8a   :  { %v3346_v5 = vrot.slane %v3345_v3, 2 }
0x1b8c   :  { %v3347_v7 = vadd.f32 %v3346_v5, %v3345_v3 }
0x1b8e   :  { %v3348_v11 = vrot.slane %v3347_v7, 1 }
0x1b90   :  { %v3349_v28 = vadd.f32 %v3348_v11, %v3347_v7  ;;  %v8173_v7 = vld [vmem:[%s13935_s13 + $0x80] sm:$0xff]  ;;  %v8174_v11 = vld [vmem:[%s13935_s13 + $0x88] sm:$0xff] }
0x1b92   :  { %v3350_v17 = vmul.f32 0.0009765625, %v3349_v28 }
0x1b94   :  { %9620 = vmatmul.mubr.msk.f32.vlgmr.msra.gmra.mrb[26].mxu1 %vm525_vm4, %v3350_v17 }
0x1b95   :  { %10894 = vmatpush3.bf16.msra.mxu1 %v11922_v43 }
0x1b96   :  { %10896 = vmatprep.subr.bf16.mxu1 %v11927_v45 }
0x1b99   :  { %10898 = vmatpush3.bf16.msra.mxu1 %v11927_v45 }
0x1b9a   :  { %10900 = vmatprep.subr.bf16.mxu1 %v11938_v48 }
0x1b9d   :  { %10902 = vmatpush3.bf16.msra.mxu1 %v11938_v48 }
0x1b9e   :  { %10904 = vmatprep.subr.bf16.mxu1 %v11948_v51 }
0x1ba1   :  { %10906 = vmatpush3.bf16.msra.mxu1 %v11948_v51 }
0x1ba2   :  { %10908 = vmatprep.subr.bf16.mxu1 %v11958_v54 }
0x1ba5   :  { %10910 = vmatpush3.bf16.msra.mxu1 %v11958_v54 }
0x1ba6   :  { %10912 = vmatprep.subr.bf16.mxu1 %v11968_v57 }
0x1ba9   :  { %10914 = vmatpush3.bf16.msra.mxu1 %v11968_v57 }
0x1baa   :  { %10916 = vmatprep.subr.bf16.mxu1 %v11978_v60 }
0x1bad   :  { %10918 = vmatpush3.bf16.msra.mxu1 %v11978_v60 }
0x1bae   :  { %10920 = vmatprep.subr.bf16.mxu1 %v12002_v9 }
0x1bb1   :  { %10922 = vmatpush3.bf16.msra.mxu1 %v12002_v9 }
0x1bb2   :  { %10928 = vmatprep.subr.bf16.mxu1 %v10927_v40 }
0x1c67   :  { %v3420_v43 = vpop.f32.mrb[26].mxu1 }
0x1c68   :  { %v3427_v45 = vrot.slane %v3420_v43, %v11863_v8  ;;  %v9621_v48 = vpop.f32.mrb[27].mxu1 }
0x1c69   :  { %v8175_v48 = vld [vmem:[%s13935_s13 + $0x90] sm:$0xff] }
0x1c6a   :  { %v12710_v51 = vsub.f32 %v3258_v29, %v3427_v45  ;;  %v12712_v32 = vsub.f32 %v3259_v27, %v3427_v45  ;;  %v3520_v29 = vpop.permute.xlu0 %3519  ;;  %v3525_v27 = vpop.permute.xlu1 %3524  ;;  %v10959_v45 = vpack.c.bf16 %v8174_v11, %v8173_v7  ;;  %v8198_v7 = vld [vmem:[%s13935_s13 + $0x148] sm:$0xff]  ;;  %v8213_v11 = vld [vmem:[%s13935_s13 + $0x1c0] sm:$0xff] }
0x1c6c   :  { %v3431_v54 = vmul.f32 %v12712_v32, %v12712_v32  ;;  %v3430_v57 = vmul.f32 %v12710_v51, %v12710_v51  ;;  %v3527_v55 = vmul.f32 %v3520_v29, %v12710_v51  ;;  %v3528_v30 = vmul.f32 %v3525_v27, %v12712_v32  ;;  %v8176_v51 = vld [vmem:[%s13935_s13 + $0x98] sm:$0xff]  ;;  %v8170_v32 = vld [vmem:[%s13979_s2 + $0x28] sm:$0xff]  ;;  %v8209_v27 = vld [vmem:[%s13935_s13 + $0x1a0] sm:$0xff] }
0x1c6d   :  { %v8194_v29 = vld [vmem:[%s13935_s13 + $0x128] sm:$0xff] }
0x1c6e   :  { %9654 = vmatprep.mubr.f32.mxu1 %v3430_v57  ;;  %v3612_v3 = vpop.permute.xlu0 %3611  ;;  %v3617_v5 = vpop.permute.xlu1 %3616  ;;  %v8177_v57 = vld [vmem:[%s13935_s13 + $0xa0] sm:$0xff] }
0x1c6f   :  { %9655 = vmatmul.mubr.f32.vlgmr.msra.gmra.mrb[28].mxu1 %v3431_v54  ;;  %v10963_v54 = vpack.c.bf16 %v8176_v51, %v8175_v48  ;;  %v8200_v48 = vld [vmem:[%s13935_s13 + $0x158] sm:$0xff]  ;;  %v8215_v51 = vld [vmem:[%s13935_s13 + $0x1d0] sm:$0xff] }
0x1c70   :  { %10930 = vmatpush3.bf16.msra.mxu1 %v10927_v40  ;;  %v3724_v40 = vld [vmem:[%s13935_s13 + $0x78] sm:$0xff] }
0x1c71   :  { %10932 = vmatprep.subr.bf16.mxu1 %v10931_v56  ;;  %v10955_v62 = vpack.c.bf16 %v3724_v40, %v3723_v31 }
0x1c74   :  { %10934 = vmatpush3.bf16.msra.mxu1 %v10931_v56  ;;  %v8188_v56 = vld [vmem:[%s13935_s13 + $0xf8] sm:$0xff] }
0x1c75   :  { %10936 = vmatprep.subr.bf16.mxu1 %v10935_v35  ;;  %v10987_v14 = vpack.c.bf16 %v8188_v56, %v8187_v13 }
0x1c78   :  { %10938 = vmatpush3.bf16.msra.mxu1 %v10935_v35  ;;  %v8190_v35 = vld [vmem:[%s13935_s13 + $0x108] sm:$0xff] }
0x1c79   :  { %10940 = vmatprep.subr.bf16.mxu1 %v10939_v22  ;;  %v10991_v38 = vpack.c.bf16 %v8190_v35, %v8189_v33 }
0x1c7c   :  { %10942 = vmatpush3.bf16.msra.mxu1 %v10939_v22  ;;  %v8206_v22 = vld [vmem:[%s13935_s13 + $0x188] sm:$0xff] }
0x1c7d   :  { %10944 = vmatprep.subr.bf16.mxu1 %v10943_v10  ;;  %v11023_v39 = vpack.c.bf16 %v8206_v22, %v8205_v37 }
0x1c80   :  { %10946 = vmatpush3.bf16.msra.mxu1 %v10943_v10 }
0x1c81   :  { %10948 = vmatprep.subr.bf16.mxu1 %v10947_v44 }
0x1c84   :  { %10950 = vmatpush3.bf16.msra.mxu1 %v10947_v44  ;;  %v8191_v44 = vld [vmem:[%s13935_s13 + $0x110] sm:$0xff] }
0x1c85   :  { %10952 = vmatprep.subr.bf16.mxu1 %v10951_v46 }
0x1c88   :  { %10954 = vmatpush3.bf16.msra.mxu1 %v10951_v46  ;;  %v8208_v46 = vld [vmem:[%s13935_s13 + $0x198] sm:$0xff] }
0x1c89   :  { %10956 = vmatprep.subr.bf16.mxu1 %v10955_v62 }
0x1c8c   :  { %10958 = vmatpush3.bf16.msra.mxu1 %v10955_v62 }
0x1c8d   :  { %10992 = vmatprep.subr.bf16.mxu1 %v10991_v38 }
0x1d42   :  { %v9656_v60 = vpop.f32.mrb[28].mxu1 }
0x1d43   :  { %v3508_v26 = vsel %vm525_vm4, %v9656_v60, 0.0  ;;  %v3498_v9 = vpop.f32.mrb[29].mxu1  ;;  %v8178_v60 = vld [vmem:[%s13935_s13 + $0xa8] sm:$0xff] }
0x1d44   :  { %v3507_v50 = vsel %vm525_vm4, %v3498_v9, 0.0  ;;  %v8179_v9 = vld [vmem:[%s13935_s13 + $0xb0] sm:$0xff] }
0x1d45   :  { %v3509_v53 = vadd.f32 %v3508_v26, %v3507_v50  ;;  %v10967_v26 = vpack.c.bf16 %v8178_v60, %v8177_v57  ;;  %v8180_v50 = vld [vmem:[%s13935_s13 + $0xb8] sm:$0xff]  ;;  %v8201_v60 = vld [vmem:[%s13935_s13 + $0x160] sm:$0xff] }
0x1d47   :  { %v3510_v15 = vrot.slane %v3509_v53, 4 }
0x1d49   :  { %v3511_v16 = vadd.f32 %v3510_v15, %v3509_v53  ;;  %v10971_v53 = vpack.c.bf16 %v8180_v50, %v8179_v9  ;;  %v8181_v15 = vld [vmem:[%s13935_s13 + $0xc0] sm:$0xff]  ;;  %v8218_v50 = vld [vmem:[%s13935_s13 + $0x1e8] sm:$0xff] }
0x1d4a   :  { %v8217_v9 = vld [vmem:[%s13935_s13 + $0x1e0] sm:$0xff] }
0x1d4b   :  { %v3512_v19 = vrot.slane %v3511_v16, 2 }
0x1d4d   :  { %v3513_v21 = vadd.f32 %v3512_v19, %v3511_v16  ;;  %v8182_v16 = vld [vmem:[%s13935_s13 + $0xc8] sm:$0xff] }
0x1d4e   :  { %v10975_v19 = vpack.c.bf16 %v8182_v16, %v8181_v15  ;;  %v11047_v15 = vpack.c.bf16 %v8218_v50, %v8217_v9  ;;  %v8203_v16 = vld [vmem:[%s13935_s13 + $0x170] sm:$0xff] }
0x1d4f   :  { %v3514_v61 = vrot.slane %v3513_v21, 1 }
0x1d51   :  { %v3515_v23 = vadd.f32 %v3514_v61, %v3513_v21  ;;  %v8183_v21 = vld [vmem:[%s13935_s13 + $0xd0] sm:$0xff]  ;;  %v8184_v61 = vld [vmem:[%s13935_s13 + $0xd8] sm:$0xff] }
0x1d53   :  { %v3516_v59 = vmul.f32 0.0009765625, %v3515_v23  ;;  %v10979_v23 = vpack.c.bf16 %v8184_v61, %v8183_v21  ;;  %v8219_v21 = vld [vmem:[%s13935_s13 + $0x1f0] sm:$0xff]  ;;  %v8220_v61 = vld [vmem:[%s13935_s13 + $0x1f8] sm:$0xff] }
0x1d55   :  { %9660 = vmatmul.mubr.msk.f32.vlgmr.msra.gmra.mrb[32].mxu0 %vm525_vm4, %v3516_v59  ;;  %v8185_v59 = vld [vmem:[%s13935_s13 + $0xe0] sm:$0xff] }
0x1d56   :  { %9666 = vmatprep.mubr.msk.f32.mxu0 %vm84_vm1, %v8169_v12  ;;  %v8186_v12 = vld [vmem:[%s13935_s13 + $0xe8] sm:$0xff] }
0x1d57   :  { %v10983_v25 = vpack.c.bf16 %v8186_v12, %v8185_v59  ;;  %v11051_v59 = vpack.c.bf16 %v8220_v61, %v8219_v21  ;;  %v4076_v12 = vld [vmem:[%s13933_s11] sm:$0xff] }
0x1e28   :  { %v3598_v47 = vpop.f32.mrb[32].mxu0 }
0x1e29   :  { %v3599_v49 = vadd.f32 1e-08, %v3598_v47  ;;  %v9661_v20 = vpop.f32.mrb[33].mxu0  ;;  %v8193_v47 = vld [vmem:[%s13935_s13 + $0x120] sm:$0xff] }
0x1e2a   :  { %v11027_v20 = vpack.c.bf16 %v8208_v46, %v8207_v24  ;;  %v4174_v24 = vld [vmem:[%s13937_s15] sm:$0xff]  ;;  %v4175_v46 = vld [vmem:[%s13937_s15 + $0x8] sm:$0xff] }
0x1e2b   :  { %11662 = vrsqrt.f32 %v3599_v49  ;;  %v10995_v49 = vpack.c.bf16 %v8192_v58, %v8191_v44 }
0x1e35   :  { %v11663_v52 = vpop.eup %11662 }
0x1e36   :  { %v3606_v18 = vrot.slane %v11663_v52, %v11863_v8 }
0x1e38   :  { %v3607_v63 = vmul.f32 %v3606_v18, %v3527_v55  ;;  %v3608_v1 = vmul.f32 %v3606_v18, %v3528_v30  ;;  %v8195_v55 = vld [vmem:[%s13935_s13 + $0x130] sm:$0xff]  ;;  %v8196_v30 = vld [vmem:[%s13935_s13 + $0x138] sm:$0xff] }
0x1e39   :  { %v8211_v18 = vld [vmem:[%s13935_s13 + $0x1b0] sm:$0xff] }
0x1e3a   :  { %v3619_v28 = vadd.f32 %v3612_v3, %v3607_v63  ;;  %v3620_v17 = vadd.f32 %v3617_v5, %v3608_v1  ;;  %v8212_v63 = vld [vmem:[%s13935_s13 + $0x1b8] sm:$0xff]  ;;  %v11003_v1 = vpack.c.bf16 %v8196_v30, %v8195_v55  ;;  %v8197_v5 = vld [vmem:[%s13935_s13 + $0x140] sm:$0xff]  ;;  %v4180_v55 = vld [vmem:[%s13937_s15 + $0x30] sm:$0xff] }
0x1e3b   :  { %v11035_v3 = vpack.c.bf16 %v8212_v63, %v8211_v18  ;;  %v4181_v30 = vld [vmem:[%s13937_s15 + $0x38] sm:$0xff]  ;;  %v4182_v63 = vld [vmem:[%s13937_s15 + $0x40] sm:$0xff] }
0x1e3c   :  { %v10923_v43 = vpack.c.bf16 %v3620_v17, %v3619_v28  ;;  %v8214_v28 = vld [vmem:[%s13935_s13 + $0x1c8] sm:$0xff]  ;;  %v11007_v17 = vpack.c.bf16 %v8198_v7, %v8197_v5  ;;  %v12996_v18 = vpack.c.bf16 %v4181_v30, %v4180_v55  ;;  %v4184_v5 = vld [vmem:[%s13937_s15 + $0x50] sm:$0xff]  ;;  %v4185_v7 = vld [vmem:[%s13937_s15 + $0x58] sm:$0xff] }
0x1e3e   :  { %10924 = vmatprep.subr.bf16.mxu0 %v10923_v43 }
0x1e3f   :  { %10926 = vmatpush3.bf16.msra.mxu0 %v10923_v43  ;;  %v11039_v43 = vpack.c.bf16 %v8214_v28, %v8213_v11  ;;  %v13016_v11 = vpack.c.bf16 %v4185_v7, %v4184_v5  ;;  %v4186_v28 = vld [vmem:[%s13937_s15 + $0x60] sm:$0xff] }
0x1e40   :  { %10960 = vmatprep.subr.bf16.mxu0 %v10959_v45 }
0x1e42   :  { %9667 = vmatmul.mubr.msk.f32.vlgmr.msra.gmra.mrb[34].mxu0 %vm84_vm1, %v8170_v32  ;;  %v8216_v32 = vld [vmem:[%s13935_s13 + $0x1d8] sm:$0xff] }
0x1e43   :  { %10962 = vmatpush3.bf16.msra.mxu0 %v10959_v45  ;;  %v8199_v45 = vld [vmem:[%s13935_s13 + $0x150] sm:$0xff]  ;;  %v11043_v57 = vpack.c.bf16 %v8216_v32, %v8215_v51  ;;  %v4278_v32 = vstv %s8229_s12 }
0x1e44   :  { %10964 = vmatprep.subr.bf16.mxu0 %v10963_v54 }
0x1e47   :  { %10966 = vmatpush3.bf16.msra.mxu0 %v10963_v54  ;;  %v11011_v54 = vpack.c.bf16 %v8200_v48, %v8199_v45  ;;  %v4188_v45 = vld [vmem:[%s13937_s15 + $0x70] sm:$0xff]  ;;  %v4189_v48 = vld [vmem:[%s13937_s15 + $0x78] sm:$0xff] }
0x1e48   :  { %10968 = vmatprep.subr.bf16.mxu0 %v10967_v26  ;;  %v13037_v51 = vpack.c.bf16 %v4189_v48, %v4188_v45 }
0x1e4b   :  { %10970 = vmatpush3.bf16.msra.mxu0 %v10967_v26  ;;  %v8202_v26 = vld [vmem:[%s13935_s13 + $0x168] sm:$0xff] }
0x1e4c   :  { %10972 = vmatprep.subr.bf16.mxu0 %v10971_v53 }
0x1e4f   :  { %10974 = vmatpush3.bf16.msra.mxu0 %v10971_v53  ;;  %v11015_v53 = vpack.c.bf16 %v8202_v26, %v8201_v60 }
0x1e50   :  { %10976 = vmatprep.subr.bf16.mxu0 %v10975_v19 }
0x1e53   :  { %10978 = vmatpush3.bf16.msra.mxu0 %v10975_v19  ;;  %v8204_v19 = vld [vmem:[%s13935_s13 + $0x178] sm:$0xff] }
0x1e54   :  { %10980 = vmatprep.subr.bf16.mxu0 %v10979_v23 }
0x1e57   :  { %10982 = vmatpush3.bf16.msra.mxu0 %v10979_v23  ;;  %v11019_v23 = vpack.c.bf16 %v8204_v19, %v8203_v16 }
0x1e58   :  { %10984 = vmatprep.subr.bf16.mxu0 %v10983_v25 }
0x1e5b   :  { %10986 = vmatpush3.bf16.msra.mxu0 %v10983_v25 }
0x1e5c   :  { %10988 = vmatprep.subr.bf16.mxu0 %v10987_v14 }
0x1e5f   :  { %10990 = vmatpush3.bf16.msra.mxu0 %v10987_v14 }
0x1e60   :  { %11024 = vmatprep.subr.bf16.mxu0 %v11023_v39 }
0x1f15   :  { %v9668_v41 = vpop.f32.mrb[34].mxu0 }
0x1f16   :  { %v3706_v10 = vadd.f32 %v9668_v41, %v12501_v34  ;;  %v3696_v6 = vpop.f32.mrb[35].mxu0  ;;  %v8223_v41 = vld [vmem:[%s13978_s5 + $0x30] sm:$0xff] }
0x1f17   :  { %v3705_v42 = vadd.f32 %v3696_v6, %v12504_v36 }
0x1f18   :  { %v12856_v36 = vadd.f32 %v3706_v10, %v11983_v0  ;;  %v8210_v0 = vld [vmem:[%s13935_s13 + $0x1a8] sm:$0xff]  ;;  %v4088_v10 = vpop.permute.xlu1 %4087  ;;  %s13980_s13 = smov 1  }
0x1f19   :  { %v3707_v34 = vadd.f32 %v3705_v42, %v11985_v2  ;;  %v10999_v2 = vpack.c.bf16 %v8194_v29, %v8193_v47  ;;  %v11031_v52 = vpack.c.bf16 %v8210_v0, %v8209_v27  ;;  %v4083_v42 = vpop.permute.xlu0 %4082  ;;  %v12963_v47 = vpack.c.bf16 %v4175_v46, %v4174_v24  ;;  %v8224_v29 = vld [vmem:[%s13978_s5 + $0x38] sm:$0xff]  ;;  %v4178_v0 = vld [vmem:[%s13937_s15 + $0x20] sm:$0xff] }
0x1f1b   :  { %9701 = vmatprep.mubr.f32.mxu1 %v3707_v34  ;;  %9736 = vmatprep.mubr.f32.mxu0 %v3707_v34 }
0x1f1c   :  { %9702 = vmatmul.mubr.f32.vlgmr.msra.gmra.mrb[30].mxu1 %v12856_v36  ;;  %9737 = vmatmul.mubr.f32.vlgmr.msra.gmra.mrb[36].mxu0 %v12856_v36 }
0x1f1d   :  { %10994 = vmatpush3.bf16.msra.mxu1 %v10991_v38  ;;  %11026 = vmatpush3.bf16.msra.mxu0 %v11023_v39  ;;  %v4077_v39 = vld [vmem:[%s13933_s11 + $0x8] sm:$0xff]  ;;  %v4543_v55 = vpop.permute.xlu0 %4542 }
0x1f1e   :  { %9771 = vmatprep.mubr.f32.mxu1 %v3707_v34  ;;  %9806 = vmatprep.mubr.f32.mxu0 %v3707_v34 }
0x1f1f   :  { %10996 = vmatprep.subr.bf16.mxu1 %v10995_v49  ;;  %11028 = vmatprep.subr.bf16.mxu0 %v11027_v20 }
0x1f21   :  { %10998 = vmatpush3.bf16.msra.mxu1 %v10995_v49  ;;  %11030 = vmatpush3.bf16.msra.mxu0 %v11027_v20  ;;  %v4176_v49 = vld [vmem:[%s13937_s15 + $0x10] sm:$0xff]  ;;  %v4177_v20 = vld [vmem:[%s13937_s15 + $0x18] sm:$0xff]  ;;  %v4635_v45 = vpop.permute.xlu0 %4634 }
0x1f22   :  { %11000 = vmatprep.subr.bf16.mxu1 %v10999_v2  ;;  %11032 = vmatprep.subr.bf16.mxu0 %v11031_v52  ;;  %v12975_v27 = vpack.c.bf16 %v4177_v20, %v4176_v49 }
0x1f25   :  { %11002 = vmatpush3.bf16.msra.mxu1 %v10999_v2  ;;  %11034 = vmatpush3.bf16.msra.mxu0 %v11031_v52  ;;  %v4179_v2 = vld [vmem:[%s13937_s15 + $0x28] sm:$0xff] }
0x1f26   :  { %11004 = vmatprep.subr.bf16.mxu1 %v11003_v1  ;;  %11036 = vmatprep.subr.bf16.mxu0 %v11035_v3  ;;  %v12986_v52 = vpack.c.bf16 %v4179_v2, %v4178_v0 }
0x1f29   :  { %11006 = vmatpush3.bf16.msra.mxu1 %v11003_v1  ;;  %11038 = vmatpush3.bf16.msra.mxu0 %v11035_v3  ;;  %v4183_v1 = vld [vmem:[%s13937_s15 + $0x48] sm:$0xff] }
0x1f2a   :  { %11008 = vmatprep.subr.bf16.mxu1 %v11007_v17  ;;  %11040 = vmatprep.subr.bf16.mxu0 %v11039_v43  ;;  %v13006_v3 = vpack.c.bf16 %v4183_v1, %v4182_v63  ;;  %v4548_v63 = vpop.permute.xlu1 %4547 }
0x1f2d   :  { %11010 = vmatpush3.bf16.msra.mxu1 %v11007_v17  ;;  %11042 = vmatpush3.bf16.msra.mxu0 %v11039_v43  ;;  %v4187_v17 = vld [vmem:[%s13937_s15 + $0x68] sm:$0xff]  ;;  %s8328_s15 = sld [smem:[#allocation2 + $0xa]] }
0x1f2e   :  { %11012 = vmatprep.subr.bf16.mxu1 %v11011_v54  ;;  %11044 = vmatprep.subr.bf16.mxu0 %v11043_v57  ;;  %v13026_v43 = vpack.c.bf16 %v4187_v17, %v4186_v28 }
0x1f31   :  { %11014 = vmatpush3.bf16.msra.mxu1 %v11011_v54  ;;  %11046 = vmatpush3.bf16.msra.mxu0 %v11043_v57 }
0x1f32   :  { %11016 = vmatprep.subr.bf16.mxu1 %v11015_v53  ;;  %11048 = vmatprep.subr.bf16.mxu0 %v11047_v15 }
0x1f35   :  { %11018 = vmatpush3.bf16.msra.mxu1 %v11015_v53  ;;  %11050 = vmatpush3.bf16.msra.mxu0 %v11047_v15  ;;  %v13047_v53 = vld [vmem:[%s13938_s16] sm:$0xff] }
0x1f36   :  { %11020 = vmatprep.subr.bf16.mxu1 %v11019_v23  ;;  %11052 = vmatprep.subr.bf16.mxu0 %v11051_v59 }
0x1f39   :  { %11022 = vmatpush3.bf16.msra.mxu1 %v11019_v23  ;;  %11054 = vmatpush3.bf16.msra.mxu0 %v11051_v59 }
0x1f3c   :  { %9772 = vmatmul.mubr.f32.vlgmr.msra.gmra.mrb[32].mxu1 %v12856_v36  ;;  %9807 = vmatmul.mubr.f32.vlgmr.msra.gmra.mrb[38].mxu0 %v12856_v36 }
0x1f3d   :  { %9825 = vmatprep.mubr.msk.f32.mxu1 %vm4090_vm15, %v4076_v12  ;;  %9832 = vmatprep.mubr.msk.f32.mxu0 %vm84_vm1, %v8223_v41 }
0x1fef   :  { %v9703_v25 = vpop.f32.mrb[30].mxu1  ;;  %v9738_v31 = vpop.f32.mrb[36].mxu0 }
0x1ff0   :  { %v3791_v40 = vpop.f32.mrb[31].mxu1  ;;  %v3883_v13 = vpop.f32.mrb[37].mxu0 }
0x1ff1   :  { %v11055_v62 = vpack.c.bf16 %v9703_v25, %v3791_v40  ;;  %v11059_v56 = vpack.c.bf16 %v9738_v31, %v3883_v13 }
0x1ff3   :  { %11056 = vmatprep.subr.bf16.mxu1 %v11055_v62 }
0x1ff4   :  { %11058 = vmatpush3.bf16.msra.mxu1 %v11055_v62 }
0x1ff5   :  { %11060 = vmatprep.subr.bf16.mxu1 %v11059_v56 }
0x1ff8   :  { %11062 = vmatpush3.bf16.msra.mxu1 %v11059_v56 }
0x200f   :  { %v9773_v14 = vpop.f32.mrb[32].mxu1  ;;  %v9808_v33 = vpop.f32.mrb[38].mxu0 }
0x2010   :  { %v3975_v35 = vpop.f32.mrb[33].mxu1  ;;  %v4067_v37 = vpop.f32.mrb[39].mxu0 }
0x2011   :  { %v11063_v38 = vpack.c.bf16 %v9773_v14, %v3975_v35  ;;  %v11067_v22 = vpack.c.bf16 %v9808_v33, %v4067_v37 }
0x2013   :  { %11064 = vmatprep.subr.bf16.mxu1 %v11063_v38 }
0x2014   :  { %11066 = vmatpush3.bf16.msra.mxu1 %v11063_v38 }
0x2015   :  { %11068 = vmatprep.subr.bf16.mxu1 %v11067_v22 }
0x2018   :  { %11070 = vmatpush3.bf16.msra.mxu1 %v11067_v22 }
0x2019   :  { %9870 = vmatprep.subr.mxu1 %v11719_v4 }
0x201b   :  { %9826 = vmatmul.mubr.msk.f32.vlgmr.msra.gmra.mrb[34].mxu1 %vm4090_vm15, %v4077_v39 }
0x201c   :  { %9872 = vmatprep.mubr.msk.f32.mxu1 %vm11718_vm0, %v11719_v4  ;;  %9871 = vmatpush3.msra.mxu1 %v13047_v53 }
0x201d   :  { %11110 = vmatprep.subr.bf16.mxu1 %v12963_v47 }
0x20ee   :  { %v9827_v6 = vpop.f32.mrb[34].mxu1 }
0x20ef   :  { %v12949_v44 = vadd.f32 %v9827_v6, %v4088_v10  ;;  %v4163_v58 = vpop.f32.mrb[35].mxu1 }
0x20f0   :  { %v12957_v34 = vadd.f32 %v4163_v58, %v4083_v42 }
0x20f2   :  { %v11071_v36 = vpack.c.bf16 %v12949_v44, %v12957_v34 }
0x20f4   :  { %11073 = vmatprep.subr.msk.bf16.mxu0 %vm11072_vm2, %v11071_v36 }
0x20f5   :  { %11076 = vmatpush3.bf16.msk.msra.mxu0 %vm11072_vm2, %v11071_v36 }
0x20f6   :  { %11078 = vmatprep.subr.bf16.mxu0 %v12963_v47 }
0x20f8   :  { %9833 = vmatmul.mubr.msk.f32.vlgmr.msra.gmra.mrb[40].mxu0 %vm84_vm1, %v8224_v29 }
0x20f9   :  { %11080 = vmatpush3.bf16.msra.mxu0 %v12963_v47 }
0x20fa   :  { %11082 = vmatprep.subr.bf16.mxu0 %v12975_v27 }
0x20fd   :  { %11084 = vmatpush3.bf16.msra.mxu0 %v12975_v27 }
0x20fe   :  { %11086 = vmatprep.subr.bf16.mxu0 %v12986_v52 }
0x2101   :  { %11088 = vmatpush3.bf16.msra.mxu0 %v12986_v52 }
0x2102   :  { %11090 = vmatprep.subr.bf16.mxu0 %v12996_v18 }
0x2105   :  { %11092 = vmatpush3.bf16.msra.mxu0 %v12996_v18 }
0x2106   :  { %11094 = vmatprep.subr.bf16.mxu0 %v13006_v3 }
0x2109   :  { %11096 = vmatpush3.bf16.msra.mxu0 %v13006_v3 }
0x210a   :  { %11098 = vmatprep.subr.bf16.mxu0 %v13016_v11 }
0x210d   :  { %11100 = vmatpush3.bf16.msra.mxu0 %v13016_v11 }
0x210e   :  { %11102 = vmatprep.subr.bf16.mxu0 %v13026_v43 }
0x2111   :  { %11104 = vmatpush3.bf16.msra.mxu0 %v13026_v43 }
0x2112   :  { %11106 = vmatprep.subr.bf16.mxu0 %v13037_v51 }
0x2115   :  { %11108 = vmatpush3.bf16.msra.mxu0 %v13037_v51 }
0x2116   :  { %9910 = vmatprep.subr.mxu0 %v11719_v4 }
0x21cb   :  { %v9834_v54 = vpop.f32.mrb[40].mxu0 }
0x21cc   :  { %v4280_v57 = vmul.f32 %v9834_v54, %v4278_v32  ;;  %v4266_v60 = vpop.f32.mrb[41].mxu0  ;;  %vm4277_vm3 = vcmp.ge.f32.partialorder %v9834_v54, 0.0 }
0x21cd   :  { %vm4276_vm5 = vcmp.ge.f32.partialorder %v4266_v60, 0.0  ;;  %v4279_v26 = vmul.f32 %v4278_v32, %v4266_v60  ;;  %v4640_v32 = vpop.permute.xlu1 %4639 }
0x21ce   :  { %v4282_v50 = vsel %vm4277_vm3, %v9834_v54, %v4280_v57  ;;  %v8261_v57 = vld [vmem:[%s13977_s29 + $0x1b8] sm:$0xff] }
0x21cf   :  { %v4281_v9 = vsel %vm4276_vm5, %v4266_v60, %v4279_v26  ;;  %v8264_v60 = vld [vmem:[%s13928_s6 + $0x70] sm:$0xff] }
0x21d0   :  { %9867 = vmatprep.mubr.f32.mxu0 %v4281_v9  ;;  %v8266_v26 = vld [vmem:[%s13929_s7 + $0x70] sm:$0xff] }
0x21d1   :  { %9868 = vmatmul.mubr.f32.vlgmr.msra.gmra.mrb[42].mxu0 %v4282_v50 }
0x21d2   :  { %9912 = vmatprep.mubr.msk.f32.mxu0 %vm11718_vm0, %v11719_v4  ;;  %9911 = vmatpush3.msra.mxu0 %v13047_v53 }
0x21d3   :  { %11142 = vmatprep.subr.bf16.mxu0 %v12963_v47 }
0x22a4   :  { %v9869_v15 = vpop.f32.mrb[42].mxu0 }
0x22a5   :  { %v4365_v16 = vsel %vm525_vm4, %v9869_v15, 0.0  ;;  %v4355_v19 = vpop.f32.mrb[43].mxu0  ;;  %v8265_v15 = vld [vmem:[%s13928_s6 + $0x78] sm:$0xff] }
0x22a6   :  { %v4364_v21 = vsel %vm525_vm4, %v4355_v19, 0.0  ;;  %v8267_v19 = vld [vmem:[%s13929_s7 + $0x78] sm:$0xff] }
0x22a7   :  { %v4366_v61 = vadd.f32 %v4365_v16, %v4364_v21  ;;  %v8286_v16 = vld [vmem:[%s13977_s29 + $0x1c0] sm:$0xff]  ;;  %v8287_v21 = vld [vmem:[%s13977_s29 + $0x1c8] sm:$0xff] }
0x22a9   :  { %v4367_v23 = vrot.slane %v4366_v61, 4 }
0x22ab   :  { %v4368_v59 = vadd.f32 %v4367_v23, %v4366_v61  ;;  %v8280_v61 = vld [vmem:[%s13928_s6 + $0x88] sm:$0xff]  ;;  %v8294_v23 = vld [vmem:[%s13977_s29 + $0x1e0] sm:$0xff] }
0x22ad   :  { %v4369_v12 = vrot.slane %v4368_v59, 2 }
0x22af   :  { %v4370_v25 = vadd.f32 %v4369_v12, %v4368_v59  ;;  %v8282_v59 = vld [vmem:[%s13929_s7 + $0x88] sm:$0xff]  ;;  %v8298_v12 = vld [vmem:[%s13977_s29 + $0x1f0] sm:$0xff] }
0x22b1   :  { %v4371_v31 = vrot.slane %v4370_v25, 1 }
0x22b3   :  { %v4372_v40 = vadd.f32 %v4371_v31, %v4370_v25  ;;  %v8290_v25 = vld [vmem:[%s13977_s29 + $0x1d0] sm:$0xff]  ;;  %v8302_v31 = vld [vmem:[%s13977_s29 + $0x200] sm:$0xff] }
0x22b5   :  { %v4373_v13 = vmul.f32 0.001953125, %v4372_v40  ;;  %v8291_v40 = vld [vmem:[%s13977_s29 + $0x1d8] sm:$0xff] }
0x22b7   :  { %9873 = vmatmul.mubr.msk.f32.vlgmr.msra.gmra.mrb[36].mxu1 %vm525_vm4, %v4373_v13  ;;  %v8303_v13 = vld [vmem:[%s13977_s29 + $0x208] sm:$0xff] }
0x22b8   :  { %11112 = vmatpush3.bf16.msra.mxu1 %v12963_v47 }
0x22b9   :  { %11114 = vmatprep.subr.bf16.mxu1 %v12975_v27 }
0x22bc   :  { %11116 = vmatpush3.bf16.msra.mxu1 %v12975_v27 }
0x22bd   :  { %11118 = vmatprep.subr.bf16.mxu1 %v12986_v52 }
0x22c0   :  { %11120 = vmatpush3.bf16.msra.mxu1 %v12986_v52 }
0x22c1   :  { %11122 = vmatprep.subr.bf16.mxu1 %v12996_v18 }
0x22c4   :  { %11124 = vmatpush3.bf16.msra.mxu1 %v12996_v18 }
0x22c5   :  { %11126 = vmatprep.subr.bf16.mxu1 %v13006_v3 }
0x22c8   :  { %11128 = vmatpush3.bf16.msra.mxu1 %v13006_v3 }
0x22c9   :  { %11130 = vmatprep.subr.bf16.mxu1 %v13016_v11 }
0x22cc   :  { %11132 = vmatpush3.bf16.msra.mxu1 %v13016_v11 }
0x22cd   :  { %11134 = vmatprep.subr.bf16.mxu1 %v13026_v43 }
0x22d0   :  { %11136 = vmatpush3.bf16.msra.mxu1 %v13026_v43 }
0x22d1   :  { %11138 = vmatprep.subr.bf16.mxu1 %v13037_v51 }
0x22d4   :  { %11140 = vmatpush3.bf16.msra.mxu1 %v13037_v51 }
0x22d5   :  { %9950 = vmatprep.subr.mxu1 %v11719_v4 }
0x238a   :  { %v4443_v62 = vpop.f32.mrb[36].mxu1 }
0x238b   :  { %v4450_v56 = vrot.slane %v4443_v62, %v11863_v8  ;;  %v9874_v14 = vpop.f32.mrb[37].mxu1  ;;  %v8295_v62 = vld [vmem:[%s13977_s29 + $0x1e8] sm:$0xff] }
0x238c   :  { %v8299_v14 = vld [vmem:[%s13977_s29 + $0x1f8] sm:$0xff] }
0x238d   :  { %v4451_v33 = vsub.f32 %v4281_v9, %v4450_v56  ;;  %v4452_v35 = vsub.f32 %v4282_v50, %v4450_v56  ;;  %v8279_v9 = vld [vmem:[%s13928_s6 + $0x80] sm:$0xff]  ;;  %v8306_v56 = vld [vmem:[%s13977_s29 + $0x210] sm:$0xff] }
0x238e   :  { %v8281_v50 = vld [vmem:[%s13929_s7 + $0x80] sm:$0xff] }
0x238f   :  { %v4454_v37 = vmul.f32 %v4452_v35, %v4452_v35  ;;  %v4453_v38 = vmul.f32 %v4451_v33, %v4451_v33  ;;  %v4550_v1 = vmul.f32 %v4543_v55, %v4451_v33  ;;  %v4551_v5 = vmul.f32 %v4548_v63, %v4452_v35  ;;  %v8310_v33 = vld [vmem:[%s13977_s29 + $0x220] sm:$0xff]  ;;  %v8307_v35 = vld [vmem:[%s13977_s29 + $0x218] sm:$0xff] }
0x2390   :  { %v8238_v63 = vld [vmem:[%s13936_s14] ss:$0 sm:$0xff] }
0x2391   :  { %9907 = vmatprep.mubr.f32.mxu1 %v4453_v38 }
0x2392   :  { %9908 = vmatmul.mubr.f32.vlgmr.msra.gmra.mrb[38].mxu1 %v4454_v37  ;;  %v4663_v37 = vpop.permute.xlu0 %4662 }
0x2393   :  { %9951 = vmatpush3.msra.mxu1 %v13047_v53  ;;  %9952 = vmatprep.mubr.msk.f32.mxu1 %vm11718_vm0, %v11719_v4 }
0x2394   :  { %11174 = vmatprep.subr.bf16.mxu1 %v12963_v47 }
0x2396   :  { %v4668_v38 = vpop.permute.xlu0 %4667 }
0x2465   :  { %v9909_v22 = vpop.f32.mrb[38].mxu1 }
0x2466   :  { %v4531_v39 = vsel %vm525_vm4, %v9909_v22, 0.0  ;;  %v4521_v41 = vpop.f32.mrb[39].mxu1  ;;  %v4723_v22 = vpop.permute.xlu0 %4722 }
0x2467   :  { %v4530_v10 = vsel %vm525_vm4, %v4521_v41, 0.0 }
0x2468   :  { %v4532_v6 = vadd.f32 %v4531_v39, %v4530_v10  ;;  %v4692_v39 = vpop.permute.xlu1 %4691 }
0x246a   :  { %v4533_v42 = vrot.slane %v4532_v6, 4  ;;  %v4750_v41 = vpop.permute.xlu0 %4749 }
0x246c   :  { %v4534_v58 = vadd.f32 %v4533_v42, %v4532_v6  ;;  %v4697_v10 = vpop.permute.xlu1 %4696 }
0x246e   :  { %v4535_v24 = vrot.slane %v4534_v58, 2  ;;  %v4781_v6 = vpop.permute.xlu0 %4780 }
0x2470   :  { %v4536_v46 = vadd.f32 %v4535_v24, %v4534_v58  ;;  %v4728_v42 = vpop.permute.xlu1 %4727 }
0x2472   :  { %v4537_v36 = vrot.slane %v4536_v46, 1  ;;  %v4786_v58 = vpop.permute.xlu0 %4785 }
0x2474   :  { %v4538_v49 = vadd.f32 %v4537_v36, %v4536_v46  ;;  %v4755_v24 = vpop.permute.xlu1 %4754 }
0x2476   :  { %v4539_v20 = vmul.f32 0.001953125, %v4538_v49  ;;  %v4812_v46 = vpop.permute.xlu0 %4811 }
0x2478   :  { %9913 = vmatmul.mubr.msk.f32.vlgmr.msra.gmra.mrb[44].mxu0 %vm525_vm4, %v4539_v20  ;;  %v4817_v36 = vpop.permute.xlu1 %4816 }
0x2479   :  { %11144 = vmatpush3.bf16.msra.mxu0 %v12963_v47 }
0x247a   :  { %11146 = vmatprep.subr.bf16.mxu0 %v12975_v27  ;;  %v4843_v49 = vpop.permute.xlu0 %4842 }
0x247d   :  { %11148 = vmatpush3.bf16.msra.mxu0 %v12975_v27 }
0x247e   :  { %11150 = vmatprep.subr.bf16.mxu0 %v12986_v52 }
0x2481   :  { %11152 = vmatpush3.bf16.msra.mxu0 %v12986_v52 }
0x2482   :  { %11154 = vmatprep.subr.bf16.mxu0 %v12996_v18 }
0x2485   :  { %11156 = vmatpush3.bf16.msra.mxu0 %v12996_v18 }
0x2486   :  { %11158 = vmatprep.subr.bf16.mxu0 %v13006_v3 }
0x2489   :  { %11160 = vmatpush3.bf16.msra.mxu0 %v13006_v3 }
0x248a   :  { %11162 = vmatprep.subr.bf16.mxu0 %v13016_v11 }
0x248d   :  { %11164 = vmatpush3.bf16.msra.mxu0 %v13016_v11 }
0x248e   :  { %11166 = vmatprep.subr.bf16.mxu0 %v13026_v43 }
0x2491   :  { %11168 = vmatpush3.bf16.msra.mxu0 %v13026_v43 }
0x2492   :  { %11170 = vmatprep.subr.bf16.mxu0 %v13037_v51 }
0x2495   :  { %11172 = vmatpush3.bf16.msra.mxu0 %v13037_v51 }
0x2496   :  { %9990 = vmatprep.subr.mxu0 %v11719_v4 }
0x254b   :  { %v4621_v29 = vpop.f32.mrb[44].mxu0 }
0x254c   :  { %v4622_v0 = vadd.f32 1e-08, %v4621_v29  ;;  %v9914_v2 = vpop.f32.mrb[45].mxu0 }
0x254e   :  { %11664 = vrsqrt.f32 %v4622_v0 }
0x2558   :  { %v11665_v30 = vpop.eup %11664 }
0x2559   :  { %v4629_v7 = vrot.slane %v11665_v30, %v11863_v8  ;;  %v8242_v30 = vld [vmem:[%s13936_s14 + $0x1] ss:$0 sm:$0xff] }
0x255b   :  { %v4630_v28 = vmul.f32 %v4629_v7, %v4550_v1  ;;  %v4631_v17 = vmul.f32 %v4629_v7, %v4551_v5 }
0x255d   :  { %v13097_v48 = vadd.f32 %v4635_v45, %v4630_v28  ;;  %v13103_v54 = vadd.f32 %v4640_v32, %v4631_v17  ;;  %v8246_v28 = vld [vmem:[%s13936_s14 + $0x2] ss:$0 sm:$0xff] }
0x255f   :  { %4674 = vrot.lane.b32.xlu0 %v13097_v48, %s11722_s28  ;;  %4645 = vrot.lane.b32.xlu1 %v13097_v48, %s11723_s0 }
0x2563   :  { %4647 = vrot.lane.b32.xlu0 %v13103_v54, %s11723_s0  ;;  %4676 = vrot.lane.b32.xlu1 %v13103_v54, %s11722_s28 }
0x2567   :  { %4847 = vperm.xlu0 %11648, %v8261_v57   ;;  %4705 = vrot.lane.b32.xlu1 %v13097_v48, %s13980_s13 }
0x256b   :  { %4794 = vrot.lane.b32.xlu0 %v13097_v48, %s13981_s23  ;;  %4707 = vrot.lane.b32.xlu1 %v13103_v54, %s13980_s13  ;;  %s13988_s13 = smov 101  }
0x256f   :  { %4825 = vrot.lane.b32.xlu0 %v13097_v48, %s13982_s26  ;;  %4763 = vrot.lane.b32.xlu1 %v13097_v48, %s13983_s20 }
0x2573   :  { %5121 = vperm.xlu0 %11648, %v8264_v60   ;;  %4765 = vrot.lane.b32.xlu1 %v13103_v54, %s13983_s20 }
0x2577   :  { %5213 = vperm.xlu0 %11648, %v8266_v26   ;;  %4796 = vrot.lane.b32.xlu1 %v13103_v54, %s13981_s23  ;;  %s8313_s23 = sld [smem:[#allocation2 + $0x9]] }
0x257b   :  { %5660 = vperm.xlu0 %11648, %v8279_v9   ;;  %4827 = vrot.lane.b32.xlu1 %v13103_v54, %s13982_s26 }
0x257f   :  { %5752 = vperm.xlu0 %11648, %v8281_v50   ;;  %5126 = vperm.xlu1 %11649, %v8265_v15  }
0x2583   :  { %5781 = vperm.xlu0 %11648, %v8286_v16   ;;  %5218 = vperm.xlu1 %11649, %v8267_v19   ;;  %v8250_v16 = vld [vmem:[%s13936_s14 + $0x3] ss:$0 sm:$0xff] }
0x2587   :  { %5786 = vperm.xlu0 %11648, %v8287_v21   ;;  %5665 = vperm.xlu1 %11649, %v8280_v61   ;;  %v8254_v21 = vld [vmem:[%s13936_s14 + $0x4] ss:$0 sm:$0xff] }
0x258b   :  { %5841 = vperm.xlu0 %11648, %v8294_v23   ;;  %5757 = vperm.xlu1 %11649, %v8282_v59  }
0x258f   :  { %5868 = vperm.xlu0 %11648, %v8298_v12   ;;  %5810 = vperm.xlu1 %11649, %v8290_v25   ;;  %v4746_v12 = vmul.f32 %v8250_v16, %v13103_v54 }
0x2593   :  { %5899 = vperm.xlu0 %11648, %v8302_v31   ;;  %5815 = vperm.xlu1 %11649, %v8291_v40  }
0x2597   :  { %5904 = vperm.xlu0 %11648, %v8303_v13   ;;  %5846 = vperm.xlu1 %11649, %v8295_v62   ;;  %v4745_v13 = vmul.f32 %v8250_v16, %v13097_v48  ;;  %v8262_v48 = vld [vmem:[%s13936_s14 + $0x6] ss:$0 sm:$0xff] }
0x259b   :  { %5930 = vperm.xlu0 %11648, %v8306_v56   ;;  %5873 = vperm.xlu1 %11649, %v8299_v14   ;;  %v8258_v56 = vld [vmem:[%s13936_s14 + $0x5] ss:$0 sm:$0xff] }
0x259f   :  { %5961 = vperm.xlu0 %11648, %v8310_v33   ;;  %5935 = vperm.xlu1 %11649, %v8307_v35  }
0x25d1   :  { %v4646_v20 = vpop.permute.xlu1 %4645  ;;  %v4675_v29 = vpop.permute.xlu0 %4674 }
0x25d2   :  { %v4687_v17 = vmul.f32 %v8242_v30, %v4675_v29  ;;  %v4658_v45 = vmul.f32 %v8238_v63, %v4646_v20 }
0x25d4   :  { %v4699_v50 = vmul.f32 %v4692_v39, %v4687_v17  ;;  %v4670_v15 = vmul.f32 %v4663_v37, %v4658_v45  ;;  %v4758_v37 = vmul.f32 %v4755_v24, %v4746_v12 }
0x25d5   :  { %v4677_v0 = vpop.permute.xlu1 %4676  ;;  %v4648_v55 = vpop.permute.xlu0 %4647 }
0x25d6   :  { %v4659_v5 = vmul.f32 %v8238_v63, %v4648_v55  ;;  %v4688_v7 = vmul.f32 %v8242_v30, %v4677_v0  ;;  %v4701_v40 = vadd.f32 %v4699_v50, %v4670_v15 }
0x25d8   :  { %v4671_v26 = vmul.f32 %v4668_v38, %v4659_v5  ;;  %v4700_v9 = vmul.f32 %v4697_v10, %v4688_v7  ;;  %v4757_v10 = vmul.f32 %v4750_v41, %v4745_v13 }
0x25d9   :  { %v4706_v2 = vpop.permute.xlu1 %4705 }
0x25da   :  { %v4718_v57 = vmul.f32 %v8246_v28, %v4706_v2  ;;  %v4702_v59 = vadd.f32 %v4700_v9, %v4671_v26 }
0x25dc   :  { %v4730_v61 = vmul.f32 %v4723_v22, %v4718_v57 }
0x25dd   :  { %v4708_v1 = vpop.permute.xlu1 %4707 }
0x25de   :  { %v4719_v32 = vmul.f32 %v8246_v28, %v4708_v1  ;;  %v4732_v33 = vadd.f32 %v4730_v61, %v4701_v40 }
0x25e0   :  { %v4731_v19 = vmul.f32 %v4728_v42, %v4719_v32  ;;  %v4759_v0 = vadd.f32 %v4757_v10, %v4732_v33 }
0x25e1   :  { %v4764_v60 = vpop.permute.xlu1 %4763 }
0x25e2   :  { %v4776_v62 = vmul.f32 %v8254_v21, %v4764_v60  ;;  %v4733_v14 = vadd.f32 %v4731_v19, %v4702_v59 }
0x25e4   :  { %v4788_v54 = vmul.f32 %v4781_v6, %v4776_v62  ;;  %v4760_v20 = vadd.f32 %v4758_v37, %v4733_v14  ;;  %v4857_v6 = vstv %s8263_s1  ;;  %s13985_s1 = smov 122  }
0x25e5   :  { %v4766_v23 = vpop.permute.xlu1 %4765 }
0x25e6   :  { %v4777_v25 = vmul.f32 %v8254_v21, %v4766_v23  ;;  %v4848_v31 = vpop.permute.xlu0 %4847  ;;  %v4790_v5 = vadd.f32 %v4788_v54, %v4759_v0 }
0x25e8   :  { %v4789_v38 = vmul.f32 %v4786_v58, %v4777_v25 }
0x25e9   :  { %v4797_v35 = vpop.permute.xlu1 %4796 }
0x25ea   :  { %v4808_v22 = vmul.f32 %v8258_v56, %v4797_v35  ;;  %v4795_v39 = vpop.permute.xlu0 %4794  ;;  %v4791_v30 = vadd.f32 %v4789_v38, %v4760_v20 }
0x25eb   :  { %v4807_v42 = vmul.f32 %v8258_v56, %v4795_v39 }
0x25ec   :  { %v4820_v29 = vmul.f32 %v4817_v36, %v4808_v22 }
0x25ed   :  { %v4819_v2 = vmul.f32 %v4812_v46, %v4807_v42  ;;  %v4828_v55 = vpop.permute.xlu1 %4827 }
0x25ee   :  { %v4839_v63 = vmul.f32 %v8262_v48, %v4828_v55  ;;  %v4826_v1 = vpop.permute.xlu0 %4825  ;;  %v4822_v58 = vadd.f32 %v4820_v29, %v4791_v30  ;;  %v8270_v29 = vld [vmem:[%s13979_s2 + $0x30] sm:$0xff] }
0x25ef   :  { %v4838_v24 = vmul.f32 %v8262_v48, %v4826_v1  ;;  %v4821_v28 = vadd.f32 %v4819_v2, %v4790_v5 }
0x25f0   :  { %v4851_v7 = vmul.f32 %v4848_v31, %v4839_v63 }
0x25f1   :  { %v4850_v41 = vmul.f32 %v4843_v49, %v4838_v24 }
0x25f2   :  { %v4853_v17 = vadd.f32 %v4851_v7, %v4822_v58  ;;  %v5122_v30 = vpop.permute.xlu0 %5121 }
0x25f3   :  { %v4852_v45 = vadd.f32 %v4850_v41, %v4821_v28 }
0x25f4   :  { %v4859_v32 = vmul.f32 %v4857_v6, %v4853_v17  ;;  %vm4856_vm7 = vcmp.ge.f32.partialorder %v4853_v17, 0.0 }
0x25f5   :  { %vm4855_vm6 = vcmp.ge.f32.partialorder %v4852_v45, 0.0  ;;  %v4858_v57 = vmul.f32 %v4857_v6, %v4852_v45 }
0x25f6   :  { %v4861_v46 = vsel %vm4856_vm7, %v4853_v17, %v4859_v32  ;;  %v5214_v41 = vpop.permute.xlu0 %5213 }
0x25f7   :  { %v4860_v36 = vsel %vm4855_vm6, %v4852_v45, %v4858_v57  ;;  %v8271_v57 = vld [vmem:[%s13979_s2 + $0x38] sm:$0xff] }
0x25f8   :  { %9947 = vmatprep.mubr.f32.mxu0 %v4860_v36 }
0x25f9   :  { %9948 = vmatmul.mubr.f32.vlgmr.msra.gmra.mrb[46].mxu0 %v4861_v46 }
0x25fa   :  { %9991 = vmatpush3.msra.mxu0 %v13047_v53  ;;  %9992 = vmatprep.mubr.msk.f32.mxu0 %vm11718_vm0, %v11719_v4 }
0x25fe   :  { %v5127_v63 = vpop.permute.xlu1 %5126 }
0x2602   :  { %v5219_v6 = vpop.permute.xlu1 %5218 }
0x26cc   :  { %v9949_v60 = vpop.f32.mrb[46].mxu0 }
0x26cd   :  { %v4944_v26 = vsel %vm525_vm4, %v9949_v60, 0.0  ;;  %v4934_v49 = vpop.f32.mrb[47].mxu0 }
0x26ce   :  { %v4943_v9 = vsel %vm525_vm4, %v4934_v49, 0.0  ;;  %v13266_v49 = vsel %vm4090_vm15, %v12957_v34, 0.0  ;;  %v5396_v34 = vstv %s8278_s3 }
0x26cf   :  { %v4945_v50 = vadd.f32 %v4944_v26, %v4943_v9 }
0x26d1   :  { %v4946_v15 = vrot.slane %v4945_v50, 4 }
0x26d3   :  { %v4947_v16 = vadd.f32 %v4946_v15, %v4945_v50 }
0x26d5   :  { %v4948_v19 = vrot.slane %v4947_v16, 2 }
0x26d7   :  { %v4949_v21 = vadd.f32 %v4948_v19, %v4947_v16 }
0x26d9   :  { %v4950_v61 = vrot.slane %v4949_v21, 1 }
0x26db   :  { %v4951_v23 = vadd.f32 %v4950_v61, %v4949_v21 }
0x26dd   :  { %v4952_v59 = vmul.f32 0.001953125, %v4951_v23 }
0x26df   :  { %9953 = vmatmul.mubr.msk.f32.vlgmr.msra.gmra.mrb[40].mxu1 %vm525_vm4, %v4952_v59 }
0x26e0   :  { %11176 = vmatpush3.bf16.msra.mxu1 %v12963_v47 }
0x26e1   :  { %11178 = vmatprep.subr.bf16.mxu1 %v12975_v27 }
0x26e4   :  { %11180 = vmatpush3.bf16.msra.mxu1 %v12975_v27 }
0x26e5   :  { %11182 = vmatprep.subr.bf16.mxu1 %v12986_v52 }
0x26e8   :  { %11184 = vmatpush3.bf16.msra.mxu1 %v12986_v52 }
0x26e9   :  { %11186 = vmatprep.subr.bf16.mxu1 %v12996_v18 }
0x26ec   :  { %11188 = vmatpush3.bf16.msra.mxu1 %v12996_v18 }
0x26ed   :  { %11190 = vmatprep.subr.bf16.mxu1 %v13006_v3 }
0x26f0   :  { %11192 = vmatpush3.bf16.msra.mxu1 %v13006_v3 }
0x26f1   :  { %11194 = vmatprep.subr.bf16.mxu1 %v13016_v11 }
0x26f4   :  { %11196 = vmatpush3.bf16.msra.mxu1 %v13016_v11 }
0x26f5   :  { %11198 = vmatprep.subr.bf16.mxu1 %v13026_v43 }
0x26f8   :  { %11200 = vmatpush3.bf16.msra.mxu1 %v13026_v43 }
0x26f9   :  { %11202 = vmatprep.subr.bf16.mxu1 %v13037_v51 }
0x26fc   :  { %11204 = vmatpush3.bf16.msra.mxu1 %v13037_v51 }
0x26fd   :  { %10044 = vmatprep.subr.mxu1 %v11719_v4 }
0x27b2   :  { %v5022_v12 = vpop.f32.mrb[40].mxu1 }
0x27b3   :  { %v5029_v25 = vrot.slane %v5022_v12, %v11863_v8  ;;  %v9954_v31 = vpop.f32.mrb[41].mxu1 }
0x27b5   :  { %v5030_v40 = vsub.f32 %v4860_v36, %v5029_v25  ;;  %v5031_v13 = vsub.f32 %v4861_v46, %v5029_v25  ;;  %v8274_v36 = vld [vmem:[%s13978_s5 + $0x40] sm:$0xff]  ;;  %v13259_v46 = vsel %vm4090_vm15, %v12949_v44, 0.0  ;;  %v8275_v44 = vld [vmem:[%s13978_s5 + $0x48] sm:$0xff] }
0x27b7   :  { %v5033_v62 = vmul.f32 %v5031_v13, %v5031_v13  ;;  %v5032_v56 = vmul.f32 %v5030_v40, %v5030_v40  ;;  %v5129_v5 = vmul.f32 %v5122_v30, %v5030_v40  ;;  %v5130_v24 = vmul.f32 %v5127_v63, %v5031_v13 }
0x27b9   :  { %9987 = vmatprep.mubr.f32.mxu1 %v5032_v56 }
0x27ba   :  { %9988 = vmatmul.mubr.f32.vlgmr.msra.gmra.mrb[42].mxu1 %v5033_v62 }
0x27bb   :  { %10045 = vmatpush3.msra.mxu1 %v13047_v53  ;;  %10046 = vmatprep.mubr.msk.f32.mxu1 %vm11718_vm0, %v11719_v4 }
0x27bc   :  { %11246 = vmatprep.subr.bf16.mxu1 %v12963_v47 }
0x288d   :  { %v9989_v14 = vpop.f32.mrb[42].mxu1 }
0x288e   :  { %v5110_v33 = vsel %vm525_vm4, %v9989_v14, 0.0  ;;  %v5100_v35 = vpop.f32.mrb[43].mxu1 }
0x288f   :  { %v5109_v37 = vsel %vm525_vm4, %v5100_v35, 0.0 }
0x2890   :  { %v5111_v38 = vadd.f32 %v5110_v33, %v5109_v37 }
0x2892   :  { %v5112_v22 = vrot.slane %v5111_v38, 4 }
0x2894   :  { %v5113_v39 = vadd.f32 %v5112_v22, %v5111_v38 }
0x2896   :  { %v5114_v10 = vrot.slane %v5113_v39, 2 }
0x2898   :  { %v5115_v54 = vadd.f32 %v5114_v10, %v5113_v39 }
0x289a   :  { %v5116_v42 = vrot.slane %v5115_v54, 1 }
0x289c   :  { %v5117_v48 = vadd.f32 %v5116_v42, %v5115_v54 }
0x289e   :  { %v5118_v20 = vmul.f32 0.001953125, %v5117_v48 }
0x28a0   :  { %9993 = vmatmul.mubr.msk.f32.vlgmr.msra.gmra.mrb[48].mxu0 %vm525_vm4, %v5118_v20 }
0x28a1   :  { %9999 = vmatprep.mubr.msk.f32.mxu0 %vm84_vm1, %v8270_v29 }
0x2973   :  { %v5200_v0 = vpop.f32.mrb[48].mxu0 }
0x2974   :  { %v5201_v2 = vadd.f32 1e-08, %v5200_v0  ;;  %v9994_v55 = vpop.f32.mrb[49].mxu0 }
0x2976   :  { %11666 = vrsqrt.f32 %v5201_v2 }
0x2980   :  { %v11667_v1 = vpop.eup %11666 }
0x2981   :  { %v5208_v58 = vrot.slane %v11667_v1, %v11863_v8 }
0x2983   :  { %v5209_v7 = vmul.f32 %v5208_v58, %v5129_v5  ;;  %v5210_v28 = vmul.f32 %v5208_v58, %v5130_v24 }
0x2985   :  { %v5221_v17 = vadd.f32 %v5214_v41, %v5209_v7  ;;  %v5222_v45 = vadd.f32 %v5219_v6, %v5210_v28 }
0x2987   :  { %v11205_v32 = vpack.c.bf16 %v5222_v45, %v5221_v17  ;;  %v5661_v17 = vpop.permute.xlu0 %5660 }
0x2989   :  { %11206 = vmatprep.subr.bf16.mxu0 %v11205_v32 }
0x298a   :  { %11208 = vmatpush3.bf16.msra.mxu0 %v11205_v32  ;;  %v5666_v32 = vpop.permute.xlu1 %5665 }
0x298d   :  { %10000 = vmatmul.mubr.msk.f32.vlgmr.msra.gmra.mrb[50].mxu0 %vm84_vm1, %v8271_v57 }
0x298e   :  { %10006 = vmatprep.mubr.msk.f32.mxu0 %vm84_vm1, %v8274_v36 }
0x2a60   :  { %v10001_v60 = vpop.f32.mrb[50].mxu0 }
0x2a61   :  { %v13262_v26 = vadd.f32 %v10001_v60, %v13259_v46  ;;  %v5298_v9 = vpop.f32.mrb[51].mxu0 }
0x2a62   :  { %v13269_v50 = vadd.f32 %v5298_v9, %v13266_v49 }
0x2a64   :  { %v11209_v15 = vpack.c.bf16 %v13262_v26, %v13269_v50 }
0x2a66   :  { %11210 = vmatprep.subr.bf16.mxu0 %v11209_v15 }
0x2a67   :  { %11212 = vmatpush3.bf16.msra.mxu0 %v11209_v15 }
0x2a68   :  { %11214 = vmatprep.subr.bf16.mxu0 %v12963_v47 }
0x2a6a   :  { %10007 = vmatmul.mubr.msk.f32.vlgmr.msra.gmra.mrb[52].mxu0 %vm84_vm1, %v8275_v44  ;;  %v5753_v44 = vpop.permute.xlu0 %5752 }
0x2a6b   :  { %11216 = vmatpush3.bf16.msra.mxu0 %v12963_v47 }
0x2a6c   :  { %11218 = vmatprep.subr.bf16.mxu0 %v12975_v27 }
0x2a6f   :  { %11220 = vmatpush3.bf16.msra.mxu0 %v12975_v27 }
0x2a70   :  { %11222 = vmatprep.subr.bf16.mxu0 %v12986_v52 }
0x2a73   :  { %11224 = vmatpush3.bf16.msra.mxu0 %v12986_v52 }
0x2a74   :  { %11226 = vmatprep.subr.bf16.mxu0 %v12996_v18 }
0x2a77   :  { %11228 = vmatpush3.bf16.msra.mxu0 %v12996_v18 }
0x2a78   :  { %11230 = vmatprep.subr.bf16.mxu0 %v13006_v3 }
0x2a7b   :  { %11232 = vmatpush3.bf16.msra.mxu0 %v13006_v3 }
0x2a7c   :  { %11234 = vmatprep.subr.bf16.mxu0 %v13016_v11 }
0x2a7f   :  { %11236 = vmatpush3.bf16.msra.mxu0 %v13016_v11 }
0x2a80   :  { %11238 = vmatprep.subr.bf16.mxu0 %v13026_v43 }
0x2a83   :  { %11240 = vmatpush3.bf16.msra.mxu0 %v13026_v43 }
0x2a84   :  { %11242 = vmatprep.subr.bf16.mxu0 %v13037_v51 }
0x2a87   :  { %11244 = vmatpush3.bf16.msra.mxu0 %v13037_v51 }
0x2a88   :  { %10084 = vmatprep.subr.mxu0 %v11719_v4 }
0x2b3d   :  { %v10008_v16 = vpop.f32.mrb[52].mxu0 }
0x2b3e   :  { %v5398_v19 = vmul.f32 %v10008_v16, %v5396_v34  ;;  %v5384_v21 = vpop.f32.mrb[53].mxu0  ;;  %vm5395_vm8 = vcmp.ge.f32.partialorder %v10008_v16, 0.0 }
0x2b3f   :  { %vm5394_vm9 = vcmp.ge.f32.partialorder %v5384_v21, 0.0  ;;  %v5397_v61 = vmul.f32 %v5396_v34, %v5384_v21 }
0x2b40   :  { %v5400_v59 = vsel %vm5395_vm8, %v10008_v16, %v5398_v19  ;;  %v5758_v16 = vpop.permute.xlu1 %5757 }
0x2b41   :  { %v5399_v23 = vsel %vm5394_vm9, %v5384_v21, %v5397_v61  ;;  %v8311_v21 = vld [vmem:[%s13977_s29 + $0x228] sm:$0xff]  ;;  %v8314_v61 = vld [vmem:[%s13928_s6 + $0x90] sm:$0xff] }
0x2b42   :  { %10041 = vmatprep.mubr.f32.mxu0 %v5399_v23 }
0x2b43   :  { %10042 = vmatmul.mubr.f32.vlgmr.msra.gmra.mrb[54].mxu0 %v5400_v59 }
0x2b44   :  { %10085 = vmatpush3.msra.mxu0 %v13047_v53  ;;  %10086 = vmatprep.mubr.msk.f32.mxu0 %vm11718_vm0, %v11719_v4 }
0x2b45   :  { %11278 = vmatprep.subr.bf16.mxu0 %v12963_v47 }
0x2c16   :  { %v10043_v12 = vpop.f32.mrb[54].mxu0 }
0x2c17   :  { %v5483_v25 = vsel %vm525_vm4, %v10043_v12, 0.0  ;;  %v5473_v31 = vpop.f32.mrb[55].mxu0  ;;  %v8331_v12 = vld [vmem:[%s13929_s7 + $0xa0] sm:$0xff] }
0x2c18   :  { %v5482_v40 = vsel %vm525_vm4, %v5473_v31, 0.0  ;;  %v8336_v31 = vld [vmem:[%s13977_s29 + $0x230] sm:$0xff] }
0x2c19   :  { %v5484_v13 = vadd.f32 %v5483_v25, %v5482_v40  ;;  %v8315_v25 = vld [vmem:[%s13928_s6 + $0x98] sm:$0xff] }
0x2c1a   :  { %v8317_v40 = vld [vmem:[%s13929_s7 + $0x98] sm:$0xff] }
0x2c1b   :  { %v5485_v62 = vrot.slane %v5484_v13, 4 }
0x2c1d   :  { %v5486_v56 = vadd.f32 %v5485_v62, %v5484_v13  ;;  %v8337_v13 = vld [vmem:[%s13977_s29 + $0x238] sm:$0xff]  ;;  %v8330_v62 = vld [vmem:[%s13928_s6 + $0xa8] sm:$0xff] }
0x2c1f   :  { %v5487_v14 = vrot.slane %v5486_v56, 2 }
0x2c21   :  { %v5488_v33 = vadd.f32 %v5487_v14, %v5486_v56  ;;  %v8344_v56 = vld [vmem:[%s13977_s29 + $0x250] sm:$0xff]  ;;  %v8332_v14 = vld [vmem:[%s13929_s7 + $0xa8] sm:$0xff] }
0x2c23   :  { %v5489_v35 = vrot.slane %v5488_v33, 1 }
0x2c25   :  { %v5490_v37 = vadd.f32 %v5489_v35, %v5488_v33  ;;  %v8348_v33 = vld [vmem:[%s13977_s29 + $0x260] sm:$0xff] }
0x2c26   :  { %v8340_v35 = vld [vmem:[%s13977_s29 + $0x240] sm:$0xff] }
0x2c27   :  { %v5491_v38 = vmul.f32 0.001953125, %v5490_v37  ;;  %v8352_v37 = vld [vmem:[%s13977_s29 + $0x270] sm:$0xff] }
0x2c29   :  { %10047 = vmatmul.mubr.msk.f32.vlgmr.msra.gmra.mrb[44].mxu1 %vm525_vm4, %v5491_v38  ;;  %v8341_v38 = vld [vmem:[%s13977_s29 + $0x248] sm:$0xff] }
0x2c2a   :  { %11248 = vmatpush3.bf16.msra.mxu1 %v12963_v47 }
0x2c2b   :  { %11250 = vmatprep.subr.bf16.mxu1 %v12975_v27 }
0x2c2e   :  { %11252 = vmatpush3.bf16.msra.mxu1 %v12975_v27 }
0x2c2f   :  { %11254 = vmatprep.subr.bf16.mxu1 %v12986_v52 }
0x2c32   :  { %11256 = vmatpush3.bf16.msra.mxu1 %v12986_v52 }
0x2c33   :  { %11258 = vmatprep.subr.bf16.mxu1 %v12996_v18 }
0x2c36   :  { %11260 = vmatpush3.bf16.msra.mxu1 %v12996_v18 }
0x2c37   :  { %11262 = vmatprep.subr.bf16.mxu1 %v13006_v3 }
0x2c3a   :  { %11264 = vmatpush3.bf16.msra.mxu1 %v13006_v3 }
0x2c3b   :  { %11266 = vmatprep.subr.bf16.mxu1 %v13016_v11 }
0x2c3e   :  { %11268 = vmatpush3.bf16.msra.mxu1 %v13016_v11 }
0x2c3f   :  { %11270 = vmatprep.subr.bf16.mxu1 %v13026_v43 }
0x2c42   :  { %11272 = vmatpush3.bf16.msra.mxu1 %v13026_v43 }
0x2c43   :  { %11274 = vmatprep.subr.bf16.mxu1 %v13037_v51 }
0x2c46   :  { %11276 = vmatpush3.bf16.msra.mxu1 %v13037_v51 }
0x2c47   :  { %10124 = vmatprep.subr.mxu1 %v11719_v4 }
0x2cfc   :  { %v5561_v22 = vpop.f32.mrb[44].mxu1 }
0x2cfd   :  { %v5568_v39 = vrot.slane %v5561_v22, %v11863_v8  ;;  %v10048_v10 = vpop.f32.mrb[45].mxu1  ;;  %v8353_v22 = vld [vmem:[%s13977_s29 + $0x278] sm:$0xff] }
0x2cfe   :  { %v8356_v10 = vld [vmem:[%s13977_s29 + $0x280] sm:$0xff] }
0x2cff   :  { %v5569_v54 = vsub.f32 %v5399_v23, %v5568_v39  ;;  %v5570_v42 = vsub.f32 %v5400_v59, %v5568_v39  ;;  %v8316_v23 = vld [vmem:[%s13929_s7 + $0x90] sm:$0xff]  ;;  %v8329_v59 = vld [vmem:[%s13928_s6 + $0xa0] sm:$0xff]  ;;  %v8345_v39 = vld [vmem:[%s13977_s29 + $0x258] sm:$0xff] }
0x2d01   :  { %v5572_v48 = vmul.f32 %v5570_v42, %v5570_v42  ;;  %v5571_v20 = vmul.f32 %v5569_v54, %v5569_v54  ;;  %v5668_v57 = vmul.f32 %v5661_v17, %v5569_v54  ;;  %v5669_v36 = vmul.f32 %v5666_v32, %v5570_v42  ;;  %v8349_v54 = vld [vmem:[%s13977_s29 + $0x268] sm:$0xff]  ;;  %v8360_v42 = vld [vmem:[%s13977_s29 + $0x290] sm:$0xff] }
0x2d02   :  { %v8292_v32 = vld [vmem:[%s13936_s14 + $0x8] ss:$0 sm:$0xff] }
0x2d03   :  { %10081 = vmatprep.mubr.f32.mxu1 %v5571_v20  ;;  %v5782_v20 = vpop.permute.xlu0 %5781 }
0x2d04   :  { %10082 = vmatmul.mubr.f32.vlgmr.msra.gmra.mrb[46].mxu1 %v5572_v48  ;;  %v8357_v48 = vld [vmem:[%s13977_s29 + $0x288] sm:$0xff] }
0x2d05   :  { %10125 = vmatpush3.msra.mxu1 %v13047_v53  ;;  %10126 = vmatprep.mubr.msk.f32.mxu1 %vm11718_vm0, %v11719_v4 }
0x2d06   :  { %11310 = vmatprep.subr.bf16.mxu1 %v12963_v47 }
0x2dd7   :  { %v10083_v29 = vpop.f32.mrb[46].mxu1 }
0x2dd8   :  { %v5649_v0 = vsel %vm525_vm4, %v10083_v29, 0.0  ;;  %v5639_v2 = vpop.f32.mrb[47].mxu1  ;;  %v5787_v29 = vpop.permute.xlu0 %5786 }
0x2dd9   :  { %v5648_v55 = vsel %vm525_vm4, %v5639_v2, 0.0  ;;  %v5811_v2 = vpop.permute.xlu1 %5810 }
0x2dda   :  { %v5650_v30 = vadd.f32 %v5649_v0, %v5648_v55 }
0x2ddc   :  { %v5651_v63 = vrot.slane %v5650_v30, 4  ;;  %v5842_v0 = vpop.permute.xlu0 %5841 }
0x2dde   :  { %v5652_v1 = vadd.f32 %v5651_v63, %v5650_v30  ;;  %v5816_v30 = vpop.permute.xlu1 %5815 }
0x2de0   :  { %v5653_v5 = vrot.slane %v5652_v1, 2  ;;  %v5869_v55 = vpop.permute.xlu0 %5868 }
0x2de2   :  { %v5654_v24 = vadd.f32 %v5653_v5, %v5652_v1  ;;  %v5847_v1 = vpop.permute.xlu1 %5846 }
0x2de4   :  { %v5655_v58 = vrot.slane %v5654_v24, 1  ;;  %v5900_v63 = vpop.permute.xlu0 %5899 }
0x2de6   :  { %v5656_v7 = vadd.f32 %v5655_v58, %v5654_v24  ;;  %v5874_v24 = vpop.permute.xlu1 %5873 }
0x2de8   :  { %v5657_v28 = vmul.f32 0.001953125, %v5656_v7  ;;  %v5905_v5 = vpop.permute.xlu0 %5904 }
0x2dea   :  { %10087 = vmatmul.mubr.msk.f32.vlgmr.msra.gmra.mrb[56].mxu0 %vm525_vm4, %v5657_v28  ;;  %v5936_v7 = vpop.permute.xlu1 %5935 }
0x2deb   :  { %11280 = vmatpush3.bf16.msra.mxu0 %v12963_v47 }
0x2dec   :  { %11282 = vmatprep.subr.bf16.mxu0 %v12975_v27  ;;  %v5931_v58 = vpop.permute.xlu0 %5930 }
0x2def   :  { %11284 = vmatpush3.bf16.msra.mxu0 %v12975_v27 }
0x2df0   :  { %11286 = vmatprep.subr.bf16.mxu0 %v12986_v52  ;;  %v5962_v28 = vpop.permute.xlu0 %5961 }
0x2df3   :  { %11288 = vmatpush3.bf16.msra.mxu0 %v12986_v52 }
0x2df4   :  { %11290 = vmatprep.subr.bf16.mxu0 %v12996_v18 }
0x2df7   :  { %11292 = vmatpush3.bf16.msra.mxu0 %v12996_v18 }
0x2df8   :  { %11294 = vmatprep.subr.bf16.mxu0 %v13006_v3 }
0x2dfb   :  { %11296 = vmatpush3.bf16.msra.mxu0 %v13006_v3 }
0x2dfc   :  { %11298 = vmatprep.subr.bf16.mxu0 %v13016_v11 }
0x2dff   :  { %11300 = vmatpush3.bf16.msra.mxu0 %v13016_v11 }
0x2e00   :  { %11302 = vmatprep.subr.bf16.mxu0 %v13026_v43 }
0x2e03   :  { %11304 = vmatpush3.bf16.msra.mxu0 %v13026_v43 }
0x2e04   :  { %11306 = vmatprep.subr.bf16.mxu0 %v13037_v51 }
0x2e07   :  { %11308 = vmatpush3.bf16.msra.mxu0 %v13037_v51 }
0x2e08   :  { %10164 = vmatprep.subr.mxu0 %v11719_v4 }
0x2ebd   :  { %v5739_v53 = vpop.f32.mrb[56].mxu0 }
0x2ebe   :  { %v5740_v41 = vadd.f32 1e-08, %v5739_v53  ;;  %v10088_v6 = vpop.f32.mrb[57].mxu0 }
0x2ec0   :  { %11668 = vrsqrt.f32 %v5740_v41 }
0x2eca   :  { %v11669_v45 = vpop.eup %11668 }
0x2ecb   :  { %v5747_v60 = vrot.slane %v11669_v45, %v11863_v8 }
0x2ecd   :  { %v5748_v9 = vmul.f32 %v5747_v60, %v5668_v57  ;;  %v5749_v15 = vmul.f32 %v5747_v60, %v5669_v36  ;;  %v8288_v57 = vld [vmem:[%s13936_s14 + $0x7] ss:$0 sm:$0xff] }
0x2ecf   :  { %v13342_v34 = vadd.f32 %v5753_v44, %v5748_v9  ;;  %v13348_v19 = vadd.f32 %v5758_v16, %v5749_v15  ;;  %v8296_v15 = vld [vmem:[%s13936_s14 + $0x9] ss:$0 sm:$0xff] }
0x2ed1   :  { %5793 = vrot.lane.b32.xlu0 %v13342_v34, %s13984_s25  ;;  %5764 = vrot.lane.b32.xlu1 %v13342_v34, %s11729_s30 }
0x2ed5   :  { %5766 = vrot.lane.b32.xlu0 %v13348_v19, %s11729_s30  ;;  %5795 = vrot.lane.b32.xlu1 %v13348_v19, %s13984_s25 }
0x2ed9   :  { %5966 = vperm.xlu0 %11648, %v8311_v21   ;;  %5824 = vrot.lane.b32.xlu1 %v13342_v34, %s11723_s0 }
0x2edd   :  { %5913 = vrot.lane.b32.xlu0 %v13342_v34, %s13985_s1  ;;  %5826 = vrot.lane.b32.xlu1 %v13348_v19, %s11723_s0 }
0x2ee1   :  { %5944 = vrot.lane.b32.xlu0 %v13342_v34, %s11731_s9  ;;  %5882 = vrot.lane.b32.xlu1 %v13342_v34, %s13982_s26 }
0x2ee5   :  { %6240 = vperm.xlu0 %11648, %v8314_v61   ;;  %5884 = vrot.lane.b32.xlu1 %v13348_v19, %s13982_s26 }
0x2ee9   :  { %6332 = vperm.xlu0 %11648, %v8316_v23   ;;  %5915 = vrot.lane.b32.xlu1 %v13348_v19, %s13985_s1 }
0x2eed   :  { %6779 = vperm.xlu0 %11648, %v8329_v59   ;;  %5946 = vrot.lane.b32.xlu1 %v13348_v19, %s11731_s9 }
0x2ef1   :  { %6871 = vperm.xlu0 %11648, %v8331_v12   ;;  %6245 = vperm.xlu1 %11649, %v8315_v25  }
0x2ef5   :  { %6900 = vperm.xlu0 %11648, %v8336_v31   ;;  %6337 = vperm.xlu1 %11649, %v8317_v40   ;;  %v8300_v40 = vld [vmem:[%s13936_s14 + $0xa] ss:$0 sm:$0xff] }
0x2ef9   :  { %6905 = vperm.xlu0 %11648, %v8337_v13   ;;  %6784 = vperm.xlu1 %11649, %v8330_v62   ;;  %v8304_v62 = vld [vmem:[%s13936_s14 + $0xb] ss:$0 sm:$0xff] }
0x2efd   :  { %6960 = vperm.xlu0 %11648, %v8344_v56   ;;  %6876 = vperm.xlu1 %11649, %v8332_v14  }
0x2f01   :  { %6987 = vperm.xlu0 %11648, %v8348_v33   ;;  %6929 = vperm.xlu1 %11649, %v8340_v35   ;;  %v5865_v35 = vmul.f32 %v8300_v40, %v13348_v19 }
0x2f05   :  { %7018 = vperm.xlu0 %11648, %v8352_v37   ;;  %6934 = vperm.xlu1 %11649, %v8341_v38  }
0x2f09   :  { %7023 = vperm.xlu0 %11648, %v8353_v22   ;;  %6965 = vperm.xlu1 %11649, %v8345_v39   ;;  %v5864_v39 = vmul.f32 %v8300_v40, %v13342_v34  ;;  %v8312_v34 = vld [vmem:[%s13936_s14 + $0xd] ss:$0 sm:$0xff] }
0x2f0d   :  { %7049 = vperm.xlu0 %11648, %v8356_v10   ;;  %6992 = vperm.xlu1 %11649, %v8349_v54   ;;  %v8308_v54 = vld [vmem:[%s13936_s14 + $0xc] ss:$0 sm:$0xff] }
0x2f11   :  { %7080 = vperm.xlu0 %11648, %v8360_v42   ;;  %7054 = vperm.xlu1 %11649, %v8357_v48  }
0x2f43   :  { %v5765_v53 = vpop.permute.xlu1 %5764  ;;  %v5794_v41 = vpop.permute.xlu0 %5793 }
0x2f44   :  { %v5806_v44 = vmul.f32 %v8292_v32, %v5794_v41  ;;  %v5777_v16 = vmul.f32 %v8288_v57, %v5765_v53 }
0x2f46   :  { %v5818_v25 = vmul.f32 %v5811_v2, %v5806_v44  ;;  %v5789_v31 = vmul.f32 %v5782_v20, %v5777_v16 }
0x2f47   :  { %v5796_v6 = vpop.permute.xlu1 %5795  ;;  %v5767_v45 = vpop.permute.xlu0 %5766 }
0x2f48   :  { %v5778_v60 = vmul.f32 %v8288_v57, %v5767_v45  ;;  %v5807_v9 = vmul.f32 %v8292_v32, %v5796_v6  ;;  %v5820_v22 = vadd.f32 %v5818_v25, %v5789_v31 }
0x2f4a   :  { %v5790_v59 = vmul.f32 %v5787_v29, %v5778_v60  ;;  %v5819_v12 = vmul.f32 %v5816_v30, %v5807_v9  ;;  %v5877_v29 = vmul.f32 %v5874_v24, %v5865_v35 }
0x2f4b   :  { %v5825_v17 = vpop.permute.xlu1 %5824 }
0x2f4c   :  { %v5837_v61 = vmul.f32 %v8296_v15, %v5825_v17  ;;  %v5821_v33 = vadd.f32 %v5819_v12, %v5790_v59  ;;  %v13462_v59 = vld [vmem:[%s13938_s16] sm:$0xff] }
0x2f4e   :  { %v5849_v56 = vmul.f32 %v5842_v0, %v5837_v61 }
0x2f4f   :  { %v5827_v36 = vpop.permute.xlu1 %5826 }
0x2f50   :  { %v5838_v21 = vmul.f32 %v8296_v15, %v5827_v36  ;;  %v5851_v48 = vadd.f32 %v5849_v56, %v5820_v22 }
0x2f52   :  { %v5850_v13 = vmul.f32 %v5847_v1, %v5838_v21  ;;  %v5876_v1 = vmul.f32 %v5869_v55, %v5864_v39 }
0x2f53   :  { %v5883_v23 = vpop.permute.xlu1 %5882 }
0x2f54   :  { %v5895_v10 = vmul.f32 %v8304_v62, %v5883_v23  ;;  %v5852_v42 = vadd.f32 %v5850_v13, %v5821_v33  ;;  %v5878_v17 = vadd.f32 %v5876_v1, %v5851_v48 }
0x2f56   :  { %v5907_v19 = vmul.f32 %v5900_v63, %v5895_v10  ;;  %v5879_v41 = vadd.f32 %v5877_v29, %v5852_v42  ;;  %v5976_v63 = vstv %s8313_s23 }
0x2f57   :  { %v5885_v14 = vpop.permute.xlu1 %5884 }
0x2f58   :  { %v5896_v37 = vmul.f32 %v8304_v62, %v5885_v14  ;;  %v5967_v38 = vpop.permute.xlu0 %5966  ;;  %v5909_v9 = vadd.f32 %v5907_v19, %v5878_v17 }
0x2f5a   :  { %v5908_v0 = vmul.f32 %v5905_v5, %v5896_v37 }
0x2f5b   :  { %v5916_v20 = vpop.permute.xlu1 %5915 }
0x2f5c   :  { %v5927_v2 = vmul.f32 %v8308_v54, %v5916_v20  ;;  %v5914_v30 = vpop.permute.xlu0 %5913  ;;  %v5910_v57 = vadd.f32 %v5908_v0, %v5879_v41 }
0x2f5d   :  { %v5926_v53 = vmul.f32 %v8308_v54, %v5914_v30 }
0x2f5e   :  { %v5939_v6 = vmul.f32 %v5936_v7, %v5927_v2 }
0x2f5f   :  { %v5938_v45 = vmul.f32 %v5931_v58, %v5926_v53  ;;  %v5947_v32 = vpop.permute.xlu1 %5946 }
0x2f60   :  { %v5958_v36 = vmul.f32 %v8312_v34, %v5947_v32  ;;  %v5945_v60 = vpop.permute.xlu0 %5944  ;;  %v5941_v5 = vadd.f32 %v5939_v6, %v5910_v57 }
0x2f61   :  { %v5957_v24 = vmul.f32 %v8312_v34, %v5945_v60  ;;  %v5940_v44 = vadd.f32 %v5938_v45, %v5909_v9  ;;  %v8320_v45 = vld [vmem:[%s13979_s2 + $0x40] sm:$0xff] }
0x2f62   :  { %v5970_v15 = vmul.f32 %v5967_v38, %v5958_v36 }
0x2f63   :  { %v5969_v55 = vmul.f32 %v5962_v28, %v5957_v24 }
0x2f64   :  { %v5972_v16 = vadd.f32 %v5970_v15, %v5941_v5  ;;  %v6241_v60 = vpop.permute.xlu0 %6240 }
0x2f65   :  { %v5971_v21 = vadd.f32 %v5969_v55, %v5940_v44 }
0x2f66   :  { %v5978_v61 = vmul.f32 %v5976_v63, %v5972_v16  ;;  %vm5975_vm11 = vcmp.ge.f32.partialorder %v5972_v16, 0.0 }
0x2f67   :  { %vm5974_vm10 = vcmp.ge.f32.partialorder %v5971_v21, 0.0  ;;  %v5977_v23 = vmul.f32 %v5976_v63, %v5971_v21 }
0x2f68   :  { %v5980_v58 = vsel %vm5975_vm11, %v5972_v16, %v5978_v61  ;;  %v6333_v16 = vpop.permute.xlu0 %6332 }
0x2f69   :  { %v5979_v7 = vsel %vm5974_vm10, %v5971_v21, %v5977_v23 }
0x2f6a   :  { %10121 = vmatprep.mubr.f32.mxu0 %v5979_v7 }
0x2f6b   :  { %10122 = vmatmul.mubr.f32.vlgmr.msra.gmra.mrb[58].mxu0 %v5980_v58 }
0x2f6c   :  { %10165 = vmatpush3.msra.mxu0 %v13462_v59  ;;  %10166 = vmatprep.mubr.msk.f32.mxu0 %vm11718_vm0, %v11719_v4 }
0x2f70   :  { %v6246_v9 = vpop.permute.xlu1 %6245 }
0x2f74   :  { %v6338_v21 = vpop.permute.xlu1 %6337 }
0x303e   :  { %v10123_v28 = vpop.f32.mrb[58].mxu0 }
0x303f   :  { %v6063_v12 = vsel %vm525_vm4, %v10123_v28, 0.0  ;;  %v6053_v25 = vpop.f32.mrb[59].mxu0  ;;  %v8324_v28 = vld [vmem:[%s13978_s5 + $0x50] sm:$0xff] }
0x3040   :  { %v6062_v31 = vsel %vm525_vm4, %v6053_v25, 0.0 }
0x3041   :  { %v6064_v40 = vadd.f32 %v6063_v12, %v6062_v31 }
0x3043   :  { %v6065_v13 = vrot.slane %v6064_v40, 4 }
0x3045   :  { %v6066_v62 = vadd.f32 %v6065_v13, %v6064_v40 }
0x3047   :  { %v6067_v56 = vrot.slane %v6066_v62, 2 }
0x3049   :  { %v6068_v14 = vadd.f32 %v6067_v56, %v6066_v62  ;;  %v8325_v62 = vld [vmem:[%s13978_s5 + $0x58] sm:$0xff]  ;;  %s13986_s5 = smov 27  }
0x304b   :  { %v6069_v33 = vrot.slane %v6068_v14, 1 }
0x304d   :  { %v6070_v35 = vadd.f32 %v6069_v33, %v6068_v14 }
0x304f   :  { %v6071_v37 = vmul.f32 0.001953125, %v6070_v35 }
0x3051   :  { %10127 = vmatmul.mubr.msk.f32.vlgmr.msra.gmra.mrb[48].mxu1 %vm525_vm4, %v6071_v37 }
0x3052   :  { %11312 = vmatpush3.bf16.msra.mxu1 %v12963_v47 }
0x3053   :  { %11314 = vmatprep.subr.bf16.mxu1 %v12975_v27 }
0x3056   :  { %11316 = vmatpush3.bf16.msra.mxu1 %v12975_v27 }
0x3057   :  { %11318 = vmatprep.subr.bf16.mxu1 %v12986_v52 }
0x305a   :  { %11320 = vmatpush3.bf16.msra.mxu1 %v12986_v52 }
0x305b   :  { %11322 = vmatprep.subr.bf16.mxu1 %v12996_v18 }
0x305e   :  { %11324 = vmatpush3.bf16.msra.mxu1 %v12996_v18 }
0x305f   :  { %11326 = vmatprep.subr.bf16.mxu1 %v13006_v3 }
0x3062   :  { %11328 = vmatpush3.bf16.msra.mxu1 %v13006_v3 }
0x3063   :  { %11330 = vmatprep.subr.bf16.mxu1 %v13016_v11 }
0x3066   :  { %11332 = vmatpush3.bf16.msra.mxu1 %v13016_v11 }
0x3067   :  { %11334 = vmatprep.subr.bf16.mxu1 %v13026_v43 }
0x306a   :  { %11336 = vmatpush3.bf16.msra.mxu1 %v13026_v43 }
0x306b   :  { %11338 = vmatprep.subr.bf16.mxu1 %v13037_v51 }
0x306e   :  { %11340 = vmatpush3.bf16.msra.mxu1 %v13037_v51 }
0x3124   :  { %v6141_v38 = vpop.f32.mrb[48].mxu1 }
0x3125   :  { %v6148_v22 = vrot.slane %v6141_v38, %v11863_v8  ;;  %v10128_v39 = vpop.f32.mrb[49].mxu1 }
0x3127   :  { %v6149_v10 = vsub.f32 %v5979_v7, %v6148_v22  ;;  %v6150_v54 = vsub.f32 %v5980_v58, %v6148_v22  ;;  %v8321_v58 = vld [vmem:[%s13979_s2 + $0x48] sm:$0xff] }
0x3129   :  { %v6152_v42 = vmul.f32 %v6150_v54, %v6150_v54  ;;  %v6151_v48 = vmul.f32 %v6149_v10, %v6149_v10  ;;  %v6248_v5 = vmul.f32 %v6241_v60, %v6149_v10  ;;  %v6249_v15 = vmul.f32 %v6246_v9, %v6150_v54 }
0x312b   :  { %10161 = vmatprep.mubr.f32.mxu1 %v6151_v48 }
0x312c   :  { %10162 = vmatmul.mubr.f32.vlgmr.msra.gmra.mrb[50].mxu1 %v6152_v42 }
0x312d   :  { %10180 = vmatprep.mubr.msk.f32.mxu1 %vm84_vm1, %v8324_v28 }
0x31ff   :  { %v10163_v20 = vpop.f32.mrb[50].mxu1 }
0x3200   :  { %v6229_v29 = vsel %vm525_vm4, %v10163_v20, 0.0  ;;  %v6219_v0 = vpop.f32.mrb[51].mxu1 }
0x3201   :  { %v6228_v2 = vsel %vm525_vm4, %v6219_v0, 0.0 }
0x3202   :  { %v6230_v30 = vadd.f32 %v6229_v29, %v6228_v2 }
0x3204   :  { %v6231_v1 = vrot.slane %v6230_v30, 4 }
0x3206   :  { %v6232_v19 = vadd.f32 %v6231_v1, %v6230_v30 }
0x3208   :  { %v6233_v53 = vrot.slane %v6232_v19, 2 }
0x320a   :  { %v6234_v34 = vadd.f32 %v6233_v53, %v6232_v19 }
0x320c   :  { %v6235_v41 = vrot.slane %v6234_v34, 1 }
0x320e   :  { %v6236_v6 = vadd.f32 %v6235_v41, %v6234_v34 }
0x3210   :  { %v6237_v17 = vmul.f32 0.001953125, %v6236_v6 }
0x3212   :  { %10167 = vmatmul.mubr.msk.f32.vlgmr.msra.gmra.mrb[60].mxu0 %vm525_vm4, %v6237_v17 }
0x3213   :  { %10173 = vmatprep.mubr.msk.f32.mxu0 %vm84_vm1, %v8320_v45 }
0x32e5   :  { %v6319_v32 = vpop.f32.mrb[60].mxu0 }
0x32e6   :  { %v6320_v57 = vadd.f32 1e-08, %v6319_v32  ;;  %v10168_v36 = vpop.f32.mrb[61].mxu0 }
0x32e8   :  { %11670 = vrsqrt.f32 %v6320_v57 }
0x32f2   :  { %v11671_v24 = vpop.eup %11670 }
0x32f3   :  { %v6327_v44 = vrot.slane %v11671_v24, %v11863_v8 }
0x32f5   :  { %v6328_v55 = vmul.f32 %v6327_v44, %v6248_v5  ;;  %v6329_v63 = vmul.f32 %v6327_v44, %v6249_v15 }
0x32f7   :  { %v6340_v61 = vadd.f32 %v6333_v16, %v6328_v55  ;;  %v6341_v23 = vadd.f32 %v6338_v21, %v6329_v63 }
0x32f9   :  { %v11341_v7 = vpack.c.bf16 %v6341_v23, %v6340_v61  ;;  %v6780_v23 = vpop.permute.xlu0 %6779 }
0x32fb   :  { %11342 = vmatprep.subr.bf16.mxu0 %v11341_v7 }
0x32fc   :  { %11344 = vmatpush3.bf16.msra.mxu0 %v11341_v7 }
0x32fd   :  { %11350 = vmatprep.subr.bf16.mxu0 %v12963_v47 }
0x32ff   :  { %10174 = vmatmul.mubr.msk.f32.vlgmr.msra.gmra.mrb[62].mxu0 %vm84_vm1, %v8321_v58  ;;  %v6785_v58 = vpop.permute.xlu1 %6784 }
0x3300   :  { %11352 = vmatpush3.bf16.msra.mxu0 %v12963_v47 }
0x3301   :  { %11354 = vmatprep.subr.bf16.mxu0 %v12975_v27 }
0x3304   :  { %11356 = vmatpush3.bf16.msra.mxu0 %v12975_v27 }
0x3305   :  { %11358 = vmatprep.subr.bf16.mxu0 %v12986_v52 }
0x3308   :  { %11360 = vmatpush3.bf16.msra.mxu0 %v12986_v52 }
0x3309   :  { %11362 = vmatprep.subr.bf16.mxu0 %v12996_v18 }
0x330c   :  { %11364 = vmatpush3.bf16.msra.mxu0 %v12996_v18 }
0x330d   :  { %11366 = vmatprep.subr.bf16.mxu0 %v13006_v3 }
0x3310   :  { %11368 = vmatpush3.bf16.msra.mxu0 %v13006_v3 }
0x3311   :  { %11370 = vmatprep.subr.bf16.mxu0 %v13016_v11 }
0x3314   :  { %11372 = vmatpush3.bf16.msra.mxu0 %v13016_v11 }
0x3315   :  { %11374 = vmatprep.subr.bf16.mxu0 %v13026_v43 }
0x3318   :  { %11376 = vmatpush3.bf16.msra.mxu0 %v13026_v43 }
0x3319   :  { %11378 = vmatprep.subr.bf16.mxu0 %v13037_v51 }
0x331c   :  { %11380 = vmatpush3.bf16.msra.mxu0 %v13037_v51 }
0x331d   :  { %10258 = vmatprep.subr.mxu0 %v11719_v4 }
0x33d2   :  { %v10175_v12 = vpop.f32.mrb[62].mxu0 }
0x33d3   :  { %v13520_v25 = vadd.f32 %v10175_v12, %v13262_v26  ;;  %v6417_v31 = vpop.f32.mrb[63].mxu0  ;;  %v6515_v26 = vstv %s8328_s15 }
0x33d4   :  { %v13523_v40 = vadd.f32 %v6417_v31, %v13269_v50 }
0x33d6   :  { %v11345_v13 = vpack.c.bf16 %v13520_v25, %v13523_v40 }
0x33d8   :  { %11346 = vmatprep.subr.bf16.mxu1 %v11345_v13 }
0x33d9   :  { %11348 = vmatpush3.bf16.msra.mxu1 %v11345_v13 }
0x33da   :  { %10218 = vmatprep.subr.mxu1 %v11719_v4 }
0x33dc   :  { %10181 = vmatmul.mubr.msk.f32.vlgmr.msra.gmra.mrb[52].mxu1 %vm84_vm1, %v8325_v62 }
0x33dd   :  { %10219 = vmatpush3.msra.mxu1 %v13462_v59  ;;  %10220 = vmatprep.mubr.msk.f32.mxu1 %vm11718_vm0, %v11719_v4 }
0x33de   :  { %11382 = vmatprep.subr.bf16.mxu1 %v12963_v47 }
0x34af   :  { %v10182_v50 = vpop.f32.mrb[52].mxu1 }
0x34b0   :  { %v6517_v56 = vmul.f32 %v10182_v50, %v6515_v26  ;;  %v6503_v14 = vpop.f32.mrb[53].mxu1  ;;  %vm6514_vm12 = vcmp.ge.f32.partialorder %v10182_v50, 0.0 }
0x34b1   :  { %vm6513_vm13 = vcmp.ge.f32.partialorder %v6503_v14, 0.0  ;;  %v6516_v33 = vmul.f32 %v6515_v26, %v6503_v14  ;;  %v6872_v26 = vpop.permute.xlu0 %6871 }
0x34b2   :  { %v6519_v37 = vsel %vm6514_vm12, %v10182_v50, %v6517_v56  ;;  %v6877_v56 = vpop.permute.xlu1 %6876 }
0x34b3   :  { %v6518_v35 = vsel %vm6513_vm13, %v6503_v14, %v6516_v33  ;;  %v8361_v33 = vld [vmem:[%s13977_s29 + $0x298] sm:$0xff] }
0x34b4   :  { %10215 = vmatprep.mubr.f32.mxu0 %v6518_v35 }
0x34b5   :  { %10216 = vmatmul.mubr.f32.vlgmr.msra.gmra.mrb[64].mxu0 %v6519_v37 }
0x34b6   :  { %10259 = vmatpush3.msra.mxu0 %v13462_v59  ;;  %10260 = vmatprep.mubr.msk.f32.mxu0 %vm11718_vm0, %v11719_v4 }
0x34b7   :  { %11414 = vmatprep.subr.bf16.mxu0 %v12963_v47 }
0x3588   :  { %v10217_v38 = vpop.f32.mrb[64].mxu0 }
0x3589   :  { %v6602_v22 = vsel %vm525_vm4, %v10217_v38, 0.0  ;;  %v6592_v39 = vpop.f32.mrb[65].mxu0  ;;  %v7918_v38 = vld [vmem:[%s13940_s18] sm:$0xff] }
0x358a   :  { %v6601_v10 = vsel %vm525_vm4, %v6592_v39, 0.0  ;;  %v8367_v39 = vld [vmem:[%s13929_s7 + $0xb8] sm:$0xff] }
0x358b   :  { %v6603_v54 = vadd.f32 %v6602_v22, %v6601_v10  ;;  %v8365_v22 = vld [vmem:[%s13928_s6 + $0xb8] sm:$0xff]  ;;  %v7919_v10 = vld [vmem:[%s13940_s18 + $0x8] sm:$0xff] }
0x358d   :  { %v6604_v42 = vrot.slane %v6603_v54, 4 }
0x358f   :  { %v6605_v48 = vadd.f32 %v6604_v42, %v6603_v54  ;;  %v6901_v54 = vpop.permute.xlu0 %6900 }
0x3591   :  { %v6606_v20 = vrot.slane %v6605_v48, 2 }
0x3593   :  { %v6607_v29 = vadd.f32 %v6606_v20, %v6605_v48  ;;  %v6906_v42 = vpop.permute.xlu0 %6905  ;;  %v6930_v20 = vpop.permute.xlu1 %6929 }
0x3595   :  { %v6608_v0 = vrot.slane %v6607_v29, 1 }
0x3597   :  { %v6609_v2 = vadd.f32 %v6608_v0, %v6607_v29  ;;  %v6961_v48 = vpop.permute.xlu0 %6960  ;;  %v6935_v0 = vpop.permute.xlu1 %6934 }
0x3599   :  { %v6610_v30 = vmul.f32 0.001953125, %v6609_v2 }
0x359b   :  { %10221 = vmatmul.mubr.msk.f32.vlgmr.msra.gmra.mrb[54].mxu1 %vm525_vm4, %v6610_v30  ;;  %v6988_v29 = vpop.permute.xlu0 %6987  ;;  %v6966_v30 = vpop.permute.xlu1 %6965 }
0x359c   :  { %11384 = vmatpush3.bf16.msra.mxu1 %v12963_v47 }
0x359d   :  { %11386 = vmatprep.subr.bf16.mxu1 %v12975_v27 }
0x359f   :  { %v7019_v2 = vpop.permute.xlu0 %7018 }
0x35a0   :  { %11388 = vmatpush3.bf16.msra.mxu1 %v12975_v27 }
0x35a1   :  { %11390 = vmatprep.subr.bf16.mxu1 %v12986_v52 }
0x35a4   :  { %11392 = vmatpush3.bf16.msra.mxu1 %v12986_v52 }
0x35a5   :  { %11394 = vmatprep.subr.bf16.mxu1 %v12996_v18 }
0x35a8   :  { %11396 = vmatpush3.bf16.msra.mxu1 %v12996_v18 }
0x35a9   :  { %11398 = vmatprep.subr.bf16.mxu1 %v13006_v3 }
0x35ac   :  { %11400 = vmatpush3.bf16.msra.mxu1 %v13006_v3 }
0x35ad   :  { %11402 = vmatprep.subr.bf16.mxu1 %v13016_v11 }
0x35b0   :  { %11404 = vmatpush3.bf16.msra.mxu1 %v13016_v11 }
0x35b1   :  { %11406 = vmatprep.subr.bf16.mxu1 %v13026_v43 }
0x35b4   :  { %11408 = vmatpush3.bf16.msra.mxu1 %v13026_v43 }
0x35b5   :  { %11410 = vmatprep.subr.bf16.mxu1 %v13037_v51 }
0x35b8   :  { %11412 = vmatpush3.bf16.msra.mxu1 %v13037_v51 }
0x35b9   :  { %10298 = vmatprep.subr.mxu1 %v11719_v4 }
0x366e   :  { %v6680_v1 = vpop.f32.mrb[54].mxu1 }
0x366f   :  { %v6687_v19 = vrot.slane %v6680_v1, %v11863_v8  ;;  %v10222_v53 = vpop.f32.mrb[55].mxu1  ;;  %v7024_v1 = vpop.permute.xlu0 %7023 }
0x3671   :  { %v6688_v34 = vsub.f32 %v6518_v35, %v6687_v19  ;;  %v6689_v41 = vsub.f32 %v6519_v37, %v6687_v19  ;;  %v8364_v35 = vld [vmem:[%s13928_s6 + $0xb0] sm:$0xff]  ;;  %v6993_v19 = vpop.permute.xlu1 %6992 }
0x3672   :  { %v8366_v37 = vld [vmem:[%s13929_s7 + $0xb0] sm:$0xff] }
0x3673   :  { %v6691_v6 = vmul.f32 %v6689_v41, %v6689_v41  ;;  %v6690_v17 = vmul.f32 %v6688_v34, %v6688_v34  ;;  %v6787_v28 = vmul.f32 %v6780_v23, %v6688_v34  ;;  %v6788_v12 = vmul.f32 %v6785_v58, %v6689_v41  ;;  %v7050_v53 = vpop.permute.xlu0 %7049 }
0x3675   :  { %10255 = vmatprep.mubr.f32.mxu1 %v6690_v17  ;;  %v7055_v34 = vpop.permute.xlu1 %7054 }
0x3676   :  { %10256 = vmatmul.mubr.f32.vlgmr.msra.gmra.mrb[56].mxu1 %v6691_v6 }
0x3677   :  { %10299 = vmatpush3.msra.mxu1 %v13462_v59  ;;  %10300 = vmatprep.mubr.msk.f32.mxu1 %vm11718_vm0, %v11719_v4  ;;  %v7081_v41 = vpop.permute.xlu0 %7080 }
0x3678   :  { %11446 = vmatprep.subr.bf16.mxu1 %v12963_v47 }
0x3749   :  { %v10257_v45 = vpop.f32.mrb[56].mxu1 }
0x374a   :  { %v6768_v32 = vsel %vm525_vm4, %v10257_v45, 0.0  ;;  %v6758_v57 = vpop.f32.mrb[57].mxu1 }
0x374b   :  { %v6767_v36 = vsel %vm525_vm4, %v6758_v57, 0.0 }
0x374c   :  { %v6769_v60 = vadd.f32 %v6768_v32, %v6767_v36  ;;  %v8342_v36 = vld [vmem:[%s13936_s14 + $0xf] ss:$0 sm:$0xff] }
0x374e   :  { %v6770_v9 = vrot.slane %v6769_v60, 4 }
0x3750   :  { %v6771_v24 = vadd.f32 %v6770_v9, %v6769_v60  ;;  %v8338_v60 = vld [vmem:[%s13936_s14 + $0xe] ss:$0 sm:$0xff] }
0x3752   :  { %v6772_v5 = vrot.slane %v6771_v24, 2 }
0x3754   :  { %v6773_v15 = vadd.f32 %v6772_v5, %v6771_v24 }
0x3756   :  { %v6774_v44 = vrot.slane %v6773_v15, 1 }
0x3758   :  { %v6775_v55 = vadd.f32 %v6774_v44, %v6773_v15  ;;  %v8346_v15 = vld [vmem:[%s13936_s14 + $0x10] ss:$0 sm:$0xff] }
0x375a   :  { %v6776_v63 = vmul.f32 0.001953125, %v6775_v55 }
0x375c   :  { %10261 = vmatmul.mubr.msk.f32.vlgmr.msra.gmra.mrb[66].mxu0 %vm525_vm4, %v6776_v63 }
0x375d   :  { %11416 = vmatpush3.bf16.msra.mxu0 %v12963_v47 }
0x375e   :  { %11418 = vmatprep.subr.bf16.mxu0 %v12975_v27 }
0x3761   :  { %11420 = vmatpush3.bf16.msra.mxu0 %v12975_v27 }
0x3762   :  { %11422 = vmatprep.subr.bf16.mxu0 %v12986_v52 }
0x3765   :  { %11424 = vmatpush3.bf16.msra.mxu0 %v12986_v52 }
0x3766   :  { %11426 = vmatprep.subr.bf16.mxu0 %v12996_v18 }
0x3769   :  { %11428 = vmatpush3.bf16.msra.mxu0 %v12996_v18 }
0x376a   :  { %11430 = vmatprep.subr.bf16.mxu0 %v13006_v3 }
0x376d   :  { %11432 = vmatpush3.bf16.msra.mxu0 %v13006_v3 }
0x376e   :  { %11434 = vmatprep.subr.bf16.mxu0 %v13016_v11 }
0x3771   :  { %11436 = vmatpush3.bf16.msra.mxu0 %v13016_v11 }
0x3772   :  { %11438 = vmatprep.subr.bf16.mxu0 %v13026_v43 }
0x3775   :  { %11440 = vmatpush3.bf16.msra.mxu0 %v13026_v43 }
0x3776   :  { %11442 = vmatprep.subr.bf16.mxu0 %v13037_v51 }
0x3779   :  { %11444 = vmatpush3.bf16.msra.mxu0 %v13037_v51 }
0x377a   :  { %10338 = vmatprep.subr.mxu0 %v11719_v4 }
0x382f   :  { %v6858_v16 = vpop.f32.mrb[66].mxu0 }
0x3830   :  { %v6859_v21 = vadd.f32 1e-08, %v6858_v16  ;;  %v10262_v61 = vpop.f32.mrb[67].mxu0 }
0x3832   :  { %11672 = vrsqrt.f32 %v6859_v21 }
0x383c   :  { %v11673_v7 = vpop.eup %11672 }
0x383d   :  { %v6866_v31 = vrot.slane %v11673_v7, %v11863_v8 }
0x383f   :  { %v6867_v13 = vmul.f32 %v6866_v31, %v6787_v28  ;;  %v6868_v62 = vmul.f32 %v6866_v31, %v6788_v12  ;;  %v8350_v28 = vld [vmem:[%s13936_s14 + $0x11] ss:$0 sm:$0xff]  ;;  %v8354_v31 = vld [vmem:[%s13936_s14 + $0x12] ss:$0 sm:$0xff] }
0x3841   :  { %v13584_v50 = vadd.f32 %v6872_v26, %v6867_v13  ;;  %v13590_v14 = vadd.f32 %v6877_v56, %v6868_v62 }
0x3843   :  { %6912 = vrot.lane.b32.xlu0 %v13584_v50, %s11732_s27  ;;  %6883 = vrot.lane.b32.xlu1 %v13584_v50, %s13986_s5  ;;  %v6984_v56 = vmul.f32 %v8350_v28, %v13590_v14 }
0x3847   :  { %6885 = vrot.lane.b32.xlu0 %v13590_v14, %s13986_s5  ;;  %6914 = vrot.lane.b32.xlu1 %v13590_v14, %s11732_s27 }
0x384b   :  { %7085 = vperm.xlu0 %11648, %v8361_v33   ;;  %6943 = vrot.lane.b32.xlu1 %v13584_v50, %s11729_s30 }
0x384f   :  { %7032 = vrot.lane.b32.xlu0 %v13584_v50, %s13987_s4  ;;  %6945 = vrot.lane.b32.xlu1 %v13590_v14, %s11729_s30 }
0x3853   :  { %7063 = vrot.lane.b32.xlu0 %v13584_v50, %s13988_s13  ;;  %7001 = vrot.lane.b32.xlu1 %v13584_v50, %s11731_s9 }
0x3857   :  { %7359 = vperm.xlu0 %11648, %v8364_v35   ;;  %7003 = vrot.lane.b32.xlu1 %v13590_v14, %s11731_s9 }
0x385b   :  { %7451 = vperm.xlu0 %11648, %v8366_v37   ;;  %7034 = vrot.lane.b32.xlu1 %v13590_v14, %s13987_s4  ;;  %s8363_s4 = sld [smem:[#allocation2 + $0xb]] }
0x385f   :  { %7922 = vperm.xlu0 %11648, %v7918_v38   ;;  %7065 = vrot.lane.b32.xlu1 %v13590_v14, %s13988_s13  ;;  %v6983_v38 = vmul.f32 %v8350_v28, %v13584_v50  ;;  %v8362_v50 = vld [vmem:[%s13936_s14 + $0x14] ss:$0 sm:$0xff] }
0x3863   :  { %7364 = vperm.xlu1 %11649, %v8365_v22  }
0x3867   :  { %7456 = vperm.xlu1 %11649, %v8367_v39   ;;  %v8358_v39 = vld [vmem:[%s13936_s14 + $0x13] ss:$0 sm:$0xff] }
0x386b   :  { %7927 = vperm.xlu1 %11649, %v7919_v10  }
0x38b5   :  { %v6884_v6 = vpop.permute.xlu1 %6883  ;;  %v6913_v17 = vpop.permute.xlu0 %6912 }
0x38b6   :  { %v6925_v44 = vmul.f32 %v8342_v36, %v6913_v17  ;;  %v6896_v55 = vmul.f32 %v8338_v60, %v6884_v6  ;;  %v6995_v6 = vmul.f32 %v6988_v29, %v6983_v38 }
0x38b8   :  { %v6937_v7 = vmul.f32 %v6930_v20, %v6925_v44  ;;  %v6908_v58 = vmul.f32 %v6901_v54, %v6896_v55  ;;  %v6996_v20 = vmul.f32 %v6993_v19, %v6984_v56 }
0x38b9   :  { %v6915_v45 = vpop.permute.xlu1 %6914  ;;  %v6886_v57 = vpop.permute.xlu0 %6885 }
0x38ba   :  { %v6897_v24 = vmul.f32 %v8338_v60, %v6886_v57  ;;  %v6926_v5 = vmul.f32 %v8342_v36, %v6915_v45  ;;  %v6939_v37 = vadd.f32 %v6937_v7, %v6908_v58 }
0x38bc   :  { %v6909_v61 = vmul.f32 %v6906_v42, %v6897_v24  ;;  %v6938_v23 = vmul.f32 %v6935_v0, %v6926_v5 }
0x38bd   :  { %v6944_v32 = vpop.permute.xlu1 %6943 }
0x38be   :  { %v6956_v16 = vmul.f32 %v8346_v15, %v6944_v32  ;;  %v6940_v26 = vadd.f32 %v6938_v23, %v6909_v61 }
0x38c0   :  { %v6968_v13 = vmul.f32 %v6961_v48, %v6956_v16 }
0x38c1   :  { %v6946_v9 = vpop.permute.xlu1 %6945 }
0x38c2   :  { %v6957_v63 = vmul.f32 %v8346_v15, %v6946_v9  ;;  %v6970_v54 = vadd.f32 %v6968_v13, %v6939_v37 }
0x38c4   :  { %v6969_v12 = vmul.f32 %v6966_v30, %v6957_v63  ;;  %v6997_v57 = vadd.f32 %v6995_v6, %v6970_v54 }
0x38c5   :  { %v7002_v21 = vpop.permute.xlu1 %7001 }
0x38c6   :  { %v7014_v22 = vmul.f32 %v8354_v31, %v7002_v21  ;;  %v6971_v10 = vadd.f32 %v6969_v12, %v6940_v26 }
0x38c8   :  { %v7026_v14 = vmul.f32 %v7019_v2, %v7014_v22  ;;  %v6998_v45 = vadd.f32 %v6996_v20, %v6971_v10  ;;  %v7095_v2 = vstv %s8363_s4  ;;  %s8019_s4 = sshll.u32 %s11736_s8, 4  ;;  %s8020_s4 = int_to_ptr.vmem [resolvable:$true] %s8019_s4 }
0x38c9   :  { %v7004_v62 = vpop.permute.xlu1 %7003  ;;  %s11690_s13 = scalar_lea.vmem %s8020_s4, 256  ;;  %p11695_p6 = scmp.lt.s32.totalorder %s8020_s4, %s8020_s4 }
0x38ca   :  { %v7015_v33 = vmul.f32 %v8354_v31, %v7004_v62  ;;  %v7086_v35 = vpop.permute.xlu0 %7085  ;;  %v7028_v15 = vadd.f32 %v7026_v14, %v6997_v57  ;;  %v7551_v14 = vld [vmem:[%s13941_s19 + $0x10] sm:$0xff]  ;;  %p11691_p5 = scmp.ne.s32.totalorder %s8020_s4, %s11690_s13  ;;  %p11696_p7 = scmp.lt.s32.totalorder %s11690_s13, %s11690_s13 }
0x38cc   :  { %v7027_v48 = vmul.f32 %v7024_v1, %v7015_v33  ;;  %p11697_p8 = por %p11696_p7, %p11695_p6 }
0x38cd   :  { %v7035_v42 = vpop.permute.xlu1 %7034 }
0x38ce   :  { %v7046_v0 = vmul.f32 %v8358_v39, %v7035_v42  ;;  %v7033_v30 = vpop.permute.xlu0 %7032  ;;  %v7029_v9 = vadd.f32 %v7027_v48, %v6998_v45  ;;  %v8370_v48 = vld [vmem:[%s13979_s2 + $0x50] sm:$0xff]  ;;  %v7553_v45 = vld [vmem:[%s13941_s19 + $0x20] sm:$0xff]  ;;  %p11698_p9 = pnand %p11697_p8, %p11691_p5 }
0x38cf   :  { %v7045_v17 = vmul.f32 %v8358_v39, %v7033_v30  ;;  %v7550_v30 = vld [vmem:[%s13941_s19 + $0x8] sm:$0xff] }
0x38d0   :  { %v7058_v32 = vmul.f32 %v7055_v34, %v7046_v0  ;;  %v7549_v0 = vld [vmem:[%s13941_s19] sm:$0xff] }
0x38d1   :  { %v7057_v36 = vmul.f32 %v7050_v53, %v7045_v17  ;;  %v7066_v60 = vpop.permute.xlu1 %7065  ;;  %v11481_v6 = vpack.c.bf16 %v7550_v30, %v7549_v0  ;;  %v7552_v17 = vld [vmem:[%s13941_s19 + $0x18] sm:$0xff]  ;;  %v8388_v30 = vld [vmem:[%s13941_s19 + $0xf0] sm:$0xff] }
0x38d2   :  { %v7077_v24 = vmul.f32 %v8362_v50, %v7066_v60  ;;  %v7064_v5 = vpop.permute.xlu0 %7063  ;;  %v7060_v1 = vadd.f32 %v7058_v32, %v7029_v9  ;;  %v7554_v32 = vld [vmem:[%s13941_s19 + $0x28] sm:$0xff]  ;;  %v7556_v60 = vld [vmem:[%s13941_s19 + $0x38] sm:$0xff] }
0x38d3   :  { %v7076_v19 = vmul.f32 %v8362_v50, %v7064_v5  ;;  %v7059_v55 = vadd.f32 %v7057_v36, %v7028_v15  ;;  %v11485_v50 = vpack.c.bf16 %v7552_v17, %v7551_v14  ;;  %v11489_v57 = vpack.c.bf16 %v7554_v32, %v7553_v45  ;;  %v7555_v36 = vld [vmem:[%s13941_s19 + $0x30] sm:$0xff]  ;;  %v7558_v5 = vld [vmem:[%s13941_s19 + $0x48] sm:$0xff]  ;;  %v7564_v0 = vld [vmem:[%s13941_s19 + $0x78] sm:$0xff] }
0x38d4   :  { %v7089_v44 = vmul.f32 %v7086_v35, %v7077_v24  ;;  %v11493_v9 = vpack.c.bf16 %v7556_v60, %v7555_v36  ;;  %v7557_v24 = vld [vmem:[%s13941_s19 + $0x40] sm:$0xff]  ;;  %v8389_v14 = vld [vmem:[%s13941_s19 + $0xf8] sm:$0xff]  ;;  %v8391_v45 = vld [vmem:[%s13941_s19 + $0x108] sm:$0xff] }
0x38d5   :  { %v7088_v29 = vmul.f32 %v7081_v41, %v7076_v19  ;;  %v11497_v15 = vpack.c.bf16 %v7558_v5, %v7557_v24  ;;  %v7559_v19 = vld [vmem:[%s13941_s19 + $0x50] sm:$0xff]  ;;  %v11541_v17 = vpack.c.bf16 %v8389_v14, %v8388_v30  ;;  %v8406_v32 = vld [vmem:[%s13941_s19 + $0x180] sm:$0xff]  ;;  %v8407_v36 = vld [vmem:[%s13941_s19 + $0x188] sm:$0xff] }
0x38d6   :  { %v7091_v63 = vadd.f32 %v7089_v44, %v7060_v1  ;;  %v7560_v1 = vld [vmem:[%s13941_s19 + $0x58] sm:$0xff]  ;;  %v11577_v60 = vpack.c.bf16 %v8407_v36, %v8406_v32 }
0x38d7   :  { %v7090_v16 = vadd.f32 %v7088_v29, %v7059_v55  ;;  %v11501_v44 = vpack.c.bf16 %v7560_v1, %v7559_v19  ;;  %v7561_v55 = vld [vmem:[%s13941_s19 + $0x60] sm:$0xff]  ;;  %v7562_v29 = vld [vmem:[%s13941_s19 + $0x68] sm:$0xff]  ;;  %v8392_v19 = vld [vmem:[%s13941_s19 + $0x110] sm:$0xff] }
0x38d8   :  { %v7097_v21 = vmul.f32 %v7095_v2, %v7091_v63  ;;  %vm7094_vm2 = vcmp.ge.f32.partialorder %v7091_v63, 0.0  ;;  %v8393_v1 = vld [vmem:[%s13941_s19 + $0x118] sm:$0xff] }
0x38d9   :  { %vm7093_vm14 = vcmp.ge.f32.partialorder %v7090_v16, 0.0  ;;  %v7096_v61 = vmul.f32 %v7095_v2, %v7090_v16  ;;  %v11505_v2 = vpack.c.bf16 %v7562_v29, %v7561_v55  ;;  %v8409_v55 = vld [vmem:[%s13941_s19 + $0x198] sm:$0xff]  ;;  %v8394_v29 = vld [vmem:[%s13941_s19 + $0x120] sm:$0xff] }
0x38da   :  { %v7099_v53 = vsel %vm7094_vm2, %v7091_v63, %v7097_v21 }
0x38db   :  { %v7098_v34 = vsel %vm7093_vm14, %v7090_v16, %v7096_v61  ;;  %v7360_v61 = vpop.permute.xlu0 %7359 }
0x38dc   :  { %10295 = vmatprep.mubr.f32.mxu0 %v7098_v34 }
0x38dd   :  { %10296 = vmatmul.mubr.f32.vlgmr.msra.gmra.mrb[68].mxu0 %v7099_v53 }
0x38de   :  { %10339 = vmatpush3.msra.mxu0 %v13462_v59  ;;  %10340 = vmatprep.mubr.msk.f32.mxu0 %vm11718_vm0, %v11719_v4  ;;  %vm8011_vm0 = vcmask 261120  }
0x39b0   :  { %v10297_v23 = vpop.f32.mrb[68].mxu0 }
0x39b1   :  { %v7182_v7 = vsel %vm525_vm4, %v10297_v23, 0.0  ;;  %v7172_v41 = vpop.f32.mrb[69].mxu0 }
0x39b2   :  { %v7181_v58 = vsel %vm525_vm4, %v7172_v41, 0.0 }
0x39b3   :  { %v7183_v28 = vadd.f32 %v7182_v7, %v7181_v58 }
0x39b5   :  { %v7184_v12 = vrot.slane %v7183_v28, 4 }
0x39b7   :  { %v7185_v31 = vadd.f32 %v7184_v12, %v7183_v28  ;;  %v7452_v12 = vpop.permute.xlu0 %7451 }
0x39b9   :  { %v7186_v13 = vrot.slane %v7185_v31, 2 }
0x39bb   :  { %v7187_v62 = vadd.f32 %v7186_v13, %v7185_v31  ;;  %v8374_v13 = vld [vmem:[%s13941_s19 + $0x80] sm:$0xff] }
0x39bd   :  { %v7188_v26 = vrot.slane %v7187_v62, 1 }
0x39bf   :  { %v7189_v56 = vadd.f32 %v7188_v26, %v7187_v62  ;;  %v8375_v62 = vld [vmem:[%s13941_s19 + $0x88] sm:$0xff] }
0x39c1   :  { %v7190_v33 = vmul.f32 0.001953125, %v7189_v56 }
0x39c3   :  { %10301 = vmatmul.mubr.msk.f32.vlgmr.msra.gmra.mrb[58].mxu1 %vm525_vm4, %v7190_v33 }
0x39c4   :  { %11448 = vmatpush3.bf16.msra.mxu1 %v12963_v47 }
0x39c5   :  { %11450 = vmatprep.subr.bf16.mxu1 %v12975_v27 }
0x39c8   :  { %11452 = vmatpush3.bf16.msra.mxu1 %v12975_v27 }
0x39c9   :  { %11454 = vmatprep.subr.bf16.mxu1 %v12986_v52 }
0x39cc   :  { %11456 = vmatpush3.bf16.msra.mxu1 %v12986_v52 }
0x39cd   :  { %11458 = vmatprep.subr.bf16.mxu1 %v12996_v18 }
0x39d0   :  { %11460 = vmatpush3.bf16.msra.mxu1 %v12996_v18 }
0x39d1   :  { %11462 = vmatprep.subr.bf16.mxu1 %v13006_v3 }
0x39d4   :  { %11464 = vmatpush3.bf16.msra.mxu1 %v13006_v3 }
0x39d5   :  { %11466 = vmatprep.subr.bf16.mxu1 %v13016_v11 }
0x39d8   :  { %11468 = vmatpush3.bf16.msra.mxu1 %v13016_v11 }
0x39d9   :  { %11470 = vmatprep.subr.bf16.mxu1 %v13026_v43 }
0x39dc   :  { %11472 = vmatpush3.bf16.msra.mxu1 %v13026_v43 }
0x39dd   :  { %11474 = vmatprep.subr.bf16.mxu1 %v13037_v51 }
0x39e0   :  { %11476 = vmatpush3.bf16.msra.mxu1 %v13037_v51 }
0x39e1   :  { %11482 = vmatprep.subr.bf16.mxu1 %v11481_v6 }
0x3a96   :  { %v7260_v4 = vpop.f32.mrb[58].mxu1 }
0x3a97   :  { %v7267_v47 = vrot.slane %v7260_v4, %v11863_v8  ;;  %v10302_v27 = vpop.f32.mrb[59].mxu1  ;;  %v11513_v4 = vpack.c.bf16 %v8375_v62, %v8374_v13  ;;  %v8415_v13 = vld [vmem:[%s13941_s19 + $0x1c8] sm:$0xff] }
0x3a98   :  { %v8371_v27 = vld [vmem:[%s13979_s2 + $0x58] sm:$0xff] }
0x3a99   :  { %v13678_v52 = vsub.f32 %v7098_v34, %v7267_v47  ;;  %v13680_v18 = vsub.f32 %v7099_v53, %v7267_v47  ;;  %v7365_v34 = vpop.permute.xlu1 %7364  ;;  %v8377_v47 = vld [vmem:[%s13941_s19 + $0x98] sm:$0xff] }
0x3a9b   :  { %v7271_v3 = vmul.f32 %v13680_v18, %v13680_v18  ;;  %v7270_v11 = vmul.f32 %v13678_v52, %v13678_v52  ;;  %v7367_v23 = vmul.f32 %v7360_v61, %v13678_v52  ;;  %v7368_v7 = vmul.f32 %v7365_v34, %v13680_v18  ;;  %v8378_v18 = vld [vmem:[%s13941_s19 + $0xa0] sm:$0xff]  ;;  %v8396_v34 = vld [vmem:[%s13941_s19 + $0x130] sm:$0xff] }
0x3a9d   :  { %10335 = vmatprep.mubr.f32.mxu1 %v7270_v11  ;;  %v7457_v31 = vpop.permute.xlu1 %7456 }
0x3a9e   :  { %10336 = vmatmul.mubr.f32.vlgmr.msra.gmra.mrb[60].mxu1 %v7271_v3  ;;  %v8379_v3 = vld [vmem:[%s13941_s19 + $0xa8] sm:$0xff] }
0x3a9f   :  { %11484 = vmatpush3.bf16.msra.mxu1 %v11481_v6  ;;  %v11521_v11 = vpack.c.bf16 %v8379_v3, %v8378_v18  ;;  %v8403_v18 = vld [vmem:[%s13941_s19 + $0x168] sm:$0xff]  ;;  %v8418_v3 = vld [vmem:[%s13941_s19 + $0x1e0] sm:$0xff] }
0x3aa0   :  { %11486 = vmatprep.subr.bf16.mxu1 %v11485_v50 }
0x3aa1   :  { %v7928_v36 = vpop.permute.xlu1 %7927 }
0x3aa3   :  { %11488 = vmatpush3.bf16.msra.mxu1 %v11485_v50  ;;  %v8390_v50 = vld [vmem:[%s13941_s19 + $0x100] sm:$0xff] }
0x3aa4   :  { %11490 = vmatprep.subr.bf16.mxu1 %v11489_v57 }
0x3aa7   :  { %11492 = vmatpush3.bf16.msra.mxu1 %v11489_v57  ;;  %v11545_v57 = vpack.c.bf16 %v8391_v45, %v8390_v50 }
0x3aa8   :  { %11494 = vmatprep.subr.bf16.mxu1 %v11493_v9 }
0x3aab   :  { %11496 = vmatpush3.bf16.msra.mxu1 %v11493_v9 }
0x3aac   :  { %11498 = vmatprep.subr.bf16.mxu1 %v11497_v15 }
0x3aaf   :  { %11500 = vmatpush3.bf16.msra.mxu1 %v11497_v15 }
0x3ab0   :  { %11502 = vmatprep.subr.bf16.mxu1 %v11501_v44 }
0x3ab3   :  { %11504 = vmatpush3.bf16.msra.mxu1 %v11501_v44  ;;  %v8408_v44 = vld [vmem:[%s13941_s19 + $0x190] sm:$0xff] }
0x3ab4   :  { %11506 = vmatprep.subr.bf16.mxu1 %v11505_v2 }
0x3ab7   :  { %11508 = vmatpush3.bf16.msra.mxu1 %v11505_v2  ;;  %v11549_v2 = vpack.c.bf16 %v8393_v1, %v8392_v19 }
0x3b71   :  { %v10337_v43 = vpop.f32.mrb[60].mxu1 }
0x3b72   :  { %v7348_v59 = vsel %vm525_vm4, %v10337_v43, 0.0  ;;  %v7338_v51 = vpop.f32.mrb[61].mxu1  ;;  %v8380_v43 = vld [vmem:[%s13941_s19 + $0xb0] sm:$0xff] }
0x3b73   :  { %v7347_v35 = vsel %vm525_vm4, %v7338_v51, 0.0 }
0x3b74   :  { %v7349_v37 = vadd.f32 %v7348_v59, %v7347_v35  ;;  %v8381_v59 = vld [vmem:[%s13941_s19 + $0xb8] sm:$0xff]  ;;  %v8382_v35 = vld [vmem:[%s13941_s19 + $0xc0] sm:$0xff] }
0x3b75   :  { %v11525_v51 = vpack.c.bf16 %v8381_v59, %v8380_v43 }
0x3b76   :  { %v7350_v38 = vrot.slane %v7349_v37, 4 }
0x3b78   :  { %v7351_v22 = vadd.f32 %v7350_v38, %v7349_v37  ;;  %v8383_v37 = vld [vmem:[%s13941_s19 + $0xc8] sm:$0xff] }
0x3b79   :  { %v11529_v38 = vpack.c.bf16 %v8383_v37, %v8382_v35  ;;  %v8405_v35 = vld [vmem:[%s13941_s19 + $0x178] sm:$0xff]  ;;  %v8420_v37 = vld [vmem:[%s13941_s19 + $0x1f0] sm:$0xff] }
0x3b7a   :  { %v7352_v39 = vrot.slane %v7351_v22, 2 }
0x3b7c   :  { %v7353_v10 = vadd.f32 %v7352_v39, %v7351_v22  ;;  %v8384_v22 = vld [vmem:[%s13941_s19 + $0xd0] sm:$0xff]  ;;  %v8385_v39 = vld [vmem:[%s13941_s19 + $0xd8] sm:$0xff] }
0x3b7e   :  { %v7354_v54 = vrot.slane %v7353_v10, 1 }
0x3b80   :  { %v7355_v42 = vadd.f32 %v7354_v54, %v7353_v10  ;;  %v11533_v10 = vpack.c.bf16 %v8385_v39, %v8384_v22  ;;  %v8386_v54 = vld [vmem:[%s13941_s19 + $0xe0] sm:$0xff] }
0x3b82   :  { %v7356_v20 = vmul.f32 0.001953125, %v7355_v42  ;;  %v8387_v42 = vld [vmem:[%s13941_s19 + $0xe8] sm:$0xff] }
0x3b84   :  { %10341 = vmatmul.mubr.msk.f32.vlgmr.msra.gmra.mrb[70].mxu0 %vm525_vm4, %v7356_v20  ;;  %v11537_v20 = vpack.c.bf16 %v8387_v42, %v8386_v54 }
0x3b85   :  { %10347 = vmatprep.mubr.msk.f32.mxu0 %vm84_vm1, %v8370_v48  ;;  %v7563_v48 = vld [vmem:[%s13941_s19 + $0x70] sm:$0xff] }
0x3b86   :  { %v11509_v6 = vpack.c.bf16 %v7564_v0, %v7563_v48 }
0x3b88   :  { %11510 = vmatprep.subr.bf16.mxu1 %v11509_v6 }
0x3b89   :  { %11512 = vmatpush3.bf16.msra.mxu1 %v11509_v6 }
0x3b8a   :  { %11546 = vmatprep.subr.bf16.mxu1 %v11545_v57 }
0x3c57   :  { %v7438_v63 = vpop.f32.mrb[70].mxu0 }
0x3c58   :  { %v7439_v16 = vadd.f32 1e-08, %v7438_v63  ;;  %v10342_v21 = vpop.f32.mrb[71].mxu0  ;;  %v11581_v63 = vpack.c.bf16 %v8409_v55, %v8408_v44 }
0x3c59   :  { %v8410_v21 = vld [vmem:[%s13941_s19 + $0x1a0] sm:$0xff] }
0x3c5a   :  { %11674 = vrsqrt.f32 %v7439_v16  ;;  %v8395_v16 = vld [vmem:[%s13941_s19 + $0x128] sm:$0xff] }
0x3c64   :  { %v11675_v53 = vpop.eup %11674 }
0x3c65   :  { %v7446_v41 = vrot.slane %v11675_v53, %v11863_v8  ;;  %v8376_v8 = vld [vmem:[%s13941_s19 + $0x90] sm:$0xff]  ;;  %v8397_v53 = vld [vmem:[%s13941_s19 + $0x138] sm:$0xff] }
0x3c66   :  { %v11517_v52 = vpack.c.bf16 %v8377_v47, %v8376_v8  ;;  %v8417_v8 = vld [vmem:[%s13941_s19 + $0x1d8] sm:$0xff] }
0x3c67   :  { %v7447_v58 = vmul.f32 %v7446_v41, %v7367_v23  ;;  %v7448_v28 = vmul.f32 %v7446_v41, %v7368_v7  ;;  %v8412_v23 = vld [vmem:[%s13941_s19 + $0x1b0] sm:$0xff]  ;;  %v8413_v7 = vld [vmem:[%s13941_s19 + $0x1b8] sm:$0xff]  ;;  %v11557_v41 = vpack.c.bf16 %v8397_v53, %v8396_v34 }
0x3c69   :  { %v7459_v26 = vadd.f32 %v7452_v12, %v7447_v58  ;;  %v7460_v56 = vadd.f32 %v7457_v31, %v7448_v28  ;;  %v11589_v58 = vpack.c.bf16 %v8413_v7, %v8412_v23  ;;  %v8398_v28 = vld [vmem:[%s13941_s19 + $0x140] sm:$0xff]  ;;  %v8399_v12 = vld [vmem:[%s13941_s19 + $0x148] sm:$0xff] }
0x3c6a   :  { %v8414_v31 = vld [vmem:[%s13941_s19 + $0x1c0] sm:$0xff]  ;;  %v11561_v62 = vpack.c.bf16 %v8399_v12, %v8398_v28 }
0x3c6b   :  { %v11477_v33 = vpack.c.bf16 %v7460_v56, %v7459_v26  ;;  %v11593_v26 = vpack.c.bf16 %v8415_v13, %v8414_v31  ;;  %v8400_v56 = vld [vmem:[%s13941_s19 + $0x150] sm:$0xff] }
0x3c6d   :  { %11478 = vmatprep.subr.bf16.mxu0 %v11477_v33 }
0x3c6e   :  { %11480 = vmatpush3.bf16.msra.mxu0 %v11477_v33  ;;  %v8401_v33 = vld [vmem:[%s13941_s19 + $0x158] sm:$0xff] }
0x3c6f   :  { %11514 = vmatprep.subr.bf16.mxu0 %v11513_v4  ;;  %v11565_v47 = vpack.c.bf16 %v8401_v33, %v8400_v56 }
0x3c71   :  { %10348 = vmatmul.mubr.msk.f32.vlgmr.msra.gmra.mrb[72].mxu0 %vm84_vm1, %v8371_v27 }
0x3c72   :  { %11516 = vmatpush3.bf16.msra.mxu0 %v11513_v4  ;;  %v8416_v4 = vld [vmem:[%s13941_s19 + $0x1d0] sm:$0xff] }
0x3c73   :  { %11518 = vmatprep.subr.bf16.mxu0 %v11517_v52  ;;  %v11597_v27 = vpack.c.bf16 %v8417_v8, %v8416_v4 }
0x3c76   :  { %11520 = vmatpush3.bf16.msra.mxu0 %v11517_v52  ;;  %v8402_v52 = vld [vmem:[%s13941_s19 + $0x160] sm:$0xff] }
0x3c77   :  { %11522 = vmatprep.subr.bf16.mxu0 %v11521_v11  ;;  %v11569_v43 = vpack.c.bf16 %v8403_v18, %v8402_v52 }
0x3c7a   :  { %11524 = vmatpush3.bf16.msra.mxu0 %v11521_v11  ;;  %v8419_v11 = vld [vmem:[%s13941_s19 + $0x1e8] sm:$0xff] }
0x3c7b   :  { %11526 = vmatprep.subr.bf16.mxu0 %v11525_v51  ;;  %v11601_v59 = vpack.c.bf16 %v8419_v11, %v8418_v3 }
0x3c7e   :  { %11528 = vmatpush3.bf16.msra.mxu0 %v11525_v51  ;;  %v8404_v51 = vld [vmem:[%s13941_s19 + $0x170] sm:$0xff] }
0x3c7f   :  { %11530 = vmatprep.subr.bf16.mxu0 %v11529_v38  ;;  %v11573_v22 = vpack.c.bf16 %v8405_v35, %v8404_v51 }
0x3c82   :  { %11532 = vmatpush3.bf16.msra.mxu0 %v11529_v38  ;;  %v8421_v38 = vld [vmem:[%s13941_s19 + $0x1f8] sm:$0xff] }
0x3c83   :  { %11534 = vmatprep.subr.bf16.mxu0 %v11533_v10  ;;  %v11605_v39 = vpack.c.bf16 %v8421_v38, %v8420_v37 }
0x3c86   :  { %11536 = vmatpush3.bf16.msra.mxu0 %v11533_v10  ;;  %v7916_v10 = vld [vmem:[%s13939_s17] sm:$0xff] }
0x3c87   :  { %11538 = vmatprep.subr.bf16.mxu0 %v11537_v20 }
0x3c8a   :  { %11540 = vmatpush3.bf16.msra.mxu0 %v11537_v20 }
0x3c8b   :  { %11542 = vmatprep.subr.bf16.mxu0 %v11541_v17 }
0x3c8e   :  { %11544 = vmatpush3.bf16.msra.mxu0 %v11541_v17 }
0x3c8f   :  { %11578 = vmatprep.subr.bf16.mxu0 %v11577_v60 }
0x3d44   :  { %v10349_v9 = vpop.f32.mrb[72].mxu0 }
0x3d45   :  { %v7546_v24 = vadd.f32 %v10349_v9, %v13520_v25  ;;  %v7536_v5 = vpop.f32.mrb[73].mxu0  ;;  %v7923_v9 = vpop.permute.xlu0 %7922 }
0x3d46   :  { %v7545_v15 = vadd.f32 %v7536_v5, %v13523_v40 }
0x3d47   :  { %v13824_v40 = vadd.f32 %v7546_v24, %v13259_v46  ;;  %v8411_v46 = vld [vmem:[%s13941_s19 + $0x1a8] sm:$0xff] }
0x3d48   :  { %v7547_v25 = vadd.f32 %v7545_v15, %v13266_v49  ;;  %v11553_v49 = vpack.c.bf16 %v8395_v16, %v8394_v29  ;;  %v11585_v61 = vpack.c.bf16 %v8411_v46, %v8410_v21 }
0x3d4a   :  { %10382 = vmatprep.mubr.f32.mxu1 %v7547_v25  ;;  %10417 = vmatprep.mubr.f32.mxu0 %v7547_v25 }
0x3d4b   :  { %10383 = vmatmul.mubr.f32.vlgmr.msra.gmra.mrb[62].mxu1 %v13824_v40  ;;  %10418 = vmatmul.mubr.f32.vlgmr.msra.gmra.mrb[74].mxu0 %v13824_v40 }
0x3d4c   :  { %11548 = vmatpush3.bf16.msra.mxu1 %v11545_v57  ;;  %11580 = vmatpush3.bf16.msra.mxu0 %v11577_v60  ;;  %v7917_v57 = vld [vmem:[%s13939_s17 + $0x8] sm:$0xff] }
0x3d4d   :  { %10452 = vmatprep.mubr.f32.mxu1 %v7547_v25  ;;  %10487 = vmatprep.mubr.f32.mxu0 %v7547_v25 }
0x3d4e   :  { %11550 = vmatprep.subr.bf16.mxu1 %v11549_v2  ;;  %11582 = vmatprep.subr.bf16.mxu0 %v11581_v63 }
0x3d50   :  { %11552 = vmatpush3.bf16.msra.mxu1 %v11549_v2  ;;  %11584 = vmatpush3.bf16.msra.mxu0 %v11581_v63 }
0x3d51   :  { %11554 = vmatprep.subr.bf16.mxu1 %v11553_v49  ;;  %11586 = vmatprep.subr.bf16.mxu0 %v11585_v61 }
0x3d54   :  { %11556 = vmatpush3.bf16.msra.mxu1 %v11553_v49  ;;  %11588 = vmatpush3.bf16.msra.mxu0 %v11585_v61 }
0x3d55   :  { %11558 = vmatprep.subr.bf16.mxu1 %v11557_v41  ;;  %11590 = vmatprep.subr.bf16.mxu0 %v11589_v58 }
0x3d58   :  { %11560 = vmatpush3.bf16.msra.mxu1 %v11557_v41  ;;  %11592 = vmatpush3.bf16.msra.mxu0 %v11589_v58 }
0x3d59   :  { %11562 = vmatprep.subr.bf16.mxu1 %v11561_v62  ;;  %11594 = vmatprep.subr.bf16.mxu0 %v11593_v26 }
0x3d5c   :  { %11564 = vmatpush3.bf16.msra.mxu1 %v11561_v62  ;;  %11596 = vmatpush3.bf16.msra.mxu0 %v11593_v26 }
0x3d5d   :  { %11566 = vmatprep.subr.bf16.mxu1 %v11565_v47  ;;  %11598 = vmatprep.subr.bf16.mxu0 %v11597_v27 }
0x3d60   :  { %11568 = vmatpush3.bf16.msra.mxu1 %v11565_v47  ;;  %11600 = vmatpush3.bf16.msra.mxu0 %v11597_v27 }
0x3d61   :  { %11570 = vmatprep.subr.bf16.mxu1 %v11569_v43  ;;  %11602 = vmatprep.subr.bf16.mxu0 %v11601_v59 }
0x3d64   :  { %11572 = vmatpush3.bf16.msra.mxu1 %v11569_v43  ;;  %11604 = vmatpush3.bf16.msra.mxu0 %v11601_v59 }
0x3d65   :  { %11574 = vmatprep.subr.bf16.mxu1 %v11573_v22  ;;  %11606 = vmatprep.subr.bf16.mxu0 %v11605_v39 }
0x3d68   :  { %11576 = vmatpush3.bf16.msra.mxu1 %v11573_v22  ;;  %11608 = vmatpush3.bf16.msra.mxu0 %v11605_v39 }
0x3d6b   :  { %10453 = vmatmul.mubr.f32.vlgmr.msra.gmra.mrb[64].mxu1 %v13824_v40  ;;  %10488 = vmatmul.mubr.f32.vlgmr.msra.gmra.mrb[76].mxu0 %v13824_v40 }
0x3d6c   :  { %10506 = vmatprep.mubr.msk.f32.mxu1 %vm4090_vm15, %v7916_v10 }
0x3e1e   :  { %v10384_v54 = vpop.f32.mrb[62].mxu1  ;;  %v10419_v42 = vpop.f32.mrb[74].mxu0 }
0x3e1f   :  { %v7631_v20 = vpop.f32.mrb[63].mxu1  ;;  %v7723_v48 = vpop.f32.mrb[75].mxu0 }
0x3e20   :  { %v11609_v0 = vpack.c.bf16 %v10384_v54, %v7631_v20  ;;  %v11613_v30 = vpack.c.bf16 %v10419_v42, %v7723_v48 }
0x3e22   :  { %11610 = vmatprep.subr.bf16.mxu1 %v11609_v0 }
0x3e23   :  { %11612 = vmatpush3.bf16.msra.mxu1 %v11609_v0 }
0x3e24   :  { %11614 = vmatprep.subr.bf16.mxu1 %v11613_v30 }
0x3e27   :  { %11616 = vmatpush3.bf16.msra.mxu1 %v11613_v30 }
0x3e3e   :  { %v10454_v6 = vpop.f32.mrb[64].mxu1  ;;  %v10489_v14 = vpop.f32.mrb[76].mxu0 }
0x3e3f   :  { %v7815_v17 = vpop.f32.mrb[65].mxu1  ;;  %v7907_v50 = vpop.f32.mrb[77].mxu0 }
0x3e40   :  { %v11617_v45 = vpack.c.bf16 %v10454_v6, %v7815_v17  ;;  %v11621_v32 = vpack.c.bf16 %v10489_v14, %v7907_v50 }
0x3e42   :  { %11618 = vmatprep.subr.bf16.mxu1 %v11617_v45 }
0x3e43   :  { %11620 = vmatpush3.bf16.msra.mxu1 %v11617_v45 }
0x3e44   :  { %11622 = vmatprep.subr.bf16.mxu1 %v11621_v32 }
0x3e47   :  { %11624 = vmatpush3.bf16.msra.mxu1 %v11621_v32 }
0x3e4a   :  { %10507 = vmatmul.mubr.msk.f32.vlgmr.msra.gmra.mrb[66].mxu1 %vm4090_vm15, %v7917_v57 }
0x3f1d   :  { %v10508_v60 = vpop.f32.mrb[66].mxu1 }
0x3f1e   :  { %v8008_v24 = vadd.f32 %v10508_v60, %v7928_v36  ;;  %v8002_v5 = vpop.f32.mrb[67].mxu1 }
0x3f1f   :  { %v8003_v15 = vadd.f32 %v8002_v5, %v7923_v9 }
0x3f20   :  { %8013 = vst.msk [vmem:[#allocation5 + $0x8] sm:$0xff] %vm8011_vm0, %v8008_v24 }
0x3f21   :  { %8012 = vst.msk [vmem:[#allocation5] sm:$0xff] %vm8011_vm0, %v8003_v15 }
0x3f22   :  { %11701 = shalt.err (!%p11698_p9)
}
0x3f23   :  { %s11702_s14 = scalar_lea.hbm %s13943_s21, 256 }
0x3f24   :  { %p11703_p10 = scmp.ne.s32.totalorder %s13943_s21, %s11702_s14  ;;  %p11706_p11 = scmp.lt.u32.totalorder %s11702_s14, %s13943_s21 }
0x3f26   :  { %p11708_p12 = pnand %p11706_p11, %p11703_p10 }
0x3f28   :  { %11711 = shalt.err (!%p11708_p12)
}
0x3f29   :  { %s11737_s20 = smov 128   ;;  %s11738_s28 = smov 8  }
0x3f2a   :  { %8025 = dma.vmem_to_hbm [thread:$0]  %s8020_s4, 256, %s13943_s21, [#allocation3], %s11737_s20, %s11737_s20, %s11738_s28  }
0x3f2b   :  { %11714 = dma.done.wait [#allocation3], 256  }
0x3f2c   :  { %11715 = vsyncadd [#allocation3], 4294967040 }
0x3f2d   :  { %8029 = vsyncpa [#allocation3], 1 }
0x3f2e   :  { %8030 = vsyncpa [#allocation4], 1 }

</bundles_post_ra>
